<compile_context>
chip_gen: v7x
topology: tpu7x:2x2x1
jax: 0.10.0
libtpu: 0.0.40
codegen_flags: <defaults>
</compile_context>

<pallas_src>
import math
import numpy as np
import jax
import jax.numpy as jnp
from jax import lax
from jax.experimental import pallas as pl
from jax.experimental.pallas import tpu as pltpu

# ----------------------------- configuration --------------------------------
INPUT_DIM   = 16          # flattened 4x4 "image"  (reference default is 784 = 28x28)
HIDDEN_DIM  = 64
LATENT_DIM  = 2
COORD       = 3
Z_DIM       = LATENT_DIM + COORD      # 5  (encoder latent size = latent_dim + coord)
SEQ_LEN     = 8
BATCH       = 2
THETA_PRIOR = 1.0
DX_PRIOR    = (1.0, 1.0)              # reference default dx_prior=[1.0], broadcast over (x, y)
ODE_STEP    = 0.1
LN_EPS      = 1e-5

N_PTS = SEQ_LEN * BATCH * INPUT_DIM   # 256 decoder points (lane-dense: 2 x 128)


def _dot(a, b):
    return jnp.dot(a, b, preferred_element_type=jnp.float32)


_VMEM = pl.BlockSpec(memory_space=pltpu.MemorySpace.VMEM)


# ----------------------------- parameters -----------------------------------
def _uniform(key, shape, fan_in):
    bound = 1.0 / math.sqrt(fan_in)
    return jax.random.uniform(key, shape, jnp.float32, -bound, bound)


def init_params(key):
    ks = iter(jax.random.split(key, 32))
    p = {}
    in1 = INPUT_DIM + 1
    H = HIDDEN_DIM
    # --- RNNEncoder: nn.GRU(input_dim+1, hidden)  (gate order r, z, n) ---
    p["gru_w_ih"] = _uniform(next(ks), (3 * H, in1), H)
    p["gru_w_hh"] = _uniform(next(ks), (3 * H, H), H)
    p["gru_b_ih"] = _uniform(next(ks), (3 * H,), H)
    p["gru_b_hh"] = _uniform(next(ks), (3 * H,), H)
    # --- RNNEncoder MLP head: Linear(H,H)-tanh-Linear(H,H)-tanh-Linear(H, 2*Z_DIM) ---
    p["enc_w1"] = _uniform(next(ks), (H, H), H); p["enc_b1"] = _uniform(next(ks), (H,), H)
    p["enc_w2"] = _uniform(next(ks), (H, H), H); p["enc_b2"] = _uniform(next(ks), (H,), H)
    p["enc_w3"] = _uniform(next(ks), (2 * Z_DIM, H), H); p["enc_b3"] = _uniform(next(ks), (2 * Z_DIM,), H)
    # --- NNODEF(Z_DIM, H, time_invariant=True) ---
    p["ode_w1"] = _uniform(next(ks), (H, Z_DIM), Z_DIM); p["ode_b1"] = _uniform(next(ks), (H,), Z_DIM)
    p["ode_g1"] = jnp.ones((H,), jnp.float32);           p["ode_be1"] = jnp.zeros((H,), jnp.float32)
    p["ode_w2"] = _uniform(next(ks), (H, H), H);         p["ode_b2"] = _uniform(next(ks), (H,), H)
    p["ode_g2"] = jnp.ones((H,), jnp.float32);           p["ode_be2"] = jnp.zeros((H,), jnp.float32)
    p["ode_w3"] = _uniform(next(ks), (Z_DIM, H), H);     p["ode_b3"] = _uniform(next(ks), (Z_DIM,), H)
    # --- CoordBoost(latent_dim, hidden, n_out=1) ---
    p["cb_wc"] = _uniform(next(ks), (H, 2), 2);          p["cb_bc"] = _uniform(next(ks), (H,), 2)
    # fc_latent exists in the reference module but is dead code (hasattr(self,'latent_linear')
    # is always False), initialized here for parity and never used.
    p["cb_wl"] = _uniform(next(ks), (H, LATENT_DIM), LATENT_DIM)
    p["cb_w1"] = _uniform(next(ks), (H, H), H);          p["cb_b1"] = _uniform(next(ks), (H,), H)
    p["cb_w2"] = _uniform(next(ks), (H, H), H);          p["cb_b2"] = _uniform(next(ks), (H,), H)
    p["cb_w3"] = _uniform(next(ks), (1, H), H);          p["cb_b3"] = _uniform(next(ks), (1,), H)
    return p


# ----------------------------- encoder kernel -------------------------------
def _encoder_kernel(xt_ref, wih_ref, whh_ref, gru_b_ref,
                    head_w12_ref, head_b12_ref, head_w3_ref, head_b3_ref,
                    z0_ref):
    H = HIDDEN_DIM
    b_ih = gru_b_ref[0:1, :]                     # (1, 3H)
    b_hh = gru_b_ref[1:2, :]                     # (1, 3H)

    # Hoisted input projection for ALL time steps: one (S*B, 17) @ (17, 192) matmul.
    x_proj = _dot(xt_ref[...], wih_ref[...]) + b_ih          # (S*B, 3H)
    w_hh = whh_ref[...]                                       # (H, 3H)

    # GRU recurrence over the (already flipped) sequence, h0 = 0, fully unrolled.
    h = jnp.zeros((BATCH, H), jnp.float32)
    for i in range(SEQ_LEN):
        gi = x_proj[i * BATCH:(i + 1) * BATCH, :]             # (B, 3H)
        gh = _dot(h, w_hh) + b_hh                             # (B, 3H) fused gate matmul
        r  = jax.nn.sigmoid(gi[:, 0:H]       + gh[:, 0:H])
        zg = jax.nn.sigmoid(gi[:, H:2 * H]   + gh[:, H:2 * H])
        n  = jnp.tanh(      gi[:, 2 * H:3*H] + r * gh[:, 2 * H:3*H])
        h = (1.0 - zg) * n + zg * h

    # 3-layer MLP head.
    h1 = jnp.tanh(_dot(h,  head_w12_ref[0]) + head_b12_ref[0:1, :])
    h2 = jnp.tanh(_dot(h1, head_w12_ref[1]) + head_b12_ref[1:2, :])
    z0_ref[...] = _dot(h2, head_w3_ref[...]) + head_b3_ref[...]      # (B, 2*Z_DIM)


def encoder_forward(params, x, t):
    # t[1:] = t[:-1] - t[1:]; t[0] = 0   (done functionally here)
    td = jnp.concatenate([jnp.zeros_like(t[:1]), t[:-1] - t[1:]], axis=0)
    xt = jnp.concatenate([x, td], axis=-1)                    # (S, B, input_dim+1)
    xt_rev = jnp.flip(xt, axis=0)                             # xt.flip((0,))
    xt_flat = xt_rev.reshape(SEQ_LEN * BATCH, INPUT_DIM + 1)  # row q = step*B + b

    # Pack parameters: 8 kernel refs instead of 19.
    wih = params["gru_w_ih"].T                                # (in1, 3H), cols [r|z|n]
    whh = params["gru_w_hh"].T                                # (H,   3H)
    gru_b = jnp.stack([params["gru_b_ih"], params["gru_b_hh"]], axis=0)      # (2, 3H)
    head_w12 = jnp.stack([params["enc_w1"].T, params["enc_w2"].T], axis=0)   # (2, H, H)
    head_b12 = jnp.stack([params["enc_b1"], params["enc_b2"]], axis=0)       # (2, H)
    head_w3 = params["enc_w3"].T                              # (H, 2*Z_DIM)
    head_b3 = params["enc_b3"][None, :]                       # (1, 2*Z_DIM)

    args = (xt_flat, wih, whh, gru_b, head_w12, head_b12, head_w3, head_b3)
    z0 = pl.pallas_call(
        _encoder_kernel,
        out_shape=jax.ShapeDtypeStruct((BATCH, 2 * Z_DIM), jnp.float32),
        in_specs=[_VMEM] * len(args),
        out_specs=_VMEM,
    )(*args)
    return z0[:, :Z_DIM], z0[:, Z_DIM:]


# ----------------------------- ODE (RK4) kernel ------------------------------
def _make_ode_grid(t_np):
    """torchdiffeq FixedGridODESolver(step_size=0.1) grid + linear-interp bookkeeping.

    Host-side numpy; all results become trace-time constants baked into the kernel.
    """
    t_np = np.asarray(t_np, dtype=np.float32)
    start, end = np.float32(t_np[0]), np.float32(t_np[-1])
    niters = int(np.ceil((end - start) / np.float32(ODE_STEP) + 1.0))
    grid_t = (np.arange(niters, dtype=np.float32) * np.float32(ODE_STEP) + start).astype(np.float32)
    grid_t[-1] = end
    dts = (grid_t[1:] - grid_t[:-1]).astype(np.float32)
    n_steps = dts.shape[0]
    # NOTE: a final dt of 0 (end an exact multiple of the step) is a numerical no-op;
    # the denom==0 guard below keeps the interpolation well-defined.
    seg = np.zeros(len(t_np), dtype=np.int64)
    wgt = np.zeros(len(t_np), dtype=np.float32)
    for j in range(1, len(t_np)):
        i = int(np.searchsorted(grid_t[1:], t_np[j]))
        i = min(i, n_steps - 1)
        seg[j] = i
        denom = float(grid_t[i + 1] - grid_t[i])
        wgt[j] = float((t_np[j] - grid_t[i]) / denom) if denom != 0.0 else 1.0
    return [float(d) for d in dts], [int(s) for s in seg], [float(w) for w in wgt]


def _make_ode_kernel(dts, seg, wgt, n_out):
    """RK4 (torchdiffeq 'rk4' 3/8-rule) with dts / interpolation baked as constants."""

    def _ode_kernel(y0_ref, w1_ref, w2_ref, w3_ref, nb_ref, b3_ref, zs_ref):
        bp = nb_ref[...]                                       # (6, H)
        b1, g1, be1 = bp[0:1], bp[1:2], bp[2:3]
        b2, g2, be2 = bp[3:4], bp[4:5], bp[5:6]
        w1, w2, w3, b3 = w1_ref[...], w2_ref[...], w3_ref[...], b3_ref[...]

        def layernorm(h, g, b):
            mu = jnp.mean(h, axis=-1, keepdims=True)
            var = jnp.mean((h - mu) ** 2, axis=-1, keepdims=True)
            return (h - mu) * lax.rsqrt(var + LN_EPS) * g + b

        def f(y):  # NNODEF, time_invariant=True
            h = jnp.tanh(layernorm(_dot(y, w1) + b1, g1, be1))
            h = jnp.tanh(layernorm(_dot(h, w2) + b2, g2, be2))
            return _dot(h, w3) + b3

        y = y0_ref[...]                                        # (B, Z_DIM)
        ys = [y]
        for dt in dts:                                         # fully unrolled, dt = constant
            k1 = f(y)
            k2 = f(y + k1 * (dt / 3.0))
            k3 = f(y + (k2 - k1 * (1.0 / 3.0)) * dt)
            k4 = f(y + (k1 - k2 + k3) * dt)
            y = y + (k1 + 3.0 * (k2 + k3) + k4) * (dt * 0.125)
            ys.append(y)

        # Interpolate the grid solution to the requested output times in-kernel
        # (seg / wgt are trace-time constants), write zs directly.
        zs_ref[0] = ys[0]
        for j in range(1, n_out):
            s, w = seg[j], wgt[j]
            zs_ref[j] = ys[s] + w * (ys[s + 1] - ys[s])

    return _ode_kernel


def ode_forward(params, z0, dts, seg, wgt):
    w1 = params["ode_w1"].T                                    # (Z, H)
    w2 = params["ode_w2"].T                                    # (H, H)
    w3 = params["ode_w3"].T                                    # (H, Z)
    nb = jnp.stack([params["ode_b1"], params["ode_g1"], params["ode_be1"],
                    params["ode_b2"], params["ode_g2"], params["ode_be2"]], axis=0)  # (6, H)
    b3 = params["ode_b3"][None, :]                             # (1, Z)
    n_out = len(seg)

    args = (z0, w1, w2, w3, nb, b3)
    zs = pl.pallas_call(
        _make_ode_kernel(dts, seg, wgt, n_out),
        out_shape=jax.ShapeDtypeStruct((n_out, BATCH, Z_DIM), jnp.float32),
        in_specs=[_VMEM] * len(args),
        out_specs=_VMEM,
    )(*args)
    return zs


# ----------------------------- decoder kernel --------------------------------
def imcoordgrid(input_dim):
    # TODO(synk): imcoordgrid is not defined in the reference source file; this is the
    # atomai-style [-1, 1] image coordinate grid of shape (input_dim, 2).
    side = int(round(math.sqrt(input_dim)))
    xx = np.linspace(-1.0, 1.0, side)
    yy = np.linspace(1.0, -1.0, side)
    x0, x1 = np.meshgrid(xx, yy, indexing="ij")
    return np.stack([x0.T.flatten(), x1.T.flatten()], axis=1).astype(np.float32)


def _make_decoder_geometry():
    """Constant (S*B + 2, N_PTS) geometry slab:
       rows 0..S*B-1 : one-hot frame-expansion matrix E[q, p] = (p // INPUT_DIM == q)
       row  S*B      : tiled grid x-coordinate per point
       row  S*B+1    : tiled grid y-coordinate per point
    """
    cgrid = imcoordgrid(INPUT_DIM)                             # (INPUT_DIM, 2)
    nq = SEQ_LEN * BATCH
    gx = np.tile(cgrid[:, 0], nq)                              # (N_PTS,)
    gy = np.tile(cgrid[:, 1], nq)
    q = np.arange(N_PTS) // INPUT_DIM
    expand = (q[None, :] == np.arange(nq)[:, None]).astype(np.float32)   # (nq, N_PTS)
    geom = np.concatenate([expand, gx[None, :], gy[None, :]], axis=0)    # (nq+2, N_PTS)
    return jnp.asarray(geom)


def _decoder_kernel(zst_ref, geom_ref, wc_ref, w12_ref, w3_ref, bias_ref, out_ref):
    nq = SEQ_LEN * BATCH
    zt = zst_ref[...]                                          # (Z_DIM, S*B)
    theta = zt[0:1, :]                                         # (1, S*B)
    cosr, sinr = jnp.cos(theta), jnp.sin(theta)
    dx0 = zt[1:2, :] * DX_PRIOR[0]                             # calc_dx: zs[:,:,1:3] * dx_prior
    dx1 = zt[2:3, :] * DX_PRIOR[1]
    scal = jnp.concatenate([cosr, sinr, dx0, dx1], axis=0)     # (4, S*B)

    expand = geom_ref[0:nq, :]                                 # (S*B, N_PTS) one-hot
    gx = geom_ref[nq:nq + 1, :]                                # (1, N_PTS)
    gy = geom_ref[nq + 1:nq + 2, :]

    se = _dot(scal, expand)                                    # (4, N_PTS): per-point cos/sin/dx
    # grid @ [[cos,-sin],[sin,cos]] + dx   (transposed point-major layout)
    cx = se[0:1] * gx + se[1:2] * gy + se[2:3]
    cy = -se[1:2] * gx + se[0:1] * gy + se[3:4]
    coord = jnp.concatenate([cx, cy], axis=0)                  # (2, N_PTS)

    # CoordBoost MLP in (features, points) layout -> lane-dense 256-wide matmuls.
    # (h_z branch is dead code in the reference: hasattr(self,'latent_linear') is False.)
    bp = bias_ref[...]                                         # (H, 4)
    h = jnp.tanh(_dot(wc_ref[...], coord) + bp[:, 0:1])        # (H, N_PTS)
    h = jnp.tanh(_dot(w12_ref[0], h) + bp[:, 1:2])
    h = jnp.tanh(_dot(w12_ref[1], h) + bp[:, 2:3])
    out_ref[...] = _dot(w3_ref[...], h) + bp[0:1, 3:4]         # (1, N_PTS) lane-dense store


def decoder_forward(params, zs, geom):
    # zs (S, B, Z) -> transposed (Z, S*B) so the kernel needs no in-kernel transpose.
    zs_t = zs.reshape(SEQ_LEN * BATCH, Z_DIM).T                # (Z_DIM, S*B)

    # torch Linear stores weight as (out, in), which is exactly the matrix needed for
    # the transposed layout y = W @ h — no transposes required.
    w12 = jnp.stack([params["cb_w1"], params["cb_w2"]], axis=0)            # (2, H, H)
    b3_col = jnp.zeros((HIDDEN_DIM,), jnp.float32).at[0].set(params["cb_b3"][0])
    bias = jnp.stack([params["cb_bc"], params["cb_b1"], params["cb_b2"], b3_col], axis=1)  # (H, 4)

    args = (zs_t, geom, params["cb_wc"], w12, params["cb_w3"], bias)
    y = pl.pallas_call(
        _decoder_kernel,
        out_shape=jax.ShapeDtypeStruct((1, N_PTS), jnp.float32),
        in_specs=[_VMEM] * len(args),
        out_specs=_VMEM,
    )(*args)
    xs = y.reshape(SEQ_LEN, BATCH, INPUT_DIM)                  # point p = (s*B + b)*16 + n
    return xs


# ----------------------------- full ODEVAE forward ---------------------------
def make_odevae_forward(t_times_np, MAP=False):
    """Build a jitted ODEVAE forward for a fixed set of requested times (the ODE grid
    and interpolation constants must be concrete, like torchdiffeq's host-side grid)."""
    dts, seg, wgt = _make_ode_grid(t_times_np)
    geom = _make_decoder_geometry()

    @jax.jit
    def forward(params, x, t, beta, eps):
        z_mean, z_log_std = encoder_forward(params, x, t)
        z = z_mean if MAP else z_mean + eps * jnp.exp(z_log_std)

        # KL terms (coord > 0 path)
        theta_logstd = z_log_std[:, 0]
        theta_std = jnp.exp(theta_logstd)
        kl_div_rot = (-theta_logstd + jnp.log(THETA_PRIOR)
                      + theta_std ** 2 / 2.0 / THETA_PRIOR ** 2 - 0.5)
        z_mu_c = z_mean[:, 1:]
        z_ls_c = z_log_std[:, 1:]
        z_std_c = jnp.exp(z_ls_c)
        z_div_kl = jnp.sum(-z_ls_c + 0.5 * z_std_c ** 2 + 0.5 * z_mu_c ** 2 - 0.5, axis=1)
        kl_div = jnp.mean(z_div_kl + kl_div_rot)

        zs = ode_forward(params, z, dts, seg, wgt)             # (S, B, Z_DIM)
        x_p = decoder_forward(params, zs, geom)                # (S, B, INPUT_DIM)

        diff = x.reshape(-1, INPUT_DIM) - x_p.reshape(-1, INPUT_DIM)
        log_p_x_g_z = -jnp.mean(0.5 * jnp.sum(diff ** 2, axis=1))
        elbo = log_p_x_g_z - beta * kl_div
        return x_p, elbo, log_p_x_g_z, kl_div, zs

    return forward


# ----------------------------- main ------------------------------------------
if __name__ == "__main__":
    key = jax.random.PRNGKey(0)
    pkey, xkey, ekey = jax.random.split(key, 3)
    params = init_params(pkey)

    x = jax.random.normal(xkey, (SEQ_LEN, BATCH, INPUT_DIM), jnp.float32)
    times_np = np.linspace(0.0, 0.7, SEQ_LEN, dtype=np.float32)   # t[:, 0].view(-1)
    t = jnp.broadcast_to(jnp.asarray(times_np)[:, None, None],
                         (SEQ_LEN, BATCH, 1)).astype(jnp.float32)
    beta = jnp.float32(1.0)
    eps = jax.random.normal(ekey, (BATCH, Z_DIM), jnp.float32)    # unused when MAP=True

    forward = make_odevae_forward(times_np, MAP=True)
    x_p, elbo, log_p, kl_div, zs = forward(params, x, t, beta, eps)
    jax.block_until_ready((x_p, elbo, log_p, kl_div, zs))

    assert x_p.shape == (SEQ_LEN, BATCH, INPUT_DIM)
    assert zs.shape == (SEQ_LEN, BATCH, Z_DIM)
    assert np.all(np.isfinite(np.asarray(x_p)))
    print("KERNEL_OK")
</pallas_src>

<mosaic_0001>
module attributes {stable_mosaic.version = 11 : i64} {
  func.func @_encoder_kernel(%arg0: memref<16x17xf32, #tpu.memory_space<vmem>>, %arg1: memref<17x192xf32, #tpu.memory_space<vmem>>, %arg2: memref<64x192xf32, #tpu.memory_space<vmem>>, %arg3: memref<2x192xf32, #tpu.memory_space<vmem>>, %arg4: memref<2x64x64xf32, #tpu.memory_space<vmem>>, %arg5: memref<2x64xf32, #tpu.memory_space<vmem>>, %arg6: memref<64x10xf32, #tpu.memory_space<vmem>>, %arg7: memref<1x10xf32, #tpu.memory_space<vmem>>, %arg8: memref<2x10xf32, #tpu.memory_space<vmem>>) attributes {dimension_semantics = [], scalar_prefetch = 0 : i64, scratch_operands = 0 : i64, tpu.core_type = #tpu.core_type<tc>} {
    %c0 = arith.constant 0 : index
    %c0_0 = arith.constant 0 : index
    %0 = vector.load %arg3[%c0, %c0_0] : memref<2x192xf32, #tpu.memory_space<vmem>>, vector<1x192xf32>
    %c1 = arith.constant 1 : index
    %c0_1 = arith.constant 0 : index
    %1 = vector.load %arg3[%c1, %c0_1] : memref<2x192xf32, #tpu.memory_space<vmem>>, vector<1x192xf32>
    %c0_2 = arith.constant 0 : index
    %c0_3 = arith.constant 0 : index
    %2 = vector.load %arg0[%c0_2, %c0_3] : memref<16x17xf32, #tpu.memory_space<vmem>>, vector<16x17xf32>
    %c0_4 = arith.constant 0 : index
    %c0_5 = arith.constant 0 : index
    %3 = vector.load %arg1[%c0_4, %c0_5] : memref<17x192xf32, #tpu.memory_space<vmem>>, vector<17x192xf32>
    %cst = arith.constant dense<0.000000e+00> : vector<16x192xf32>
    %4 = tpu.matmul %2, %3, %cst {dimension_numbers = #tpu.dot_dimension_numbers<[1], [0], [0], [1], [0, 0, 1, 1], [], []>} : vector<16x17xf32>, vector<17x192xf32>, vector<16x192xf32> -> vector<16x192xf32>
    %5 = vector.broadcast %0 : vector<1x192xf32> to vector<16x192xf32>
    %6 = arith.addf %4, %5 : vector<16x192xf32>
    %c0_6 = arith.constant 0 : index
    %c0_7 = arith.constant 0 : index
    %7 = vector.load %arg2[%c0_6, %c0_7] : memref<64x192xf32, #tpu.memory_space<vmem>>, vector<64x192xf32>
    %cst_8 = arith.constant 0.000000e+00 : f32
    %8 = vector.broadcast %cst_8 : f32 to vector<2x64xf32>
    %9 = vector.extract_strided_slice %6 {offsets = [0, 0], sizes = [2, 192], strides = [1, 1]} : vector<16x192xf32> to vector<2x192xf32>
    %cst_9 = arith.constant dense<0.000000e+00> : vector<2x192xf32>
    %10 = tpu.matmul %8, %7, %cst_9 {dimension_numbers = #tpu.dot_dimension_numbers<[1], [0], [0], [1], [0, 0, 1, 1], [], []>} : vector<2x64xf32>, vector<64x192xf32>, vector<2x192xf32> -> vector<2x192xf32>
    %11 = vector.broadcast %1 : vector<1x192xf32> to vector<2x192xf32>
    %12 = arith.addf %10, %11 : vector<2x192xf32>
    %13 = vector.extract_strided_slice %9 {offsets = [0, 0], sizes = [2, 64], strides = [1, 1]} : vector<2x192xf32> to vector<2x64xf32>
    %14 = vector.extract_strided_slice %12 {offsets = [0, 0], sizes = [2, 64], strides = [1, 1]} : vector<2x192xf32> to vector<2x64xf32>
    %15 = arith.addf %13, %14 : vector<2x64xf32>
    %16 = arith.negf %15 : vector<2x64xf32>
    %17 = math.exp %16 : vector<2x64xf32>
    %cst_10 = arith.constant 1.000000e+00 : f32
    %18 = vector.broadcast %cst_10 : f32 to vector<2x64xf32>
    %19 = arith.addf %18, %17 : vector<2x64xf32>
    %20 = arith.divf %18, %19 : vector<2x64xf32>
    %21 = vector.extract_strided_slice %9 {offsets = [0, 64], sizes = [2, 64], strides = [1, 1]} : vector<2x192xf32> to vector<2x64xf32>
    %22 = vector.extract_strided_slice %12 {offsets = [0, 64], sizes = [2, 64], strides = [1, 1]} : vector<2x192xf32> to vector<2x64xf32>
    %23 = arith.addf %21, %22 : vector<2x64xf32>
    %24 = arith.negf %23 : vector<2x64xf32>
    %25 = math.exp %24 : vector<2x64xf32>
    %cst_11 = arith.constant 1.000000e+00 : f32
    %26 = vector.broadcast %cst_11 : f32 to vector<2x64xf32>
    %27 = arith.addf %26, %25 : vector<2x64xf32>
    %28 = arith.divf %26, %27 : vector<2x64xf32>
    %29 = vector.extract_strided_slice %9 {offsets = [0, 128], sizes = [2, 64], strides = [1, 1]} : vector<2x192xf32> to vector<2x64xf32>
    %30 = vector.extract_strided_slice %12 {offsets = [0, 128], sizes = [2, 64], strides = [1, 1]} : vector<2x192xf32> to vector<2x64xf32>
    %31 = arith.mulf %20, %30 : vector<2x64xf32>
    %32 = arith.addf %29, %31 : vector<2x64xf32>
    %33 = math.tanh %32 : vector<2x64xf32>
    %cst_12 = arith.constant 1.000000e+00 : f32
    %34 = vector.broadcast %cst_12 : f32 to vector<2x64xf32>
    %35 = arith.subf %34, %28 : vector<2x64xf32>
    %36 = arith.mulf %35, %33 : vector<2x64xf32>
    %37 = arith.mulf %28, %8 : vector<2x64xf32>
    %38 = arith.addf %36, %37 : vector<2x64xf32>
    %39 = vector.extract_strided_slice %6 {offsets = [2, 0], sizes = [2, 192], strides = [1, 1]} : vector<16x192xf32> to vector<2x192xf32>
    %cst_13 = arith.constant dense<0.000000e+00> : vector<2x192xf32>
    %40 = tpu.matmul %38, %7, %cst_13 {dimension_numbers = #tpu.dot_dimension_numbers<[1], [0], [0], [1], [0, 0, 1, 1], [], []>} : vector<2x64xf32>, vector<64x192xf32>, vector<2x192xf32> -> vector<2x192xf32>
    %41 = vector.broadcast %1 : vector<1x192xf32> to vector<2x192xf32>
    %42 = arith.addf %40, %41 : vector<2x192xf32>
    %43 = vector.extract_strided_slice %39 {offsets = [0, 0], sizes = [2, 64], strides = [1, 1]} : vector<2x192xf32> to vector<2x64xf32>
    %44 = vector.extract_strided_slice %42 {offsets = [0, 0], sizes = [2, 64], strides = [1, 1]} : vector<2x192xf32> to vector<2x64xf32>
    %45 = arith.addf %43, %44 : vector<2x64xf32>
    %46 = arith.negf %45 : vector<2x64xf32>
    %47 = math.exp %46 : vector<2x64xf32>
    %cst_14 = arith.constant 1.000000e+00 : f32
    %48 = vector.broadcast %cst_14 : f32 to vector<2x64xf32>
    %49 = arith.addf %48, %47 : vector<2x64xf32>
    %50 = arith.divf %48, %49 : vector<2x64xf32>
    %51 = vector.extract_strided_slice %39 {offsets = [0, 64], sizes = [2, 64], strides = [1, 1]} : vector<2x192xf32> to vector<2x64xf32>
    %52 = vector.extract_strided_slice %42 {offsets = [0, 64], sizes = [2, 64], strides = [1, 1]} : vector<2x192xf32> to vector<2x64xf32>
    %53 = arith.addf %51, %52 : vector<2x64xf32>
    %54 = arith.negf %53 : vector<2x64xf32>
    %55 = math.exp %54 : vector<2x64xf32>
    %cst_15 = arith.constant 1.000000e+00 : f32
    %56 = vector.broadcast %cst_15 : f32 to vector<2x64xf32>
    %57 = arith.addf %56, %55 : vector<2x64xf32>
    %58 = arith.divf %56, %57 : vector<2x64xf32>
    %59 = vector.extract_strided_slice %39 {offsets = [0, 128], sizes = [2, 64], strides = [1, 1]} : vector<2x192xf32> to vector<2x64xf32>
    %60 = vector.extract_strided_slice %42 {offsets = [0, 128], sizes = [2, 64], strides = [1, 1]} : vector<2x192xf32> to vector<2x64xf32>
    %61 = arith.mulf %50, %60 : vector<2x64xf32>
    %62 = arith.addf %59, %61 : vector<2x64xf32>
    %63 = math.tanh %62 : vector<2x64xf32>
    %cst_16 = arith.constant 1.000000e+00 : f32
    %64 = vector.broadcast %cst_16 : f32 to vector<2x64xf32>
    %65 = arith.subf %64, %58 : vector<2x64xf32>
    %66 = arith.mulf %65, %63 : vector<2x64xf32>
    %67 = arith.mulf %58, %38 : vector<2x64xf32>
    %68 = arith.addf %66, %67 : vector<2x64xf32>
    %69 = vector.extract_strided_slice %6 {offsets = [4, 0], sizes = [2, 192], strides = [1, 1]} : vector<16x192xf32> to vector<2x192xf32>
    %cst_17 = arith.constant dense<0.000000e+00> : vector<2x192xf32>
    %70 = tpu.matmul %68, %7, %cst_17 {dimension_numbers = #tpu.dot_dimension_numbers<[1], [0], [0], [1], [0, 0, 1, 1], [], []>} : vector<2x64xf32>, vector<64x192xf32>, vector<2x192xf32> -> vector<2x192xf32>
    %71 = vector.broadcast %1 : vector<1x192xf32> to vector<2x192xf32>
    %72 = arith.addf %70, %71 : vector<2x192xf32>
    %73 = vector.extract_strided_slice %69 {offsets = [0, 0], sizes = [2, 64], strides = [1, 1]} : vector<2x192xf32> to vector<2x64xf32>
    %74 = vector.extract_strided_slice %72 {offsets = [0, 0], sizes = [2, 64], strides = [1, 1]} : vector<2x192xf32> to vector<2x64xf32>
    %75 = arith.addf %73, %74 : vector<2x64xf32>
    %76 = arith.negf %75 : vector<2x64xf32>
    %77 = math.exp %76 : vector<2x64xf32>
    %cst_18 = arith.constant 1.000000e+00 : f32
    %78 = vector.broadcast %cst_18 : f32 to vector<2x64xf32>
    %79 = arith.addf %78, %77 : vector<2x64xf32>
    %80 = arith.divf %78, %79 : vector<2x64xf32>
    %81 = vector.extract_strided_slice %69 {offsets = [0, 64], sizes = [2, 64], strides = [1, 1]} : vector<2x192xf32> to vector<2x64xf32>
    %82 = vector.extract_strided_slice %72 {offsets = [0, 64], sizes = [2, 64], strides = [1, 1]} : vector<2x192xf32> to vector<2x64xf32>
    %83 = arith.addf %81, %82 : vector<2x64xf32>
    %84 = arith.negf %83 : vector<2x64xf32>
    %85 = math.exp %84 : vector<2x64xf32>
    %cst_19 = arith.constant 1.000000e+00 : f32
    %86 = vector.broadcast %cst_19 : f32 to vector<2x64xf32>
    %87 = arith.addf %86, %85 : vector<2x64xf32>
    %88 = arith.divf %86, %87 : vector<2x64xf32>
    %89 = vector.extract_strided_slice %69 {offsets = [0, 128], sizes = [2, 64], strides = [1, 1]} : vector<2x192xf32> to vector<2x64xf32>
    %90 = vector.extract_strided_slice %72 {offsets = [0, 128], sizes = [2, 64], strides = [1, 1]} : vector<2x192xf32> to vector<2x64xf32>
    %91 = arith.mulf %80, %90 : vector<2x64xf32>
    %92 = arith.addf %89, %91 : vector<2x64xf32>
    %93 = math.tanh %92 : vector<2x64xf32>
    %cst_20 = arith.constant 1.000000e+00 : f32
    %94 = vector.broadcast %cst_20 : f32 to vector<2x64xf32>
    %95 = arith.subf %94, %88 : vector<2x64xf32>
    %96 = arith.mulf %95, %93 : vector<2x64xf32>
    %97 = arith.mulf %88, %68 : vector<2x64xf32>
    %98 = arith.addf %96, %97 : vector<2x64xf32>
    %99 = vector.extract_strided_slice %6 {offsets = [6, 0], sizes = [2, 192], strides = [1, 1]} : vector<16x192xf32> to vector<2x192xf32>
    %cst_21 = arith.constant dense<0.000000e+00> : vector<2x192xf32>
    %100 = tpu.matmul %98, %7, %cst_21 {dimension_numbers = #tpu.dot_dimension_numbers<[1], [0], [0], [1], [0, 0, 1, 1], [], []>} : vector<2x64xf32>, vector<64x192xf32>, vector<2x192xf32> -> vector<2x192xf32>
    %101 = vector.broadcast %1 : vector<1x192xf32> to vector<2x192xf32>
    %102 = arith.addf %100, %101 : vector<2x192xf32>
    %103 = vector.extract_strided_slice %99 {offsets = [0, 0], sizes = [2, 64], strides = [1, 1]} : vector<2x192xf32> to vector<2x64xf32>
    %104 = vector.extract_strided_slice %102 {offsets = [0, 0], sizes = [2, 64], strides = [1, 1]} : vector<2x192xf32> to vector<2x64xf32>
    %105 = arith.addf %103, %104 : vector<2x64xf32>
    %106 = arith.negf %105 : vector<2x64xf32>
    %107 = math.exp %106 : vector<2x64xf32>
    %cst_22 = arith.constant 1.000000e+00 : f32
    %108 = vector.broadcast %cst_22 : f32 to vector<2x64xf32>
    %109 = arith.addf %108, %107 : vector<2x64xf32>
    %110 = arith.divf %108, %109 : vector<2x64xf32>
    %111 = vector.extract_strided_slice %99 {offsets = [0, 64], sizes = [2, 64], strides = [1, 1]} : vector<2x192xf32> to vector<2x64xf32>
    %112 = vector.extract_strided_slice %102 {offsets = [0, 64], sizes = [2, 64], strides = [1, 1]} : vector<2x192xf32> to vector<2x64xf32>
    %113 = arith.addf %111, %112 : vector<2x64xf32>
    %114 = arith.negf %113 : vector<2x64xf32>
    %115 = math.exp %114 : vector<2x64xf32>
    %cst_23 = arith.constant 1.000000e+00 : f32
    %116 = vector.broadcast %cst_23 : f32 to vector<2x64xf32>
    %117 = arith.addf %116, %115 : vector<2x64xf32>
    %118 = arith.divf %116, %117 : vector<2x64xf32>
    %119 = vector.extract_strided_slice %99 {offsets = [0, 128], sizes = [2, 64], strides = [1, 1]} : vector<2x192xf32> to vector<2x64xf32>
    %120 = vector.extract_strided_slice %102 {offsets = [0, 128], sizes = [2, 64], strides = [1, 1]} : vector<2x192xf32> to vector<2x64xf32>
    %121 = arith.mulf %110, %120 : vector<2x64xf32>
    %122 = arith.addf %119, %121 : vector<2x64xf32>
    %123 = math.tanh %122 : vector<2x64xf32>
    %cst_24 = arith.constant 1.000000e+00 : f32
    %124 = vector.broadcast %cst_24 : f32 to vector<2x64xf32>
    %125 = arith.subf %124, %118 : vector<2x64xf32>
    %126 = arith.mulf %125, %123 : vector<2x64xf32>
    %127 = arith.mulf %118, %98 : vector<2x64xf32>
    %128 = arith.addf %126, %127 : vector<2x64xf32>
    %129 = vector.extract_strided_slice %6 {offsets = [8, 0], sizes = [2, 192], strides = [1, 1]} : vector<16x192xf32> to vector<2x192xf32>
    %cst_25 = arith.constant dense<0.000000e+00> : vector<2x192xf32>
    %130 = tpu.matmul %128, %7, %cst_25 {dimension_numbers = #tpu.dot_dimension_numbers<[1], [0], [0], [1], [0, 0, 1, 1], [], []>} : vector<2x64xf32>, vector<64x192xf32>, vector<2x192xf32> -> vector<2x192xf32>
    %131 = vector.broadcast %1 : vector<1x192xf32> to vector<2x192xf32>
    %132 = arith.addf %130, %131 : vector<2x192xf32>
    %133 = vector.extract_strided_slice %129 {offsets = [0, 0], sizes = [2, 64], strides = [1, 1]} : vector<2x192xf32> to vector<2x64xf32>
    %134 = vector.extract_strided_slice %132 {offsets = [0, 0], sizes = [2, 64], strides = [1, 1]} : vector<2x192xf32> to vector<2x64xf32>
    %135 = arith.addf %133, %134 : vector<2x64xf32>
    %136 = arith.negf %135 : vector<2x64xf32>
    %137 = math.exp %136 : vector<2x64xf32>
    %cst_26 = arith.constant 1.000000e+00 : f32
    %138 = vector.broadcast %cst_26 : f32 to vector<2x64xf32>
    %139 = arith.addf %138, %137 : vector<2x64xf32>
    %140 = arith.divf %138, %139 : vector<2x64xf32>
    %141 = vector.extract_strided_slice %129 {offsets = [0, 64], sizes = [2, 64], strides = [1, 1]} : vector<2x192xf32> to vector<2x64xf32>
    %142 = vector.extract_strided_slice %132 {offsets = [0, 64], sizes = [2, 64], strides = [1, 1]} : vector<2x192xf32> to vector<2x64xf32>
    %143 = arith.addf %141, %142 : vector<2x64xf32>
    %144 = arith.negf %143 : vector<2x64xf32>
    %145 = math.exp %144 : vector<2x64xf32>
    %cst_27 = arith.constant 1.000000e+00 : f32
    %146 = vector.broadcast %cst_27 : f32 to vector<2x64xf32>
    %147 = arith.addf %146, %145 : vector<2x64xf32>
    %148 = arith.divf %146, %147 : vector<2x64xf32>
    %149 = vector.extract_strided_slice %129 {offsets = [0, 128], sizes = [2, 64], strides = [1, 1]} : vector<2x192xf32> to vector<2x64xf32>
    %150 = vector.extract_strided_slice %132 {offsets = [0, 128], sizes = [2, 64], strides = [1, 1]} : vector<2x192xf32> to vector<2x64xf32>
    %151 = arith.mulf %140, %150 : vector<2x64xf32>
    %152 = arith.addf %149, %151 : vector<2x64xf32>
    %153 = math.tanh %152 : vector<2x64xf32>
    %cst_28 = arith.constant 1.000000e+00 : f32
    %154 = vector.broadcast %cst_28 : f32 to vector<2x64xf32>
    %155 = arith.subf %154, %148 : vector<2x64xf32>
    %156 = arith.mulf %155, %153 : vector<2x64xf32>
    %157 = arith.mulf %148, %128 : vector<2x64xf32>
    %158 = arith.addf %156, %157 : vector<2x64xf32>
    %159 = vector.extract_strided_slice %6 {offsets = [10, 0], sizes = [2, 192], strides = [1, 1]} : vector<16x192xf32> to vector<2x192xf32>
    %cst_29 = arith.constant dense<0.000000e+00> : vector<2x192xf32>
    %160 = tpu.matmul %158, %7, %cst_29 {dimension_numbers = #tpu.dot_dimension_numbers<[1], [0], [0], [1], [0, 0, 1, 1], [], []>} : vector<2x64xf32>, vector<64x192xf32>, vector<2x192xf32> -> vector<2x192xf32>
    %161 = vector.broadcast %1 : vector<1x192xf32> to vector<2x192xf32>
    %162 = arith.addf %160, %161 : vector<2x192xf32>
    %163 = vector.extract_strided_slice %159 {offsets = [0, 0], sizes = [2, 64], strides = [1, 1]} : vector<2x192xf32> to vector<2x64xf32>
    %164 = vector.extract_strided_slice %162 {offsets = [0, 0], sizes = [2, 64], strides = [1, 1]} : vector<2x192xf32> to vector<2x64xf32>
    %165 = arith.addf %163, %164 : vector<2x64xf32>
    %166 = arith.negf %165 : vector<2x64xf32>
    %167 = math.exp %166 : vector<2x64xf32>
    %cst_30 = arith.constant 1.000000e+00 : f32
    %168 = vector.broadcast %cst_30 : f32 to vector<2x64xf32>
    %169 = arith.addf %168, %167 : vector<2x64xf32>
    %170 = arith.divf %168, %169 : vector<2x64xf32>
    %171 = vector.extract_strided_slice %159 {offsets = [0, 64], sizes = [2, 64], strides = [1, 1]} : vector<2x192xf32> to vector<2x64xf32>
    %172 = vector.extract_strided_slice %162 {offsets = [0, 64], sizes = [2, 64], strides = [1, 1]} : vector<2x192xf32> to vector<2x64xf32>
    %173 = arith.addf %171, %172 : vector<2x64xf32>
    %174 = arith.negf %173 : vector<2x64xf32>
    %175 = math.exp %174 : vector<2x64xf32>
    %cst_31 = arith.constant 1.000000e+00 : f32
    %176 = vector.broadcast %cst_31 : f32 to vector<2x64xf32>
    %177 = arith.addf %176, %175 : vector<2x64xf32>
    %178 = arith.divf %176, %177 : vector<2x64xf32>
    %179 = vector.extract_strided_slice %159 {offsets = [0, 128], sizes = [2, 64], strides = [1, 1]} : vector<2x192xf32> to vector<2x64xf32>
    %180 = vector.extract_strided_slice %162 {offsets = [0, 128], sizes = [2, 64], strides = [1, 1]} : vector<2x192xf32> to vector<2x64xf32>
    %181 = arith.mulf %170, %180 : vector<2x64xf32>
    %182 = arith.addf %179, %181 : vector<2x64xf32>
    %183 = math.tanh %182 : vector<2x64xf32>
    %cst_32 = arith.constant 1.000000e+00 : f32
    %184 = vector.broadcast %cst_32 : f32 to vector<2x64xf32>
    %185 = arith.subf %184, %178 : vector<2x64xf32>
    %186 = arith.mulf %185, %183 : vector<2x64xf32>
    %187 = arith.mulf %178, %158 : vector<2x64xf32>
    %188 = arith.addf %186, %187 : vector<2x64xf32>
    %189 = vector.extract_strided_slice %6 {offsets = [12, 0], sizes = [2, 192], strides = [1, 1]} : vector<16x192xf32> to vector<2x192xf32>
    %cst_33 = arith.constant dense<0.000000e+00> : vector<2x192xf32>
    %190 = tpu.matmul %188, %7, %cst_33 {dimension_numbers = #tpu.dot_dimension_numbers<[1], [0], [0], [1], [0, 0, 1, 1], [], []>} : vector<2x64xf32>, vector<64x192xf32>, vector<2x192xf32> -> vector<2x192xf32>
    %191 = vector.broadcast %1 : vector<1x192xf32> to vector<2x192xf32>
    %192 = arith.addf %190, %191 : vector<2x192xf32>
    %193 = vector.extract_strided_slice %189 {offsets = [0, 0], sizes = [2, 64], strides = [1, 1]} : vector<2x192xf32> to vector<2x64xf32>
    %194 = vector.extract_strided_slice %192 {offsets = [0, 0], sizes = [2, 64], strides = [1, 1]} : vector<2x192xf32> to vector<2x64xf32>
    %195 = arith.addf %193, %194 : vector<2x64xf32>
    %196 = arith.negf %195 : vector<2x64xf32>
    %197 = math.exp %196 : vector<2x64xf32>
    %cst_34 = arith.constant 1.000000e+00 : f32
    %198 = vector.broadcast %cst_34 : f32 to vector<2x64xf32>
    %199 = arith.addf %198, %197 : vector<2x64xf32>
    %200 = arith.divf %198, %199 : vector<2x64xf32>
    %201 = vector.extract_strided_slice %189 {offsets = [0, 64], sizes = [2, 64], strides = [1, 1]} : vector<2x192xf32> to vector<2x64xf32>
    %202 = vector.extract_strided_slice %192 {offsets = [0, 64], sizes = [2, 64], strides = [1, 1]} : vector<2x192xf32> to vector<2x64xf32>
    %203 = arith.addf %201, %202 : vector<2x64xf32>
    %204 = arith.negf %203 : vector<2x64xf32>
    %205 = math.exp %204 : vector<2x64xf32>
    %cst_35 = arith.constant 1.000000e+00 : f32
    %206 = vector.broadcast %cst_35 : f32 to vector<2x64xf32>
    %207 = arith.addf %206, %205 : vector<2x64xf32>
    %208 = arith.divf %206, %207 : vector<2x64xf32>
    %209 = vector.extract_strided_slice %189 {offsets = [0, 128], sizes = [2, 64], strides = [1, 1]} : vector<2x192xf32> to vector<2x64xf32>
    %210 = vector.extract_strided_slice %192 {offsets = [0, 128], sizes = [2, 64], strides = [1, 1]} : vector<2x192xf32> to vector<2x64xf32>
    %211 = arith.mulf %200, %210 : vector<2x64xf32>
    %212 = arith.addf %209, %211 : vector<2x64xf32>
    %213 = math.tanh %212 : vector<2x64xf32>
    %cst_36 = arith.constant 1.000000e+00 : f32
    %214 = vector.broadcast %cst_36 : f32 to vector<2x64xf32>
    %215 = arith.subf %214, %208 : vector<2x64xf32>
    %216 = arith.mulf %215, %213 : vector<2x64xf32>
    %217 = arith.mulf %208, %188 : vector<2x64xf32>
    %218 = arith.addf %216, %217 : vector<2x64xf32>
    %219 = vector.extract_strided_slice %6 {offsets = [14, 0], sizes = [2, 192], strides = [1, 1]} : vector<16x192xf32> to vector<2x192xf32>
    %cst_37 = arith.constant dense<0.000000e+00> : vector<2x192xf32>
    %220 = tpu.matmul %218, %7, %cst_37 {dimension_numbers = #tpu.dot_dimension_numbers<[1], [0], [0], [1], [0, 0, 1, 1], [], []>} : vector<2x64xf32>, vector<64x192xf32>, vector<2x192xf32> -> vector<2x192xf32>
    %221 = vector.broadcast %1 : vector<1x192xf32> to vector<2x192xf32>
    %222 = arith.addf %220, %221 : vector<2x192xf32>
    %223 = vector.extract_strided_slice %219 {offsets = [0, 0], sizes = [2, 64], strides = [1, 1]} : vector<2x192xf32> to vector<2x64xf32>
    %224 = vector.extract_strided_slice %222 {offsets = [0, 0], sizes = [2, 64], strides = [1, 1]} : vector<2x192xf32> to vector<2x64xf32>
    %225 = arith.addf %223, %224 : vector<2x64xf32>
    %226 = arith.negf %225 : vector<2x64xf32>
    %227 = math.exp %226 : vector<2x64xf32>
    %cst_38 = arith.constant 1.000000e+00 : f32
    %228 = vector.broadcast %cst_38 : f32 to vector<2x64xf32>
    %229 = arith.addf %228, %227 : vector<2x64xf32>
    %230 = arith.divf %228, %229 : vector<2x64xf32>
    %231 = vector.extract_strided_slice %219 {offsets = [0, 64], sizes = [2, 64], strides = [1, 1]} : vector<2x192xf32> to vector<2x64xf32>
    %232 = vector.extract_strided_slice %222 {offsets = [0, 64], sizes = [2, 64], strides = [1, 1]} : vector<2x192xf32> to vector<2x64xf32>
    %233 = arith.addf %231, %232 : vector<2x64xf32>
    %234 = arith.negf %233 : vector<2x64xf32>
    %235 = math.exp %234 : vector<2x64xf32>
    %cst_39 = arith.constant 1.000000e+00 : f32
    %236 = vector.broadcast %cst_39 : f32 to vector<2x64xf32>
    %237 = arith.addf %236, %235 : vector<2x64xf32>
    %238 = arith.divf %236, %237 : vector<2x64xf32>
    %239 = vector.extract_strided_slice %219 {offsets = [0, 128], sizes = [2, 64], strides = [1, 1]} : vector<2x192xf32> to vector<2x64xf32>
    %240 = vector.extract_strided_slice %222 {offsets = [0, 128], sizes = [2, 64], strides = [1, 1]} : vector<2x192xf32> to vector<2x64xf32>
    %241 = arith.mulf %230, %240 : vector<2x64xf32>
    %242 = arith.addf %239, %241 : vector<2x64xf32>
    %243 = math.tanh %242 : vector<2x64xf32>
    %cst_40 = arith.constant 1.000000e+00 : f32
    %244 = vector.broadcast %cst_40 : f32 to vector<2x64xf32>
    %245 = arith.subf %244, %238 : vector<2x64xf32>
    %246 = arith.mulf %245, %243 : vector<2x64xf32>
    %247 = arith.mulf %238, %218 : vector<2x64xf32>
    %248 = arith.addf %246, %247 : vector<2x64xf32>
    %c0_41 = arith.constant 0 : index
    %c0_42 = arith.constant 0 : index
    %c0_43 = arith.constant 0 : index
    %249 = vector.load %arg4[%c0_41, %c0_42, %c0_43] : memref<2x64x64xf32, #tpu.memory_space<vmem>>, vector<1x64x64xf32>
    %250 = vector.shape_cast %249 : vector<1x64x64xf32> to vector<64x64xf32>
    %cst_44 = arith.constant dense<0.000000e+00> : vector<2x64xf32>
    %251 = tpu.matmul %248, %250, %cst_44 {dimension_numbers = #tpu.dot_dimension_numbers<[1], [0], [0], [1], [0, 0, 1, 1], [], []>} : vector<2x64xf32>, vector<64x64xf32>, vector<2x64xf32> -> vector<2x64xf32>
    %c0_45 = arith.constant 0 : index
    %c0_46 = arith.constant 0 : index
    %252 = vector.load %arg5[%c0_45, %c0_46] : memref<2x64xf32, #tpu.memory_space<vmem>>, vector<1x64xf32>
    %253 = vector.broadcast %252 : vector<1x64xf32> to vector<2x64xf32>
    %254 = arith.addf %251, %253 : vector<2x64xf32>
    %255 = math.tanh %254 : vector<2x64xf32>
    %c1_47 = arith.constant 1 : index
    %c0_48 = arith.constant 0 : index
    %c0_49 = arith.constant 0 : index
    %256 = vector.load %arg4[%c1_47, %c0_48, %c0_49] : memref<2x64x64xf32, #tpu.memory_space<vmem>>, vector<1x64x64xf32>
    %257 = vector.shape_cast %256 : vector<1x64x64xf32> to vector<64x64xf32>
    %cst_50 = arith.constant dense<0.000000e+00> : vector<2x64xf32>
    %258 = tpu.matmul %255, %257, %cst_50 {dimension_numbers = #tpu.dot_dimension_numbers<[1], [0], [0], [1], [0, 0, 1, 1], [], []>} : vector<2x64xf32>, vector<64x64xf32>, vector<2x64xf32> -> vector<2x64xf32>
    %c1_51 = arith.constant 1 : index
    %c0_52 = arith.constant 0 : index
    %259 = vector.load %arg5[%c1_51, %c0_52] : memref<2x64xf32, #tpu.memory_space<vmem>>, vector<1x64xf32>
    %260 = vector.broadcast %259 : vector<1x64xf32> to vector<2x64xf32>
    %261 = arith.addf %258, %260 : vector<2x64xf32>
    %262 = math.tanh %261 : vector<2x64xf32>
    %c0_53 = arith.constant 0 : index
    %c0_54 = arith.constant 0 : index
    %263 = vector.load %arg6[%c0_53, %c0_54] : memref<64x10xf32, #tpu.memory_space<vmem>>, vector<64x10xf32>
    %cst_55 = arith.constant dense<0.000000e+00> : vector<2x10xf32>
    %264 = tpu.matmul %262, %263, %cst_55 {dimension_numbers = #tpu.dot_dimension_numbers<[1], [0], [0], [1], [0, 0, 1, 1], [], []>} : vector<2x64xf32>, vector<64x10xf32>, vector<2x10xf32> -> vector<2x10xf32>
    %c0_56 = arith.constant 0 : index
    %c0_57 = arith.constant 0 : index
    %265 = vector.load %arg7[%c0_56, %c0_57] : memref<1x10xf32, #tpu.memory_space<vmem>>, vector<1x10xf32>
    %266 = vector.broadcast %265 : vector<1x10xf32> to vector<2x10xf32>
    %267 = arith.addf %264, %266 : vector<2x10xf32>
    %c0_58 = arith.constant 0 : index
    %c0_59 = arith.constant 0 : index
    %268 = vector.load %arg8[%c0_58, %c0_59] : memref<2x10xf32, #tpu.memory_space<vmem>>, vector<2x10xf32>
    tpu.vector_store %arg8[%c0_58, %c0_59], %267 {strides = array<i32>} : memref<2x10xf32, #tpu.memory_space<vmem>>, vector<2x10xf32>,
    return
  }
}

module attributes {stable_mosaic.version = 11 : i64} {
  func.func @_decoder_kernel(%arg0: memref<5x16xf32, #tpu.memory_space<vmem>>, %arg1: memref<18x256xf32, #tpu.memory_space<vmem>>, %arg2: memref<64x2xf32, #tpu.memory_space<vmem>>, %arg3: memref<2x64x64xf32, #tpu.memory_space<vmem>>, %arg4: memref<1x64xf32, #tpu.memory_space<vmem>>, %arg5: memref<64x4xf32, #tpu.memory_space<vmem>>, %arg6: memref<1x256xf32, #tpu.memory_space<vmem>>) attributes {dimension_semantics = [], scalar_prefetch = 0 : i64, scratch_operands = 0 : i64, tpu.core_type = #tpu.core_type<tc>} {
    %c0 = arith.constant 0 : index
    %c0_0 = arith.constant 0 : index
    %0 = vector.load %arg0[%c0, %c0_0] : memref<5x16xf32, #tpu.memory_space<vmem>>, vector<5x16xf32>
    %1 = vector.extract_strided_slice %0 {offsets = [0, 0], sizes = [1, 16], strides = [1, 1]} : vector<5x16xf32> to vector<1x16xf32>
    %2 = math.cos %1 : vector<1x16xf32>
    %3 = math.sin %1 : vector<1x16xf32>
    %4 = vector.extract_strided_slice %0 {offsets = [1, 0], sizes = [1, 16], strides = [1, 1]} : vector<5x16xf32> to vector<1x16xf32>
    %cst = arith.constant 1.000000e+00 : f32
    %5 = vector.broadcast %cst : f32 to vector<1x16xf32>
    %6 = arith.mulf %4, %5 : vector<1x16xf32>
    %7 = vector.extract_strided_slice %0 {offsets = [2, 0], sizes = [1, 16], strides = [1, 1]} : vector<5x16xf32> to vector<1x16xf32>
    %cst_1 = arith.constant 1.000000e+00 : f32
    %8 = vector.broadcast %cst_1 : f32 to vector<1x16xf32>
    %9 = arith.mulf %7, %8 : vector<1x16xf32>
    %10 = tpu.concatenate %2, %3, %6, %9 in 0 : vector<1x16xf32>, vector<1x16xf32>, vector<1x16xf32>, vector<1x16xf32> -> vector<4x16xf32>
    %c0_2 = arith.constant 0 : index
    %c0_3 = arith.constant 0 : index
    %11 = vector.load %arg1[%c0_2, %c0_3] : memref<18x256xf32, #tpu.memory_space<vmem>>, vector<16x256xf32>
    %c16 = arith.constant 16 : index
    %c0_4 = arith.constant 0 : index
    %12 = vector.load %arg1[%c16, %c0_4] : memref<18x256xf32, #tpu.memory_space<vmem>>, vector<1x256xf32>
    %c17 = arith.constant 17 : index
    %c0_5 = arith.constant 0 : index
    %13 = vector.load %arg1[%c17, %c0_5] : memref<18x256xf32, #tpu.memory_space<vmem>>, vector<1x256xf32>
    %cst_6 = arith.constant dense<0.000000e+00> : vector<4x256xf32>
    %14 = tpu.matmul %10, %11, %cst_6 {dimension_numbers = #tpu.dot_dimension_numbers<[1], [0], [0], [1], [0, 0, 1, 1], [], []>} : vector<4x16xf32>, vector<16x256xf32>, vector<4x256xf32> -> vector<4x256xf32>
    %15 = vector.extract_strided_slice %14 {offsets = [0, 0], sizes = [1, 256], strides = [1, 1]} : vector<4x256xf32> to vector<1x256xf32>
    %16 = arith.mulf %15, %12 : vector<1x256xf32>
    %17 = vector.extract_strided_slice %14 {offsets = [1, 0], sizes = [1, 256], strides = [1, 1]} : vector<4x256xf32> to vector<1x256xf32>
    %18 = arith.mulf %17, %13 : vector<1x256xf32>
    %19 = arith.addf %16, %18 : vector<1x256xf32>
    %20 = vector.extract_strided_slice %14 {offsets = [2, 0], sizes = [1, 256], strides = [1, 1]} : vector<4x256xf32> to vector<1x256xf32>
    %21 = arith.addf %19, %20 : vector<1x256xf32>
    %22 = vector.extract_strided_slice %14 {offsets = [1, 0], sizes = [1, 256], strides = [1, 1]} : vector<4x256xf32> to vector<1x256xf32>
    %cst_7 = arith.constant 0.000000e+00 : f32
    %23 = vector.broadcast %cst_7 : f32 to vector<1x256xf32>
    %24 = arith.subf %23, %22 : vector<1x256xf32>
    %25 = arith.mulf %24, %12 : vector<1x256xf32>
    %26 = vector.extract_strided_slice %14 {offsets = [0, 0], sizes = [1, 256], strides = [1, 1]} : vector<4x256xf32> to vector<1x256xf32>
    %27 = arith.mulf %26, %13 : vector<1x256xf32>
    %28 = arith.addf %25, %27 : vector<1x256xf32>
    %29 = vector.extract_strided_slice %14 {offsets = [3, 0], sizes = [1, 256], strides = [1, 1]} : vector<4x256xf32> to vector<1x256xf32>
    %30 = arith.addf %28, %29 : vector<1x256xf32>
    %31 = tpu.concatenate %21, %30 in 0 : vector<1x256xf32>, vector<1x256xf32> -> vector<2x256xf32>
    %c0_8 = arith.constant 0 : index
    %c0_9 = arith.constant 0 : index
    %32 = vector.load %arg5[%c0_8, %c0_9] : memref<64x4xf32, #tpu.memory_space<vmem>>, vector<64x4xf32>
    %c0_10 = arith.constant 0 : index
    %c0_11 = arith.constant 0 : index
    %33 = vector.load %arg2[%c0_10, %c0_11] : memref<64x2xf32, #tpu.memory_space<vmem>>, vector<64x2xf32>
    %cst_12 = arith.constant dense<0.000000e+00> : vector<64x256xf32>
    %34 = tpu.matmul %33, %31, %cst_12 {dimension_numbers = #tpu.dot_dimension_numbers<[1], [0], [0], [1], [0, 0, 1, 1], [], []>} : vector<64x2xf32>, vector<2x256xf32>, vector<64x256xf32> -> vector<64x256xf32>
    %35 = vector.extract_strided_slice %32 {offsets = [0, 0], sizes = [64, 1], strides = [1, 1]} : vector<64x4xf32> to vector<64x1xf32>
    %36 = vector.broadcast %35 : vector<64x1xf32> to vector<64x256xf32>
    %37 = arith.addf %34, %36 : vector<64x256xf32>
    %38 = math.tanh %37 : vector<64x256xf32>
    %c0_13 = arith.constant 0 : index
    %c0_14 = arith.constant 0 : index
    %c0_15 = arith.constant 0 : index
    %39 = vector.load %arg3[%c0_13, %c0_14, %c0_15] : memref<2x64x64xf32, #tpu.memory_space<vmem>>, vector<1x64x64xf32>
    %40 = vector.shape_cast %39 : vector<1x64x64xf32> to vector<64x64xf32>
    %cst_16 = arith.constant dense<0.000000e+00> : vector<64x256xf32>
    %41 = tpu.matmul %40, %38, %cst_16 {dimension_numbers = #tpu.dot_dimension_numbers<[1], [0], [0], [1], [0, 0, 1, 1], [], []>} : vector<64x64xf32>, vector<64x256xf32>, vector<64x256xf32> -> vector<64x256xf32>
    %42 = vector.extract_strided_slice %32 {offsets = [0, 1], sizes = [64, 1], strides = [1, 1]} : vector<64x4xf32> to vector<64x1xf32>
    %43 = vector.broadcast %42 : vector<64x1xf32> to vector<64x256xf32>
    %44 = arith.addf %41, %43 : vector<64x256xf32>
    %45 = math.tanh %44 : vector<64x256xf32>
    %c1 = arith.constant 1 : index
    %c0_17 = arith.constant 0 : index
    %c0_18 = arith.constant 0 : index
    %46 = vector.load %arg3[%c1, %c0_17, %c0_18] : memref<2x64x64xf32, #tpu.memory_space<vmem>>, vector<1x64x64xf32>
    %47 = vector.shape_cast %46 : vector<1x64x64xf32> to vector<64x64xf32>
    %cst_19 = arith.constant dense<0.000000e+00> : vector<64x256xf32>
    %48 = tpu.matmul %47, %45, %cst_19 {dimension_numbers = #tpu.dot_dimension_numbers<[1], [0], [0], [1], [0, 0, 1, 1], [], []>} : vector<64x64xf32>, vector<64x256xf32>, vector<64x256xf32> -> vector<64x256xf32>
    %49 = vector.extract_strided_slice %32 {offsets = [0, 2], sizes = [64, 1], strides = [1, 1]} : vector<64x4xf32> to vector<64x1xf32>
    %50 = vector.broadcast %49 : vector<64x1xf32> to vector<64x256xf32>
    %51 = arith.addf %48, %50 : vector<64x256xf32>
    %52 = math.tanh %51 : vector<64x256xf32>
    %c0_20 = arith.constant 0 : index
    %c0_21 = arith.constant 0 : index
    %53 = vector.load %arg4[%c0_20, %c0_21] : memref<1x64xf32, #tpu.memory_space<vmem>>, vector<1x64xf32>
    %cst_22 = arith.constant dense<0.000000e+00> : vector<1x256xf32>
    %54 = tpu.matmul %53, %52, %cst_22 {dimension_numbers = #tpu.dot_dimension_numbers<[1], [0], [0], [1], [0, 0, 1, 1], [], []>} : vector<1x64xf32>, vector<64x256xf32>, vector<1x256xf32> -> vector<1x256xf32>
    %55 = vector.extract_strided_slice %32 {offsets = [0, 3], sizes = [1, 1], strides = [1, 1]} : vector<64x4xf32> to vector<1x1xf32>
    %56 = vector.broadcast %55 : vector<1x1xf32> to vector<1x256xf32>
    %57 = arith.addf %54, %56 : vector<1x256xf32>
    %c0_23 = arith.constant 0 : index
    %c0_24 = arith.constant 0 : index
    %58 = vector.load %arg6[%c0_23, %c0_24] : memref<1x256xf32, #tpu.memory_space<vmem>>, vector<1x256xf32>
    tpu.vector_store %arg6[%c0_23, %c0_24], %57 {strides = array<i32>} : memref<1x256xf32, #tpu.memory_space<vmem>>, vector<1x256xf32>,
    return
  }
}

module attributes {stable_mosaic.version = 11 : i64} {
  func.func @_ode_kernel(%arg0: memref<2x5xf32, #tpu.memory_space<vmem>>, %arg1: memref<5x64xf32, #tpu.memory_space<vmem>>, %arg2: memref<64x64xf32, #tpu.memory_space<vmem>>, %arg3: memref<64x5xf32, #tpu.memory_space<vmem>>, %arg4: memref<6x64xf32, #tpu.memory_space<vmem>>, %arg5: memref<1x5xf32, #tpu.memory_space<vmem>>, %arg6: memref<8x2x5xf32, #tpu.memory_space<vmem>>) attributes {dimension_semantics = [], scalar_prefetch = 0 : i64, scratch_operands = 0 : i64, tpu.core_type = #tpu.core_type<tc>} {
    %c0 = arith.constant 0 : index
    %c0_0 = arith.constant 0 : index
    %0 = vector.load %arg4[%c0, %c0_0] : memref<6x64xf32, #tpu.memory_space<vmem>>, vector<6x64xf32>
    %1 = vector.extract_strided_slice %0 {offsets = [0, 0], sizes = [1, 64], strides = [1, 1]} : vector<6x64xf32> to vector<1x64xf32>
    %2 = vector.extract_strided_slice %0 {offsets = [1, 0], sizes = [1, 64], strides = [1, 1]} : vector<6x64xf32> to vector<1x64xf32>
    %3 = vector.extract_strided_slice %0 {offsets = [2, 0], sizes = [1, 64], strides = [1, 1]} : vector<6x64xf32> to vector<1x64xf32>
    %4 = vector.extract_strided_slice %0 {offsets = [3, 0], sizes = [1, 64], strides = [1, 1]} : vector<6x64xf32> to vector<1x64xf32>
    %5 = vector.extract_strided_slice %0 {offsets = [4, 0], sizes = [1, 64], strides = [1, 1]} : vector<6x64xf32> to vector<1x64xf32>
    %6 = vector.extract_strided_slice %0 {offsets = [5, 0], sizes = [1, 64], strides = [1, 1]} : vector<6x64xf32> to vector<1x64xf32>
    %c0_1 = arith.constant 0 : index
    %c0_2 = arith.constant 0 : index
    %7 = vector.load %arg1[%c0_1, %c0_2] : memref<5x64xf32, #tpu.memory_space<vmem>>, vector<5x64xf32>
    %c0_3 = arith.constant 0 : index
    %c0_4 = arith.constant 0 : index
    %8 = vector.load %arg2[%c0_3, %c0_4] : memref<64x64xf32, #tpu.memory_space<vmem>>, vector<64x64xf32>
    %c0_5 = arith.constant 0 : index
    %c0_6 = arith.constant 0 : index
    %9 = vector.load %arg3[%c0_5, %c0_6] : memref<64x5xf32, #tpu.memory_space<vmem>>, vector<64x5xf32>
    %c0_7 = arith.constant 0 : index
    %c0_8 = arith.constant 0 : index
    %10 = vector.load %arg5[%c0_7, %c0_8] : memref<1x5xf32, #tpu.memory_space<vmem>>, vector<1x5xf32>
    %c0_9 = arith.constant 0 : index
    %c0_10 = arith.constant 0 : index
    %11 = vector.load %arg0[%c0_9, %c0_10] : memref<2x5xf32, #tpu.memory_space<vmem>>, vector<2x5xf32>
    %cst = arith.constant dense<0.000000e+00> : vector<2x64xf32>
    %12 = tpu.matmul %11, %7, %cst {dimension_numbers = #tpu.dot_dimension_numbers<[1], [0], [0], [1], [0, 0, 1, 1], [], []>} : vector<2x5xf32>, vector<5x64xf32>, vector<2x64xf32> -> vector<2x64xf32>
    %13 = vector.broadcast %1 : vector<1x64xf32> to vector<2x64xf32>
    %14 = arith.addf %12, %13 : vector<2x64xf32>
    %cst_11 = arith.constant dense<0.000000e+00> : vector<2xf32>
    %15 = vector.multi_reduction <add>, %14, %cst_11 [1] : vector<2x64xf32> to vector<2xf32>
    %16 = vector.shape_cast %15 : vector<2xf32> to vector<2x1xf32>
    %cst_12 = arith.constant 6.400000e+01 : f32
    %17 = vector.broadcast %cst_12 : f32 to vector<2x1xf32>
    %18 = arith.divf %16, %17 : vector<2x1xf32>
    %19 = vector.broadcast %18 : vector<2x1xf32> to vector<2x64xf32>
    %20 = arith.subf %14, %19 : vector<2x64xf32>
    %21 = arith.mulf %20, %20 : vector<2x64xf32>
    %cst_13 = arith.constant dense<0.000000e+00> : vector<2xf32>
    %22 = vector.multi_reduction <add>, %21, %cst_13 [1] : vector<2x64xf32> to vector<2xf32>
    %23 = vector.shape_cast %22 : vector<2xf32> to vector<2x1xf32>
    %cst_14 = arith.constant 6.400000e+01 : f32
    %24 = vector.broadcast %cst_14 : f32 to vector<2x1xf32>
    %25 = arith.divf %23, %24 : vector<2x1xf32>
    %26 = vector.broadcast %18 : vector<2x1xf32> to vector<2x64xf32>
    %27 = arith.subf %14, %26 : vector<2x64xf32>
    %cst_15 = arith.constant 9.99999974E-6 : f32
    %28 = vector.broadcast %cst_15 : f32 to vector<2x1xf32>
    %29 = arith.addf %25, %28 : vector<2x1xf32>
    %30 = math.rsqrt %29 : vector<2x1xf32>
    %31 = vector.broadcast %30 : vector<2x1xf32> to vector<2x64xf32>
    %32 = arith.mulf %27, %31 : vector<2x64xf32>
    %33 = vector.broadcast %2 : vector<1x64xf32> to vector<2x64xf32>
    %34 = arith.mulf %32, %33 : vector<2x64xf32>
    %35 = vector.broadcast %3 : vector<1x64xf32> to vector<2x64xf32>
    %36 = arith.addf %34, %35 : vector<2x64xf32>
    %37 = math.tanh %36 : vector<2x64xf32>
    %cst_16 = arith.constant dense<0.000000e+00> : vector<2x64xf32>
    %38 = tpu.matmul %37, %8, %cst_16 {dimension_numbers = #tpu.dot_dimension_numbers<[1], [0], [0], [1], [0, 0, 1, 1], [], []>} : vector<2x64xf32>, vector<64x64xf32>, vector<2x64xf32> -> vector<2x64xf32>
    %39 = vector.broadcast %4 : vector<1x64xf32> to vector<2x64xf32>
    %40 = arith.addf %38, %39 : vector<2x64xf32>
    %cst_17 = arith.constant dense<0.000000e+00> : vector<2xf32>
    %41 = vector.multi_reduction <add>, %40, %cst_17 [1] : vector<2x64xf32> to vector<2xf32>
    %42 = vector.shape_cast %41 : vector<2xf32> to vector<2x1xf32>
    %cst_18 = arith.constant 6.400000e+01 : f32
    %43 = vector.broadcast %cst_18 : f32 to vector<2x1xf32>
    %44 = arith.divf %42, %43 : vector<2x1xf32>
    %45 = vector.broadcast %44 : vector<2x1xf32> to vector<2x64xf32>
    %46 = arith.subf %40, %45 : vector<2x64xf32>
    %47 = arith.mulf %46, %46 : vector<2x64xf32>
    %cst_19 = arith.constant dense<0.000000e+00> : vector<2xf32>
    %48 = vector.multi_reduction <add>, %47, %cst_19 [1] : vector<2x64xf32> to vector<2xf32>
    %49 = vector.shape_cast %48 : vector<2xf32> to vector<2x1xf32>
    %cst_20 = arith.constant 6.400000e+01 : f32
    %50 = vector.broadcast %cst_20 : f32 to vector<2x1xf32>
    %51 = arith.divf %49, %50 : vector<2x1xf32>
    %52 = vector.broadcast %44 : vector<2x1xf32> to vector<2x64xf32>
    %53 = arith.subf %40, %52 : vector<2x64xf32>
    %cst_21 = arith.constant 9.99999974E-6 : f32
    %54 = vector.broadcast %cst_21 : f32 to vector<2x1xf32>
    %55 = arith.addf %51, %54 : vector<2x1xf32>
    %56 = math.rsqrt %55 : vector<2x1xf32>
    %57 = vector.broadcast %56 : vector<2x1xf32> to vector<2x64xf32>
    %58 = arith.mulf %53, %57 : vector<2x64xf32>
    %59 = vector.broadcast %5 : vector<1x64xf32> to vector<2x64xf32>
    %60 = arith.mulf %58, %59 : vector<2x64xf32>
    %61 = vector.broadcast %6 : vector<1x64xf32> to vector<2x64xf32>
    %62 = arith.addf %60, %61 : vector<2x64xf32>
    %63 = math.tanh %62 : vector<2x64xf32>
    %cst_22 = arith.constant dense<0.000000e+00> : vector<2x5xf32>
    %64 = tpu.matmul %63, %9, %cst_22 {dimension_numbers = #tpu.dot_dimension_numbers<[1], [0], [0], [1], [0, 0, 1, 1], [], []>} : vector<2x64xf32>, vector<64x5xf32>, vector<2x5xf32> -> vector<2x5xf32>
    %65 = vector.broadcast %10 : vector<1x5xf32> to vector<2x5xf32>
    %66 = arith.addf %64, %65 : vector<2x5xf32>
    %cst_23 = arith.constant 0.0333333351 : f32
    %67 = vector.broadcast %cst_23 : f32 to vector<2x5xf32>
    %68 = arith.mulf %66, %67 : vector<2x5xf32>
    %69 = arith.addf %11, %68 : vector<2x5xf32>
    %cst_24 = arith.constant dense<0.000000e+00> : vector<2x64xf32>
    %70 = tpu.matmul %69, %7, %cst_24 {dimension_numbers = #tpu.dot_dimension_numbers<[1], [0], [0], [1], [0, 0, 1, 1], [], []>} : vector<2x5xf32>, vector<5x64xf32>, vector<2x64xf32> -> vector<2x64xf32>
    %71 = vector.broadcast %1 : vector<1x64xf32> to vector<2x64xf32>
    %72 = arith.addf %70, %71 : vector<2x64xf32>
    %cst_25 = arith.constant dense<0.000000e+00> : vector<2xf32>
    %73 = vector.multi_reduction <add>, %72, %cst_25 [1] : vector<2x64xf32> to vector<2xf32>
    %74 = vector.shape_cast %73 : vector<2xf32> to vector<2x1xf32>
    %cst_26 = arith.constant 6.400000e+01 : f32
    %75 = vector.broadcast %cst_26 : f32 to vector<2x1xf32>
    %76 = arith.divf %74, %75 : vector<2x1xf32>
    %77 = vector.broadcast %76 : vector<2x1xf32> to vector<2x64xf32>
    %78 = arith.subf %72, %77 : vector<2x64xf32>
    %79 = arith.mulf %78, %78 : vector<2x64xf32>
    %cst_27 = arith.constant dense<0.000000e+00> : vector<2xf32>
    %80 = vector.multi_reduction <add>, %79, %cst_27 [1] : vector<2x64xf32> to vector<2xf32>
    %81 = vector.shape_cast %80 : vector<2xf32> to vector<2x1xf32>
    %cst_28 = arith.constant 6.400000e+01 : f32
    %82 = vector.broadcast %cst_28 : f32 to vector<2x1xf32>
    %83 = arith.divf %81, %82 : vector<2x1xf32>
    %84 = vector.broadcast %76 : vector<2x1xf32> to vector<2x64xf32>
    %85 = arith.subf %72, %84 : vector<2x64xf32>
    %cst_29 = arith.constant 9.99999974E-6 : f32
    %86 = vector.broadcast %cst_29 : f32 to vector<2x1xf32>
    %87 = arith.addf %83, %86 : vector<2x1xf32>
    %88 = math.rsqrt %87 : vector<2x1xf32>
    %89 = vector.broadcast %88 : vector<2x1xf32> to vector<2x64xf32>
    %90 = arith.mulf %85, %89 : vector<2x64xf32>
    %91 = vector.broadcast %2 : vector<1x64xf32> to vector<2x64xf32>
    %92 = arith.mulf %90, %91 : vector<2x64xf32>
    %93 = vector.broadcast %3 : vector<1x64xf32> to vector<2x64xf32>
    %94 = arith.addf %92, %93 : vector<2x64xf32>
    %95 = math.tanh %94 : vector<2x64xf32>
    %cst_30 = arith.constant dense<0.000000e+00> : vector<2x64xf32>
    %96 = tpu.matmul %95, %8, %cst_30 {dimension_numbers = #tpu.dot_dimension_numbers<[1], [0], [0], [1], [0, 0, 1, 1], [], []>} : vector<2x64xf32>, vector<64x64xf32>, vector<2x64xf32> -> vector<2x64xf32>
    %97 = vector.broadcast %4 : vector<1x64xf32> to vector<2x64xf32>
    %98 = arith.addf %96, %97 : vector<2x64xf32>
    %cst_31 = arith.constant dense<0.000000e+00> : vector<2xf32>
    %99 = vector.multi_reduction <add>, %98, %cst_31 [1] : vector<2x64xf32> to vector<2xf32>
    %100 = vector.shape_cast %99 : vector<2xf32> to vector<2x1xf32>
    %cst_32 = arith.constant 6.400000e+01 : f32
    %101 = vector.broadcast %cst_32 : f32 to vector<2x1xf32>
    %102 = arith.divf %100, %101 : vector<2x1xf32>
    %103 = vector.broadcast %102 : vector<2x1xf32> to vector<2x64xf32>
    %104 = arith.subf %98, %103 : vector<2x64xf32>
    %105 = arith.mulf %104, %104 : vector<2x64xf32>
    %cst_33 = arith.constant dense<0.000000e+00> : vector<2xf32>
    %106 = vector.multi_reduction <add>, %105, %cst_33 [1] : vector<2x64xf32> to vector<2xf32>
    %107 = vector.shape_cast %106 : vector<2xf32> to vector<2x1xf32>
    %cst_34 = arith.constant 6.400000e+01 : f32
    %108 = vector.broadcast %cst_34 : f32 to vector<2x1xf32>
    %109 = arith.divf %107, %108 : vector<2x1xf32>
    %110 = vector.broadcast %102 : vector<2x1xf32> to vector<2x64xf32>
    %111 = arith.subf %98, %110 : vector<2x64xf32>
    %cst_35 = arith.constant 9.99999974E-6 : f32
    %112 = vector.broadcast %cst_35 : f32 to vector<2x1xf32>
    %113 = arith.addf %109, %112 : vector<2x1xf32>
    %114 = math.rsqrt %113 : vector<2x1xf32>
    %115 = vector.broadcast %114 : vector<2x1xf32> to vector<2x64xf32>
    %116 = arith.mulf %111, %115 : vector<2x64xf32>
    %117 = vector.broadcast %5 : vector<1x64xf32> to vector<2x64xf32>
    %118 = arith.mulf %116, %117 : vector<2x64xf32>
    %119 = vector.broadcast %6 : vector<1x64xf32> to vector<2x64xf32>
    %120 = arith.addf %118, %119 : vector<2x64xf32>
    %121 = math.tanh %120 : vector<2x64xf32>
    %cst_36 = arith.constant dense<0.000000e+00> : vector<2x5xf32>
    %122 = tpu.matmul %121, %9, %cst_36 {dimension_numbers = #tpu.dot_dimension_numbers<[1], [0], [0], [1], [0, 0, 1, 1], [], []>} : vector<2x64xf32>, vector<64x5xf32>, vector<2x5xf32> -> vector<2x5xf32>
    %123 = vector.broadcast %10 : vector<1x5xf32> to vector<2x5xf32>
    %124 = arith.addf %122, %123 : vector<2x5xf32>
    %cst_37 = arith.constant 0.333333343 : f32
    %125 = vector.broadcast %cst_37 : f32 to vector<2x5xf32>
    %126 = arith.mulf %66, %125 : vector<2x5xf32>
    %127 = arith.subf %124, %126 : vector<2x5xf32>
    %cst_38 = arith.constant 1.000000e-01 : f32
    %128 = vector.broadcast %cst_38 : f32 to vector<2x5xf32>
    %129 = arith.mulf %127, %128 : vector<2x5xf32>
    %130 = arith.addf %11, %129 : vector<2x5xf32>
    %cst_39 = arith.constant dense<0.000000e+00> : vector<2x64xf32>
    %131 = tpu.matmul %130, %7, %cst_39 {dimension_numbers = #tpu.dot_dimension_numbers<[1], [0], [0], [1], [0, 0, 1, 1], [], []>} : vector<2x5xf32>, vector<5x64xf32>, vector<2x64xf32> -> vector<2x64xf32>
    %132 = vector.broadcast %1 : vector<1x64xf32> to vector<2x64xf32>
    %133 = arith.addf %131, %132 : vector<2x64xf32>
    %cst_40 = arith.constant dense<0.000000e+00> : vector<2xf32>
    %134 = vector.multi_reduction <add>, %133, %cst_40 [1] : vector<2x64xf32> to vector<2xf32>
    %135 = vector.shape_cast %134 : vector<2xf32> to vector<2x1xf32>
    %cst_41 = arith.constant 6.400000e+01 : f32
    %136 = vector.broadcast %cst_41 : f32 to vector<2x1xf32>
    %137 = arith.divf %135, %136 : vector<2x1xf32>
    %138 = vector.broadcast %137 : vector<2x1xf32> to vector<2x64xf32>
    %139 = arith.subf %133, %138 : vector<2x64xf32>
    %140 = arith.mulf %139, %139 : vector<2x64xf32>
    %cst_42 = arith.constant dense<0.000000e+00> : vector<2xf32>
    %141 = vector.multi_reduction <add>, %140, %cst_42 [1] : vector<2x64xf32> to vector<2xf32>
    %142 = vector.shape_cast %141 : vector<2xf32> to vector<2x1xf32>
    %cst_43 = arith.constant 6.400000e+01 : f32
    %143 = vector.broadcast %cst_43 : f32 to vector<2x1xf32>
    %144 = arith.divf %142, %143 : vector<2x1xf32>
    %145 = vector.broadcast %137 : vector<2x1xf32> to vector<2x64xf32>
    %146 = arith.subf %133, %145 : vector<2x64xf32>
    %cst_44 = arith.constant 9.99999974E-6 : f32
    %147 = vector.broadcast %cst_44 : f32 to vector<2x1xf32>
    %148 = arith.addf %144, %147 : vector<2x1xf32>
    %149 = math.rsqrt %148 : vector<2x1xf32>
    %150 = vector.broadcast %149 : vector<2x1xf32> to vector<2x64xf32>
    %151 = arith.mulf %146, %150 : vector<2x64xf32>
    %152 = vector.broadcast %2 : vector<1x64xf32> to vector<2x64xf32>
    %153 = arith.mulf %151, %152 : vector<2x64xf32>
    %154 = vector.broadcast %3 : vector<1x64xf32> to vector<2x64xf32>
    %155 = arith.addf %153, %154 : vector<2x64xf32>
    %156 = math.tanh %155 : vector<2x64xf32>
    %cst_45 = arith.constant dense<0.000000e+00> : vector<2x64xf32>
    %157 = tpu.matmul %156, %8, %cst_45 {dimension_numbers = #tpu.dot_dimension_numbers<[1], [0], [0], [1], [0, 0, 1, 1], [], []>} : vector<2x64xf32>, vector<64x64xf32>, vector<2x64xf32> -> vector<2x64xf32>
    %158 = vector.broadcast %4 : vector<1x64xf32> to vector<2x64xf32>
    %159 = arith.addf %157, %158 : vector<2x64xf32>
    %cst_46 = arith.constant dense<0.000000e+00> : vector<2xf32>
    %160 = vector.multi_reduction <add>, %159, %cst_46 [1] : vector<2x64xf32> to vector<2xf32>
    %161 = vector.shape_cast %160 : vector<2xf32> to vector<2x1xf32>
    %cst_47 = arith.constant 6.400000e+01 : f32
    %162 = vector.broadcast %cst_47 : f32 to vector<2x1xf32>
    %163 = arith.divf %161, %162 : vector<2x1xf32>
    %164 = vector.broadcast %163 : vector<2x1xf32> to vector<2x64xf32>
    %165 = arith.subf %159, %164 : vector<2x64xf32>
    %166 = arith.mulf %165, %165 : vector<2x64xf32>
    %cst_48 = arith.constant dense<0.000000e+00> : vector<2xf32>
    %167 = vector.multi_reduction <add>, %166, %cst_48 [1] : vector<2x64xf32> to vector<2xf32>
    %168 = vector.shape_cast %167 : vector<2xf32> to vector<2x1xf32>
    %cst_49 = arith.constant 6.400000e+01 : f32
    %169 = vector.broadcast %cst_49 : f32 to vector<2x1xf32>
    %170 = arith.divf %168, %169 : vector<2x1xf32>
    %171 = vector.broadcast %163 : vector<2x1xf32> to vector<2x64xf32>
    %172 = arith.subf %159, %171 : vector<2x64xf32>
    %cst_50 = arith.constant 9.99999974E-6 : f32
    %173 = vector.broadcast %cst_50 : f32 to vector<2x1xf32>
    %174 = arith.addf %170, %173 : vector<2x1xf32>
    %175 = math.rsqrt %174 : vector<2x1xf32>
    %176 = vector.broadcast %175 : vector<2x1xf32> to vector<2x64xf32>
    %177 = arith.mulf %172, %176 : vector<2x64xf32>
    %178 = vector.broadcast %5 : vector<1x64xf32> to vector<2x64xf32>
    %179 = arith.mulf %177, %178 : vector<2x64xf32>
    %180 = vector.broadcast %6 : vector<1x64xf32> to vector<2x64xf32>
    %181 = arith.addf %179, %180 : vector<2x64xf32>
    %182 = math.tanh %181 : vector<2x64xf32>
    %cst_51 = arith.constant dense<0.000000e+00> : vector<2x5xf32>
    %183 = tpu.matmul %182, %9, %cst_51 {dimension_numbers = #tpu.dot_dimension_numbers<[1], [0], [0], [1], [0, 0, 1, 1], [], []>} : vector<2x64xf32>, vector<64x5xf32>, vector<2x5xf32> -> vector<2x5xf32>
    %184 = vector.broadcast %10 : vector<1x5xf32> to vector<2x5xf32>
    %185 = arith.addf %183, %184 : vector<2x5xf32>
    %186 = arith.subf %66, %124 : vector<2x5xf32>
    %187 = arith.addf %186, %185 : vector<2x5xf32>
    %cst_52 = arith.constant 1.000000e-01 : f32
    %188 = vector.broadcast %cst_52 : f32 to vector<2x5xf32>
    %189 = arith.mulf %187, %188 : vector<2x5xf32>
    %190 = arith.addf %11, %189 : vector<2x5xf32>
    %cst_53 = arith.constant dense<0.000000e+00> : vector<2x64xf32>
    %191 = tpu.matmul %190, %7, %cst_53 {dimension_numbers = #tpu.dot_dimension_numbers<[1], [0], [0], [1], [0, 0, 1, 1], [], []>} : vector<2x5xf32>, vector<5x64xf32>, vector<2x64xf32> -> vector<2x64xf32>
    %192 = vector.broadcast %1 : vector<1x64xf32> to vector<2x64xf32>
    %193 = arith.addf %191, %192 : vector<2x64xf32>
    %cst_54 = arith.constant dense<0.000000e+00> : vector<2xf32>
    %194 = vector.multi_reduction <add>, %193, %cst_54 [1] : vector<2x64xf32> to vector<2xf32>
    %195 = vector.shape_cast %194 : vector<2xf32> to vector<2x1xf32>
    %cst_55 = arith.constant 6.400000e+01 : f32
    %196 = vector.broadcast %cst_55 : f32 to vector<2x1xf32>
    %197 = arith.divf %195, %196 : vector<2x1xf32>
    %198 = vector.broadcast %197 : vector<2x1xf32> to vector<2x64xf32>
    %199 = arith.subf %193, %198 : vector<2x64xf32>
    %200 = arith.mulf %199, %199 : vector<2x64xf32>
    %cst_56 = arith.constant dense<0.000000e+00> : vector<2xf32>
    %201 = vector.multi_reduction <add>, %200, %cst_56 [1] : vector<2x64xf32> to vector<2xf32>
    %202 = vector.shape_cast %201 : vector<2xf32> to vector<2x1xf32>
    %cst_57 = arith.constant 6.400000e+01 : f32
    %203 = vector.broadcast %cst_57 : f32 to vector<2x1xf32>
    %204 = arith.divf %202, %203 : vector<2x1xf32>
    %205 = vector.broadcast %197 : vector<2x1xf32> to vector<2x64xf32>
    %206 = arith.subf %193, %205 : vector<2x64xf32>
    %cst_58 = arith.constant 9.99999974E-6 : f32
    %207 = vector.broadcast %cst_58 : f32 to vector<2x1xf32>
    %208 = arith.addf %204, %207 : vector<2x1xf32>
    %209 = math.rsqrt %208 : vector<2x1xf32>
    %210 = vector.broadcast %209 : vector<2x1xf32> to vector<2x64xf32>
    %211 = arith.mulf %206, %210 : vector<2x64xf32>
    %212 = vector.broadcast %2 : vector<1x64xf32> to vector<2x64xf32>
    %213 = arith.mulf %211, %212 : vector<2x64xf32>
    %214 = vector.broadcast %3 : vector<1x64xf32> to vector<2x64xf32>
    %215 = arith.addf %213, %214 : vector<2x64xf32>
    %216 = math.tanh %215 : vector<2x64xf32>
    %cst_59 = arith.constant dense<0.000000e+00> : vector<2x64xf32>
    %217 = tpu.matmul %216, %8, %cst_59 {dimension_numbers = #tpu.dot_dimension_numbers<[1], [0], [0], [1], [0, 0, 1, 1], [], []>} : vector<2x64xf32>, vector<64x64xf32>, vector<2x64xf32> -> vector<2x64xf32>
    %218 = vector.broadcast %4 : vector<1x64xf32> to vector<2x64xf32>
    %219 = arith.addf %217, %218 : vector<2x64xf32>
    %cst_60 = arith.constant dense<0.000000e+00> : vector<2xf32>
    %220 = vector.multi_reduction <add>, %219, %cst_60 [1] : vector<2x64xf32> to vector<2xf32>
    %221 = vector.shape_cast %220 : vector<2xf32> to vector<2x1xf32>
    %cst_61 = arith.constant 6.400000e+01 : f32
    %222 = vector.broadcast %cst_61 : f32 to vector<2x1xf32>
    %223 = arith.divf %221, %222 : vector<2x1xf32>
    %224 = vector.broadcast %223 : vector<2x1xf32> to vector<2x64xf32>
    %225 = arith.subf %219, %224 : vector<2x64xf32>
    %226 = arith.mulf %225, %225 : vector<2x64xf32>
    %cst_62 = arith.constant dense<0.000000e+00> : vector<2xf32>
    %227 = vector.multi_reduction <add>, %226, %cst_62 [1] : vector<2x64xf32> to vector<2xf32>
    %228 = vector.shape_cast %227 : vector<2xf32> to vector<2x1xf32>
    %cst_63 = arith.constant 6.400000e+01 : f32
    %229 = vector.broadcast %cst_63 : f32 to vector<2x1xf32>
    %230 = arith.divf %228, %229 : vector<2x1xf32>
    %231 = vector.broadcast %223 : vector<2x1xf32> to vector<2x64xf32>
    %232 = arith.subf %219, %231 : vector<2x64xf32>
    %cst_64 = arith.constant 9.99999974E-6 : f32
    %233 = vector.broadcast %cst_64 : f32 to vector<2x1xf32>
    %234 = arith.addf %230, %233 : vector<2x1xf32>
    %235 = math.rsqrt %234 : vector<2x1xf32>
    %236 = vector.broadcast %235 : vector<2x1xf32> to vector<2x64xf32>
    %237 = arith.mulf %232, %236 : vector<2x64xf32>
    %238 = vector.broadcast %5 : vector<1x64xf32> to vector<2x64xf32>
    %239 = arith.mulf %237, %238 : vector<2x64xf32>
    %240 = vector.broadcast %6 : vector<1x64xf32> to vector<2x64xf32>
    %241 = arith.addf %239, %240 : vector<2x64xf32>
    %242 = math.tanh %241 : vector<2x64xf32>
    %cst_65 = arith.constant dense<0.000000e+00> : vector<2x5xf32>
    %243 = tpu.matmul %242, %9, %cst_65 {dimension_numbers = #tpu.dot_dimension_numbers<[1], [0], [0], [1], [0, 0, 1, 1], [], []>} : vector<2x64xf32>, vector<64x5xf32>, vector<2x5xf32> -> vector<2x5xf32>
    %244 = vector.broadcast %10 : vector<1x5xf32> to vector<2x5xf32>
    %245 = arith.addf %243, %244 : vector<2x5xf32>
    %246 = arith.addf %124, %185 : vector<2x5xf32>
    %cst_66 = arith.constant 3.000000e+00 : f32
    %247 = vector.broadcast %cst_66 : f32 to vector<2x5xf32>
    %248 = arith.mulf %247, %246 : vector<2x5xf32>
    %249 = arith.addf %66, %248 : vector<2x5xf32>
    %250 = arith.addf %249, %245 : vector<2x5xf32>
    %cst_67 = arith.constant 1.250000e-02 : f32
    %251 = vector.broadcast %cst_67 : f32 to vector<2x5xf32>
    %252 = arith.mulf %250, %251 : vector<2x5xf32>
    %253 = arith.addf %11, %252 : vector<2x5xf32>
    %cst_68 = arith.constant dense<0.000000e+00> : vector<2x64xf32>
    %254 = tpu.matmul %253, %7, %cst_68 {dimension_numbers = #tpu.dot_dimension_numbers<[1], [0], [0], [1], [0, 0, 1, 1], [], []>} : vector<2x5xf32>, vector<5x64xf32>, vector<2x64xf32> -> vector<2x64xf32>
    %255 = vector.broadcast %1 : vector<1x64xf32> to vector<2x64xf32>
    %256 = arith.addf %254, %255 : vector<2x64xf32>
    %cst_69 = arith.constant dense<0.000000e+00> : vector<2xf32>
    %257 = vector.multi_reduction <add>, %256, %cst_69 [1] : vector<2x64xf32> to vector<2xf32>
    %258 = vector.shape_cast %257 : vector<2xf32> to vector<2x1xf32>
    %cst_70 = arith.constant 6.400000e+01 : f32
    %259 = vector.broadcast %cst_70 : f32 to vector<2x1xf32>
    %260 = arith.divf %258, %259 : vector<2x1xf32>
    %261 = vector.broadcast %260 : vector<2x1xf32> to vector<2x64xf32>
    %262 = arith.subf %256, %261 : vector<2x64xf32>
    %263 = arith.mulf %262, %262 : vector<2x64xf32>
    %cst_71 = arith.constant dense<0.000000e+00> : vector<2xf32>
    %264 = vector.multi_reduction <add>, %263, %cst_71 [1] : vector<2x64xf32> to vector<2xf32>
    %265 = vector.shape_cast %264 : vector<2xf32> to vector<2x1xf32>
    %cst_72 = arith.constant 6.400000e+01 : f32
    %266 = vector.broadcast %cst_72 : f32 to vector<2x1xf32>
    %267 = arith.divf %265, %266 : vector<2x1xf32>
    %268 = vector.broadcast %260 : vector<2x1xf32> to vector<2x64xf32>
    %269 = arith.subf %256, %268 : vector<2x64xf32>
    %cst_73 = arith.constant 9.99999974E-6 : f32
    %270 = vector.broadcast %cst_73 : f32 to vector<2x1xf32>
    %271 = arith.addf %267, %270 : vector<2x1xf32>
    %272 = math.rsqrt %271 : vector<2x1xf32>
    %273 = vector.broadcast %272 : vector<2x1xf32> to vector<2x64xf32>
    %274 = arith.mulf %269, %273 : vector<2x64xf32>
    %275 = vector.broadcast %2 : vector<1x64xf32> to vector<2x64xf32>
    %276 = arith.mulf %274, %275 : vector<2x64xf32>
    %277 = vector.broadcast %3 : vector<1x64xf32> to vector<2x64xf32>
    %278 = arith.addf %276, %277 : vector<2x64xf32>
    %279 = math.tanh %278 : vector<2x64xf32>
    %cst_74 = arith.constant dense<0.000000e+00> : vector<2x64xf32>
    %280 = tpu.matmul %279, %8, %cst_74 {dimension_numbers = #tpu.dot_dimension_numbers<[1], [0], [0], [1], [0, 0, 1, 1], [], []>} : vector<2x64xf32>, vector<64x64xf32>, vector<2x64xf32> -> vector<2x64xf32>
    %281 = vector.broadcast %4 : vector<1x64xf32> to vector<2x64xf32>
    %282 = arith.addf %280, %281 : vector<2x64xf32>
    %cst_75 = arith.constant dense<0.000000e+00> : vector<2xf32>
    %283 = vector.multi_reduction <add>, %282, %cst_75 [1] : vector<2x64xf32> to vector<2xf32>
    %284 = vector.shape_cast %283 : vector<2xf32> to vector<2x1xf32>
    %cst_76 = arith.constant 6.400000e+01 : f32
    %285 = vector.broadcast %cst_76 : f32 to vector<2x1xf32>
    %286 = arith.divf %284, %285 : vector<2x1xf32>
    %287 = vector.broadcast %286 : vector<2x1xf32> to vector<2x64xf32>
    %288 = arith.subf %282, %287 : vector<2x64xf32>
    %289 = arith.mulf %288, %288 : vector<2x64xf32>
    %cst_77 = arith.constant dense<0.000000e+00> : vector<2xf32>
    %290 = vector.multi_reduction <add>, %289, %cst_77 [1] : vector<2x64xf32> to vector<2xf32>
    %291 = vector.shape_cast %290 : vector<2xf32> to vector<2x1xf32>
    %cst_78 = arith.constant 6.400000e+01 : f32
    %292 = vector.broadcast %cst_78 : f32 to vector<2x1xf32>
    %293 = arith.divf %291, %292 : vector<2x1xf32>
    %294 = vector.broadcast %286 : vector<2x1xf32> to vector<2x64xf32>
    %295 = arith.subf %282, %294 : vector<2x64xf32>
    %cst_79 = arith.constant 9.99999974E-6 : f32
    %296 = vector.broadcast %cst_79 : f32 to vector<2x1xf32>
    %297 = arith.addf %293, %296 : vector<2x1xf32>
    %298 = math.rsqrt %297 : vector<2x1xf32>
    %299 = vector.broadcast %298 : vector<2x1xf32> to vector<2x64xf32>
    %300 = arith.mulf %295, %299 : vector<2x64xf32>
    %301 = vector.broadcast %5 : vector<1x64xf32> to vector<2x64xf32>
    %302 = arith.mulf %300, %301 : vector<2x64xf32>
    %303 = vector.broadcast %6 : vector<1x64xf32> to vector<2x64xf32>
    %304 = arith.addf %302, %303 : vector<2x64xf32>
    %305 = math.tanh %304 : vector<2x64xf32>
    %cst_80 = arith.constant dense<0.000000e+00> : vector<2x5xf32>
    %306 = tpu.matmul %305, %9, %cst_80 {dimension_numbers = #tpu.dot_dimension_numbers<[1], [0], [0], [1], [0, 0, 1, 1], [], []>} : vector<2x64xf32>, vector<64x5xf32>, vector<2x5xf32> -> vector<2x5xf32>
    %307 = vector.broadcast %10 : vector<1x5xf32> to vector<2x5xf32>
    %308 = arith.addf %306, %307 : vector<2x5xf32>
    %cst_81 = arith.constant 0.0333333351 : f32
    %309 = vector.broadcast %cst_81 : f32 to vector<2x5xf32>
    %310 = arith.mulf %308, %309 : vector<2x5xf32>
    %311 = arith.addf %253, %310 : vector<2x5xf32>
    %cst_82 = arith.constant dense<0.000000e+00> : vector<2x64xf32>
    %312 = tpu.matmul %311, %7, %cst_82 {dimension_numbers = #tpu.dot_dimension_numbers<[1], [0], [0], [1], [0, 0, 1, 1], [], []>} : vector<2x5xf32>, vector<5x64xf32>, vector<2x64xf32> -> vector<2x64xf32>
    %313 = vector.broadcast %1 : vector<1x64xf32> to vector<2x64xf32>
    %314 = arith.addf %312, %313 : vector<2x64xf32>
    %cst_83 = arith.constant dense<0.000000e+00> : vector<2xf32>
    %315 = vector.multi_reduction <add>, %314, %cst_83 [1] : vector<2x64xf32> to vector<2xf32>
    %316 = vector.shape_cast %315 : vector<2xf32> to vector<2x1xf32>
    %cst_84 = arith.constant 6.400000e+01 : f32
    %317 = vector.broadcast %cst_84 : f32 to vector<2x1xf32>
    %318 = arith.divf %316, %317 : vector<2x1xf32>
    %319 = vector.broadcast %318 : vector<2x1xf32> to vector<2x64xf32>
    %320 = arith.subf %314, %319 : vector<2x64xf32>
    %321 = arith.mulf %320, %320 : vector<2x64xf32>
    %cst_85 = arith.constant dense<0.000000e+00> : vector<2xf32>
    %322 = vector.multi_reduction <add>, %321, %cst_85 [1] : vector<2x64xf32> to vector<2xf32>
    %323 = vector.shape_cast %322 : vector<2xf32> to vector<2x1xf32>
    %cst_86 = arith.constant 6.400000e+01 : f32
    %324 = vector.broadcast %cst_86 : f32 to vector<2x1xf32>
    %325 = arith.divf %323, %324 : vector<2x1xf32>
    %326 = vector.broadcast %318 : vector<2x1xf32> to vector<2x64xf32>
    %327 = arith.subf %314, %326 : vector<2x64xf32>
    %cst_87 = arith.constant 9.99999974E-6 : f32
    %328 = vector.broadcast %cst_87 : f32 to vector<2x1xf32>
    %329 = arith.addf %325, %328 : vector<2x1xf32>
    %330 = math.rsqrt %329 : vector<2x1xf32>
    %331 = vector.broadcast %330 : vector<2x1xf32> to vector<2x64xf32>
    %332 = arith.mulf %327, %331 : vector<2x64xf32>
    %333 = vector.broadcast %2 : vector<1x64xf32> to vector<2x64xf32>
    %334 = arith.mulf %332, %333 : vector<2x64xf32>
    %335 = vector.broadcast %3 : vector<1x64xf32> to vector<2x64xf32>
    %336 = arith.addf %334, %335 : vector<2x64xf32>
    %337 = math.tanh %336 : vector<2x64xf32>
    %cst_88 = arith.constant dense<0.000000e+00> : vector<2x64xf32>
    %338 = tpu.matmul %337, %8, %cst_88 {dimension_numbers = #tpu.dot_dimension_numbers<[1], [0], [0], [1], [0, 0, 1, 1], [], []>} : vector<2x64xf32>, vector<64x64xf32>, vector<2x64xf32> -> vector<2x64xf32>
    %339 = vector.broadcast %4 : vector<1x64xf32> to vector<2x64xf32>
    %340 = arith.addf %338, %339 : vector<2x64xf32>
    %cst_89 = arith.constant dense<0.000000e+00> : vector<2xf32>
    %341 = vector.multi_reduction <add>, %340, %cst_89 [1] : vector<2x64xf32> to vector<2xf32>
    %342 = vector.shape_cast %341 : vector<2xf32> to vector<2x1xf32>
    %cst_90 = arith.constant 6.400000e+01 : f32
    %343 = vector.broadcast %cst_90 : f32 to vector<2x1xf32>
    %344 = arith.divf %342, %343 : vector<2x1xf32>
    %345 = vector.broadcast %344 : vector<2x1xf32> to vector<2x64xf32>
    %346 = arith.subf %340, %345 : vector<2x64xf32>
    %347 = arith.mulf %346, %346 : vector<2x64xf32>
    %cst_91 = arith.constant dense<0.000000e+00> : vector<2xf32>
    %348 = vector.multi_reduction <add>, %347, %cst_91 [1] : vector<2x64xf32> to vector<2xf32>
    %349 = vector.shape_cast %348 : vector<2xf32> to vector<2x1xf32>
    %cst_92 = arith.constant 6.400000e+01 : f32
    %350 = vector.broadcast %cst_92 : f32 to vector<2x1xf32>
    %351 = arith.divf %349, %350 : vector<2x1xf32>
    %352 = vector.broadcast %344 : vector<2x1xf32> to vector<2x64xf32>
    %353 = arith.subf %340, %352 : vector<2x64xf32>
    %cst_93 = arith.constant 9.99999974E-6 : f32
    %354 = vector.broadcast %cst_93 : f32 to vector<2x1xf32>
    %355 = arith.addf %351, %354 : vector<2x1xf32>
    %356 = math.rsqrt %355 : vector<2x1xf32>
    %357 = vector.broadcast %356 : vector<2x1xf32> to vector<2x64xf32>
    %358 = arith.mulf %353, %357 : vector<2x64xf32>
    %359 = vector.broadcast %5 : vector<1x64xf32> to vector<2x64xf32>
    %360 = arith.mulf %358, %359 : vector<2x64xf32>
    %361 = vector.broadcast %6 : vector<1x64xf32> to vector<2x64xf32>
    %362 = arith.addf %360, %361 : vector<2x64xf32>
    %363 = math.tanh %362 : vector<2x64xf32>
    %cst_94 = arith.constant dense<0.000000e+00> : vector<2x5xf32>
    %364 = tpu.matmul %363, %9, %cst_94 {dimension_numbers = #tpu.dot_dimension_numbers<[1], [0], [0], [1], [0, 0, 1, 1], [], []>} : vector<2x64xf32>, vector<64x5xf32>, vector<2x5xf32> -> vector<2x5xf32>
    %365 = vector.broadcast %10 : vector<1x5xf32> to vector<2x5xf32>
    %366 = arith.addf %364, %365 : vector<2x5xf32>
    %cst_95 = arith.constant 0.333333343 : f32
    %367 = vector.broadcast %cst_95 : f32 to vector<2x5xf32>
    %368 = arith.mulf %308, %367 : vector<2x5xf32>
    %369 = arith.subf %366, %368 : vector<2x5xf32>
    %cst_96 = arith.constant 1.000000e-01 : f32
    %370 = vector.broadcast %cst_96 : f32 to vector<2x5xf32>
    %371 = arith.mulf %369, %370 : vector<2x5xf32>
    %372 = arith.addf %253, %371 : vector<2x5xf32>
    %cst_97 = arith.constant dense<0.000000e+00> : vector<2x64xf32>
    %373 = tpu.matmul %372, %7, %cst_97 {dimension_numbers = #tpu.dot_dimension_numbers<[1], [0], [0], [1], [0, 0, 1, 1], [], []>} : vector<2x5xf32>, vector<5x64xf32>, vector<2x64xf32> -> vector<2x64xf32>
    %374 = vector.broadcast %1 : vector<1x64xf32> to vector<2x64xf32>
    %375 = arith.addf %373, %374 : vector<2x64xf32>
    %cst_98 = arith.constant dense<0.000000e+00> : vector<2xf32>
    %376 = vector.multi_reduction <add>, %375, %cst_98 [1] : vector<2x64xf32> to vector<2xf32>
    %377 = vector.shape_cast %376 : vector<2xf32> to vector<2x1xf32>
    %cst_99 = arith.constant 6.400000e+01 : f32
    %378 = vector.broadcast %cst_99 : f32 to vector<2x1xf32>
    %379 = arith.divf %377, %378 : vector<2x1xf32>
    %380 = vector.broadcast %379 : vector<2x1xf32> to vector<2x64xf32>
    %381 = arith.subf %375, %380 : vector<2x64xf32>
    %382 = arith.mulf %381, %381 : vector<2x64xf32>
    %cst_100 = arith.constant dense<0.000000e+00> : vector<2xf32>
    %383 = vector.multi_reduction <add>, %382, %cst_100 [1] : vector<2x64xf32> to vector<2xf32>
    %384 = vector.shape_cast %383 : vector<2xf32> to vector<2x1xf32>
    %cst_101 = arith.constant 6.400000e+01 : f32
    %385 = vector.broadcast %cst_101 : f32 to vector<2x1xf32>
    %386 = arith.divf %384, %385 : vector<2x1xf32>
    %387 = vector.broadcast %379 : vector<2x1xf32> to vector<2x64xf32>
    %388 = arith.subf %375, %387 : vector<2x64xf32>
    %cst_102 = arith.constant 9.99999974E-6 : f32
    %389 = vector.broadcast %cst_102 : f32 to vector<2x1xf32>
    %390 = arith.addf %386, %389 : vector<2x1xf32>
    %391 = math.rsqrt %390 : vector<2x1xf32>
    %392 = vector.broadcast %391 : vector<2x1xf32> to vector<2x64xf32>
    %393 = arith.mulf %388, %392 : vector<2x64xf32>
    %394 = vector.broadcast %2 : vector<1x64xf32> to vector<2x64xf32>
    %395 = arith.mulf %393, %394 : vector<2x64xf32>
    %396 = vector.broadcast %3 : vector<1x64xf32> to vector<2x64xf32>
    %397 = arith.addf %395, %396 : vector<2x64xf32>
    %398 = math.tanh %397 : vector<2x64xf32>
    %cst_103 = arith.constant dense<0.000000e+00> : vector<2x64xf32>
    %399 = tpu.matmul %398, %8, %cst_103 {dimension_numbers = #tpu.dot_dimension_numbers<[1], [0], [0], [1], [0, 0, 1, 1], [], []>} : vector<2x64xf32>, vector<64x64xf32>, vector<2x64xf32> -> vector<2x64xf32>
    %400 = vector.broadcast %4 : vector<1x64xf32> to vector<2x64xf32>
    %401 = arith.addf %399, %400 : vector<2x64xf32>
    %cst_104 = arith.constant dense<0.000000e+00> : vector<2xf32>
    %402 = vector.multi_reduction <add>, %401, %cst_104 [1] : vector<2x64xf32> to vector<2xf32>
    %403 = vector.shape_cast %402 : vector<2xf32> to vector<2x1xf32>
    %cst_105 = arith.constant 6.400000e+01 : f32
    %404 = vector.broadcast %cst_105 : f32 to vector<2x1xf32>
    %405 = arith.divf %403, %404 : vector<2x1xf32>
    %406 = vector.broadcast %405 : vector<2x1xf32> to vector<2x64xf32>
    %407 = arith.subf %401, %406 : vector<2x64xf32>
    %408 = arith.mulf %407, %407 : vector<2x64xf32>
    %cst_106 = arith.constant dense<0.000000e+00> : vector<2xf32>
    %409 = vector.multi_reduction <add>, %408, %cst_106 [1] : vector<2x64xf32> to vector<2xf32>
    %410 = vector.shape_cast %409 : vector<2xf32> to vector<2x1xf32>
    %cst_107 = arith.constant 6.400000e+01 : f32
    %411 = vector.broadcast %cst_107 : f32 to vector<2x1xf32>
    %412 = arith.divf %410, %411 : vector<2x1xf32>
    %413 = vector.broadcast %405 : vector<2x1xf32> to vector<2x64xf32>
    %414 = arith.subf %401, %413 : vector<2x64xf32>
    %cst_108 = arith.constant 9.99999974E-6 : f32
    %415 = vector.broadcast %cst_108 : f32 to vector<2x1xf32>
    %416 = arith.addf %412, %415 : vector<2x1xf32>
    %417 = math.rsqrt %416 : vector<2x1xf32>
    %418 = vector.broadcast %417 : vector<2x1xf32> to vector<2x64xf32>
    %419 = arith.mulf %414, %418 : vector<2x64xf32>
    %420 = vector.broadcast %5 : vector<1x64xf32> to vector<2x64xf32>
    %421 = arith.mulf %419, %420 : vector<2x64xf32>
    %422 = vector.broadcast %6 : vector<1x64xf32> to vector<2x64xf32>
    %423 = arith.addf %421, %422 : vector<2x64xf32>
    %424 = math.tanh %423 : vector<2x64xf32>
    %cst_109 = arith.constant dense<0.000000e+00> : vector<2x5xf32>
    %425 = tpu.matmul %424, %9, %cst_109 {dimension_numbers = #tpu.dot_dimension_numbers<[1], [0], [0], [1], [0, 0, 1, 1], [], []>} : vector<2x64xf32>, vector<64x5xf32>, vector<2x5xf32> -> vector<2x5xf32>
    %426 = vector.broadcast %10 : vector<1x5xf32> to vector<2x5xf32>
    %427 = arith.addf %425, %426 : vector<2x5xf32>
    %428 = arith.subf %308, %366 : vector<2x5xf32>
    %429 = arith.addf %428, %427 : vector<2x5xf32>
    %cst_110 = arith.constant 1.000000e-01 : f32
    %430 = vector.broadcast %cst_110 : f32 to vector<2x5xf32>
    %431 = arith.mulf %429, %430 : vector<2x5xf32>
    %432 = arith.addf %253, %431 : vector<2x5xf32>
    %cst_111 = arith.constant dense<0.000000e+00> : vector<2x64xf32>
    %433 = tpu.matmul %432, %7, %cst_111 {dimension_numbers = #tpu.dot_dimension_numbers<[1], [0], [0], [1], [0, 0, 1, 1], [], []>} : vector<2x5xf32>, vector<5x64xf32>, vector<2x64xf32> -> vector<2x64xf32>
    %434 = vector.broadcast %1 : vector<1x64xf32> to vector<2x64xf32>
    %435 = arith.addf %433, %434 : vector<2x64xf32>
    %cst_112 = arith.constant dense<0.000000e+00> : vector<2xf32>
    %436 = vector.multi_reduction <add>, %435, %cst_112 [1] : vector<2x64xf32> to vector<2xf32>
    %437 = vector.shape_cast %436 : vector<2xf32> to vector<2x1xf32>
    %cst_113 = arith.constant 6.400000e+01 : f32
    %438 = vector.broadcast %cst_113 : f32 to vector<2x1xf32>
    %439 = arith.divf %437, %438 : vector<2x1xf32>
    %440 = vector.broadcast %439 : vector<2x1xf32> to vector<2x64xf32>
    %441 = arith.subf %435, %440 : vector<2x64xf32>
    %442 = arith.mulf %441, %441 : vector<2x64xf32>
    %cst_114 = arith.constant dense<0.000000e+00> : vector<2xf32>
    %443 = vector.multi_reduction <add>, %442, %cst_114 [1] : vector<2x64xf32> to vector<2xf32>
    %444 = vector.shape_cast %443 : vector<2xf32> to vector<2x1xf32>
    %cst_115 = arith.constant 6.400000e+01 : f32
    %445 = vector.broadcast %cst_115 : f32 to vector<2x1xf32>
    %446 = arith.divf %444, %445 : vector<2x1xf32>
    %447 = vector.broadcast %439 : vector<2x1xf32> to vector<2x64xf32>
    %448 = arith.subf %435, %447 : vector<2x64xf32>
    %cst_116 = arith.constant 9.99999974E-6 : f32
    %449 = vector.broadcast %cst_116 : f32 to vector<2x1xf32>
    %450 = arith.addf %446, %449 : vector<2x1xf32>
    %451 = math.rsqrt %450 : vector<2x1xf32>
    %452 = vector.broadcast %451 : vector<2x1xf32> to vector<2x64xf32>
    %453 = arith.mulf %448, %452 : vector<2x64xf32>
    %454 = vector.broadcast %2 : vector<1x64xf32> to vector<2x64xf32>
    %455 = arith.mulf %453, %454 : vector<2x64xf32>
    %456 = vector.broadcast %3 : vector<1x64xf32> to vector<2x64xf32>
    %457 = arith.addf %455, %456 : vector<2x64xf32>
    %458 = math.tanh %457 : vector<2x64xf32>
    %cst_117 = arith.constant dense<0.000000e+00> : vector<2x64xf32>
    %459 = tpu.matmul %458, %8, %cst_117 {dimension_numbers = #tpu.dot_dimension_numbers<[1], [0], [0], [1], [0, 0, 1, 1], [], []>} : vector<2x64xf32>, vector<64x64xf32>, vector<2x64xf32> -> vector<2x64xf32>
    %460 = vector.broadcast %4 : vector<1x64xf32> to vector<2x64xf32>
    %461 = arith.addf %459, %460 : vector<2x64xf32>
    %cst_118 = arith.constant dense<0.000000e+00> : vector<2xf32>
    %462 = vector.multi_reduction <add>, %461, %cst_118 [1] : vector<2x64xf32> to vector<2xf32>
    %463 = vector.shape_cast %462 : vector<2xf32> to vector<2x1xf32>
    %cst_119 = arith.constant 6.400000e+01 : f32
    %464 = vector.broadcast %cst_119 : f32 to vector<2x1xf32>
    %465 = arith.divf %463, %464 : vector<2x1xf32>
    %466 = vector.broadcast %465 : vector<2x1xf32> to vector<2x64xf32>
    %467 = arith.subf %461, %466 : vector<2x64xf32>
    %468 = arith.mulf %467, %467 : vector<2x64xf32>
    %cst_120 = arith.constant dense<0.000000e+00> : vector<2xf32>
    %469 = vector.multi_reduction <add>, %468, %cst_120 [1] : vector<2x64xf32> to vector<2xf32>
    %470 = vector.shape_cast %469 : vector<2xf32> to vector<2x1xf32>
    %cst_121 = arith.constant 6.400000e+01 : f32
    %471 = vector.broadcast %cst_121 : f32 to vector<2x1xf32>
    %472 = arith.divf %470, %471 : vector<2x1xf32>
    %473 = vector.broadcast %465 : vector<2x1xf32> to vector<2x64xf32>
    %474 = arith.subf %461, %473 : vector<2x64xf32>
    %cst_122 = arith.constant 9.99999974E-6 : f32
    %475 = vector.broadcast %cst_122 : f32 to vector<2x1xf32>
    %476 = arith.addf %472, %475 : vector<2x1xf32>
    %477 = math.rsqrt %476 : vector<2x1xf32>
    %478 = vector.broadcast %477 : vector<2x1xf32> to vector<2x64xf32>
    %479 = arith.mulf %474, %478 : vector<2x64xf32>
    %480 = vector.broadcast %5 : vector<1x64xf32> to vector<2x64xf32>
    %481 = arith.mulf %479, %480 : vector<2x64xf32>
    %482 = vector.broadcast %6 : vector<1x64xf32> to vector<2x64xf32>
    %483 = arith.addf %481, %482 : vector<2x64xf32>
    %484 = math.tanh %483 : vector<2x64xf32>
    %cst_123 = arith.constant dense<0.000000e+00> : vector<2x5xf32>
    %485 = tpu.matmul %484, %9, %cst_123 {dimension_numbers = #tpu.dot_dimension_numbers<[1], [0], [0], [1], [0, 0, 1, 1], [], []>} : vector<2x64xf32>, vector<64x5xf32>, vector<2x5xf32> -> vector<2x5xf32>
    %486 = vector.broadcast %10 : vector<1x5xf32> to vector<2x5xf32>
    %487 = arith.addf %485, %486 : vector<2x5xf32>
    %488 = arith.addf %366, %427 : vector<2x5xf32>
    %cst_124 = arith.constant 3.000000e+00 : f32
    %489 = vector.broadcast %cst_124 : f32 to vector<2x5xf32>
    %490 = arith.mulf %489, %488 : vector<2x5xf32>
    %491 = arith.addf %308, %490 : vector<2x5xf32>
    %492 = arith.addf %491, %487 : vector<2x5xf32>
    %cst_125 = arith.constant 1.250000e-02 : f32
    %493 = vector.broadcast %cst_125 : f32 to vector<2x5xf32>
    %494 = arith.mulf %492, %493 : vector<2x5xf32>
    %495 = arith.addf %253, %494 : vector<2x5xf32>
    %cst_126 = arith.constant dense<0.000000e+00> : vector<2x64xf32>
    %496 = tpu.matmul %495, %7, %cst_126 {dimension_numbers = #tpu.dot_dimension_numbers<[1], [0], [0], [1], [0, 0, 1, 1], [], []>} : vector<2x5xf32>, vector<5x64xf32>, vector<2x64xf32> -> vector<2x64xf32>
    %497 = vector.broadcast %1 : vector<1x64xf32> to vector<2x64xf32>
    %498 = arith.addf %496, %497 : vector<2x64xf32>
    %cst_127 = arith.constant dense<0.000000e+00> : vector<2xf32>
    %499 = vector.multi_reduction <add>, %498, %cst_127 [1] : vector<2x64xf32> to vector<2xf32>
    %500 = vector.shape_cast %499 : vector<2xf32> to vector<2x1xf32>
    %cst_128 = arith.constant 6.400000e+01 : f32
    %501 = vector.broadcast %cst_128 : f32 to vector<2x1xf32>
    %502 = arith.divf %500, %501 : vector<2x1xf32>
    %503 = vector.broadcast %502 : vector<2x1xf32> to vector<2x64xf32>
    %504 = arith.subf %498, %503 : vector<2x64xf32>
    %505 = arith.mulf %504, %504 : vector<2x64xf32>
    %cst_129 = arith.constant dense<0.000000e+00> : vector<2xf32>
    %506 = vector.multi_reduction <add>, %505, %cst_129 [1] : vector<2x64xf32> to vector<2xf32>
    %507 = vector.shape_cast %506 : vector<2xf32> to vector<2x1xf32>
    %cst_130 = arith.constant 6.400000e+01 : f32
    %508 = vector.broadcast %cst_130 : f32 to vector<2x1xf32>
    %509 = arith.divf %507, %508 : vector<2x1xf32>
    %510 = vector.broadcast %502 : vector<2x1xf32> to vector<2x64xf32>
    %511 = arith.subf %498, %510 : vector<2x64xf32>
    %cst_131 = arith.constant 9.99999974E-6 : f32
    %512 = vector.broadcast %cst_131 : f32 to vector<2x1xf32>
    %513 = arith.addf %509, %512 : vector<2x1xf32>
    %514 = math.rsqrt %513 : vector<2x1xf32>
    %515 = vector.broadcast %514 : vector<2x1xf32> to vector<2x64xf32>
    %516 = arith.mulf %511, %515 : vector<2x64xf32>
    %517 = vector.broadcast %2 : vector<1x64xf32> to vector<2x64xf32>
    %518 = arith.mulf %516, %517 : vector<2x64xf32>
    %519 = vector.broadcast %3 : vector<1x64xf32> to vector<2x64xf32>
    %520 = arith.addf %518, %519 : vector<2x64xf32>
    %521 = math.tanh %520 : vector<2x64xf32>
    %cst_132 = arith.constant dense<0.000000e+00> : vector<2x64xf32>
    %522 = tpu.matmul %521, %8, %cst_132 {dimension_numbers = #tpu.dot_dimension_numbers<[1], [0], [0], [1], [0, 0, 1, 1], [], []>} : vector<2x64xf32>, vector<64x64xf32>, vector<2x64xf32> -> vector<2x64xf32>
    %523 = vector.broadcast %4 : vector<1x64xf32> to vector<2x64xf32>
    %524 = arith.addf %522, %523 : vector<2x64xf32>
    %cst_133 = arith.constant dense<0.000000e+00> : vector<2xf32>
    %525 = vector.multi_reduction <add>, %524, %cst_133 [1] : vector<2x64xf32> to vector<2xf32>
    %526 = vector.shape_cast %525 : vector<2xf32> to vector<2x1xf32>
    %cst_134 = arith.constant 6.400000e+01 : f32
    %527 = vector.broadcast %cst_134 : f32 to vector<2x1xf32>
    %528 = arith.divf %526, %527 : vector<2x1xf32>
    %529 = vector.broadcast %528 : vector<2x1xf32> to vector<2x64xf32>
    %530 = arith.subf %524, %529 : vector<2x64xf32>
    %531 = arith.mulf %530, %530 : vector<2x64xf32>
    %cst_135 = arith.constant dense<0.000000e+00> : vector<2xf32>
    %532 = vector.multi_reduction <add>, %531, %cst_135 [1] : vector<2x64xf32> to vector<2xf32>
    %533 = vector.shape_cast %532 : vector<2xf32> to vector<2x1xf32>
    %cst_136 = arith.constant 6.400000e+01 : f32
    %534 = vector.broadcast %cst_136 : f32 to vector<2x1xf32>
    %535 = arith.divf %533, %534 : vector<2x1xf32>
    %536 = vector.broadcast %528 : vector<2x1xf32> to vector<2x64xf32>
    %537 = arith.subf %524, %536 : vector<2x64xf32>
    %cst_137 = arith.constant 9.99999974E-6 : f32
    %538 = vector.broadcast %cst_137 : f32 to vector<2x1xf32>
    %539 = arith.addf %535, %538 : vector<2x1xf32>
    %540 = math.rsqrt %539 : vector<2x1xf32>
    %541 = vector.broadcast %540 : vector<2x1xf32> to vector<2x64xf32>
    %542 = arith.mulf %537, %541 : vector<2x64xf32>
    %543 = vector.broadcast %5 : vector<1x64xf32> to vector<2x64xf32>
    %544 = arith.mulf %542, %543 : vector<2x64xf32>
    %545 = vector.broadcast %6 : vector<1x64xf32> to vector<2x64xf32>
    %546 = arith.addf %544, %545 : vector<2x64xf32>
    %547 = math.tanh %546 : vector<2x64xf32>
    %cst_138 = arith.constant dense<0.000000e+00> : vector<2x5xf32>
    %548 = tpu.matmul %547, %9, %cst_138 {dimension_numbers = #tpu.dot_dimension_numbers<[1], [0], [0], [1], [0, 0, 1, 1], [], []>} : vector<2x64xf32>, vector<64x5xf32>, vector<2x5xf32> -> vector<2x5xf32>
    %549 = vector.broadcast %10 : vector<1x5xf32> to vector<2x5xf32>
    %550 = arith.addf %548, %549 : vector<2x5xf32>
    %cst_139 = arith.constant 0.0333333351 : f32
    %551 = vector.broadcast %cst_139 : f32 to vector<2x5xf32>
    %552 = arith.mulf %550, %551 : vector<2x5xf32>
    %553 = arith.addf %495, %552 : vector<2x5xf32>
    %cst_140 = arith.constant dense<0.000000e+00> : vector<2x64xf32>
    %554 = tpu.matmul %553, %7, %cst_140 {dimension_numbers = #tpu.dot_dimension_numbers<[1], [0], [0], [1], [0, 0, 1, 1], [], []>} : vector<2x5xf32>, vector<5x64xf32>, vector<2x64xf32> -> vector<2x64xf32>
    %555 = vector.broadcast %1 : vector<1x64xf32> to vector<2x64xf32>
    %556 = arith.addf %554, %555 : vector<2x64xf32>
    %cst_141 = arith.constant dense<0.000000e+00> : vector<2xf32>
    %557 = vector.multi_reduction <add>, %556, %cst_141 [1] : vector<2x64xf32> to vector<2xf32>
    %558 = vector.shape_cast %557 : vector<2xf32> to vector<2x1xf32>
    %cst_142 = arith.constant 6.400000e+01 : f32
    %559 = vector.broadcast %cst_142 : f32 to vector<2x1xf32>
    %560 = arith.divf %558, %559 : vector<2x1xf32>
    %561 = vector.broadcast %560 : vector<2x1xf32> to vector<2x64xf32>
    %562 = arith.subf %556, %561 : vector<2x64xf32>
    %563 = arith.mulf %562, %562 : vector<2x64xf32>
    %cst_143 = arith.constant dense<0.000000e+00> : vector<2xf32>
    %564 = vector.multi_reduction <add>, %563, %cst_143 [1] : vector<2x64xf32> to vector<2xf32>
    %565 = vector.shape_cast %564 : vector<2xf32> to vector<2x1xf32>
    %cst_144 = arith.constant 6.400000e+01 : f32
    %566 = vector.broadcast %cst_144 : f32 to vector<2x1xf32>
    %567 = arith.divf %565, %566 : vector<2x1xf32>
    %568 = vector.broadcast %560 : vector<2x1xf32> to vector<2x64xf32>
    %569 = arith.subf %556, %568 : vector<2x64xf32>
    %cst_145 = arith.constant 9.99999974E-6 : f32
    %570 = vector.broadcast %cst_145 : f32 to vector<2x1xf32>
    %571 = arith.addf %567, %570 : vector<2x1xf32>
    %572 = math.rsqrt %571 : vector<2x1xf32>
    %573 = vector.broadcast %572 : vector<2x1xf32> to vector<2x64xf32>
    %574 = arith.mulf %569, %573 : vector<2x64xf32>
    %575 = vector.broadcast %2 : vector<1x64xf32> to vector<2x64xf32>
    %576 = arith.mulf %574, %575 : vector<2x64xf32>
    %577 = vector.broadcast %3 : vector<1x64xf32> to vector<2x64xf32>
    %578 = arith.addf %576, %577 : vector<2x64xf32>
    %579 = math.tanh %578 : vector<2x64xf32>
    %cst_146 = arith.constant dense<0.000000e+00> : vector<2x64xf32>
    %580 = tpu.matmul %579, %8, %cst_146 {dimension_numbers = #tpu.dot_dimension_numbers<[1], [0], [0], [1], [0, 0, 1, 1], [], []>} : vector<2x64xf32>, vector<64x64xf32>, vector<2x64xf32> -> vector<2x64xf32>
    %581 = vector.broadcast %4 : vector<1x64xf32> to vector<2x64xf32>
    %582 = arith.addf %580, %581 : vector<2x64xf32>
    %cst_147 = arith.constant dense<0.000000e+00> : vector<2xf32>
    %583 = vector.multi_reduction <add>, %582, %cst_147 [1] : vector<2x64xf32> to vector<2xf32>
    %584 = vector.shape_cast %583 : vector<2xf32> to vector<2x1xf32>
    %cst_148 = arith.constant 6.400000e+01 : f32
    %585 = vector.broadcast %cst_148 : f32 to vector<2x1xf32>
    %586 = arith.divf %584, %585 : vector<2x1xf32>
    %587 = vector.broadcast %586 : vector<2x1xf32> to vector<2x64xf32>
    %588 = arith.subf %582, %587 : vector<2x64xf32>
    %589 = arith.mulf %588, %588 : vector<2x64xf32>
    %cst_149 = arith.constant dense<0.000000e+00> : vector<2xf32>
    %590 = vector.multi_reduction <add>, %589, %cst_149 [1] : vector<2x64xf32> to vector<2xf32>
    %591 = vector.shape_cast %590 : vector<2xf32> to vector<2x1xf32>
    %cst_150 = arith.constant 6.400000e+01 : f32
    %592 = vector.broadcast %cst_150 : f32 to vector<2x1xf32>
    %593 = arith.divf %591, %592 : vector<2x1xf32>
    %594 = vector.broadcast %586 : vector<2x1xf32> to vector<2x64xf32>
    %595 = arith.subf %582, %594 : vector<2x64xf32>
    %cst_151 = arith.constant 9.99999974E-6 : f32
    %596 = vector.broadcast %cst_151 : f32 to vector<2x1xf32>
    %597 = arith.addf %593, %596 : vector<2x1xf32>
    %598 = math.rsqrt %597 : vector<2x1xf32>
    %599 = vector.broadcast %598 : vector<2x1xf32> to vector<2x64xf32>
    %600 = arith.mulf %595, %599 : vector<2x64xf32>
    %601 = vector.broadcast %5 : vector<1x64xf32> to vector<2x64xf32>
    %602 = arith.mulf %600, %601 : vector<2x64xf32>
    %603 = vector.broadcast %6 : vector<1x64xf32> to vector<2x64xf32>
    %604 = arith.addf %602, %603 : vector<2x64xf32>
    %605 = math.tanh %604 : vector<2x64xf32>
    %cst_152 = arith.constant dense<0.000000e+00> : vector<2x5xf32>
    %606 = tpu.matmul %605, %9, %cst_152 {dimension_numbers = #tpu.dot_dimension_numbers<[1], [0], [0], [1], [0, 0, 1, 1], [], []>} : vector<2x64xf32>, vector<64x5xf32>, vector<2x5xf32> -> vector<2x5xf32>
    %607 = vector.broadcast %10 : vector<1x5xf32> to vector<2x5xf32>
    %608 = arith.addf %606, %607 : vector<2x5xf32>
    %cst_153 = arith.constant 0.333333343 : f32
    %609 = vector.broadcast %cst_153 : f32 to vector<2x5xf32>
    %610 = arith.mulf %550, %609 : vector<2x5xf32>
    %611 = arith.subf %608, %610 : vector<2x5xf32>
    %cst_154 = arith.constant 0.100000009 : f32
    %612 = vector.broadcast %cst_154 : f32 to vector<2x5xf32>
    %613 = arith.mulf %611, %612 : vector<2x5xf32>
    %614 = arith.addf %495, %613 : vector<2x5xf32>
    %cst_155 = arith.constant dense<0.000000e+00> : vector<2x64xf32>
    %615 = tpu.matmul %614, %7, %cst_155 {dimension_numbers = #tpu.dot_dimension_numbers<[1], [0], [0], [1], [0, 0, 1, 1], [], []>} : vector<2x5xf32>, vector<5x64xf32>, vector<2x64xf32> -> vector<2x64xf32>
    %616 = vector.broadcast %1 : vector<1x64xf32> to vector<2x64xf32>
    %617 = arith.addf %615, %616 : vector<2x64xf32>
    %cst_156 = arith.constant dense<0.000000e+00> : vector<2xf32>
    %618 = vector.multi_reduction <add>, %617, %cst_156 [1] : vector<2x64xf32> to vector<2xf32>
    %619 = vector.shape_cast %618 : vector<2xf32> to vector<2x1xf32>
    %cst_157 = arith.constant 6.400000e+01 : f32
    %620 = vector.broadcast %cst_157 : f32 to vector<2x1xf32>
    %621 = arith.divf %619, %620 : vector<2x1xf32>
    %622 = vector.broadcast %621 : vector<2x1xf32> to vector<2x64xf32>
    %623 = arith.subf %617, %622 : vector<2x64xf32>
    %624 = arith.mulf %623, %623 : vector<2x64xf32>
    %cst_158 = arith.constant dense<0.000000e+00> : vector<2xf32>
    %625 = vector.multi_reduction <add>, %624, %cst_158 [1] : vector<2x64xf32> to vector<2xf32>
    %626 = vector.shape_cast %625 : vector<2xf32> to vector<2x1xf32>
    %cst_159 = arith.constant 6.400000e+01 : f32
    %627 = vector.broadcast %cst_159 : f32 to vector<2x1xf32>
    %628 = arith.divf %626, %627 : vector<2x1xf32>
    %629 = vector.broadcast %621 : vector<2x1xf32> to vector<2x64xf32>
    %630 = arith.subf %617, %629 : vector<2x64xf32>
    %cst_160 = arith.constant 9.99999974E-6 : f32
    %631 = vector.broadcast %cst_160 : f32 to vector<2x1xf32>
    %632 = arith.addf %628, %631 : vector<2x1xf32>
    %633 = math.rsqrt %632 : vector<2x1xf32>
    %634 = vector.broadcast %633 : vector<2x1xf32> to vector<2x64xf32>
    %635 = arith.mulf %630, %634 : vector<2x64xf32>
    %636 = vector.broadcast %2 : vector<1x64xf32> to vector<2x64xf32>
    %637 = arith.mulf %635, %636 : vector<2x64xf32>
    %638 = vector.broadcast %3 : vector<1x64xf32> to vector<2x64xf32>
    %639 = arith.addf %637, %638 : vector<2x64xf32>
    %640 = math.tanh %639 : vector<2x64xf32>
    %cst_161 = arith.constant dense<0.000000e+00> : vector<2x64xf32>
    %641 = tpu.matmul %640, %8, %cst_161 {dimension_numbers = #tpu.dot_dimension_numbers<[1], [0], [0], [1], [0, 0, 1, 1], [], []>} : vector<2x64xf32>, vector<64x64xf32>, vector<2x64xf32> -> vector<2x64xf32>
    %642 = vector.broadcast %4 : vector<1x64xf32> to vector<2x64xf32>
    %643 = arith.addf %641, %642 : vector<2x64xf32>
    %cst_162 = arith.constant dense<0.000000e+00> : vector<2xf32>
    %644 = vector.multi_reduction <add>, %643, %cst_162 [1] : vector<2x64xf32> to vector<2xf32>
    %645 = vector.shape_cast %644 : vector<2xf32> to vector<2x1xf32>
    %cst_163 = arith.constant 6.400000e+01 : f32
    %646 = vector.broadcast %cst_163 : f32 to vector<2x1xf32>
    %647 = arith.divf %645, %646 : vector<2x1xf32>
    %648 = vector.broadcast %647 : vector<2x1xf32> to vector<2x64xf32>
    %649 = arith.subf %643, %648 : vector<2x64xf32>
    %650 = arith.mulf %649, %649 : vector<2x64xf32>
    %cst_164 = arith.constant dense<0.000000e+00> : vector<2xf32>
    %651 = vector.multi_reduction <add>, %650, %cst_164 [1] : vector<2x64xf32> to vector<2xf32>
    %652 = vector.shape_cast %651 : vector<2xf32> to vector<2x1xf32>
    %cst_165 = arith.constant 6.400000e+01 : f32
    %653 = vector.broadcast %cst_165 : f32 to vector<2x1xf32>
    %654 = arith.divf %652, %653 : vector<2x1xf32>
    %655 = vector.broadcast %647 : vector<2x1xf32> to vector<2x64xf32>
    %656 = arith.subf %643, %655 : vector<2x64xf32>
    %cst_166 = arith.constant 9.99999974E-6 : f32
    %657 = vector.broadcast %cst_166 : f32 to vector<2x1xf32>
    %658 = arith.addf %654, %657 : vector<2x1xf32>
    %659 = math.rsqrt %658 : vector<2x1xf32>
    %660 = vector.broadcast %659 : vector<2x1xf32> to vector<2x64xf32>
    %661 = arith.mulf %656, %660 : vector<2x64xf32>
    %662 = vector.broadcast %5 : vector<1x64xf32> to vector<2x64xf32>
    %663 = arith.mulf %661, %662 : vector<2x64xf32>
    %664 = vector.broadcast %6 : vector<1x64xf32> to vector<2x64xf32>
    %665 = arith.addf %663, %664 : vector<2x64xf32>
    %666 = math.tanh %665 : vector<2x64xf32>
    %cst_167 = arith.constant dense<0.000000e+00> : vector<2x5xf32>
    %667 = tpu.matmul %666, %9, %cst_167 {dimension_numbers = #tpu.dot_dimension_numbers<[1], [0], [0], [1], [0, 0, 1, 1], [], []>} : vector<2x64xf32>, vector<64x5xf32>, vector<2x5xf32> -> vector<2x5xf32>
    %668 = vector.broadcast %10 : vector<1x5xf32> to vector<2x5xf32>
    %669 = arith.addf %667, %668 : vector<2x5xf32>
    %670 = arith.subf %550, %608 : vector<2x5xf32>
    %671 = arith.addf %670, %669 : vector<2x5xf32>
    %cst_168 = arith.constant 0.100000009 : f32
    %672 = vector.broadcast %cst_168 : f32 to vector<2x5xf32>
    %673 = arith.mulf %671, %672 : vector<2x5xf32>
    %674 = arith.addf %495, %673 : vector<2x5xf32>
    %cst_169 = arith.constant dense<0.000000e+00> : vector<2x64xf32>
    %675 = tpu.matmul %674, %7, %cst_169 {dimension_numbers = #tpu.dot_dimension_numbers<[1], [0], [0], [1], [0, 0, 1, 1], [], []>} : vector<2x5xf32>, vector<5x64xf32>, vector<2x64xf32> -> vector<2x64xf32>
    %676 = vector.broadcast %1 : vector<1x64xf32> to vector<2x64xf32>
    %677 = arith.addf %675, %676 : vector<2x64xf32>
    %cst_170 = arith.constant dense<0.000000e+00> : vector<2xf32>
    %678 = vector.multi_reduction <add>, %677, %cst_170 [1] : vector<2x64xf32> to vector<2xf32>
    %679 = vector.shape_cast %678 : vector<2xf32> to vector<2x1xf32>
    %cst_171 = arith.constant 6.400000e+01 : f32
    %680 = vector.broadcast %cst_171 : f32 to vector<2x1xf32>
    %681 = arith.divf %679, %680 : vector<2x1xf32>
    %682 = vector.broadcast %681 : vector<2x1xf32> to vector<2x64xf32>
    %683 = arith.subf %677, %682 : vector<2x64xf32>
    %684 = arith.mulf %683, %683 : vector<2x64xf32>
    %cst_172 = arith.constant dense<0.000000e+00> : vector<2xf32>
    %685 = vector.multi_reduction <add>, %684, %cst_172 [1] : vector<2x64xf32> to vector<2xf32>
    %686 = vector.shape_cast %685 : vector<2xf32> to vector<2x1xf32>
    %cst_173 = arith.constant 6.400000e+01 : f32
    %687 = vector.broadcast %cst_173 : f32 to vector<2x1xf32>
    %688 = arith.divf %686, %687 : vector<2x1xf32>
    %689 = vector.broadcast %681 : vector<2x1xf32> to vector<2x64xf32>
    %690 = arith.subf %677, %689 : vector<2x64xf32>
    %cst_174 = arith.constant 9.99999974E-6 : f32
    %691 = vector.broadcast %cst_174 : f32 to vector<2x1xf32>
    %692 = arith.addf %688, %691 : vector<2x1xf32>
    %693 = math.rsqrt %692 : vector<2x1xf32>
    %694 = vector.broadcast %693 : vector<2x1xf32> to vector<2x64xf32>
    %695 = arith.mulf %690, %694 : vector<2x64xf32>
    %696 = vector.broadcast %2 : vector<1x64xf32> to vector<2x64xf32>
    %697 = arith.mulf %695, %696 : vector<2x64xf32>
    %698 = vector.broadcast %3 : vector<1x64xf32> to vector<2x64xf32>
    %699 = arith.addf %697, %698 : vector<2x64xf32>
    %700 = math.tanh %699 : vector<2x64xf32>
    %cst_175 = arith.constant dense<0.000000e+00> : vector<2x64xf32>
    %701 = tpu.matmul %700, %8, %cst_175 {dimension_numbers = #tpu.dot_dimension_numbers<[1], [0], [0], [1], [0, 0, 1, 1], [], []>} : vector<2x64xf32>, vector<64x64xf32>, vector<2x64xf32> -> vector<2x64xf32>
    %702 = vector.broadcast %4 : vector<1x64xf32> to vector<2x64xf32>
    %703 = arith.addf %701, %702 : vector<2x64xf32>
    %cst_176 = arith.constant dense<0.000000e+00> : vector<2xf32>
    %704 = vector.multi_reduction <add>, %703, %cst_176 [1] : vector<2x64xf32> to vector<2xf32>
    %705 = vector.shape_cast %704 : vector<2xf32> to vector<2x1xf32>
    %cst_177 = arith.constant 6.400000e+01 : f32
    %706 = vector.broadcast %cst_177 : f32 to vector<2x1xf32>
    %707 = arith.divf %705, %706 : vector<2x1xf32>
    %708 = vector.broadcast %707 : vector<2x1xf32> to vector<2x64xf32>
    %709 = arith.subf %703, %708 : vector<2x64xf32>
    %710 = arith.mulf %709, %709 : vector<2x64xf32>
    %cst_178 = arith.constant dense<0.000000e+00> : vector<2xf32>
    %711 = vector.multi_reduction <add>, %710, %cst_178 [1] : vector<2x64xf32> to vector<2xf32>
    %712 = vector.shape_cast %711 : vector<2xf32> to vector<2x1xf32>
    %cst_179 = arith.constant 6.400000e+01 : f32
    %713 = vector.broadcast %cst_179 : f32 to vector<2x1xf32>
    %714 = arith.divf %712, %713 : vector<2x1xf32>
    %715 = vector.broadcast %707 : vector<2x1xf32> to vector<2x64xf32>
    %716 = arith.subf %703, %715 : vector<2x64xf32>
    %cst_180 = arith.constant 9.99999974E-6 : f32
    %717 = vector.broadcast %cst_180 : f32 to vector<2x1xf32>
    %718 = arith.addf %714, %717 : vector<2x1xf32>
    %719 = math.rsqrt %718 : vector<2x1xf32>
    %720 = vector.broadcast %719 : vector<2x1xf32> to vector<2x64xf32>
    %721 = arith.mulf %716, %720 : vector<2x64xf32>
    %722 = vector.broadcast %5 : vector<1x64xf32> to vector<2x64xf32>
    %723 = arith.mulf %721, %722 : vector<2x64xf32>
    %724 = vector.broadcast %6 : vector<1x64xf32> to vector<2x64xf32>
    %725 = arith.addf %723, %724 : vector<2x64xf32>
    %726 = math.tanh %725 : vector<2x64xf32>
    %cst_181 = arith.constant dense<0.000000e+00> : vector<2x5xf32>
    %727 = tpu.matmul %726, %9, %cst_181 {dimension_numbers = #tpu.dot_dimension_numbers<[1], [0], [0], [1], [0, 0, 1, 1], [], []>} : vector<2x64xf32>, vector<64x5xf32>, vector<2x5xf32> -> vector<2x5xf32>
    %728 = vector.broadcast %10 : vector<1x5xf32> to vector<2x5xf32>
    %729 = arith.addf %727, %728 : vector<2x5xf32>
    %730 = arith.addf %608, %669 : vector<2x5xf32>
    %cst_182 = arith.constant 3.000000e+00 : f32
    %731 = vector.broadcast %cst_182 : f32 to vector<2x5xf32>
    %732 = arith.mulf %731, %730 : vector<2x5xf32>
    %733 = arith.addf %550, %732 : vector<2x5xf32>
    %734 = arith.addf %733, %729 : vector<2x5xf32>
    %cst_183 = arith.constant 0.0125000011 : f32
    %735 = vector.broadcast %cst_183 : f32 to vector<2x5xf32>
    %736 = arith.mulf %734, %735 : vector<2x5xf32>
    %737 = arith.addf %495, %736 : vector<2x5xf32>
    %cst_184 = arith.constant dense<0.000000e+00> : vector<2x64xf32>
    %738 = tpu.matmul %737, %7, %cst_184 {dimension_numbers = #tpu.dot_dimension_numbers<[1], [0], [0], [1], [0, 0, 1, 1], [], []>} : vector<2x5xf32>, vector<5x64xf32>, vector<2x64xf32> -> vector<2x64xf32>
    %739 = vector.broadcast %1 : vector<1x64xf32> to vector<2x64xf32>
    %740 = arith.addf %738, %739 : vector<2x64xf32>
    %cst_185 = arith.constant dense<0.000000e+00> : vector<2xf32>
    %741 = vector.multi_reduction <add>, %740, %cst_185 [1] : vector<2x64xf32> to vector<2xf32>
    %742 = vector.shape_cast %741 : vector<2xf32> to vector<2x1xf32>
    %cst_186 = arith.constant 6.400000e+01 : f32
    %743 = vector.broadcast %cst_186 : f32 to vector<2x1xf32>
    %744 = arith.divf %742, %743 : vector<2x1xf32>
    %745 = vector.broadcast %744 : vector<2x1xf32> to vector<2x64xf32>
    %746 = arith.subf %740, %745 : vector<2x64xf32>
    %747 = arith.mulf %746, %746 : vector<2x64xf32>
    %cst_187 = arith.constant dense<0.000000e+00> : vector<2xf32>
    %748 = vector.multi_reduction <add>, %747, %cst_187 [1] : vector<2x64xf32> to vector<2xf32>
    %749 = vector.shape_cast %748 : vector<2xf32> to vector<2x1xf32>
    %cst_188 = arith.constant 6.400000e+01 : f32
    %750 = vector.broadcast %cst_188 : f32 to vector<2x1xf32>
    %751 = arith.divf %749, %750 : vector<2x1xf32>
    %752 = vector.broadcast %744 : vector<2x1xf32> to vector<2x64xf32>
    %753 = arith.subf %740, %752 : vector<2x64xf32>
    %cst_189 = arith.constant 9.99999974E-6 : f32
    %754 = vector.broadcast %cst_189 : f32 to vector<2x1xf32>
    %755 = arith.addf %751, %754 : vector<2x1xf32>
    %756 = math.rsqrt %755 : vector<2x1xf32>
    %757 = vector.broadcast %756 : vector<2x1xf32> to vector<2x64xf32>
    %758 = arith.mulf %753, %757 : vector<2x64xf32>
    %759 = vector.broadcast %2 : vector<1x64xf32> to vector<2x64xf32>
    %760 = arith.mulf %758, %759 : vector<2x64xf32>
    %761 = vector.broadcast %3 : vector<1x64xf32> to vector<2x64xf32>
    %762 = arith.addf %760, %761 : vector<2x64xf32>
    %763 = math.tanh %762 : vector<2x64xf32>
    %cst_190 = arith.constant dense<0.000000e+00> : vector<2x64xf32>
    %764 = tpu.matmul %763, %8, %cst_190 {dimension_numbers = #tpu.dot_dimension_numbers<[1], [0], [0], [1], [0, 0, 1, 1], [], []>} : vector<2x64xf32>, vector<64x64xf32>, vector<2x64xf32> -> vector<2x64xf32>
    %765 = vector.broadcast %4 : vector<1x64xf32> to vector<2x64xf32>
    %766 = arith.addf %764, %765 : vector<2x64xf32>
    %cst_191 = arith.constant dense<0.000000e+00> : vector<2xf32>
    %767 = vector.multi_reduction <add>, %766, %cst_191 [1] : vector<2x64xf32> to vector<2xf32>
    %768 = vector.shape_cast %767 : vector<2xf32> to vector<2x1xf32>
    %cst_192 = arith.constant 6.400000e+01 : f32
    %769 = vector.broadcast %cst_192 : f32 to vector<2x1xf32>
    %770 = arith.divf %768, %769 : vector<2x1xf32>
    %771 = vector.broadcast %770 : vector<2x1xf32> to vector<2x64xf32>
    %772 = arith.subf %766, %771 : vector<2x64xf32>
    %773 = arith.mulf %772, %772 : vector<2x64xf32>
    %cst_193 = arith.constant dense<0.000000e+00> : vector<2xf32>
    %774 = vector.multi_reduction <add>, %773, %cst_193 [1] : vector<2x64xf32> to vector<2xf32>
    %775 = vector.shape_cast %774 : vector<2xf32> to vector<2x1xf32>
    %cst_194 = arith.constant 6.400000e+01 : f32
    %776 = vector.broadcast %cst_194 : f32 to vector<2x1xf32>
    %777 = arith.divf %775, %776 : vector<2x1xf32>
    %778 = vector.broadcast %770 : vector<2x1xf32> to vector<2x64xf32>
    %779 = arith.subf %766, %778 : vector<2x64xf32>
    %cst_195 = arith.constant 9.99999974E-6 : f32
    %780 = vector.broadcast %cst_195 : f32 to vector<2x1xf32>
    %781 = arith.addf %777, %780 : vector<2x1xf32>
    %782 = math.rsqrt %781 : vector<2x1xf32>
    %783 = vector.broadcast %782 : vector<2x1xf32> to vector<2x64xf32>
    %784 = arith.mulf %779, %783 : vector<2x64xf32>
    %785 = vector.broadcast %5 : vector<1x64xf32> to vector<2x64xf32>
    %786 = arith.mulf %784, %785 : vector<2x64xf32>
    %787 = vector.broadcast %6 : vector<1x64xf32> to vector<2x64xf32>
    %788 = arith.addf %786, %787 : vector<2x64xf32>
    %789 = math.tanh %788 : vector<2x64xf32>
    %cst_196 = arith.constant dense<0.000000e+00> : vector<2x5xf32>
    %790 = tpu.matmul %789, %9, %cst_196 {dimension_numbers = #tpu.dot_dimension_numbers<[1], [0], [0], [1], [0, 0, 1, 1], [], []>} : vector<2x64xf32>, vector<64x5xf32>, vector<2x5xf32> -> vector<2x5xf32>
    %791 = vector.broadcast %10 : vector<1x5xf32> to vector<2x5xf32>
    %792 = arith.addf %790, %791 : vector<2x5xf32>
    %cst_197 = arith.constant 0.0333333313 : f32
    %793 = vector.broadcast %cst_197 : f32 to vector<2x5xf32>
    %794 = arith.mulf %792, %793 : vector<2x5xf32>
    %795 = arith.addf %737, %794 : vector<2x5xf32>
    %cst_198 = arith.constant dense<0.000000e+00> : vector<2x64xf32>
    %796 = tpu.matmul %795, %7, %cst_198 {dimension_numbers = #tpu.dot_dimension_numbers<[1], [0], [0], [1], [0, 0, 1, 1], [], []>} : vector<2x5xf32>, vector<5x64xf32>, vector<2x64xf32> -> vector<2x64xf32>
    %797 = vector.broadcast %1 : vector<1x64xf32> to vector<2x64xf32>
    %798 = arith.addf %796, %797 : vector<2x64xf32>
    %cst_199 = arith.constant dense<0.000000e+00> : vector<2xf32>
    %799 = vector.multi_reduction <add>, %798, %cst_199 [1] : vector<2x64xf32> to vector<2xf32>
    %800 = vector.shape_cast %799 : vector<2xf32> to vector<2x1xf32>
    %cst_200 = arith.constant 6.400000e+01 : f32
    %801 = vector.broadcast %cst_200 : f32 to vector<2x1xf32>
    %802 = arith.divf %800, %801 : vector<2x1xf32>
    %803 = vector.broadcast %802 : vector<2x1xf32> to vector<2x64xf32>
    %804 = arith.subf %798, %803 : vector<2x64xf32>
    %805 = arith.mulf %804, %804 : vector<2x64xf32>
    %cst_201 = arith.constant dense<0.000000e+00> : vector<2xf32>
    %806 = vector.multi_reduction <add>, %805, %cst_201 [1] : vector<2x64xf32> to vector<2xf32>
    %807 = vector.shape_cast %806 : vector<2xf32> to vector<2x1xf32>
    %cst_202 = arith.constant 6.400000e+01 : f32
    %808 = vector.broadcast %cst_202 : f32 to vector<2x1xf32>
    %809 = arith.divf %807, %808 : vector<2x1xf32>
    %810 = vector.broadcast %802 : vector<2x1xf32> to vector<2x64xf32>
    %811 = arith.subf %798, %810 : vector<2x64xf32>
    %cst_203 = arith.constant 9.99999974E-6 : f32
    %812 = vector.broadcast %cst_203 : f32 to vector<2x1xf32>
    %813 = arith.addf %809, %812 : vector<2x1xf32>
    %814 = math.rsqrt %813 : vector<2x1xf32>
    %815 = vector.broadcast %814 : vector<2x1xf32> to vector<2x64xf32>
    %816 = arith.mulf %811, %815 : vector<2x64xf32>
    %817 = vector.broadcast %2 : vector<1x64xf32> to vector<2x64xf32>
    %818 = arith.mulf %816, %817 : vector<2x64xf32>
    %819 = vector.broadcast %3 : vector<1x64xf32> to vector<2x64xf32>
    %820 = arith.addf %818, %819 : vector<2x64xf32>
    %821 = math.tanh %820 : vector<2x64xf32>
    %cst_204 = arith.constant dense<0.000000e+00> : vector<2x64xf32>
    %822 = tpu.matmul %821, %8, %cst_204 {dimension_numbers = #tpu.dot_dimension_numbers<[1], [0], [0], [1], [0, 0, 1, 1], [], []>} : vector<2x64xf32>, vector<64x64xf32>, vector<2x64xf32> -> vector<2x64xf32>
    %823 = vector.broadcast %4 : vector<1x64xf32> to vector<2x64xf32>
    %824 = arith.addf %822, %823 : vector<2x64xf32>
    %cst_205 = arith.constant dense<0.000000e+00> : vector<2xf32>
    %825 = vector.multi_reduction <add>, %824, %cst_205 [1] : vector<2x64xf32> to vector<2xf32>
    %826 = vector.shape_cast %825 : vector<2xf32> to vector<2x1xf32>
    %cst_206 = arith.constant 6.400000e+01 : f32
    %827 = vector.broadcast %cst_206 : f32 to vector<2x1xf32>
    %828 = arith.divf %826, %827 : vector<2x1xf32>
    %829 = vector.broadcast %828 : vector<2x1xf32> to vector<2x64xf32>
    %830 = arith.subf %824, %829 : vector<2x64xf32>
    %831 = arith.mulf %830, %830 : vector<2x64xf32>
    %cst_207 = arith.constant dense<0.000000e+00> : vector<2xf32>
    %832 = vector.multi_reduction <add>, %831, %cst_207 [1] : vector<2x64xf32> to vector<2xf32>
    %833 = vector.shape_cast %832 : vector<2xf32> to vector<2x1xf32>
    %cst_208 = arith.constant 6.400000e+01 : f32
    %834 = vector.broadcast %cst_208 : f32 to vector<2x1xf32>
    %835 = arith.divf %833, %834 : vector<2x1xf32>
    %836 = vector.broadcast %828 : vector<2x1xf32> to vector<2x64xf32>
    %837 = arith.subf %824, %836 : vector<2x64xf32>
    %cst_209 = arith.constant 9.99999974E-6 : f32
    %838 = vector.broadcast %cst_209 : f32 to vector<2x1xf32>
    %839 = arith.addf %835, %838 : vector<2x1xf32>
    %840 = math.rsqrt %839 : vector<2x1xf32>
    %841 = vector.broadcast %840 : vector<2x1xf32> to vector<2x64xf32>
    %842 = arith.mulf %837, %841 : vector<2x64xf32>
    %843 = vector.broadcast %5 : vector<1x64xf32> to vector<2x64xf32>
    %844 = arith.mulf %842, %843 : vector<2x64xf32>
    %845 = vector.broadcast %6 : vector<1x64xf32> to vector<2x64xf32>
    %846 = arith.addf %844, %845 : vector<2x64xf32>
    %847 = math.tanh %846 : vector<2x64xf32>
    %cst_210 = arith.constant dense<0.000000e+00> : vector<2x5xf32>
    %848 = tpu.matmul %847, %9, %cst_210 {dimension_numbers = #tpu.dot_dimension_numbers<[1], [0], [0], [1], [0, 0, 1, 1], [], []>} : vector<2x64xf32>, vector<64x5xf32>, vector<2x5xf32> -> vector<2x5xf32>
    %849 = vector.broadcast %10 : vector<1x5xf32> to vector<2x5xf32>
    %850 = arith.addf %848, %849 : vector<2x5xf32>
    %cst_211 = arith.constant 0.333333343 : f32
    %851 = vector.broadcast %cst_211 : f32 to vector<2x5xf32>
    %852 = arith.mulf %792, %851 : vector<2x5xf32>
    %853 = arith.subf %850, %852 : vector<2x5xf32>
    %cst_212 = arith.constant 0.099999994 : f32
    %854 = vector.broadcast %cst_212 : f32 to vector<2x5xf32>
    %855 = arith.mulf %853, %854 : vector<2x5xf32>
    %856 = arith.addf %737, %855 : vector<2x5xf32>
    %cst_213 = arith.constant dense<0.000000e+00> : vector<2x64xf32>
    %857 = tpu.matmul %856, %7, %cst_213 {dimension_numbers = #tpu.dot_dimension_numbers<[1], [0], [0], [1], [0, 0, 1, 1], [], []>} : vector<2x5xf32>, vector<5x64xf32>, vector<2x64xf32> -> vector<2x64xf32>
    %858 = vector.broadcast %1 : vector<1x64xf32> to vector<2x64xf32>
    %859 = arith.addf %857, %858 : vector<2x64xf32>
    %cst_214 = arith.constant dense<0.000000e+00> : vector<2xf32>
    %860 = vector.multi_reduction <add>, %859, %cst_214 [1] : vector<2x64xf32> to vector<2xf32>
    %861 = vector.shape_cast %860 : vector<2xf32> to vector<2x1xf32>
    %cst_215 = arith.constant 6.400000e+01 : f32
    %862 = vector.broadcast %cst_215 : f32 to vector<2x1xf32>
    %863 = arith.divf %861, %862 : vector<2x1xf32>
    %864 = vector.broadcast %863 : vector<2x1xf32> to vector<2x64xf32>
    %865 = arith.subf %859, %864 : vector<2x64xf32>
    %866 = arith.mulf %865, %865 : vector<2x64xf32>
    %cst_216 = arith.constant dense<0.000000e+00> : vector<2xf32>
    %867 = vector.multi_reduction <add>, %866, %cst_216 [1] : vector<2x64xf32> to vector<2xf32>
    %868 = vector.shape_cast %867 : vector<2xf32> to vector<2x1xf32>
    %cst_217 = arith.constant 6.400000e+01 : f32
    %869 = vector.broadcast %cst_217 : f32 to vector<2x1xf32>
    %870 = arith.divf %868, %869 : vector<2x1xf32>
    %871 = vector.broadcast %863 : vector<2x1xf32> to vector<2x64xf32>
    %872 = arith.subf %859, %871 : vector<2x64xf32>
    %cst_218 = arith.constant 9.99999974E-6 : f32
    %873 = vector.broadcast %cst_218 : f32 to vector<2x1xf32>
    %874 = arith.addf %870, %873 : vector<2x1xf32>
    %875 = math.rsqrt %874 : vector<2x1xf32>
    %876 = vector.broadcast %875 : vector<2x1xf32> to vector<2x64xf32>
    %877 = arith.mulf %872, %876 : vector<2x64xf32>
    %878 = vector.broadcast %2 : vector<1x64xf32> to vector<2x64xf32>
    %879 = arith.mulf %877, %878 : vector<2x64xf32>
    %880 = vector.broadcast %3 : vector<1x64xf32> to vector<2x64xf32>
    %881 = arith.addf %879, %880 : vector<2x64xf32>
    %882 = math.tanh %881 : vector<2x64xf32>
    %cst_219 = arith.constant dense<0.000000e+00> : vector<2x64xf32>
    %883 = tpu.matmul %882, %8, %cst_219 {dimension_numbers = #tpu.dot_dimension_numbers<[1], [0], [0], [1], [0, 0, 1, 1], [], []>} : vector<2x64xf32>, vector<64x64xf32>, vector<2x64xf32> -> vector<2x64xf32>
    %884 = vector.broadcast %4 : vector<1x64xf32> to vector<2x64xf32>
    %885 = arith.addf %883, %884 : vector<2x64xf32>
    %cst_220 = arith.constant dense<0.000000e+00> : vector<2xf32>
    %886 = vector.multi_reduction <add>, %885, %cst_220 [1] : vector<2x64xf32> to vector<2xf32>
    %887 = vector.shape_cast %886 : vector<2xf32> to vector<2x1xf32>
    %cst_221 = arith.constant 6.400000e+01 : f32
    %888 = vector.broadcast %cst_221 : f32 to vector<2x1xf32>
    %889 = arith.divf %887, %888 : vector<2x1xf32>
    %890 = vector.broadcast %889 : vector<2x1xf32> to vector<2x64xf32>
    %891 = arith.subf %885, %890 : vector<2x64xf32>
    %892 = arith.mulf %891, %891 : vector<2x64xf32>
    %cst_222 = arith.constant dense<0.000000e+00> : vector<2xf32>
    %893 = vector.multi_reduction <add>, %892, %cst_222 [1] : vector<2x64xf32> to vector<2xf32>
    %894 = vector.shape_cast %893 : vector<2xf32> to vector<2x1xf32>
    %cst_223 = arith.constant 6.400000e+01 : f32
    %895 = vector.broadcast %cst_223 : f32 to vector<2x1xf32>
    %896 = arith.divf %894, %895 : vector<2x1xf32>
    %897 = vector.broadcast %889 : vector<2x1xf32> to vector<2x64xf32>
    %898 = arith.subf %885, %897 : vector<2x64xf32>
    %cst_224 = arith.constant 9.99999974E-6 : f32
    %899 = vector.broadcast %cst_224 : f32 to vector<2x1xf32>
    %900 = arith.addf %896, %899 : vector<2x1xf32>
    %901 = math.rsqrt %900 : vector<2x1xf32>
    %902 = vector.broadcast %901 : vector<2x1xf32> to vector<2x64xf32>
    %903 = arith.mulf %898, %902 : vector<2x64xf32>
    %904 = vector.broadcast %5 : vector<1x64xf32> to vector<2x64xf32>
    %905 = arith.mulf %903, %904 : vector<2x64xf32>
    %906 = vector.broadcast %6 : vector<1x64xf32> to vector<2x64xf32>
    %907 = arith.addf %905, %906 : vector<2x64xf32>
    %908 = math.tanh %907 : vector<2x64xf32>
    %cst_225 = arith.constant dense<0.000000e+00> : vector<2x5xf32>
    %909 = tpu.matmul %908, %9, %cst_225 {dimension_numbers = #tpu.dot_dimension_numbers<[1], [0], [0], [1], [0, 0, 1, 1], [], []>} : vector<2x64xf32>, vector<64x5xf32>, vector<2x5xf32> -> vector<2x5xf32>
    %910 = vector.broadcast %10 : vector<1x5xf32> to vector<2x5xf32>
    %911 = arith.addf %909, %910 : vector<2x5xf32>
    %912 = arith.subf %792, %850 : vector<2x5xf32>
    %913 = arith.addf %912, %911 : vector<2x5xf32>
    %cst_226 = arith.constant 0.099999994 : f32
    %914 = vector.broadcast %cst_226 : f32 to vector<2x5xf32>
    %915 = arith.mulf %913, %914 : vector<2x5xf32>
    %916 = arith.addf %737, %915 : vector<2x5xf32>
    %cst_227 = arith.constant dense<0.000000e+00> : vector<2x64xf32>
    %917 = tpu.matmul %916, %7, %cst_227 {dimension_numbers = #tpu.dot_dimension_numbers<[1], [0], [0], [1], [0, 0, 1, 1], [], []>} : vector<2x5xf32>, vector<5x64xf32>, vector<2x64xf32> -> vector<2x64xf32>
    %918 = vector.broadcast %1 : vector<1x64xf32> to vector<2x64xf32>
    %919 = arith.addf %917, %918 : vector<2x64xf32>
    %cst_228 = arith.constant dense<0.000000e+00> : vector<2xf32>
    %920 = vector.multi_reduction <add>, %919, %cst_228 [1] : vector<2x64xf32> to vector<2xf32>
    %921 = vector.shape_cast %920 : vector<2xf32> to vector<2x1xf32>
    %cst_229 = arith.constant 6.400000e+01 : f32
    %922 = vector.broadcast %cst_229 : f32 to vector<2x1xf32>
    %923 = arith.divf %921, %922 : vector<2x1xf32>
    %924 = vector.broadcast %923 : vector<2x1xf32> to vector<2x64xf32>
    %925 = arith.subf %919, %924 : vector<2x64xf32>
    %926 = arith.mulf %925, %925 : vector<2x64xf32>
    %cst_230 = arith.constant dense<0.000000e+00> : vector<2xf32>
    %927 = vector.multi_reduction <add>, %926, %cst_230 [1] : vector<2x64xf32> to vector<2xf32>
    %928 = vector.shape_cast %927 : vector<2xf32> to vector<2x1xf32>
    %cst_231 = arith.constant 6.400000e+01 : f32
    %929 = vector.broadcast %cst_231 : f32 to vector<2x1xf32>
    %930 = arith.divf %928, %929 : vector<2x1xf32>
    %931 = vector.broadcast %923 : vector<2x1xf32> to vector<2x64xf32>
    %932 = arith.subf %919, %931 : vector<2x64xf32>
    %cst_232 = arith.constant 9.99999974E-6 : f32
    %933 = vector.broadcast %cst_232 : f32 to vector<2x1xf32>
    %934 = arith.addf %930, %933 : vector<2x1xf32>
    %935 = math.rsqrt %934 : vector<2x1xf32>
    %936 = vector.broadcast %935 : vector<2x1xf32> to vector<2x64xf32>
    %937 = arith.mulf %932, %936 : vector<2x64xf32>
    %938 = vector.broadcast %2 : vector<1x64xf32> to vector<2x64xf32>
    %939 = arith.mulf %937, %938 : vector<2x64xf32>
    %940 = vector.broadcast %3 : vector<1x64xf32> to vector<2x64xf32>
    %941 = arith.addf %939, %940 : vector<2x64xf32>
    %942 = math.tanh %941 : vector<2x64xf32>
    %cst_233 = arith.constant dense<0.000000e+00> : vector<2x64xf32>
    %943 = tpu.matmul %942, %8, %cst_233 {dimension_numbers = #tpu.dot_dimension_numbers<[1], [0], [0], [1], [0, 0, 1, 1], [], []>} : vector<2x64xf32>, vector<64x64xf32>, vector<2x64xf32> -> vector<2x64xf32>
    %944 = vector.broadcast %4 : vector<1x64xf32> to vector<2x64xf32>
    %945 = arith.addf %943, %944 : vector<2x64xf32>
    %cst_234 = arith.constant dense<0.000000e+00> : vector<2xf32>
    %946 = vector.multi_reduction <add>, %945, %cst_234 [1] : vector<2x64xf32> to vector<2xf32>
    %947 = vector.shape_cast %946 : vector<2xf32> to vector<2x1xf32>
    %cst_235 = arith.constant 6.400000e+01 : f32
    %948 = vector.broadcast %cst_235 : f32 to vector<2x1xf32>
    %949 = arith.divf %947, %948 : vector<2x1xf32>
    %950 = vector.broadcast %949 : vector<2x1xf32> to vector<2x64xf32>
    %951 = arith.subf %945, %950 : vector<2x64xf32>
    %952 = arith.mulf %951, %951 : vector<2x64xf32>
    %cst_236 = arith.constant dense<0.000000e+00> : vector<2xf32>
    %953 = vector.multi_reduction <add>, %952, %cst_236 [1] : vector<2x64xf32> to vector<2xf32>
    %954 = vector.shape_cast %953 : vector<2xf32> to vector<2x1xf32>
    %cst_237 = arith.constant 6.400000e+01 : f32
    %955 = vector.broadcast %cst_237 : f32 to vector<2x1xf32>
    %956 = arith.divf %954, %955 : vector<2x1xf32>
    %957 = vector.broadcast %949 : vector<2x1xf32> to vector<2x64xf32>
    %958 = arith.subf %945, %957 : vector<2x64xf32>
    %cst_238 = arith.constant 9.99999974E-6 : f32
    %959 = vector.broadcast %cst_238 : f32 to vector<2x1xf32>
    %960 = arith.addf %956, %959 : vector<2x1xf32>
    %961 = math.rsqrt %960 : vector<2x1xf32>
    %962 = vector.broadcast %961 : vector<2x1xf32> to vector<2x64xf32>
    %963 = arith.mulf %958, %962 : vector<2x64xf32>
    %964 = vector.broadcast %5 : vector<1x64xf32> to vector<2x64xf32>
    %965 = arith.mulf %963, %964 : vector<2x64xf32>
    %966 = vector.broadcast %6 : vector<1x64xf32> to vector<2x64xf32>
    %967 = arith.addf %965, %966 : vector<2x64xf32>
    %968 = math.tanh %967 : vector<2x64xf32>
    %cst_239 = arith.constant dense<0.000000e+00> : vector<2x5xf32>
    %969 = tpu.matmul %968, %9, %cst_239 {dimension_numbers = #tpu.dot_dimension_numbers<[1], [0], [0], [1], [0, 0, 1, 1], [], []>} : vector<2x64xf32>, vector<64x5xf32>, vector<2x5xf32> -> vector<2x5xf32>
    %970 = vector.broadcast %10 : vector<1x5xf32> to vector<2x5xf32>
    %971 = arith.addf %969, %970 : vector<2x5xf32>
    %972 = arith.addf %850, %911 : vector<2x5xf32>
    %cst_240 = arith.constant 3.000000e+00 : f32
    %973 = vector.broadcast %cst_240 : f32 to vector<2x5xf32>
    %974 = arith.mulf %973, %972 : vector<2x5xf32>
    %975 = arith.addf %792, %974 : vector<2x5xf32>
    %976 = arith.addf %975, %971 : vector<2x5xf32>
    %cst_241 = arith.constant 0.0124999993 : f32
    %977 = vector.broadcast %cst_241 : f32 to vector<2x5xf32>
    %978 = arith.mulf %976, %977 : vector<2x5xf32>
    %979 = arith.addf %737, %978 : vector<2x5xf32>
    %cst_242 = arith.constant dense<0.000000e+00> : vector<2x64xf32>
    %980 = tpu.matmul %979, %7, %cst_242 {dimension_numbers = #tpu.dot_dimension_numbers<[1], [0], [0], [1], [0, 0, 1, 1], [], []>} : vector<2x5xf32>, vector<5x64xf32>, vector<2x64xf32> -> vector<2x64xf32>
    %981 = vector.broadcast %1 : vector<1x64xf32> to vector<2x64xf32>
    %982 = arith.addf %980, %981 : vector<2x64xf32>
    %cst_243 = arith.constant dense<0.000000e+00> : vector<2xf32>
    %983 = vector.multi_reduction <add>, %982, %cst_243 [1] : vector<2x64xf32> to vector<2xf32>
    %984 = vector.shape_cast %983 : vector<2xf32> to vector<2x1xf32>
    %cst_244 = arith.constant 6.400000e+01 : f32
    %985 = vector.broadcast %cst_244 : f32 to vector<2x1xf32>
    %986 = arith.divf %984, %985 : vector<2x1xf32>
    %987 = vector.broadcast %986 : vector<2x1xf32> to vector<2x64xf32>
    %988 = arith.subf %982, %987 : vector<2x64xf32>
    %989 = arith.mulf %988, %988 : vector<2x64xf32>
    %cst_245 = arith.constant dense<0.000000e+00> : vector<2xf32>
    %990 = vector.multi_reduction <add>, %989, %cst_245 [1] : vector<2x64xf32> to vector<2xf32>
    %991 = vector.shape_cast %990 : vector<2xf32> to vector<2x1xf32>
    %cst_246 = arith.constant 6.400000e+01 : f32
    %992 = vector.broadcast %cst_246 : f32 to vector<2x1xf32>
    %993 = arith.divf %991, %992 : vector<2x1xf32>
    %994 = vector.broadcast %986 : vector<2x1xf32> to vector<2x64xf32>
    %995 = arith.subf %982, %994 : vector<2x64xf32>
    %cst_247 = arith.constant 9.99999974E-6 : f32
    %996 = vector.broadcast %cst_247 : f32 to vector<2x1xf32>
    %997 = arith.addf %993, %996 : vector<2x1xf32>
    %998 = math.rsqrt %997 : vector<2x1xf32>
    %999 = vector.broadcast %998 : vector<2x1xf32> to vector<2x64xf32>
    %1000 = arith.mulf %995, %999 : vector<2x64xf32>
    %1001 = vector.broadcast %2 : vector<1x64xf32> to vector<2x64xf32>
    %1002 = arith.mulf %1000, %1001 : vector<2x64xf32>
    %1003 = vector.broadcast %3 : vector<1x64xf32> to vector<2x64xf32>
    %1004 = arith.addf %1002, %1003 : vector<2x64xf32>
    %1005 = math.tanh %1004 : vector<2x64xf32>
    %cst_248 = arith.constant dense<0.000000e+00> : vector<2x64xf32>
    %1006 = tpu.matmul %1005, %8, %cst_248 {dimension_numbers = #tpu.dot_dimension_numbers<[1], [0], [0], [1], [0, 0, 1, 1], [], []>} : vector<2x64xf32>, vector<64x64xf32>, vector<2x64xf32> -> vector<2x64xf32>
    %1007 = vector.broadcast %4 : vector<1x64xf32> to vector<2x64xf32>
    %1008 = arith.addf %1006, %1007 : vector<2x64xf32>
    %cst_249 = arith.constant dense<0.000000e+00> : vector<2xf32>
    %1009 = vector.multi_reduction <add>, %1008, %cst_249 [1] : vector<2x64xf32> to vector<2xf32>
    %1010 = vector.shape_cast %1009 : vector<2xf32> to vector<2x1xf32>
    %cst_250 = arith.constant 6.400000e+01 : f32
    %1011 = vector.broadcast %cst_250 : f32 to vector<2x1xf32>
    %1012 = arith.divf %1010, %1011 : vector<2x1xf32>
    %1013 = vector.broadcast %1012 : vector<2x1xf32> to vector<2x64xf32>
    %1014 = arith.subf %1008, %1013 : vector<2x64xf32>
    %1015 = arith.mulf %1014, %1014 : vector<2x64xf32>
    %cst_251 = arith.constant dense<0.000000e+00> : vector<2xf32>
    %1016 = vector.multi_reduction <add>, %1015, %cst_251 [1] : vector<2x64xf32> to vector<2xf32>
    %1017 = vector.shape_cast %1016 : vector<2xf32> to vector<2x1xf32>
    %cst_252 = arith.constant 6.400000e+01 : f32
    %1018 = vector.broadcast %cst_252 : f32 to vector<2x1xf32>
    %1019 = arith.divf %1017, %1018 : vector<2x1xf32>
    %1020 = vector.broadcast %1012 : vector<2x1xf32> to vector<2x64xf32>
    %1021 = arith.subf %1008, %1020 : vector<2x64xf32>
    %cst_253 = arith.constant 9.99999974E-6 : f32
    %1022 = vector.broadcast %cst_253 : f32 to vector<2x1xf32>
    %1023 = arith.addf %1019, %1022 : vector<2x1xf32>
    %1024 = math.rsqrt %1023 : vector<2x1xf32>
    %1025 = vector.broadcast %1024 : vector<2x1xf32> to vector<2x64xf32>
    %1026 = arith.mulf %1021, %1025 : vector<2x64xf32>
    %1027 = vector.broadcast %5 : vector<1x64xf32> to vector<2x64xf32>
    %1028 = arith.mulf %1026, %1027 : vector<2x64xf32>
    %1029 = vector.broadcast %6 : vector<1x64xf32> to vector<2x64xf32>
    %1030 = arith.addf %1028, %1029 : vector<2x64xf32>
    %1031 = math.tanh %1030 : vector<2x64xf32>
    %cst_254 = arith.constant dense<0.000000e+00> : vector<2x5xf32>
    %1032 = tpu.matmul %1031, %9, %cst_254 {dimension_numbers = #tpu.dot_dimension_numbers<[1], [0], [0], [1], [0, 0, 1, 1], [], []>} : vector<2x64xf32>, vector<64x5xf32>, vector<2x5xf32> -> vector<2x5xf32>
    %1033 = vector.broadcast %10 : vector<1x5xf32> to vector<2x5xf32>
    %1034 = arith.addf %1032, %1033 : vector<2x5xf32>
    %cst_255 = arith.constant 0.0333333313 : f32
    %1035 = vector.broadcast %cst_255 : f32 to vector<2x5xf32>
    %1036 = arith.mulf %1034, %1035 : vector<2x5xf32>
    %1037 = arith.addf %979, %1036 : vector<2x5xf32>
    %cst_256 = arith.constant dense<0.000000e+00> : vector<2x64xf32>
    %1038 = tpu.matmul %1037, %7, %cst_256 {dimension_numbers = #tpu.dot_dimension_numbers<[1], [0], [0], [1], [0, 0, 1, 1], [], []>} : vector<2x5xf32>, vector<5x64xf32>, vector<2x64xf32> -> vector<2x64xf32>
    %1039 = vector.broadcast %1 : vector<1x64xf32> to vector<2x64xf32>
    %1040 = arith.addf %1038, %1039 : vector<2x64xf32>
    %cst_257 = arith.constant dense<0.000000e+00> : vector<2xf32>
    %1041 = vector.multi_reduction <add>, %1040, %cst_257 [1] : vector<2x64xf32> to vector<2xf32>
    %1042 = vector.shape_cast %1041 : vector<2xf32> to vector<2x1xf32>
    %cst_258 = arith.constant 6.400000e+01 : f32
    %1043 = vector.broadcast %cst_258 : f32 to vector<2x1xf32>
    %1044 = arith.divf %1042, %1043 : vector<2x1xf32>
    %1045 = vector.broadcast %1044 : vector<2x1xf32> to vector<2x64xf32>
    %1046 = arith.subf %1040, %1045 : vector<2x64xf32>
    %1047 = arith.mulf %1046, %1046 : vector<2x64xf32>
    %cst_259 = arith.constant dense<0.000000e+00> : vector<2xf32>
    %1048 = vector.multi_reduction <add>, %1047, %cst_259 [1] : vector<2x64xf32> to vector<2xf32>
    %1049 = vector.shape_cast %1048 : vector<2xf32> to vector<2x1xf32>
    %cst_260 = arith.constant 6.400000e+01 : f32
    %1050 = vector.broadcast %cst_260 : f32 to vector<2x1xf32>
    %1051 = arith.divf %1049, %1050 : vector<2x1xf32>
    %1052 = vector.broadcast %1044 : vector<2x1xf32> to vector<2x64xf32>
    %1053 = arith.subf %1040, %1052 : vector<2x64xf32>
    %cst_261 = arith.constant 9.99999974E-6 : f32
    %1054 = vector.broadcast %cst_261 : f32 to vector<2x1xf32>
    %1055 = arith.addf %1051, %1054 : vector<2x1xf32>
    %1056 = math.rsqrt %1055 : vector<2x1xf32>
    %1057 = vector.broadcast %1056 : vector<2x1xf32> to vector<2x64xf32>
    %1058 = arith.mulf %1053, %1057 : vector<2x64xf32>
    %1059 = vector.broadcast %2 : vector<1x64xf32> to vector<2x64xf32>
    %1060 = arith.mulf %1058, %1059 : vector<2x64xf32>
    %1061 = vector.broadcast %3 : vector<1x64xf32> to vector<2x64xf32>
    %1062 = arith.addf %1060, %1061 : vector<2x64xf32>
    %1063 = math.tanh %1062 : vector<2x64xf32>
    %cst_262 = arith.constant dense<0.000000e+00> : vector<2x64xf32>
    %1064 = tpu.matmul %1063, %8, %cst_262 {dimension_numbers = #tpu.dot_dimension_numbers<[1], [0], [0], [1], [0, 0, 1, 1], [], []>} : vector<2x64xf32>, vector<64x64xf32>, vector<2x64xf32> -> vector<2x64xf32>
    %1065 = vector.broadcast %4 : vector<1x64xf32> to vector<2x64xf32>
    %1066 = arith.addf %1064, %1065 : vector<2x64xf32>
    %cst_263 = arith.constant dense<0.000000e+00> : vector<2xf32>
    %1067 = vector.multi_reduction <add>, %1066, %cst_263 [1] : vector<2x64xf32> to vector<2xf32>
    %1068 = vector.shape_cast %1067 : vector<2xf32> to vector<2x1xf32>
    %cst_264 = arith.constant 6.400000e+01 : f32
    %1069 = vector.broadcast %cst_264 : f32 to vector<2x1xf32>
    %1070 = arith.divf %1068, %1069 : vector<2x1xf32>
    %1071 = vector.broadcast %1070 : vector<2x1xf32> to vector<2x64xf32>
    %1072 = arith.subf %1066, %1071 : vector<2x64xf32>
    %1073 = arith.mulf %1072, %1072 : vector<2x64xf32>
    %cst_265 = arith.constant dense<0.000000e+00> : vector<2xf32>
    %1074 = vector.multi_reduction <add>, %1073, %cst_265 [1] : vector<2x64xf32> to vector<2xf32>
    %1075 = vector.shape_cast %1074 : vector<2xf32> to vector<2x1xf32>
    %cst_266 = arith.constant 6.400000e+01 : f32
    %1076 = vector.broadcast %cst_266 : f32 to vector<2x1xf32>
    %1077 = arith.divf %1075, %1076 : vector<2x1xf32>
    %1078 = vector.broadcast %1070 : vector<2x1xf32> to vector<2x64xf32>
    %1079 = arith.subf %1066, %1078 : vector<2x64xf32>
    %cst_267 = arith.constant 9.99999974E-6 : f32
    %1080 = vector.broadcast %cst_267 : f32 to vector<2x1xf32>
    %1081 = arith.addf %1077, %1080 : vector<2x1xf32>
    %1082 = math.rsqrt %1081 : vector<2x1xf32>
    %1083 = vector.broadcast %1082 : vector<2x1xf32> to vector<2x64xf32>
    %1084 = arith.mulf %1079, %1083 : vector<2x64xf32>
    %1085 = vector.broadcast %5 : vector<1x64xf32> to vector<2x64xf32>
    %1086 = arith.mulf %1084, %1085 : vector<2x64xf32>
    %1087 = vector.broadcast %6 : vector<1x64xf32> to vector<2x64xf32>
    %1088 = arith.addf %1086, %1087 : vector<2x64xf32>
    %1089 = math.tanh %1088 : vector<2x64xf32>
    %cst_268 = arith.constant dense<0.000000e+00> : vector<2x5xf32>
    %1090 = tpu.matmul %1089, %9, %cst_268 {dimension_numbers = #tpu.dot_dimension_numbers<[1], [0], [0], [1], [0, 0, 1, 1], [], []>} : vector<2x64xf32>, vector<64x5xf32>, vector<2x5xf32> -> vector<2x5xf32>
    %1091 = vector.broadcast %10 : vector<1x5xf32> to vector<2x5xf32>
    %1092 = arith.addf %1090, %1091 : vector<2x5xf32>
    %cst_269 = arith.constant 0.333333343 : f32
    %1093 = vector.broadcast %cst_269 : f32 to vector<2x5xf32>
    %1094 = arith.mulf %1034, %1093 : vector<2x5xf32>
    %1095 = arith.subf %1092, %1094 : vector<2x5xf32>
    %cst_270 = arith.constant 0.099999994 : f32
    %1096 = vector.broadcast %cst_270 : f32 to vector<2x5xf32>
    %1097 = arith.mulf %1095, %1096 : vector<2x5xf32>
    %1098 = arith.addf %979, %1097 : vector<2x5xf32>
    %cst_271 = arith.constant dense<0.000000e+00> : vector<2x64xf32>
    %1099 = tpu.matmul %1098, %7, %cst_271 {dimension_numbers = #tpu.dot_dimension_numbers<[1], [0], [0], [1], [0, 0, 1, 1], [], []>} : vector<2x5xf32>, vector<5x64xf32>, vector<2x64xf32> -> vector<2x64xf32>
    %1100 = vector.broadcast %1 : vector<1x64xf32> to vector<2x64xf32>
    %1101 = arith.addf %1099, %1100 : vector<2x64xf32>
    %cst_272 = arith.constant dense<0.000000e+00> : vector<2xf32>
    %1102 = vector.multi_reduction <add>, %1101, %cst_272 [1] : vector<2x64xf32> to vector<2xf32>
    %1103 = vector.shape_cast %1102 : vector<2xf32> to vector<2x1xf32>
    %cst_273 = arith.constant 6.400000e+01 : f32
    %1104 = vector.broadcast %cst_273 : f32 to vector<2x1xf32>
    %1105 = arith.divf %1103, %1104 : vector<2x1xf32>
    %1106 = vector.broadcast %1105 : vector<2x1xf32> to vector<2x64xf32>
    %1107 = arith.subf %1101, %1106 : vector<2x64xf32>
    %1108 = arith.mulf %1107, %1107 : vector<2x64xf32>
    %cst_274 = arith.constant dense<0.000000e+00> : vector<2xf32>
    %1109 = vector.multi_reduction <add>, %1108, %cst_274 [1] : vector<2x64xf32> to vector<2xf32>
    %1110 = vector.shape_cast %1109 : vector<2xf32> to vector<2x1xf32>
    %cst_275 = arith.constant 6.400000e+01 : f32
    %1111 = vector.broadcast %cst_275 : f32 to vector<2x1xf32>
    %1112 = arith.divf %1110, %1111 : vector<2x1xf32>
    %1113 = vector.broadcast %1105 : vector<2x1xf32> to vector<2x64xf32>
    %1114 = arith.subf %1101, %1113 : vector<2x64xf32>
    %cst_276 = arith.constant 9.99999974E-6 : f32
    %1115 = vector.broadcast %cst_276 : f32 to vector<2x1xf32>
    %1116 = arith.addf %1112, %1115 : vector<2x1xf32>
    %1117 = math.rsqrt %1116 : vector<2x1xf32>
    %1118 = vector.broadcast %1117 : vector<2x1xf32> to vector<2x64xf32>
    %1119 = arith.mulf %1114, %1118 : vector<2x64xf32>
    %1120 = vector.broadcast %2 : vector<1x64xf32> to vector<2x64xf32>
    %1121 = arith.mulf %1119, %1120 : vector<2x64xf32>
    %1122 = vector.broadcast %3 : vector<1x64xf32> to vector<2x64xf32>
    %1123 = arith.addf %1121, %1122 : vector<2x64xf32>
    %1124 = math.tanh %1123 : vector<2x64xf32>
    %cst_277 = arith.constant dense<0.000000e+00> : vector<2x64xf32>
    %1125 = tpu.matmul %1124, %8, %cst_277 {dimension_numbers = #tpu.dot_dimension_numbers<[1], [0], [0], [1], [0, 0, 1, 1], [], []>} : vector<2x64xf32>, vector<64x64xf32>, vector<2x64xf32> -> vector<2x64xf32>
    %1126 = vector.broadcast %4 : vector<1x64xf32> to vector<2x64xf32>
    %1127 = arith.addf %1125, %1126 : vector<2x64xf32>
    %cst_278 = arith.constant dense<0.000000e+00> : vector<2xf32>
    %1128 = vector.multi_reduction <add>, %1127, %cst_278 [1] : vector<2x64xf32> to vector<2xf32>
    %1129 = vector.shape_cast %1128 : vector<2xf32> to vector<2x1xf32>
    %cst_279 = arith.constant 6.400000e+01 : f32
    %1130 = vector.broadcast %cst_279 : f32 to vector<2x1xf32>
    %1131 = arith.divf %1129, %1130 : vector<2x1xf32>
    %1132 = vector.broadcast %1131 : vector<2x1xf32> to vector<2x64xf32>
    %1133 = arith.subf %1127, %1132 : vector<2x64xf32>
    %1134 = arith.mulf %1133, %1133 : vector<2x64xf32>
    %cst_280 = arith.constant dense<0.000000e+00> : vector<2xf32>
    %1135 = vector.multi_reduction <add>, %1134, %cst_280 [1] : vector<2x64xf32> to vector<2xf32>
    %1136 = vector.shape_cast %1135 : vector<2xf32> to vector<2x1xf32>
    %cst_281 = arith.constant 6.400000e+01 : f32
    %1137 = vector.broadcast %cst_281 : f32 to vector<2x1xf32>
    %1138 = arith.divf %1136, %1137 : vector<2x1xf32>
    %1139 = vector.broadcast %1131 : vector<2x1xf32> to vector<2x64xf32>
    %1140 = arith.subf %1127, %1139 : vector<2x64xf32>
    %cst_282 = arith.constant 9.99999974E-6 : f32
    %1141 = vector.broadcast %cst_282 : f32 to vector<2x1xf32>
    %1142 = arith.addf %1138, %1141 : vector<2x1xf32>
    %1143 = math.rsqrt %1142 : vector<2x1xf32>
    %1144 = vector.broadcast %1143 : vector<2x1xf32> to vector<2x64xf32>
    %1145 = arith.mulf %1140, %1144 : vector<2x64xf32>
    %1146 = vector.broadcast %5 : vector<1x64xf32> to vector<2x64xf32>
    %1147 = arith.mulf %1145, %1146 : vector<2x64xf32>
    %1148 = vector.broadcast %6 : vector<1x64xf32> to vector<2x64xf32>
    %1149 = arith.addf %1147, %1148 : vector<2x64xf32>
    %1150 = math.tanh %1149 : vector<2x64xf32>
    %cst_283 = arith.constant dense<0.000000e+00> : vector<2x5xf32>
    %1151 = tpu.matmul %1150, %9, %cst_283 {dimension_numbers = #tpu.dot_dimension_numbers<[1], [0], [0], [1], [0, 0, 1, 1], [], []>} : vector<2x64xf32>, vector<64x5xf32>, vector<2x5xf32> -> vector<2x5xf32>
    %1152 = vector.broadcast %10 : vector<1x5xf32> to vector<2x5xf32>
    %1153 = arith.addf %1151, %1152 : vector<2x5xf32>
    %1154 = arith.subf %1034, %1092 : vector<2x5xf32>
    %1155 = arith.addf %1154, %1153 : vector<2x5xf32>
    %cst_284 = arith.constant 0.099999994 : f32
    %1156 = vector.broadcast %cst_284 : f32 to vector<2x5xf32>
    %1157 = arith.mulf %1155, %1156 : vector<2x5xf32>
    %1158 = arith.addf %979, %1157 : vector<2x5xf32>
    %cst_285 = arith.constant dense<0.000000e+00> : vector<2x64xf32>
    %1159 = tpu.matmul %1158, %7, %cst_285 {dimension_numbers = #tpu.dot_dimension_numbers<[1], [0], [0], [1], [0, 0, 1, 1], [], []>} : vector<2x5xf32>, vector<5x64xf32>, vector<2x64xf32> -> vector<2x64xf32>
    %1160 = vector.broadcast %1 : vector<1x64xf32> to vector<2x64xf32>
    %1161 = arith.addf %1159, %1160 : vector<2x64xf32>
    %cst_286 = arith.constant dense<0.000000e+00> : vector<2xf32>
    %1162 = vector.multi_reduction <add>, %1161, %cst_286 [1] : vector<2x64xf32> to vector<2xf32>
    %1163 = vector.shape_cast %1162 : vector<2xf32> to vector<2x1xf32>
    %cst_287 = arith.constant 6.400000e+01 : f32
    %1164 = vector.broadcast %cst_287 : f32 to vector<2x1xf32>
    %1165 = arith.divf %1163, %1164 : vector<2x1xf32>
    %1166 = vector.broadcast %1165 : vector<2x1xf32> to vector<2x64xf32>
    %1167 = arith.subf %1161, %1166 : vector<2x64xf32>
    %1168 = arith.mulf %1167, %1167 : vector<2x64xf32>
    %cst_288 = arith.constant dense<0.000000e+00> : vector<2xf32>
    %1169 = vector.multi_reduction <add>, %1168, %cst_288 [1] : vector<2x64xf32> to vector<2xf32>
    %1170 = vector.shape_cast %1169 : vector<2xf32> to vector<2x1xf32>
    %cst_289 = arith.constant 6.400000e+01 : f32
    %1171 = vector.broadcast %cst_289 : f32 to vector<2x1xf32>
    %1172 = arith.divf %1170, %1171 : vector<2x1xf32>
    %1173 = vector.broadcast %1165 : vector<2x1xf32> to vector<2x64xf32>
    %1174 = arith.subf %1161, %1173 : vector<2x64xf32>
    %cst_290 = arith.constant 9.99999974E-6 : f32
    %1175 = vector.broadcast %cst_290 : f32 to vector<2x1xf32>
    %1176 = arith.addf %1172, %1175 : vector<2x1xf32>
    %1177 = math.rsqrt %1176 : vector<2x1xf32>
    %1178 = vector.broadcast %1177 : vector<2x1xf32> to vector<2x64xf32>
    %1179 = arith.mulf %1174, %1178 : vector<2x64xf32>
    %1180 = vector.broadcast %2 : vector<1x64xf32> to vector<2x64xf32>
    %1181 = arith.mulf %1179, %1180 : vector<2x64xf32>
    %1182 = vector.broadcast %3 : vector<1x64xf32> to vector<2x64xf32>
    %1183 = arith.addf %1181, %1182 : vector<2x64xf32>
    %1184 = math.tanh %1183 : vector<2x64xf32>
    %cst_291 = arith.constant dense<0.000000e+00> : vector<2x64xf32>
    %1185 = tpu.matmul %1184, %8, %cst_291 {dimension_numbers = #tpu.dot_dimension_numbers<[1], [0], [0], [1], [0, 0, 1, 1], [], []>} : vector<2x64xf32>, vector<64x64xf32>, vector<2x64xf32> -> vector<2x64xf32>
    %1186 = vector.broadcast %4 : vector<1x64xf32> to vector<2x64xf32>
    %1187 = arith.addf %1185, %1186 : vector<2x64xf32>
    %cst_292 = arith.constant dense<0.000000e+00> : vector<2xf32>
    %1188 = vector.multi_reduction <add>, %1187, %cst_292 [1] : vector<2x64xf32> to vector<2xf32>
    %1189 = vector.shape_cast %1188 : vector<2xf32> to vector<2x1xf32>
    %cst_293 = arith.constant 6.400000e+01 : f32
    %1190 = vector.broadcast %cst_293 : f32 to vector<2x1xf32>
    %1191 = arith.divf %1189, %1190 : vector<2x1xf32>
    %1192 = vector.broadcast %1191 : vector<2x1xf32> to vector<2x64xf32>
    %1193 = arith.subf %1187, %1192 : vector<2x64xf32>
    %1194 = arith.mulf %1193, %1193 : vector<2x64xf32>
    %cst_294 = arith.constant dense<0.000000e+00> : vector<2xf32>
    %1195 = vector.multi_reduction <add>, %1194, %cst_294 [1] : vector<2x64xf32> to vector<2xf32>
    %1196 = vector.shape_cast %1195 : vector<2xf32> to vector<2x1xf32>
    %cst_295 = arith.constant 6.400000e+01 : f32
    %1197 = vector.broadcast %cst_295 : f32 to vector<2x1xf32>
    %1198 = arith.divf %1196, %1197 : vector<2x1xf32>
    %1199 = vector.broadcast %1191 : vector<2x1xf32> to vector<2x64xf32>
    %1200 = arith.subf %1187, %1199 : vector<2x64xf32>
    %cst_296 = arith.constant 9.99999974E-6 : f32
    %1201 = vector.broadcast %cst_296 : f32 to vector<2x1xf32>
    %1202 = arith.addf %1198, %1201 : vector<2x1xf32>
    %1203 = math.rsqrt %1202 : vector<2x1xf32>
    %1204 = vector.broadcast %1203 : vector<2x1xf32> to vector<2x64xf32>
    %1205 = arith.mulf %1200, %1204 : vector<2x64xf32>
    %1206 = vector.broadcast %5 : vector<1x64xf32> to vector<2x64xf32>
    %1207 = arith.mulf %1205, %1206 : vector<2x64xf32>
    %1208 = vector.broadcast %6 : vector<1x64xf32> to vector<2x64xf32>
    %1209 = arith.addf %1207, %1208 : vector<2x64xf32>
    %1210 = math.tanh %1209 : vector<2x64xf32>
    %cst_297 = arith.constant dense<0.000000e+00> : vector<2x5xf32>
    %1211 = tpu.matmul %1210, %9, %cst_297 {dimension_numbers = #tpu.dot_dimension_numbers<[1], [0], [0], [1], [0, 0, 1, 1], [], []>} : vector<2x64xf32>, vector<64x5xf32>, vector<2x5xf32> -> vector<2x5xf32>
    %1212 = vector.broadcast %10 : vector<1x5xf32> to vector<2x5xf32>
    %1213 = arith.addf %1211, %1212 : vector<2x5xf32>
    %1214 = arith.addf %1092, %1153 : vector<2x5xf32>
    %cst_298 = arith.constant 3.000000e+00 : f32
    %1215 = vector.broadcast %cst_298 : f32 to vector<2x5xf32>
    %1216 = arith.mulf %1215, %1214 : vector<2x5xf32>
    %1217 = arith.addf %1034, %1216 : vector<2x5xf32>
    %1218 = arith.addf %1217, %1213 : vector<2x5xf32>
    %cst_299 = arith.constant 0.0124999993 : f32
    %1219 = vector.broadcast %cst_299 : f32 to vector<2x5xf32>
    %1220 = arith.mulf %1218, %1219 : vector<2x5xf32>
    %1221 = arith.addf %979, %1220 : vector<2x5xf32>
    %cst_300 = arith.constant dense<0.000000e+00> : vector<2x64xf32>
    %1222 = tpu.matmul %1221, %7, %cst_300 {dimension_numbers = #tpu.dot_dimension_numbers<[1], [0], [0], [1], [0, 0, 1, 1], [], []>} : vector<2x5xf32>, vector<5x64xf32>, vector<2x64xf32> -> vector<2x64xf32>
    %1223 = vector.broadcast %1 : vector<1x64xf32> to vector<2x64xf32>
    %1224 = arith.addf %1222, %1223 : vector<2x64xf32>
    %cst_301 = arith.constant dense<0.000000e+00> : vector<2xf32>
    %1225 = vector.multi_reduction <add>, %1224, %cst_301 [1] : vector<2x64xf32> to vector<2xf32>
    %1226 = vector.shape_cast %1225 : vector<2xf32> to vector<2x1xf32>
    %cst_302 = arith.constant 6.400000e+01 : f32
    %1227 = vector.broadcast %cst_302 : f32 to vector<2x1xf32>
    %1228 = arith.divf %1226, %1227 : vector<2x1xf32>
    %1229 = vector.broadcast %1228 : vector<2x1xf32> to vector<2x64xf32>
    %1230 = arith.subf %1224, %1229 : vector<2x64xf32>
    %1231 = arith.mulf %1230, %1230 : vector<2x64xf32>
    %cst_303 = arith.constant dense<0.000000e+00> : vector<2xf32>
    %1232 = vector.multi_reduction <add>, %1231, %cst_303 [1] : vector<2x64xf32> to vector<2xf32>
    %1233 = vector.shape_cast %1232 : vector<2xf32> to vector<2x1xf32>
    %cst_304 = arith.constant 6.400000e+01 : f32
    %1234 = vector.broadcast %cst_304 : f32 to vector<2x1xf32>
    %1235 = arith.divf %1233, %1234 : vector<2x1xf32>
    %1236 = vector.broadcast %1228 : vector<2x1xf32> to vector<2x64xf32>
    %1237 = arith.subf %1224, %1236 : vector<2x64xf32>
    %cst_305 = arith.constant 9.99999974E-6 : f32
    %1238 = vector.broadcast %cst_305 : f32 to vector<2x1xf32>
    %1239 = arith.addf %1235, %1238 : vector<2x1xf32>
    %1240 = math.rsqrt %1239 : vector<2x1xf32>
    %1241 = vector.broadcast %1240 : vector<2x1xf32> to vector<2x64xf32>
    %1242 = arith.mulf %1237, %1241 : vector<2x64xf32>
    %1243 = vector.broadcast %2 : vector<1x64xf32> to vector<2x64xf32>
    %1244 = arith.mulf %1242, %1243 : vector<2x64xf32>
    %1245 = vector.broadcast %3 : vector<1x64xf32> to vector<2x64xf32>
    %1246 = arith.addf %1244, %1245 : vector<2x64xf32>
    %1247 = math.tanh %1246 : vector<2x64xf32>
    %cst_306 = arith.constant dense<0.000000e+00> : vector<2x64xf32>
    %1248 = tpu.matmul %1247, %8, %cst_306 {dimension_numbers = #tpu.dot_dimension_numbers<[1], [0], [0], [1], [0, 0, 1, 1], [], []>} : vector<2x64xf32>, vector<64x64xf32>, vector<2x64xf32> -> vector<2x64xf32>
    %1249 = vector.broadcast %4 : vector<1x64xf32> to vector<2x64xf32>
    %1250 = arith.addf %1248, %1249 : vector<2x64xf32>
    %cst_307 = arith.constant dense<0.000000e+00> : vector<2xf32>
    %1251 = vector.multi_reduction <add>, %1250, %cst_307 [1] : vector<2x64xf32> to vector<2xf32>
    %1252 = vector.shape_cast %1251 : vector<2xf32> to vector<2x1xf32>
    %cst_308 = arith.constant 6.400000e+01 : f32
    %1253 = vector.broadcast %cst_308 : f32 to vector<2x1xf32>
    %1254 = arith.divf %1252, %1253 : vector<2x1xf32>
    %1255 = vector.broadcast %1254 : vector<2x1xf32> to vector<2x64xf32>
    %1256 = arith.subf %1250, %1255 : vector<2x64xf32>
    %1257 = arith.mulf %1256, %1256 : vector<2x64xf32>
    %cst_309 = arith.constant dense<0.000000e+00> : vector<2xf32>
    %1258 = vector.multi_reduction <add>, %1257, %cst_309 [1] : vector<2x64xf32> to vector<2xf32>
    %1259 = vector.shape_cast %1258 : vector<2xf32> to vector<2x1xf32>
    %cst_310 = arith.constant 6.400000e+01 : f32
    %1260 = vector.broadcast %cst_310 : f32 to vector<2x1xf32>
    %1261 = arith.divf %1259, %1260 : vector<2x1xf32>
    %1262 = vector.broadcast %1254 : vector<2x1xf32> to vector<2x64xf32>
    %1263 = arith.subf %1250, %1262 : vector<2x64xf32>
    %cst_311 = arith.constant 9.99999974E-6 : f32
    %1264 = vector.broadcast %cst_311 : f32 to vector<2x1xf32>
    %1265 = arith.addf %1261, %1264 : vector<2x1xf32>
    %1266 = math.rsqrt %1265 : vector<2x1xf32>
    %1267 = vector.broadcast %1266 : vector<2x1xf32> to vector<2x64xf32>
    %1268 = arith.mulf %1263, %1267 : vector<2x64xf32>
    %1269 = vector.broadcast %5 : vector<1x64xf32> to vector<2x64xf32>
    %1270 = arith.mulf %1268, %1269 : vector<2x64xf32>
    %1271 = vector.broadcast %6 : vector<1x64xf32> to vector<2x64xf32>
    %1272 = arith.addf %1270, %1271 : vector<2x64xf32>
    %1273 = math.tanh %1272 : vector<2x64xf32>
    %cst_312 = arith.constant dense<0.000000e+00> : vector<2x5xf32>
    %1274 = tpu.matmul %1273, %9, %cst_312 {dimension_numbers = #tpu.dot_dimension_numbers<[1], [0], [0], [1], [0, 0, 1, 1], [], []>} : vector<2x64xf32>, vector<64x5xf32>, vector<2x5xf32> -> vector<2x5xf32>
    %1275 = vector.broadcast %10 : vector<1x5xf32> to vector<2x5xf32>
    %1276 = arith.addf %1274, %1275 : vector<2x5xf32>
    %cst_313 = arith.constant 0.0333333425 : f32
    %1277 = vector.broadcast %cst_313 : f32 to vector<2x5xf32>
    %1278 = arith.mulf %1276, %1277 : vector<2x5xf32>
    %1279 = arith.addf %1221, %1278 : vector<2x5xf32>
    %cst_314 = arith.constant dense<0.000000e+00> : vector<2x64xf32>
    %1280 = tpu.matmul %1279, %7, %cst_314 {dimension_numbers = #tpu.dot_dimension_numbers<[1], [0], [0], [1], [0, 0, 1, 1], [], []>} : vector<2x5xf32>, vector<5x64xf32>, vector<2x64xf32> -> vector<2x64xf32>
    %1281 = vector.broadcast %1 : vector<1x64xf32> to vector<2x64xf32>
    %1282 = arith.addf %1280, %1281 : vector<2x64xf32>
    %cst_315 = arith.constant dense<0.000000e+00> : vector<2xf32>
    %1283 = vector.multi_reduction <add>, %1282, %cst_315 [1] : vector<2x64xf32> to vector<2xf32>
    %1284 = vector.shape_cast %1283 : vector<2xf32> to vector<2x1xf32>
    %cst_316 = arith.constant 6.400000e+01 : f32
    %1285 = vector.broadcast %cst_316 : f32 to vector<2x1xf32>
    %1286 = arith.divf %1284, %1285 : vector<2x1xf32>
    %1287 = vector.broadcast %1286 : vector<2x1xf32> to vector<2x64xf32>
    %1288 = arith.subf %1282, %1287 : vector<2x64xf32>
    %1289 = arith.mulf %1288, %1288 : vector<2x64xf32>
    %cst_317 = arith.constant dense<0.000000e+00> : vector<2xf32>
    %1290 = vector.multi_reduction <add>, %1289, %cst_317 [1] : vector<2x64xf32> to vector<2xf32>
    %1291 = vector.shape_cast %1290 : vector<2xf32> to vector<2x1xf32>
    %cst_318 = arith.constant 6.400000e+01 : f32
    %1292 = vector.broadcast %cst_318 : f32 to vector<2x1xf32>
    %1293 = arith.divf %1291, %1292 : vector<2x1xf32>
    %1294 = vector.broadcast %1286 : vector<2x1xf32> to vector<2x64xf32>
    %1295 = arith.subf %1282, %1294 : vector<2x64xf32>
    %cst_319 = arith.constant 9.99999974E-6 : f32
    %1296 = vector.broadcast %cst_319 : f32 to vector<2x1xf32>
    %1297 = arith.addf %1293, %1296 : vector<2x1xf32>
    %1298 = math.rsqrt %1297 : vector<2x1xf32>
    %1299 = vector.broadcast %1298 : vector<2x1xf32> to vector<2x64xf32>
    %1300 = arith.mulf %1295, %1299 : vector<2x64xf32>
    %1301 = vector.broadcast %2 : vector<1x64xf32> to vector<2x64xf32>
    %1302 = arith.mulf %1300, %1301 : vector<2x64xf32>
    %1303 = vector.broadcast %3 : vector<1x64xf32> to vector<2x64xf32>
    %1304 = arith.addf %1302, %1303 : vector<2x64xf32>
    %1305 = math.tanh %1304 : vector<2x64xf32>
    %cst_320 = arith.constant dense<0.000000e+00> : vector<2x64xf32>
    %1306 = tpu.matmul %1305, %8, %cst_320 {dimension_numbers = #tpu.dot_dimension_numbers<[1], [0], [0], [1], [0, 0, 1, 1], [], []>} : vector<2x64xf32>, vector<64x64xf32>, vector<2x64xf32> -> vector<2x64xf32>
    %1307 = vector.broadcast %4 : vector<1x64xf32> to vector<2x64xf32>
    %1308 = arith.addf %1306, %1307 : vector<2x64xf32>
    %cst_321 = arith.constant dense<0.000000e+00> : vector<2xf32>
    %1309 = vector.multi_reduction <add>, %1308, %cst_321 [1] : vector<2x64xf32> to vector<2xf32>
    %1310 = vector.shape_cast %1309 : vector<2xf32> to vector<2x1xf32>
    %cst_322 = arith.constant 6.400000e+01 : f32
    %1311 = vector.broadcast %cst_322 : f32 to vector<2x1xf32>
    %1312 = arith.divf %1310, %1311 : vector<2x1xf32>
    %1313 = vector.broadcast %1312 : vector<2x1xf32> to vector<2x64xf32>
    %1314 = arith.subf %1308, %1313 : vector<2x64xf32>
    %1315 = arith.mulf %1314, %1314 : vector<2x64xf32>
    %cst_323 = arith.constant dense<0.000000e+00> : vector<2xf32>
    %1316 = vector.multi_reduction <add>, %1315, %cst_323 [1] : vector<2x64xf32> to vector<2xf32>
    %1317 = vector.shape_cast %1316 : vector<2xf32> to vector<2x1xf32>
    %cst_324 = arith.constant 6.400000e+01 : f32
    %1318 = vector.broadcast %cst_324 : f32 to vector<2x1xf32>
    %1319 = arith.divf %1317, %1318 : vector<2x1xf32>
    %1320 = vector.broadcast %1312 : vector<2x1xf32> to vector<2x64xf32>
    %1321 = arith.subf %1308, %1320 : vector<2x64xf32>
    %cst_325 = arith.constant 9.99999974E-6 : f32
    %1322 = vector.broadcast %cst_325 : f32 to vector<2x1xf32>
    %1323 = arith.addf %1319, %1322 : vector<2x1xf32>
    %1324 = math.rsqrt %1323 : vector<2x1xf32>
    %1325 = vector.broadcast %1324 : vector<2x1xf32> to vector<2x64xf32>
    %1326 = arith.mulf %1321, %1325 : vector<2x64xf32>
    %1327 = vector.broadcast %5 : vector<1x64xf32> to vector<2x64xf32>
    %1328 = arith.mulf %1326, %1327 : vector<2x64xf32>
    %1329 = vector.broadcast %6 : vector<1x64xf32> to vector<2x64xf32>
    %1330 = arith.addf %1328, %1329 : vector<2x64xf32>
    %1331 = math.tanh %1330 : vector<2x64xf32>
    %cst_326 = arith.constant dense<0.000000e+00> : vector<2x5xf32>
    %1332 = tpu.matmul %1331, %9, %cst_326 {dimension_numbers = #tpu.dot_dimension_numbers<[1], [0], [0], [1], [0, 0, 1, 1], [], []>} : vector<2x64xf32>, vector<64x5xf32>, vector<2x5xf32> -> vector<2x5xf32>
    %1333 = vector.broadcast %10 : vector<1x5xf32> to vector<2x5xf32>
    %1334 = arith.addf %1332, %1333 : vector<2x5xf32>
    %cst_327 = arith.constant 0.333333343 : f32
    %1335 = vector.broadcast %cst_327 : f32 to vector<2x5xf32>
    %1336 = arith.mulf %1276, %1335 : vector<2x5xf32>
    %1337 = arith.subf %1334, %1336 : vector<2x5xf32>
    %cst_328 = arith.constant 0.100000024 : f32
    %1338 = vector.broadcast %cst_328 : f32 to vector<2x5xf32>
    %1339 = arith.mulf %1337, %1338 : vector<2x5xf32>
    %1340 = arith.addf %1221, %1339 : vector<2x5xf32>
    %cst_329 = arith.constant dense<0.000000e+00> : vector<2x64xf32>
    %1341 = tpu.matmul %1340, %7, %cst_329 {dimension_numbers = #tpu.dot_dimension_numbers<[1], [0], [0], [1], [0, 0, 1, 1], [], []>} : vector<2x5xf32>, vector<5x64xf32>, vector<2x64xf32> -> vector<2x64xf32>
    %1342 = vector.broadcast %1 : vector<1x64xf32> to vector<2x64xf32>
    %1343 = arith.addf %1341, %1342 : vector<2x64xf32>
    %cst_330 = arith.constant dense<0.000000e+00> : vector<2xf32>
    %1344 = vector.multi_reduction <add>, %1343, %cst_330 [1] : vector<2x64xf32> to vector<2xf32>
    %1345 = vector.shape_cast %1344 : vector<2xf32> to vector<2x1xf32>
    %cst_331 = arith.constant 6.400000e+01 : f32
    %1346 = vector.broadcast %cst_331 : f32 to vector<2x1xf32>
    %1347 = arith.divf %1345, %1346 : vector<2x1xf32>
    %1348 = vector.broadcast %1347 : vector<2x1xf32> to vector<2x64xf32>
    %1349 = arith.subf %1343, %1348 : vector<2x64xf32>
    %1350 = arith.mulf %1349, %1349 : vector<2x64xf32>
    %cst_332 = arith.constant dense<0.000000e+00> : vector<2xf32>
    %1351 = vector.multi_reduction <add>, %1350, %cst_332 [1] : vector<2x64xf32> to vector<2xf32>
    %1352 = vector.shape_cast %1351 : vector<2xf32> to vector<2x1xf32>
    %cst_333 = arith.constant 6.400000e+01 : f32
    %1353 = vector.broadcast %cst_333 : f32 to vector<2x1xf32>
    %1354 = arith.divf %1352, %1353 : vector<2x1xf32>
    %1355 = vector.broadcast %1347 : vector<2x1xf32> to vector<2x64xf32>
    %1356 = arith.subf %1343, %1355 : vector<2x64xf32>
    %cst_334 = arith.constant 9.99999974E-6 : f32
    %1357 = vector.broadcast %cst_334 : f32 to vector<2x1xf32>
    %1358 = arith.addf %1354, %1357 : vector<2x1xf32>
    %1359 = math.rsqrt %1358 : vector<2x1xf32>
    %1360 = vector.broadcast %1359 : vector<2x1xf32> to vector<2x64xf32>
    %1361 = arith.mulf %1356, %1360 : vector<2x64xf32>
    %1362 = vector.broadcast %2 : vector<1x64xf32> to vector<2x64xf32>
    %1363 = arith.mulf %1361, %1362 : vector<2x64xf32>
    %1364 = vector.broadcast %3 : vector<1x64xf32> to vector<2x64xf32>
    %1365 = arith.addf %1363, %1364 : vector<2x64xf32>
    %1366 = math.tanh %1365 : vector<2x64xf32>
    %cst_335 = arith.constant dense<0.000000e+00> : vector<2x64xf32>
    %1367 = tpu.matmul %1366, %8, %cst_335 {dimension_numbers = #tpu.dot_dimension_numbers<[1], [0], [0], [1], [0, 0, 1, 1], [], []>} : vector<2x64xf32>, vector<64x64xf32>, vector<2x64xf32> -> vector<2x64xf32>
    %1368 = vector.broadcast %4 : vector<1x64xf32> to vector<2x64xf32>
    %1369 = arith.addf %1367, %1368 : vector<2x64xf32>
    %cst_336 = arith.constant dense<0.000000e+00> : vector<2xf32>
    %1370 = vector.multi_reduction <add>, %1369, %cst_336 [1] : vector<2x64xf32> to vector<2xf32>
    %1371 = vector.shape_cast %1370 : vector<2xf32> to vector<2x1xf32>
    %cst_337 = arith.constant 6.400000e+01 : f32
    %1372 = vector.broadcast %cst_337 : f32 to vector<2x1xf32>
    %1373 = arith.divf %1371, %1372 : vector<2x1xf32>
    %1374 = vector.broadcast %1373 : vector<2x1xf32> to vector<2x64xf32>
    %1375 = arith.subf %1369, %1374 : vector<2x64xf32>
    %1376 = arith.mulf %1375, %1375 : vector<2x64xf32>
    %cst_338 = arith.constant dense<0.000000e+00> : vector<2xf32>
    %1377 = vector.multi_reduction <add>, %1376, %cst_338 [1] : vector<2x64xf32> to vector<2xf32>
    %1378 = vector.shape_cast %1377 : vector<2xf32> to vector<2x1xf32>
    %cst_339 = arith.constant 6.400000e+01 : f32
    %1379 = vector.broadcast %cst_339 : f32 to vector<2x1xf32>
    %1380 = arith.divf %1378, %1379 : vector<2x1xf32>
    %1381 = vector.broadcast %1373 : vector<2x1xf32> to vector<2x64xf32>
    %1382 = arith.subf %1369, %1381 : vector<2x64xf32>
    %cst_340 = arith.constant 9.99999974E-6 : f32
    %1383 = vector.broadcast %cst_340 : f32 to vector<2x1xf32>
    %1384 = arith.addf %1380, %1383 : vector<2x1xf32>
    %1385 = math.rsqrt %1384 : vector<2x1xf32>
    %1386 = vector.broadcast %1385 : vector<2x1xf32> to vector<2x64xf32>
    %1387 = arith.mulf %1382, %1386 : vector<2x64xf32>
    %1388 = vector.broadcast %5 : vector<1x64xf32> to vector<2x64xf32>
    %1389 = arith.mulf %1387, %1388 : vector<2x64xf32>
    %1390 = vector.broadcast %6 : vector<1x64xf32> to vector<2x64xf32>
    %1391 = arith.addf %1389, %1390 : vector<2x64xf32>
    %1392 = math.tanh %1391 : vector<2x64xf32>
    %cst_341 = arith.constant dense<0.000000e+00> : vector<2x5xf32>
    %1393 = tpu.matmul %1392, %9, %cst_341 {dimension_numbers = #tpu.dot_dimension_numbers<[1], [0], [0], [1], [0, 0, 1, 1], [], []>} : vector<2x64xf32>, vector<64x5xf32>, vector<2x5xf32> -> vector<2x5xf32>
    %1394 = vector.broadcast %10 : vector<1x5xf32> to vector<2x5xf32>
    %1395 = arith.addf %1393, %1394 : vector<2x5xf32>
    %1396 = arith.subf %1276, %1334 : vector<2x5xf32>
    %1397 = arith.addf %1396, %1395 : vector<2x5xf32>
    %cst_342 = arith.constant 0.100000024 : f32
    %1398 = vector.broadcast %cst_342 : f32 to vector<2x5xf32>
    %1399 = arith.mulf %1397, %1398 : vector<2x5xf32>
    %1400 = arith.addf %1221, %1399 : vector<2x5xf32>
    %cst_343 = arith.constant dense<0.000000e+00> : vector<2x64xf32>
    %1401 = tpu.matmul %1400, %7, %cst_343 {dimension_numbers = #tpu.dot_dimension_numbers<[1], [0], [0], [1], [0, 0, 1, 1], [], []>} : vector<2x5xf32>, vector<5x64xf32>, vector<2x64xf32> -> vector<2x64xf32>
    %1402 = vector.broadcast %1 : vector<1x64xf32> to vector<2x64xf32>
    %1403 = arith.addf %1401, %1402 : vector<2x64xf32>
    %cst_344 = arith.constant dense<0.000000e+00> : vector<2xf32>
    %1404 = vector.multi_reduction <add>, %1403, %cst_344 [1] : vector<2x64xf32> to vector<2xf32>
    %1405 = vector.shape_cast %1404 : vector<2xf32> to vector<2x1xf32>
    %cst_345 = arith.constant 6.400000e+01 : f32
    %1406 = vector.broadcast %cst_345 : f32 to vector<2x1xf32>
    %1407 = arith.divf %1405, %1406 : vector<2x1xf32>
    %1408 = vector.broadcast %1407 : vector<2x1xf32> to vector<2x64xf32>
    %1409 = arith.subf %1403, %1408 : vector<2x64xf32>
    %1410 = arith.mulf %1409, %1409 : vector<2x64xf32>
    %cst_346 = arith.constant dense<0.000000e+00> : vector<2xf32>
    %1411 = vector.multi_reduction <add>, %1410, %cst_346 [1] : vector<2x64xf32> to vector<2xf32>
    %1412 = vector.shape_cast %1411 : vector<2xf32> to vector<2x1xf32>
    %cst_347 = arith.constant 6.400000e+01 : f32
    %1413 = vector.broadcast %cst_347 : f32 to vector<2x1xf32>
    %1414 = arith.divf %1412, %1413 : vector<2x1xf32>
    %1415 = vector.broadcast %1407 : vector<2x1xf32> to vector<2x64xf32>
    %1416 = arith.subf %1403, %1415 : vector<2x64xf32>
    %cst_348 = arith.constant 9.99999974E-6 : f32
    %1417 = vector.broadcast %cst_348 : f32 to vector<2x1xf32>
    %1418 = arith.addf %1414, %1417 : vector<2x1xf32>
    %1419 = math.rsqrt %1418 : vector<2x1xf32>
    %1420 = vector.broadcast %1419 : vector<2x1xf32> to vector<2x64xf32>
    %1421 = arith.mulf %1416, %1420 : vector<2x64xf32>
    %1422 = vector.broadcast %2 : vector<1x64xf32> to vector<2x64xf32>
    %1423 = arith.mulf %1421, %1422 : vector<2x64xf32>
    %1424 = vector.broadcast %3 : vector<1x64xf32> to vector<2x64xf32>
    %1425 = arith.addf %1423, %1424 : vector<2x64xf32>
    %1426 = math.tanh %1425 : vector<2x64xf32>
    %cst_349 = arith.constant dense<0.000000e+00> : vector<2x64xf32>
    %1427 = tpu.matmul %1426, %8, %cst_349 {dimension_numbers = #tpu.dot_dimension_numbers<[1], [0], [0], [1], [0, 0, 1, 1], [], []>} : vector<2x64xf32>, vector<64x64xf32>, vector<2x64xf32> -> vector<2x64xf32>
    %1428 = vector.broadcast %4 : vector<1x64xf32> to vector<2x64xf32>
    %1429 = arith.addf %1427, %1428 : vector<2x64xf32>
    %cst_350 = arith.constant dense<0.000000e+00> : vector<2xf32>
    %1430 = vector.multi_reduction <add>, %1429, %cst_350 [1] : vector<2x64xf32> to vector<2xf32>
    %1431 = vector.shape_cast %1430 : vector<2xf32> to vector<2x1xf32>
    %cst_351 = arith.constant 6.400000e+01 : f32
    %1432 = vector.broadcast %cst_351 : f32 to vector<2x1xf32>
    %1433 = arith.divf %1431, %1432 : vector<2x1xf32>
    %1434 = vector.broadcast %1433 : vector<2x1xf32> to vector<2x64xf32>
    %1435 = arith.subf %1429, %1434 : vector<2x64xf32>
    %1436 = arith.mulf %1435, %1435 : vector<2x64xf32>
    %cst_352 = arith.constant dense<0.000000e+00> : vector<2xf32>
    %1437 = vector.multi_reduction <add>, %1436, %cst_352 [1] : vector<2x64xf32> to vector<2xf32>
    %1438 = vector.shape_cast %1437 : vector<2xf32> to vector<2x1xf32>
    %cst_353 = arith.constant 6.400000e+01 : f32
    %1439 = vector.broadcast %cst_353 : f32 to vector<2x1xf32>
    %1440 = arith.divf %1438, %1439 : vector<2x1xf32>
    %1441 = vector.broadcast %1433 : vector<2x1xf32> to vector<2x64xf32>
    %1442 = arith.subf %1429, %1441 : vector<2x64xf32>
    %cst_354 = arith.constant 9.99999974E-6 : f32
    %1443 = vector.broadcast %cst_354 : f32 to vector<2x1xf32>
    %1444 = arith.addf %1440, %1443 : vector<2x1xf32>
    %1445 = math.rsqrt %1444 : vector<2x1xf32>
    %1446 = vector.broadcast %1445 : vector<2x1xf32> to vector<2x64xf32>
    %1447 = arith.mulf %1442, %1446 : vector<2x64xf32>
    %1448 = vector.broadcast %5 : vector<1x64xf32> to vector<2x64xf32>
    %1449 = arith.mulf %1447, %1448 : vector<2x64xf32>
    %1450 = vector.broadcast %6 : vector<1x64xf32> to vector<2x64xf32>
    %1451 = arith.addf %1449, %1450 : vector<2x64xf32>
    %1452 = math.tanh %1451 : vector<2x64xf32>
    %cst_355 = arith.constant dense<0.000000e+00> : vector<2x5xf32>
    %1453 = tpu.matmul %1452, %9, %cst_355 {dimension_numbers = #tpu.dot_dimension_numbers<[1], [0], [0], [1], [0, 0, 1, 1], [], []>} : vector<2x64xf32>, vector<64x5xf32>, vector<2x5xf32> -> vector<2x5xf32>
    %1454 = vector.broadcast %10 : vector<1x5xf32> to vector<2x5xf32>
    %1455 = arith.addf %1453, %1454 : vector<2x5xf32>
    %1456 = arith.addf %1334, %1395 : vector<2x5xf32>
    %cst_356 = arith.constant 3.000000e+00 : f32
    %1457 = vector.broadcast %cst_356 : f32 to vector<2x5xf32>
    %1458 = arith.mulf %1457, %1456 : vector<2x5xf32>
    %1459 = arith.addf %1276, %1458 : vector<2x5xf32>
    %1460 = arith.addf %1459, %1455 : vector<2x5xf32>
    %cst_357 = arith.constant 0.012500003 : f32
    %1461 = vector.broadcast %cst_357 : f32 to vector<2x5xf32>
    %1462 = arith.mulf %1460, %1461 : vector<2x5xf32>
    %1463 = arith.addf %1221, %1462 : vector<2x5xf32>
    %cst_358 = arith.constant dense<0.000000e+00> : vector<2x64xf32>
    %1464 = tpu.matmul %1463, %7, %cst_358 {dimension_numbers = #tpu.dot_dimension_numbers<[1], [0], [0], [1], [0, 0, 1, 1], [], []>} : vector<2x5xf32>, vector<5x64xf32>, vector<2x64xf32> -> vector<2x64xf32>
    %1465 = vector.broadcast %1 : vector<1x64xf32> to vector<2x64xf32>
    %1466 = arith.addf %1464, %1465 : vector<2x64xf32>
    %cst_359 = arith.constant dense<0.000000e+00> : vector<2xf32>
    %1467 = vector.multi_reduction <add>, %1466, %cst_359 [1] : vector<2x64xf32> to vector<2xf32>
    %1468 = vector.shape_cast %1467 : vector<2xf32> to vector<2x1xf32>
    %cst_360 = arith.constant 6.400000e+01 : f32
    %1469 = vector.broadcast %cst_360 : f32 to vector<2x1xf32>
    %1470 = arith.divf %1468, %1469 : vector<2x1xf32>
    %1471 = vector.broadcast %1470 : vector<2x1xf32> to vector<2x64xf32>
    %1472 = arith.subf %1466, %1471 : vector<2x64xf32>
    %1473 = arith.mulf %1472, %1472 : vector<2x64xf32>
    %cst_361 = arith.constant dense<0.000000e+00> : vector<2xf32>
    %1474 = vector.multi_reduction <add>, %1473, %cst_361 [1] : vector<2x64xf32> to vector<2xf32>
    %1475 = vector.shape_cast %1474 : vector<2xf32> to vector<2x1xf32>
    %cst_362 = arith.constant 6.400000e+01 : f32
    %1476 = vector.broadcast %cst_362 : f32 to vector<2x1xf32>
    %1477 = arith.divf %1475, %1476 : vector<2x1xf32>
    %1478 = vector.broadcast %1470 : vector<2x1xf32> to vector<2x64xf32>
    %1479 = arith.subf %1466, %1478 : vector<2x64xf32>
    %cst_363 = arith.constant 9.99999974E-6 : f32
    %1480 = vector.broadcast %cst_363 : f32 to vector<2x1xf32>
    %1481 = arith.addf %1477, %1480 : vector<2x1xf32>
    %1482 = math.rsqrt %1481 : vector<2x1xf32>
    %1483 = vector.broadcast %1482 : vector<2x1xf32> to vector<2x64xf32>
    %1484 = arith.mulf %1479, %1483 : vector<2x64xf32>
    %1485 = vector.broadcast %2 : vector<1x64xf32> to vector<2x64xf32>
    %1486 = arith.mulf %1484, %1485 : vector<2x64xf32>
    %1487 = vector.broadcast %3 : vector<1x64xf32> to vector<2x64xf32>
    %1488 = arith.addf %1486, %1487 : vector<2x64xf32>
    %1489 = math.tanh %1488 : vector<2x64xf32>
    %cst_364 = arith.constant dense<0.000000e+00> : vector<2x64xf32>
    %1490 = tpu.matmul %1489, %8, %cst_364 {dimension_numbers = #tpu.dot_dimension_numbers<[1], [0], [0], [1], [0, 0, 1, 1], [], []>} : vector<2x64xf32>, vector<64x64xf32>, vector<2x64xf32> -> vector<2x64xf32>
    %1491 = vector.broadcast %4 : vector<1x64xf32> to vector<2x64xf32>
    %1492 = arith.addf %1490, %1491 : vector<2x64xf32>
    %cst_365 = arith.constant dense<0.000000e+00> : vector<2xf32>
    %1493 = vector.multi_reduction <add>, %1492, %cst_365 [1] : vector<2x64xf32> to vector<2xf32>
    %1494 = vector.shape_cast %1493 : vector<2xf32> to vector<2x1xf32>
    %cst_366 = arith.constant 6.400000e+01 : f32
    %1495 = vector.broadcast %cst_366 : f32 to vector<2x1xf32>
    %1496 = arith.divf %1494, %1495 : vector<2x1xf32>
    %1497 = vector.broadcast %1496 : vector<2x1xf32> to vector<2x64xf32>
    %1498 = arith.subf %1492, %1497 : vector<2x64xf32>
    %1499 = arith.mulf %1498, %1498 : vector<2x64xf32>
    %cst_367 = arith.constant dense<0.000000e+00> : vector<2xf32>
    %1500 = vector.multi_reduction <add>, %1499, %cst_367 [1] : vector<2x64xf32> to vector<2xf32>
    %1501 = vector.shape_cast %1500 : vector<2xf32> to vector<2x1xf32>
    %cst_368 = arith.constant 6.400000e+01 : f32
    %1502 = vector.broadcast %cst_368 : f32 to vector<2x1xf32>
    %1503 = arith.divf %1501, %1502 : vector<2x1xf32>
    %1504 = vector.broadcast %1496 : vector<2x1xf32> to vector<2x64xf32>
    %1505 = arith.subf %1492, %1504 : vector<2x64xf32>
    %cst_369 = arith.constant 9.99999974E-6 : f32
    %1506 = vector.broadcast %cst_369 : f32 to vector<2x1xf32>
    %1507 = arith.addf %1503, %1506 : vector<2x1xf32>
    %1508 = math.rsqrt %1507 : vector<2x1xf32>
    %1509 = vector.broadcast %1508 : vector<2x1xf32> to vector<2x64xf32>
    %1510 = arith.mulf %1505, %1509 : vector<2x64xf32>
    %1511 = vector.broadcast %5 : vector<1x64xf32> to vector<2x64xf32>
    %1512 = arith.mulf %1510, %1511 : vector<2x64xf32>
    %1513 = vector.broadcast %6 : vector<1x64xf32> to vector<2x64xf32>
    %1514 = arith.addf %1512, %1513 : vector<2x64xf32>
    %1515 = math.tanh %1514 : vector<2x64xf32>
    %cst_370 = arith.constant dense<0.000000e+00> : vector<2x5xf32>
    %1516 = tpu.matmul %1515, %9, %cst_370 {dimension_numbers = #tpu.dot_dimension_numbers<[1], [0], [0], [1], [0, 0, 1, 1], [], []>} : vector<2x64xf32>, vector<64x5xf32>, vector<2x5xf32> -> vector<2x5xf32>
    %1517 = vector.broadcast %10 : vector<1x5xf32> to vector<2x5xf32>
    %1518 = arith.addf %1516, %1517 : vector<2x5xf32>
    %cst_371 = arith.constant 0.0333333202 : f32
    %1519 = vector.broadcast %cst_371 : f32 to vector<2x5xf32>
    %1520 = arith.mulf %1518, %1519 : vector<2x5xf32>
    %1521 = arith.addf %1463, %1520 : vector<2x5xf32>
    %cst_372 = arith.constant dense<0.000000e+00> : vector<2x64xf32>
    %1522 = tpu.matmul %1521, %7, %cst_372 {dimension_numbers = #tpu.dot_dimension_numbers<[1], [0], [0], [1], [0, 0, 1, 1], [], []>} : vector<2x5xf32>, vector<5x64xf32>, vector<2x64xf32> -> vector<2x64xf32>
    %1523 = vector.broadcast %1 : vector<1x64xf32> to vector<2x64xf32>
    %1524 = arith.addf %1522, %1523 : vector<2x64xf32>
    %cst_373 = arith.constant dense<0.000000e+00> : vector<2xf32>
    %1525 = vector.multi_reduction <add>, %1524, %cst_373 [1] : vector<2x64xf32> to vector<2xf32>
    %1526 = vector.shape_cast %1525 : vector<2xf32> to vector<2x1xf32>
    %cst_374 = arith.constant 6.400000e+01 : f32
    %1527 = vector.broadcast %cst_374 : f32 to vector<2x1xf32>
    %1528 = arith.divf %1526, %1527 : vector<2x1xf32>
    %1529 = vector.broadcast %1528 : vector<2x1xf32> to vector<2x64xf32>
    %1530 = arith.subf %1524, %1529 : vector<2x64xf32>
    %1531 = arith.mulf %1530, %1530 : vector<2x64xf32>
    %cst_375 = arith.constant dense<0.000000e+00> : vector<2xf32>
    %1532 = vector.multi_reduction <add>, %1531, %cst_375 [1] : vector<2x64xf32> to vector<2xf32>
    %1533 = vector.shape_cast %1532 : vector<2xf32> to vector<2x1xf32>
    %cst_376 = arith.constant 6.400000e+01 : f32
    %1534 = vector.broadcast %cst_376 : f32 to vector<2x1xf32>
    %1535 = arith.divf %1533, %1534 : vector<2x1xf32>
    %1536 = vector.broadcast %1528 : vector<2x1xf32> to vector<2x64xf32>
    %1537 = arith.subf %1524, %1536 : vector<2x64xf32>
    %cst_377 = arith.constant 9.99999974E-6 : f32
    %1538 = vector.broadcast %cst_377 : f32 to vector<2x1xf32>
    %1539 = arith.addf %1535, %1538 : vector<2x1xf32>
    %1540 = math.rsqrt %1539 : vector<2x1xf32>
    %1541 = vector.broadcast %1540 : vector<2x1xf32> to vector<2x64xf32>
    %1542 = arith.mulf %1537, %1541 : vector<2x64xf32>
    %1543 = vector.broadcast %2 : vector<1x64xf32> to vector<2x64xf32>
    %1544 = arith.mulf %1542, %1543 : vector<2x64xf32>
    %1545 = vector.broadcast %3 : vector<1x64xf32> to vector<2x64xf32>
    %1546 = arith.addf %1544, %1545 : vector<2x64xf32>
    %1547 = math.tanh %1546 : vector<2x64xf32>
    %cst_378 = arith.constant dense<0.000000e+00> : vector<2x64xf32>
    %1548 = tpu.matmul %1547, %8, %cst_378 {dimension_numbers = #tpu.dot_dimension_numbers<[1], [0], [0], [1], [0, 0, 1, 1], [], []>} : vector<2x64xf32>, vector<64x64xf32>, vector<2x64xf32> -> vector<2x64xf32>
    %1549 = vector.broadcast %4 : vector<1x64xf32> to vector<2x64xf32>
    %1550 = arith.addf %1548, %1549 : vector<2x64xf32>
    %cst_379 = arith.constant dense<0.000000e+00> : vector<2xf32>
    %1551 = vector.multi_reduction <add>, %1550, %cst_379 [1] : vector<2x64xf32> to vector<2xf32>
    %1552 = vector.shape_cast %1551 : vector<2xf32> to vector<2x1xf32>
    %cst_380 = arith.constant 6.400000e+01 : f32
    %1553 = vector.broadcast %cst_380 : f32 to vector<2x1xf32>
    %1554 = arith.divf %1552, %1553 : vector<2x1xf32>
    %1555 = vector.broadcast %1554 : vector<2x1xf32> to vector<2x64xf32>
    %1556 = arith.subf %1550, %1555 : vector<2x64xf32>
    %1557 = arith.mulf %1556, %1556 : vector<2x64xf32>
    %cst_381 = arith.constant dense<0.000000e+00> : vector<2xf32>
    %1558 = vector.multi_reduction <add>, %1557, %cst_381 [1] : vector<2x64xf32> to vector<2xf32>
    %1559 = vector.shape_cast %1558 : vector<2xf32> to vector<2x1xf32>
    %cst_382 = arith.constant 6.400000e+01 : f32
    %1560 = vector.broadcast %cst_382 : f32 to vector<2x1xf32>
    %1561 = arith.divf %1559, %1560 : vector<2x1xf32>
    %1562 = vector.broadcast %1554 : vector<2x1xf32> to vector<2x64xf32>
    %1563 = arith.subf %1550, %1562 : vector<2x64xf32>
    %cst_383 = arith.constant 9.99999974E-6 : f32
    %1564 = vector.broadcast %cst_383 : f32 to vector<2x1xf32>
    %1565 = arith.addf %1561, %1564 : vector<2x1xf32>
    %1566 = math.rsqrt %1565 : vector<2x1xf32>
    %1567 = vector.broadcast %1566 : vector<2x1xf32> to vector<2x64xf32>
    %1568 = arith.mulf %1563, %1567 : vector<2x64xf32>
    %1569 = vector.broadcast %5 : vector<1x64xf32> to vector<2x64xf32>
    %1570 = arith.mulf %1568, %1569 : vector<2x64xf32>
    %1571 = vector.broadcast %6 : vector<1x64xf32> to vector<2x64xf32>
    %1572 = arith.addf %1570, %1571 : vector<2x64xf32>
    %1573 = math.tanh %1572 : vector<2x64xf32>
    %cst_384 = arith.constant dense<0.000000e+00> : vector<2x5xf32>
    %1574 = tpu.matmul %1573, %9, %cst_384 {dimension_numbers = #tpu.dot_dimension_numbers<[1], [0], [0], [1], [0, 0, 1, 1], [], []>} : vector<2x64xf32>, vector<64x5xf32>, vector<2x5xf32> -> vector<2x5xf32>
    %1575 = vector.broadcast %10 : vector<1x5xf32> to vector<2x5xf32>
    %1576 = arith.addf %1574, %1575 : vector<2x5xf32>
    %cst_385 = arith.constant 0.333333343 : f32
    %1577 = vector.broadcast %cst_385 : f32 to vector<2x5xf32>
    %1578 = arith.mulf %1518, %1577 : vector<2x5xf32>
    %1579 = arith.subf %1576, %1578 : vector<2x5xf32>
    %cst_386 = arith.constant 0.0999999642 : f32
    %1580 = vector.broadcast %cst_386 : f32 to vector<2x5xf32>
    %1581 = arith.mulf %1579, %1580 : vector<2x5xf32>
    %1582 = arith.addf %1463, %1581 : vector<2x5xf32>
    %cst_387 = arith.constant dense<0.000000e+00> : vector<2x64xf32>
    %1583 = tpu.matmul %1582, %7, %cst_387 {dimension_numbers = #tpu.dot_dimension_numbers<[1], [0], [0], [1], [0, 0, 1, 1], [], []>} : vector<2x5xf32>, vector<5x64xf32>, vector<2x64xf32> -> vector<2x64xf32>
    %1584 = vector.broadcast %1 : vector<1x64xf32> to vector<2x64xf32>
    %1585 = arith.addf %1583, %1584 : vector<2x64xf32>
    %cst_388 = arith.constant dense<0.000000e+00> : vector<2xf32>
    %1586 = vector.multi_reduction <add>, %1585, %cst_388 [1] : vector<2x64xf32> to vector<2xf32>
    %1587 = vector.shape_cast %1586 : vector<2xf32> to vector<2x1xf32>
    %cst_389 = arith.constant 6.400000e+01 : f32
    %1588 = vector.broadcast %cst_389 : f32 to vector<2x1xf32>
    %1589 = arith.divf %1587, %1588 : vector<2x1xf32>
    %1590 = vector.broadcast %1589 : vector<2x1xf32> to vector<2x64xf32>
    %1591 = arith.subf %1585, %1590 : vector<2x64xf32>
    %1592 = arith.mulf %1591, %1591 : vector<2x64xf32>
    %cst_390 = arith.constant dense<0.000000e+00> : vector<2xf32>
    %1593 = vector.multi_reduction <add>, %1592, %cst_390 [1] : vector<2x64xf32> to vector<2xf32>
    %1594 = vector.shape_cast %1593 : vector<2xf32> to vector<2x1xf32>
    %cst_391 = arith.constant 6.400000e+01 : f32
    %1595 = vector.broadcast %cst_391 : f32 to vector<2x1xf32>
    %1596 = arith.divf %1594, %1595 : vector<2x1xf32>
    %1597 = vector.broadcast %1589 : vector<2x1xf32> to vector<2x64xf32>
    %1598 = arith.subf %1585, %1597 : vector<2x64xf32>
    %cst_392 = arith.constant 9.99999974E-6 : f32
    %1599 = vector.broadcast %cst_392 : f32 to vector<2x1xf32>
    %1600 = arith.addf %1596, %1599 : vector<2x1xf32>
    %1601 = math.rsqrt %1600 : vector<2x1xf32>
    %1602 = vector.broadcast %1601 : vector<2x1xf32> to vector<2x64xf32>
    %1603 = arith.mulf %1598, %1602 : vector<2x64xf32>
    %1604 = vector.broadcast %2 : vector<1x64xf32> to vector<2x64xf32>
    %1605 = arith.mulf %1603, %1604 : vector<2x64xf32>
    %1606 = vector.broadcast %3 : vector<1x64xf32> to vector<2x64xf32>
    %1607 = arith.addf %1605, %1606 : vector<2x64xf32>
    %1608 = math.tanh %1607 : vector<2x64xf32>
    %cst_393 = arith.constant dense<0.000000e+00> : vector<2x64xf32>
    %1609 = tpu.matmul %1608, %8, %cst_393 {dimension_numbers = #tpu.dot_dimension_numbers<[1], [0], [0], [1], [0, 0, 1, 1], [], []>} : vector<2x64xf32>, vector<64x64xf32>, vector<2x64xf32> -> vector<2x64xf32>
    %1610 = vector.broadcast %4 : vector<1x64xf32> to vector<2x64xf32>
    %1611 = arith.addf %1609, %1610 : vector<2x64xf32>
    %cst_394 = arith.constant dense<0.000000e+00> : vector<2xf32>
    %1612 = vector.multi_reduction <add>, %1611, %cst_394 [1] : vector<2x64xf32> to vector<2xf32>
    %1613 = vector.shape_cast %1612 : vector<2xf32> to vector<2x1xf32>
    %cst_395 = arith.constant 6.400000e+01 : f32
    %1614 = vector.broadcast %cst_395 : f32 to vector<2x1xf32>
    %1615 = arith.divf %1613, %1614 : vector<2x1xf32>
    %1616 = vector.broadcast %1615 : vector<2x1xf32> to vector<2x64xf32>
    %1617 = arith.subf %1611, %1616 : vector<2x64xf32>
    %1618 = arith.mulf %1617, %1617 : vector<2x64xf32>
    %cst_396 = arith.constant dense<0.000000e+00> : vector<2xf32>
    %1619 = vector.multi_reduction <add>, %1618, %cst_396 [1] : vector<2x64xf32> to vector<2xf32>
    %1620 = vector.shape_cast %1619 : vector<2xf32> to vector<2x1xf32>
    %cst_397 = arith.constant 6.400000e+01 : f32
    %1621 = vector.broadcast %cst_397 : f32 to vector<2x1xf32>
    %1622 = arith.divf %1620, %1621 : vector<2x1xf32>
    %1623 = vector.broadcast %1615 : vector<2x1xf32> to vector<2x64xf32>
    %1624 = arith.subf %1611, %1623 : vector<2x64xf32>
    %cst_398 = arith.constant 9.99999974E-6 : f32
    %1625 = vector.broadcast %cst_398 : f32 to vector<2x1xf32>
    %1626 = arith.addf %1622, %1625 : vector<2x1xf32>
    %1627 = math.rsqrt %1626 : vector<2x1xf32>
    %1628 = vector.broadcast %1627 : vector<2x1xf32> to vector<2x64xf32>
    %1629 = arith.mulf %1624, %1628 : vector<2x64xf32>
    %1630 = vector.broadcast %5 : vector<1x64xf32> to vector<2x64xf32>
    %1631 = arith.mulf %1629, %1630 : vector<2x64xf32>
    %1632 = vector.broadcast %6 : vector<1x64xf32> to vector<2x64xf32>
    %1633 = arith.addf %1631, %1632 : vector<2x64xf32>
    %1634 = math.tanh %1633 : vector<2x64xf32>
    %cst_399 = arith.constant dense<0.000000e+00> : vector<2x5xf32>
    %1635 = tpu.matmul %1634, %9, %cst_399 {dimension_numbers = #tpu.dot_dimension_numbers<[1], [0], [0], [1], [0, 0, 1, 1], [], []>} : vector<2x64xf32>, vector<64x5xf32>, vector<2x5xf32> -> vector<2x5xf32>
    %1636 = vector.broadcast %10 : vector<1x5xf32> to vector<2x5xf32>
    %1637 = arith.addf %1635, %1636 : vector<2x5xf32>
    %1638 = arith.subf %1518, %1576 : vector<2x5xf32>
    %1639 = arith.addf %1638, %1637 : vector<2x5xf32>
    %cst_400 = arith.constant 0.0999999642 : f32
    %1640 = vector.broadcast %cst_400 : f32 to vector<2x5xf32>
    %1641 = arith.mulf %1639, %1640 : vector<2x5xf32>
    %1642 = arith.addf %1463, %1641 : vector<2x5xf32>
    %cst_401 = arith.constant dense<0.000000e+00> : vector<2x64xf32>
    %1643 = tpu.matmul %1642, %7, %cst_401 {dimension_numbers = #tpu.dot_dimension_numbers<[1], [0], [0], [1], [0, 0, 1, 1], [], []>} : vector<2x5xf32>, vector<5x64xf32>, vector<2x64xf32> -> vector<2x64xf32>
    %1644 = vector.broadcast %1 : vector<1x64xf32> to vector<2x64xf32>
    %1645 = arith.addf %1643, %1644 : vector<2x64xf32>
    %cst_402 = arith.constant dense<0.000000e+00> : vector<2xf32>
    %1646 = vector.multi_reduction <add>, %1645, %cst_402 [1] : vector<2x64xf32> to vector<2xf32>
    %1647 = vector.shape_cast %1646 : vector<2xf32> to vector<2x1xf32>
    %cst_403 = arith.constant 6.400000e+01 : f32
    %1648 = vector.broadcast %cst_403 : f32 to vector<2x1xf32>
    %1649 = arith.divf %1647, %1648 : vector<2x1xf32>
    %1650 = vector.broadcast %1649 : vector<2x1xf32> to vector<2x64xf32>
    %1651 = arith.subf %1645, %1650 : vector<2x64xf32>
    %1652 = arith.mulf %1651, %1651 : vector<2x64xf32>
    %cst_404 = arith.constant dense<0.000000e+00> : vector<2xf32>
    %1653 = vector.multi_reduction <add>, %1652, %cst_404 [1] : vector<2x64xf32> to vector<2xf32>
    %1654 = vector.shape_cast %1653 : vector<2xf32> to vector<2x1xf32>
    %cst_405 = arith.constant 6.400000e+01 : f32
    %1655 = vector.broadcast %cst_405 : f32 to vector<2x1xf32>
    %1656 = arith.divf %1654, %1655 : vector<2x1xf32>
    %1657 = vector.broadcast %1649 : vector<2x1xf32> to vector<2x64xf32>
    %1658 = arith.subf %1645, %1657 : vector<2x64xf32>
    %cst_406 = arith.constant 9.99999974E-6 : f32
    %1659 = vector.broadcast %cst_406 : f32 to vector<2x1xf32>
    %1660 = arith.addf %1656, %1659 : vector<2x1xf32>
    %1661 = math.rsqrt %1660 : vector<2x1xf32>
    %1662 = vector.broadcast %1661 : vector<2x1xf32> to vector<2x64xf32>
    %1663 = arith.mulf %1658, %1662 : vector<2x64xf32>
    %1664 = vector.broadcast %2 : vector<1x64xf32> to vector<2x64xf32>
    %1665 = arith.mulf %1663, %1664 : vector<2x64xf32>
    %1666 = vector.broadcast %3 : vector<1x64xf32> to vector<2x64xf32>
    %1667 = arith.addf %1665, %1666 : vector<2x64xf32>
    %1668 = math.tanh %1667 : vector<2x64xf32>
    %cst_407 = arith.constant dense<0.000000e+00> : vector<2x64xf32>
    %1669 = tpu.matmul %1668, %8, %cst_407 {dimension_numbers = #tpu.dot_dimension_numbers<[1], [0], [0], [1], [0, 0, 1, 1], [], []>} : vector<2x64xf32>, vector<64x64xf32>, vector<2x64xf32> -> vector<2x64xf32>
    %1670 = vector.broadcast %4 : vector<1x64xf32> to vector<2x64xf32>
    %1671 = arith.addf %1669, %1670 : vector<2x64xf32>
    %cst_408 = arith.constant dense<0.000000e+00> : vector<2xf32>
    %1672 = vector.multi_reduction <add>, %1671, %cst_408 [1] : vector<2x64xf32> to vector<2xf32>
    %1673 = vector.shape_cast %1672 : vector<2xf32> to vector<2x1xf32>
    %cst_409 = arith.constant 6.400000e+01 : f32
    %1674 = vector.broadcast %cst_409 : f32 to vector<2x1xf32>
    %1675 = arith.divf %1673, %1674 : vector<2x1xf32>
    %1676 = vector.broadcast %1675 : vector<2x1xf32> to vector<2x64xf32>
    %1677 = arith.subf %1671, %1676 : vector<2x64xf32>
    %1678 = arith.mulf %1677, %1677 : vector<2x64xf32>
    %cst_410 = arith.constant dense<0.000000e+00> : vector<2xf32>
    %1679 = vector.multi_reduction <add>, %1678, %cst_410 [1] : vector<2x64xf32> to vector<2xf32>
    %1680 = vector.shape_cast %1679 : vector<2xf32> to vector<2x1xf32>
    %cst_411 = arith.constant 6.400000e+01 : f32
    %1681 = vector.broadcast %cst_411 : f32 to vector<2x1xf32>
    %1682 = arith.divf %1680, %1681 : vector<2x1xf32>
    %1683 = vector.broadcast %1675 : vector<2x1xf32> to vector<2x64xf32>
    %1684 = arith.subf %1671, %1683 : vector<2x64xf32>
    %cst_412 = arith.constant 9.99999974E-6 : f32
    %1685 = vector.broadcast %cst_412 : f32 to vector<2x1xf32>
    %1686 = arith.addf %1682, %1685 : vector<2x1xf32>
    %1687 = math.rsqrt %1686 : vector<2x1xf32>
    %1688 = vector.broadcast %1687 : vector<2x1xf32> to vector<2x64xf32>
    %1689 = arith.mulf %1684, %1688 : vector<2x64xf32>
    %1690 = vector.broadcast %5 : vector<1x64xf32> to vector<2x64xf32>
    %1691 = arith.mulf %1689, %1690 : vector<2x64xf32>
    %1692 = vector.broadcast %6 : vector<1x64xf32> to vector<2x64xf32>
    %1693 = arith.addf %1691, %1692 : vector<2x64xf32>
    %1694 = math.tanh %1693 : vector<2x64xf32>
    %cst_413 = arith.constant dense<0.000000e+00> : vector<2x5xf32>
    %1695 = tpu.matmul %1694, %9, %cst_413 {dimension_numbers = #tpu.dot_dimension_numbers<[1], [0], [0], [1], [0, 0, 1, 1], [], []>} : vector<2x64xf32>, vector<64x5xf32>, vector<2x5xf32> -> vector<2x5xf32>
    %1696 = vector.broadcast %10 : vector<1x5xf32> to vector<2x5xf32>
    %1697 = arith.addf %1695, %1696 : vector<2x5xf32>
    %1698 = arith.addf %1576, %1637 : vector<2x5xf32>
    %cst_414 = arith.constant 3.000000e+00 : f32
    %1699 = vector.broadcast %cst_414 : f32 to vector<2x5xf32>
    %1700 = arith.mulf %1699, %1698 : vector<2x5xf32>
    %1701 = arith.addf %1518, %1700 : vector<2x5xf32>
    %1702 = arith.addf %1701, %1697 : vector<2x5xf32>
    %cst_415 = arith.constant 0.0124999955 : f32
    %1703 = vector.broadcast %cst_415 : f32 to vector<2x5xf32>
    %1704 = arith.mulf %1702, %1703 : vector<2x5xf32>
    %1705 = arith.addf %1463, %1704 : vector<2x5xf32>
    %c0_416 = arith.constant 0 : index
    %c0_417 = arith.constant 0 : index
    %c0_418 = arith.constant 0 : index
    %1706 = vector.load %arg6[%c0_416, %c0_417, %c0_418] : memref<8x2x5xf32, #tpu.memory_space<vmem>>, vector<1x2x5xf32>
    %1707 = vector.shape_cast %1706 : vector<1x2x5xf32> to vector<2x5xf32>
    %1708 = vector.shape_cast %11 : vector<2x5xf32> to vector<1x2x5xf32>
    tpu.vector_store %arg6[%c0_416, %c0_417, %c0_418], %1708 {strides = array<i32>} : memref<8x2x5xf32, #tpu.memory_space<vmem>>, vector<1x2x5xf32>,
    %1709 = arith.subf %253, %11 : vector<2x5xf32>
    %cst_419 = arith.constant 1.000000e+00 : f32
    %1710 = vector.broadcast %cst_419 : f32 to vector<2x5xf32>
    %1711 = arith.mulf %1710, %1709 : vector<2x5xf32>
    %1712 = arith.addf %11, %1711 : vector<2x5xf32>
    %c1 = arith.constant 1 : index
    %c0_420 = arith.constant 0 : index
    %c0_421 = arith.constant 0 : index
    %1713 = vector.load %arg6[%c1, %c0_420, %c0_421] : memref<8x2x5xf32, #tpu.memory_space<vmem>>, vector<1x2x5xf32>
    %1714 = vector.shape_cast %1713 : vector<1x2x5xf32> to vector<2x5xf32>
    %1715 = vector.shape_cast %1712 : vector<2x5xf32> to vector<1x2x5xf32>
    tpu.vector_store %arg6[%c1, %c0_420, %c0_421], %1715 {strides = array<i32>} : memref<8x2x5xf32, #tpu.memory_space<vmem>>, vector<1x2x5xf32>,
    %1716 = arith.subf %495, %253 : vector<2x5xf32>
    %cst_422 = arith.constant 1.000000e+00 : f32
    %1717 = vector.broadcast %cst_422 : f32 to vector<2x5xf32>
    %1718 = arith.mulf %1717, %1716 : vector<2x5xf32>
    %1719 = arith.addf %253, %1718 : vector<2x5xf32>
    %c2 = arith.constant 2 : index
    %c0_423 = arith.constant 0 : index
    %c0_424 = arith.constant 0 : index
    %1720 = vector.load %arg6[%c2, %c0_423, %c0_424] : memref<8x2x5xf32, #tpu.memory_space<vmem>>, vector<1x2x5xf32>
    %1721 = vector.shape_cast %1720 : vector<1x2x5xf32> to vector<2x5xf32>
    %1722 = vector.shape_cast %1719 : vector<2x5xf32> to vector<1x2x5xf32>
    tpu.vector_store %arg6[%c2, %c0_423, %c0_424], %1722 {strides = array<i32>} : memref<8x2x5xf32, #tpu.memory_space<vmem>>, vector<1x2x5xf32>,
    %1723 = arith.subf %737, %495 : vector<2x5xf32>
    %cst_425 = arith.constant 1.000000e+00 : f32
    %1724 = vector.broadcast %cst_425 : f32 to vector<2x5xf32>
    %1725 = arith.mulf %1724, %1723 : vector<2x5xf32>
    %1726 = arith.addf %495, %1725 : vector<2x5xf32>
    %c3 = arith.constant 3 : index
    %c0_426 = arith.constant 0 : index
    %c0_427 = arith.constant 0 : index
    %1727 = vector.load %arg6[%c3, %c0_426, %c0_427] : memref<8x2x5xf32, #tpu.memory_space<vmem>>, vector<1x2x5xf32>
    %1728 = vector.shape_cast %1727 : vector<1x2x5xf32> to vector<2x5xf32>
    %1729 = vector.shape_cast %1726 : vector<2x5xf32> to vector<1x2x5xf32>
    tpu.vector_store %arg6[%c3, %c0_426, %c0_427], %1729 {strides = array<i32>} : memref<8x2x5xf32, #tpu.memory_space<vmem>>, vector<1x2x5xf32>,
    %1730 = arith.subf %979, %737 : vector<2x5xf32>
    %cst_428 = arith.constant 1.000000e+00 : f32
    %1731 = vector.broadcast %cst_428 : f32 to vector<2x5xf32>
    %1732 = arith.mulf %1731, %1730 : vector<2x5xf32>
    %1733 = arith.addf %737, %1732 : vector<2x5xf32>
    %c4 = arith.constant 4 : index
    %c0_429 = arith.constant 0 : index
    %c0_430 = arith.constant 0 : index
    %1734 = vector.load %arg6[%c4, %c0_429, %c0_430] : memref<8x2x5xf32, #tpu.memory_space<vmem>>, vector<1x2x5xf32>
    %1735 = vector.shape_cast %1734 : vector<1x2x5xf32> to vector<2x5xf32>
    %1736 = vector.shape_cast %1733 : vector<2x5xf32> to vector<1x2x5xf32>
    tpu.vector_store %arg6[%c4, %c0_429, %c0_430], %1736 {strides = array<i32>} : memref<8x2x5xf32, #tpu.memory_space<vmem>>, vector<1x2x5xf32>,
    %1737 = arith.subf %1221, %979 : vector<2x5xf32>
    %cst_431 = arith.constant 1.000000e+00 : f32
    %1738 = vector.broadcast %cst_431 : f32 to vector<2x5xf32>
    %1739 = arith.mulf %1738, %1737 : vector<2x5xf32>
    %1740 = arith.addf %979, %1739 : vector<2x5xf32>
    %c5 = arith.constant 5 : index
    %c0_432 = arith.constant 0 : index
    %c0_433 = arith.constant 0 : index
    %1741 = vector.load %arg6[%c5, %c0_432, %c0_433] : memref<8x2x5xf32, #tpu.memory_space<vmem>>, vector<1x2x5xf32>
    %1742 = vector.shape_cast %1741 : vector<1x2x5xf32> to vector<2x5xf32>
    %1743 = vector.shape_cast %1740 : vector<2x5xf32> to vector<1x2x5xf32>
    tpu.vector_store %arg6[%c5, %c0_432, %c0_433], %1743 {strides = array<i32>} : memref<8x2x5xf32, #tpu.memory_space<vmem>>, vector<1x2x5xf32>,
    %1744 = arith.subf %1463, %1221 : vector<2x5xf32>
    %cst_434 = arith.constant 1.000000e+00 : f32
    %1745 = vector.broadcast %cst_434 : f32 to vector<2x5xf32>
    %1746 = arith.mulf %1745, %1744 : vector<2x5xf32>
    %1747 = arith.addf %1221, %1746 : vector<2x5xf32>
    %c6 = arith.constant 6 : index
    %c0_435 = arith.constant 0 : index
    %c0_436 = arith.constant 0 : index
    %1748 = vector.load %arg6[%c6, %c0_435, %c0_436] : memref<8x2x5xf32, #tpu.memory_space<vmem>>, vector<1x2x5xf32>
    %1749 = vector.shape_cast %1748 : vector<1x2x5xf32> to vector<2x5xf32>
    %1750 = vector.shape_cast %1747 : vector<2x5xf32> to vector<1x2x5xf32>
    tpu.vector_store %arg6[%c6, %c0_435, %c0_436], %1750 {strides = array<i32>} : memref<8x2x5xf32, #tpu.memory_space<vmem>>, vector<1x2x5xf32>,
    %1751 = arith.subf %1705, %1463 : vector<2x5xf32>
    %cst_437 = arith.constant 1.000000e+00 : f32
    %1752 = vector.broadcast %cst_437 : f32 to vector<2x5xf32>
    %1753 = arith.mulf %1752, %1751 : vector<2x5xf32>
    %1754 = arith.addf %1463, %1753 : vector<2x5xf32>
    %c7 = arith.constant 7 : index
    %c0_438 = arith.constant 0 : index
    %c0_439 = arith.constant 0 : index
    %1755 = vector.load %arg6[%c7, %c0_438, %c0_439] : memref<8x2x5xf32, #tpu.memory_space<vmem>>, vector<1x2x5xf32>
    %1756 = vector.shape_cast %1755 : vector<1x2x5xf32> to vector<2x5xf32>
    %1757 = vector.shape_cast %1754 : vector<2x5xf32> to vector<1x2x5xf32>
    tpu.vector_store %arg6[%c7, %c0_438, %c0_439], %1757 {strides = array<i32>} : memref<8x2x5xf32, #tpu.memory_space<vmem>>, vector<1x2x5xf32>,
    return
  }
}

</mosaic_0001>

<bundles_post_ra>
// kernel: forward.3
= control target key start
LH: loop header
LB: loop body
LE: loop exit
PB: predicated region body
PF: predicated region fallthrough
CT: control target
= control target key end

     0   :  { %v1588_v3 = vmov 0.0   ;;  %vm58_vm0 = vcmask 1040384   ;;  %vm51_vm1 = vcmask 138240   ;;  %v41_v34 = vlaneseq  ;;  %s1589_s10 = smov 64   ;;  %s1994_s2 = inlined_call_operand.vmem [shape: f32[64,192], index: 2, kind: input, shape index: {}]   ;;  %s1995_s1 = inlined_call_operand.vmem [shape: f32[17,192], index: 1, kind: input, shape index: {}]   ;;  %s1996_s0 = inlined_call_operand.vmem [shape: f32[16,17], index: 0, kind: input, shape index: {}]   ;;  %s1997_s3 = inlined_call_operand.vmem [shape: f32[2,192], index: 3, kind: input, shape index: {}]   ;;  %s1998_s4 = inlined_call_operand.vmem [shape: f32[2,64,64], index: 4, kind: input, shape index: {}]   ;;  %s1999_s6 = inlined_call_operand.vmem [shape: f32[64,10], index: 6, kind: input, shape index: {}]   ;;  %s2000_s5 = inlined_call_operand.vmem [shape: f32[2,64], index: 5, kind: input, shape index: {}]   ;;  %s2001_s7 = inlined_call_operand.vmem [shape: f32[1,10], index: 7, kind: input, shape index: {}]   ;;  %s2002_s8 = inlined_call_operand.vmem [shape: f32[2,10], index: 8, kind: output, shape index: {}]  }
   0x1   :  { %v143_v0 = vld [vmem:[%s1994_s2 + $0x8] sm:$0xff]  ;;  %v145_v1 = vld [vmem:[%s1994_s2 + $0x18] sm:$0xff]  ;;  %v142_v2 = vld [vmem:[%s1994_s2] sm:$0xff]  ;;  %129 = vmatprep.mubr.f32.mxu0 %v1588_v3  ;;  %237 = vmatprep.mubr.f32.mxu1 %v1588_v3  ;;  %vm169_vm2 = vcmask 523264   ;;  %vm1591_vm3 = vmmov 0   ;;  %vm1240_vm4 = vcmask 74752  }
   0x2   :  { %v1648_v4 = vpack.c.bf16 %v145_v1, %v143_v0  ;;  %v144_v5 = vld [vmem:[%s1994_s2 + $0x10] sm:$0xff]  ;;  %v147_v6 = vld [vmem:[%s1994_s2 + $0x28] sm:$0xff]  ;;  %v149_v7 = vld [vmem:[%s1994_s2 + $0x38] sm:$0xff]  ;;  %v42_v35 = vshrl.u32 %v41_v34, 7 }
   0x3   :  { %v1659_v8 = vpack.c.bf16 %v144_v5, %v142_v2  ;;  %v1661_v9 = vpack.c.bf16 %v149_v7, %v147_v6  ;;  %v146_v10 = vld [vmem:[%s1994_s2 + $0x20] sm:$0xff]  ;;  %v148_v11 = vld [vmem:[%s1994_s2 + $0x30] sm:$0xff]  ;;  %v151_v12 = vld [vmem:[%s1994_s2 + $0x48] sm:$0xff] }
   0x4   :  { %1369 = vmatprep.subr.bf16.mxu1 %v1648_v4  ;;  %v153_v13 = vld [vmem:[%s1994_s2 + $0x58] sm:$0xff]  ;;  %v35_v14 = vld [vmem:[%s1995_s1 + $0x8] sm:$0xff]  ;;  %v1683_v16 = vpack.c.bf16 %v148_v11, %v146_v10  ;;  %v34_v18 = vld [vmem:[%s1995_s1] sm:$0xff]  ;;  %v43_v36 = vsub.s32 0, %v42_v35  ;;  %v47_v51 = vsub.s32 1, %v42_v35 }
   0x5   :  { %v37_v15 = vld [vmem:[%s1995_s1 + $0x18] sm:$0xff]  ;;  %1371 = vmatpush1.bf16.msra.mxu1 %v1659_v8  ;;  %v1689_v19 = vpack.c.bf16 %v153_v13, %v151_v12  ;;  %v150_v20 = vld [vmem:[%s1994_s2 + $0x40] sm:$0xff]  ;;  %v152_v21 = vld [vmem:[%s1994_s2 + $0x50] sm:$0xff] }
   0x6   :  { %v1364_v17 = vpack.c.bf16 %v37_v15, %v35_v14  ;;  %1373 = vmatprep.subr.bf16.mxu1 %v1661_v9  ;;  %v36_v22 = vld [vmem:[%s1995_s1 + $0x10] sm:$0xff]  ;;  %v155_v24 = vld [vmem:[%s1994_s2 + $0x68] sm:$0xff]  ;;  %v157_v25 = vld [vmem:[%s1994_s2 + $0x78] sm:$0xff]  ;;  %v1710_v27 = vpack.c.bf16 %v152_v21, %v150_v20 }
   0x7   :  { %v1366_v23 = vpack.c.bf16 %v36_v22, %v34_v18  ;;  %v39_v26 = vld [vmem:[%s1995_s1 + $0x28] sm:$0x1]  ;;  %v1713_v28 = vpack.c.bf16 %v157_v25, %v155_v24  ;;  %v154_v29 = vld [vmem:[%s1994_s2 + $0x60] sm:$0xff]  ;;  %v156_v30 = vld [vmem:[%s1994_s2 + $0x70] sm:$0xff] }
   0x8   :  { %1365 = vmatprep.subr.bf16.mxu0 %v1364_v17  ;;  %v38_v31 = vld [vmem:[%s1995_s1 + $0x20] sm:$0x1]  ;;  %v1728_v33 = vpack.c.bf16 %v156_v30, %v154_v29  ;;  %v1246_v38 = vld [vmem:[%s1997_s3 + $0x1] ss:$2 sm:$0x3]  ;;  %v33_v59 = vld [vmem:[%s1996_s0 + $0x8] sm:$0xff] }
   0x9   :  { %1375 = vmatpush1.bf16.msra.mxu1 %v1683_v16  ;;  %1367 = vmatpush1.bf16.msra.mxu0 %v1366_v23  ;;  %v32_v32 = vld [vmem:[%s1996_s0] sm:$0xff]  ;;  %v1762_v42 = vrot.slane %v1246_v38, %v43_v36  ;;  %v1769_v52 = vrot.slane %v1246_v38, %v47_v51 }
   0xa   :  { %1377 = vmatprep.subr.bf16.mxu1 %v1689_v19  ;;  %1247 = vmatprep.subr.msk.mxu0 %vm58_vm0, %v39_v26  ;;  %v29_v37 = vld [vmem:[%s1997_s3] ss:$2 sm:$0x3] }
   0xb   :  { %v1760_v40 = vrot.slane %v29_v37, %v43_v36  ;;  %v1771_v53 = vrot.slane %v29_v37, %v47_v51 }
   0xd   :  { %1379 = vmatpush1.bf16.msra.mxu1 %v1710_v27  ;;  %1248 = vmatpush1.msk.msra.mxu0 %vm58_vm0, %v38_v31 }
   0xe   :  { %1381 = vmatprep.subr.bf16.mxu1 %v1713_v28  ;;  %1249 = vmatmul.mubr.msk.f32.vlgmr.msra.gmra.mrb[0].mxu0 %vm51_vm1, %v32_v32 }
   0xf   :  { %1385 = vmatprep.subr.bf16.mxu0 %v1648_v4  ;;  %135 = vmatprep.mubr.f32.mxu0 %v1588_v3 }
  0x10   :  { %1387 = vmatpush1.bf16.msra.mxu0 %v1659_v8 }
  0x11   :  { %1383 = vmatpush1.bf16.msra.mxu1 %v1728_v33  ;;  %1389 = vmatprep.subr.bf16.mxu0 %v1661_v9 }
  0x12   :  { %1401 = vmatprep.subr.bf16.mxu1 %v1648_v4  ;;  %1250 = vmatmul.mubr.msk.f32.gmra.mrb[2].mxu0 %vm51_vm1, %v33_v59 }
  0x13   :  { %331 = vmatprep.mubr.f32.mxu0 %v1588_v3 }
  0x14   :  { %238 = vmatmul.mubr.f32.vlgmr.msra.gmra.mrb[0].mxu1 %v1588_v3  ;;  %1391 = vmatpush1.bf16.msra.mxu0 %v1683_v16 }
  0x15   :  { %1393 = vmatprep.subr.bf16.mxu0 %v1689_v19  ;;  %1403 = vmatpush1.bf16.msra.mxu1 %v1659_v8 }
  0x16   :  { %1405 = vmatprep.subr.bf16.mxu1 %v1661_v9  ;;  %434 = vmatprep.mubr.f32.mxu1 %v1588_v3 }
  0x18   :  { %1395 = vmatpush1.bf16.msra.mxu0 %v1710_v27 }
  0x19   :  { %1397 = vmatprep.subr.bf16.mxu0 %v1713_v28  ;;  %1407 = vmatpush1.bf16.msra.mxu1 %v1683_v16 }
  0x1a   :  { %1409 = vmatprep.subr.bf16.mxu1 %v1689_v19 }
  0x1c   :  { %1399 = vmatpush1.bf16.msra.mxu0 %v1728_v33 }
  0x1d   :  { %1411 = vmatpush1.bf16.msra.mxu1 %v1710_v27  ;;  %1417 = vmatprep.subr.bf16.mxu0 %v1648_v4 }
  0x1e   :  { %1413 = vmatprep.subr.bf16.mxu1 %v1713_v28 }
  0x21   :  { %1415 = vmatpush1.bf16.msra.mxu1 %v1728_v33 }
  0x22   :  { %1433 = vmatprep.subr.bf16.mxu1 %v1648_v4 }
  0xe1   :  { %v131_v39 = vpop.f32.mrb[0].mxu0 }
  0xe2   :  { %v133_v41 = vpop.f32.mrb[1].mxu0  ;;  %v1765_v43 = vadd.f32 %v131_v39, %v1760_v40 }
  0xe3   :  { %v1775_v56 = vadd.f32 %v133_v41, %v1771_v53 }
  0xe5   :  { %v1785_v2 = vpop.f32.mrb[2].mxu0 }
  0xe6   :  { %v1787_v5 = vpop.f32.mrb[3].mxu0 }
  0xe7   :  { %v239_v44 = vpop.f32.mrb[0].mxu1 }
  0xe8   :  { %v240_v45 = vadd.f32 %v239_v44, %v1762_v42  ;;  %v241_v46 = vpop.f32.mrb[1].mxu1 }
  0xe9   :  { %v242_v54 = vadd.f32 %v241_v46, %v1769_v52 }
  0xea   :  { %v244_v47 = vadd.f32 %v240_v45, %v1765_v43 }
  0xec   :  { %v1251_v48 = vmul.f32 -1.442695, %v244_v47 }
  0xee   :  { %1536 = vpow2.f32 %v1251_v48 }
  0xf8   :  { %v1537_v49 = vpop.eup %1536 }
  0xf9   :  { %v248_v50 = vadd.f32 1.0, %v1537_v49 }
  0xfb   :  { %1538 = vrcp.f32 %v248_v50 }
 0x105   :  { %v1539_v55 = vpop.eup %1538 }
 0x106   :  { %v251_v57 = vmul.f32 %v1539_v55, %v242_v54  ;;  %v254_v61 = vsub.f32 1.0, %v1539_v55  ;;  %v260_v63 = vmul.f32 0.0, %v1539_v55 }
 0x108   :  { %v252_v58 = vadd.f32 %v251_v57, %v1775_v56 }
 0x10a   :  { %1540 = vtanh.f32 %v252_v58 }
 0x114   :  { %v1541_v60 = vpop.eup %1540 }
 0x115   :  { %256 = vrot.lane.b32.xlu0 %v1541_v60, %s1589_s10 }
 0x187   :  { %v257_v62 = vpop.permute.xlu0 %256 }
 0x188   :  { %v259_v0 = vmul.f32 %v257_v62, %v254_v61 }
 0x18a   :  { %v261_v1 = vadd.f32 %v260_v63, %v259_v0 }
 0x18c   :  { %263 = vrot.lane.b32.xlu0 %v261_v1, %s1589_s10  ;;  %v360_v20 = vrot.slane %v261_v1, 6 }
 0x1fe   :  { %v264_v6 = vpop.permute.xlu0 %263 }
 0x1ff   :  { %1252 = vmatmul.mubr.msk.f32.vlgmr.msra.gmra.mrb[4].mxu0 %vm169_vm2, %v264_v6 }
 0x200   :  { %1419 = vmatpush1.bf16.msra.mxu0 %v1659_v8  ;;  %537 = vmatprep.mubr.f32.mxu0 %v1588_v3 }
 0x201   :  { %1421 = vmatprep.subr.bf16.mxu0 %v1661_v9 }
 0x204   :  { %1423 = vmatpush1.bf16.msra.mxu0 %v1683_v16 }
 0x205   :  { %1425 = vmatprep.subr.bf16.mxu0 %v1689_v19 }
 0x208   :  { %1427 = vmatpush1.bf16.msra.mxu0 %v1710_v27 }
 0x209   :  { %1429 = vmatprep.subr.bf16.mxu0 %v1713_v28 }
 0x20c   :  { %1431 = vmatpush1.bf16.msra.mxu0 %v1728_v33 }
 0x20d   :  { %1449 = vmatprep.subr.bf16.mxu0 %v1648_v4 }
 0x2d2   :  { %v333_v7 = vpop.f32.mrb[4].mxu0 }
 0x2d3   :  { %v334_v10 = vadd.f32 %v333_v7, %v1762_v42  ;;  %v335_v11 = vpop.f32.mrb[5].mxu0 }
 0x2d4   :  { %v336_v18 = vadd.f32 %v335_v11, %v1769_v52 }
 0x2d5   :  { %v339_v12 = vrot.slane %v334_v10, 6 }
 0x2d6   :  { %v349_v21 = vrot.slane %v336_v18, 6 }
 0x2d7   :  { %v341_v13 = vadd.f32 %v339_v12, %v1765_v43 }
 0x2d9   :  { %v1253_v14 = vmul.f32 -1.442695, %v341_v13 }
 0x2db   :  { %1542 = vpow2.f32 %v1253_v14 }
 0x2e5   :  { %v1543_v15 = vpop.eup %1542 }
 0x2e6   :  { %v345_v17 = vadd.f32 1.0, %v1543_v15 }
 0x2e8   :  { %1544 = vrcp.f32 %v345_v17 }
 0x2f2   :  { %v1545_v22 = vpop.eup %1544 }
 0x2f3   :  { %v351_v23 = vmul.f32 %v1545_v22, %v349_v21  ;;  %v362_v24 = vmul.f32 %v1545_v22, %v360_v20  ;;  %v354_v29 = vsub.f32 1.0, %v1545_v22 }
 0x2f5   :  { %v352_v25 = vadd.f32 %v351_v23, %v1775_v56 }
 0x2f7   :  { %1546 = vtanh.f32 %v352_v25 }
 0x301   :  { %v1547_v26 = vpop.eup %1546 }
 0x302   :  { %356 = vrot.lane.b32.xlu1 %v1547_v26, %s1589_s10 }
 0x374   :  { %v357_v30 = vpop.permute.xlu1 %356 }
 0x375   :  { %v359_v31 = vmul.f32 %v357_v30, %v354_v29  ;;  %v1848_v30 = vadd.f32 %v1785_v2, %v1760_v40 }
 0x377   :  { %v363_v32 = vadd.f32 %v362_v24, %v359_v31 }
 0x379   :  { %v365_v34 = vrot.slane %v363_v32, 2  ;;  %v463_v48 = vrot.slane %v363_v32, 6 }
 0x37b   :  { %366 = vrot.lane.b32.xlu1 %v365_v34, %s1589_s10 }
 0x3ed   :  { %v367_v35 = vpop.permute.xlu1 %366 }
 0x3ee   :  { %1254 = vmatmul.mubr.msk.f32.vlgmr.msra.gmra.mrb[2].mxu1 %vm169_vm2, %v367_v35 }
 0x3ef   :  { %1435 = vmatpush1.bf16.msra.mxu1 %v1659_v8  ;;  %640 = vmatprep.mubr.f32.mxu1 %v1588_v3 }
 0x3f0   :  { %1437 = vmatprep.subr.bf16.mxu1 %v1661_v9 }
 0x3f3   :  { %1439 = vmatpush1.bf16.msra.mxu1 %v1683_v16 }
 0x3f4   :  { %1441 = vmatprep.subr.bf16.mxu1 %v1689_v19 }
 0x3f7   :  { %1443 = vmatpush1.bf16.msra.mxu1 %v1710_v27 }
 0x3f8   :  { %1445 = vmatprep.subr.bf16.mxu1 %v1713_v28 }
 0x3fb   :  { %1447 = vmatpush1.bf16.msra.mxu1 %v1728_v33 }
 0x3fc   :  { %1465 = vmatprep.subr.bf16.mxu1 %v1648_v4 }
 0x4c1   :  { %v436_v36 = vpop.f32.mrb[2].mxu1 }
 0x4c2   :  { %v437_v37 = vadd.f32 %v436_v36, %v1762_v42  ;;  %v438_v38 = vpop.f32.mrb[3].mxu1 }
 0x4c3   :  { %v439_v47 = vadd.f32 %v438_v38, %v1769_v52 }
 0x4c4   :  { %v442_v39 = vrot.slane %v437_v37, 4 }
 0x4c5   :  { %v452_v49 = vrot.slane %v439_v47, 4 }
 0x4c6   :  { %v444_v41 = vadd.f32 %v442_v39, %v1765_v43 }
 0x4c8   :  { %v1255_v44 = vmul.f32 -1.442695, %v444_v41  ;;  %v1855_v41 = vadd.f32 %v1787_v5, %v1771_v53 }
 0x4ca   :  { %1548 = vpow2.f32 %v1255_v44 }
 0x4d4   :  { %v1549_v45 = vpop.eup %1548 }
 0x4d5   :  { %v448_v46 = vadd.f32 1.0, %v1549_v45 }
 0x4d7   :  { %1550 = vrcp.f32 %v448_v46 }
 0x4e1   :  { %v1551_v50 = vpop.eup %1550 }
 0x4e2   :  { %v454_v51 = vmul.f32 %v1551_v50, %v452_v49  ;;  %v465_v54 = vmul.f32 %v1551_v50, %v463_v48  ;;  %v457_v58 = vsub.f32 1.0, %v1551_v50 }
 0x4e4   :  { %v455_v55 = vadd.f32 %v454_v51, %v1775_v56 }
 0x4e6   :  { %1552 = vtanh.f32 %v455_v55 }
 0x4f0   :  { %v1553_v57 = vpop.eup %1552 }
 0x4f1   :  { %459 = vrot.lane.b32.xlu0 %v1553_v57, %s1589_s10 }
 0x563   :  { %v460_v59 = vpop.permute.xlu0 %459 }
 0x564   :  { %v462_v60 = vmul.f32 %v460_v59, %v457_v58 }
 0x566   :  { %v466_v61 = vadd.f32 %v465_v54, %v462_v60 }
 0x568   :  { %v468_v62 = vrot.slane %v466_v61, 4  ;;  %v566_v15 = vrot.slane %v466_v61, 6 }
 0x56a   :  { %469 = vrot.lane.b32.xlu1 %v468_v62, %s1589_s10 }
 0x5dc   :  { %v470_v63 = vpop.permute.xlu1 %469 }
 0x5dd   :  { %1256 = vmatmul.mubr.msk.f32.vlgmr.msra.gmra.mrb[6].mxu0 %vm169_vm2, %v470_v63 }
 0x5de   :  { %1451 = vmatpush1.bf16.msra.mxu0 %v1659_v8  ;;  %735 = vmatprep.mubr.f32.mxu0 %v1588_v3 }
 0x5df   :  { %1453 = vmatprep.subr.bf16.mxu0 %v1661_v9 }
 0x5e2   :  { %1455 = vmatpush1.bf16.msra.mxu0 %v1683_v16 }
 0x5e3   :  { %1457 = vmatprep.subr.bf16.mxu0 %v1689_v19 }
 0x5e6   :  { %1459 = vmatpush1.bf16.msra.mxu0 %v1710_v27 }
 0x5e7   :  { %1461 = vmatprep.subr.bf16.mxu0 %v1713_v28 }
 0x5ea   :  { %1463 = vmatpush1.bf16.msra.mxu0 %v1728_v33 }
 0x5eb   :  { %1481 = vmatprep.subr.bf16.mxu0 %v1648_v4 }
 0x6b0   :  { %v539_v0 = vpop.f32.mrb[6].mxu0 }
 0x6b1   :  { %v540_v1 = vadd.f32 %v539_v0, %v1762_v42  ;;  %v541_v6 = vpop.f32.mrb[7].mxu0 }
 0x6b2   :  { %v542_v14 = vadd.f32 %v541_v6, %v1769_v52 }
 0x6b3   :  { %v545_v7 = vrot.slane %v540_v1, 2 }
 0x6b4   :  { %v555_v17 = vrot.slane %v542_v14, 2 }
 0x6b5   :  { %v547_v10 = vadd.f32 %v545_v7, %v1765_v43 }
 0x6b7   :  { %v1257_v11 = vmul.f32 -1.442695, %v547_v10 }
 0x6b9   :  { %1554 = vpow2.f32 %v1257_v11 }
 0x6c3   :  { %v1555_v12 = vpop.eup %1554 }
 0x6c4   :  { %v551_v13 = vadd.f32 1.0, %v1555_v12 }
 0x6c6   :  { %1556 = vrcp.f32 %v551_v13 }
 0x6d0   :  { %v1557_v18 = vpop.eup %1556 }
 0x6d1   :  { %v557_v20 = vmul.f32 %v1557_v18, %v555_v17  ;;  %v568_v21 = vmul.f32 %v1557_v18, %v566_v15  ;;  %v560_v23 = vsub.f32 1.0, %v1557_v18 }
 0x6d3   :  { %v558_v4 = vadd.f32 %v557_v20, %v1775_v56 }
 0x6d5   :  { %1558 = vtanh.f32 %v558_v4 }
 0x6df   :  { %v1559_v22 = vpop.eup %1558 }
 0x6e0   :  { %562 = vrot.lane.b32.xlu0 %v1559_v22, %s1589_s10 }
 0x752   :  { %v563_v43 = vpop.permute.xlu0 %562 }
 0x753   :  { %v565_v24 = vmul.f32 %v563_v43, %v560_v23 }
 0x755   :  { %v569_v25 = vadd.f32 %v568_v21, %v565_v24 }
 0x757   :  { %v571_v26 = vrot.slane %v569_v25, 6 }
 0x759   :  { %572 = vrot.lane.b32.xlu1 %v571_v26, %s1589_s10 }
 0x7cb   :  { %v573_v29 = vpop.permute.xlu1 %572 }
 0x7cc   :  { %1258 = vmatmul.mubr.msk.f32.vlgmr.msra.gmra.mrb[4].mxu1 %vm169_vm2, %v573_v29 }
 0x7cd   :  { %1467 = vmatpush1.bf16.msra.mxu1 %v1659_v8  ;;  %838 = vmatprep.mubr.f32.mxu1 %v1588_v3 }
 0x7ce   :  { %1469 = vmatprep.subr.bf16.mxu1 %v1661_v9 }
 0x7d1   :  { %1471 = vmatpush1.bf16.msra.mxu1 %v1683_v16 }
 0x7d2   :  { %1473 = vmatprep.subr.bf16.mxu1 %v1689_v19 }
 0x7d5   :  { %1475 = vmatpush1.bf16.msra.mxu1 %v1710_v27 }
 0x7d6   :  { %1477 = vmatprep.subr.bf16.mxu1 %v1713_v28 }
 0x7d9   :  { %1479 = vmatpush1.bf16.msra.mxu1 %v1728_v33 }
 0x89f   :  { %v642_v56 = vpop.f32.mrb[4].mxu1 }
 0x8a0   :  { %v643_v31 = vadd.f32 %v642_v56, %v1762_v42  ;;  %v644_v32 = vpop.f32.mrb[5].mxu1 }
 0x8a1   :  { %v645_v38 = vadd.f32 %v644_v32, %v1769_v52 }
 0x8a2   :  { %v647_v34 = vadd.f32 %v643_v31, %v1848_v30 }
 0x8a4   :  { %v1259_v35 = vmul.f32 -1.442695, %v647_v34 }
 0x8a6   :  { %1560 = vpow2.f32 %v1259_v35 }
 0x8b0   :  { %v1561_v36 = vpop.eup %1560 }
 0x8b1   :  { %v651_v37 = vadd.f32 1.0, %v1561_v36 }
 0x8b3   :  { %1562 = vrcp.f32 %v651_v37 }
 0x8bd   :  { %v1563_v39 = vpop.eup %1562 }
 0x8be   :  { %v654_v44 = vmul.f32 %v1563_v39, %v645_v38  ;;  %v657_v45 = vsub.f32 1.0, %v1563_v39  ;;  %v664_v47 = vmul.f32 %v1563_v39, %v571_v26 }
 0x8c0   :  { %v655_v40 = vadd.f32 %v654_v44, %v1855_v41 }
 0x8c2   :  { %1564 = vtanh.f32 %v655_v40 }
 0x8cc   :  { %v1565_v2 = vpop.eup %1564 }
 0x8cd   :  { %659 = vrot.lane.b32.xlu0 %v1565_v2, %s1589_s10 }
 0x93f   :  { %v660_v46 = vpop.permute.xlu0 %659 }
 0x940   :  { %v662_v48 = vmul.f32 %v660_v46, %v657_v45 }
 0x942   :  { %v665_v49 = vadd.f32 %v664_v47, %v662_v48 }
 0x944   :  { %667 = vrot.lane.b32.xlu1 %v665_v49, %s1589_s10 }
 0x9b6   :  { %v668_v50 = vpop.permute.xlu1 %667 }
 0x9b7   :  { %1260 = vmatmul.mubr.msk.f32.vlgmr.msra.gmra.mrb[8].mxu0 %vm169_vm2, %v668_v50 }
 0x9b8   :  { %1483 = vmatpush1.bf16.msra.mxu0 %v1659_v8  ;;  %941 = vmatprep.mubr.f32.mxu0 %v1588_v3 }
 0x9b9   :  { %1485 = vmatprep.subr.bf16.mxu0 %v1661_v9 }
 0x9bc   :  { %1487 = vmatpush1.bf16.msra.mxu0 %v1683_v16 }
 0x9bd   :  { %1489 = vmatprep.subr.bf16.mxu0 %v1689_v19  ;;  %v764_v19 = vrot.slane %v665_v49, 6 }
 0x9c0   :  { %1491 = vmatpush1.bf16.msra.mxu0 %v1710_v27 }
 0x9c1   :  { %1493 = vmatprep.subr.bf16.mxu0 %v1713_v28 }
 0x9c4   :  { %1495 = vmatpush1.bf16.msra.mxu0 %v1728_v33 }
 0xa8a   :  { %v737_v53 = vpop.f32.mrb[8].mxu0 }
 0xa8b   :  { %v738_v5 = vadd.f32 %v737_v53, %v1762_v42  ;;  %v739_v51 = vpop.f32.mrb[9].mxu0  ;;  %v975_v53 = vld [vmem:[%s1998_s4 + $0x8] sm:$0xff] }
 0xa8c   :  { %v740_v16 = vadd.f32 %v739_v51, %v1769_v52 }
 0xa8d   :  { %v743_v54 = vrot.slane %v738_v5, 6  ;;  %v977_v5 = vld [vmem:[%s1998_s4 + $0x18] sm:$0xff] }
 0xa8e   :  { %v753_v27 = vrot.slane %v740_v16, 6  ;;  %v981_v16 = vld [vmem:[%s1998_s4 + $0x38] sm:$0xff] }
 0xa8f   :  { %v745_v8 = vadd.f32 %v743_v54, %v1848_v30  ;;  %v978_v54 = vld [vmem:[%s1998_s4 + $0x20] sm:$0xff] }
 0xa91   :  { %v1261_v55 = vmul.f32 -1.442695, %v745_v8  ;;  %v979_v8 = vld [vmem:[%s1998_s4 + $0x28] sm:$0xff] }
 0xa93   :  { %1566 = vpow2.f32 %v1261_v55 }
 0xa9d   :  { %v1567_v9 = vpop.eup %1566 }
 0xa9e   :  { %v749_v57 = vadd.f32 1.0, %v1567_v9  ;;  %v1503_v9 = vpack.c.bf16 %v979_v8, %v978_v54 }
 0xaa0   :  { %1568 = vrcp.f32 %v749_v57  ;;  %v980_v57 = vld [vmem:[%s1998_s4 + $0x30] sm:$0xff] }
 0xaaa   :  { %v1569_v58 = vpop.eup %1568 }
 0xaab   :  { %v755_v28 = vmul.f32 %v1569_v58, %v753_v27  ;;  %v766_v59 = vmul.f32 %v1569_v58, %v764_v19  ;;  %v758_v61 = vsub.f32 1.0, %v1569_v58  ;;  %v1506_v19 = vpack.c.bf16 %v981_v16, %v980_v57  ;;  %v1268_v27 = vld [vmem:[%s1998_s4 + $0x40] sm:$0xff]  ;;  %v1269_v58 = vld [vmem:[%s1998_s4 + $0x48] sm:$0xff] }
 0xaad   :  { %v756_v33 = vadd.f32 %v755_v28, %v1855_v41  ;;  %v1509_v28 = vpack.c.bf16 %v1269_v58, %v1268_v27 }
 0xaaf   :  { %1570 = vtanh.f32 %v756_v33 }
 0xab9   :  { %v1571_v60 = vpop.eup %1570 }
 0xaba   :  { %760 = vrot.lane.b32.xlu0 %v1571_v60, %s1589_s10 }
 0xb2c   :  { %v761_v62 = vpop.permute.xlu0 %760 }
 0xb2d   :  { %v763_v63 = vmul.f32 %v761_v62, %v758_v61 }
 0xb2f   :  { %v767_v0 = vadd.f32 %v766_v59, %v763_v63 }
 0xb31   :  { %v769_v1 = vrot.slane %v767_v0, 2  ;;  %v867_v20 = vrot.slane %v767_v0, 6  ;;  %v1270_v0 = vld [vmem:[%s1998_s4 + $0x50] sm:$0xff] }
 0xb33   :  { %770 = vrot.lane.b32.xlu1 %v769_v1, %s1589_s10  ;;  %v1271_v1 = vld [vmem:[%s1998_s4 + $0x58] sm:$0xff] }
 0xba5   :  { %v771_v6 = vpop.permute.xlu1 %770 }
 0xba6   :  { %1262 = vmatmul.mubr.msk.f32.vlgmr.msra.gmra.mrb[6].mxu1 %vm169_vm2, %v771_v6  ;;  %v1512_v6 = vpack.c.bf16 %v1271_v1, %v1270_v0 }
 0xba7   :  { %1323 = vmatprep.mubr.msk.f32.mxu1 %vm1591_vm3, %v1588_v3 }
 0xc79   :  { %v840_v7 = vpop.f32.mrb[6].mxu1 }
 0xc7a   :  { %v841_v10 = vadd.f32 %v840_v7, %v1762_v42  ;;  %v842_v11 = vpop.f32.mrb[7].mxu1  ;;  %v1272_v7 = vld [vmem:[%s1998_s4 + $0x60] sm:$0xff] }
 0xc7b   :  { %v843_v18 = vadd.f32 %v842_v11, %v1769_v52  ;;  %v1274_v11 = vld [vmem:[%s1998_s4 + $0x70] sm:$0xff] }
 0xc7c   :  { %v846_v12 = vrot.slane %v841_v10, 4  ;;  %v1273_v10 = vld [vmem:[%s1998_s4 + $0x68] sm:$0xff] }
 0xc7d   :  { %v856_v21 = vrot.slane %v843_v18, 4  ;;  %v1266_v18 = vld [vmem:[%s2000_s5] ss:$0 sm:$0xff] }
 0xc7e   :  { %v848_v13 = vadd.f32 %v846_v12, %v1848_v30  ;;  %v1275_v12 = vld [vmem:[%s1998_s4 + $0x78] sm:$0xff] }
 0xc80   :  { %v1263_v14 = vmul.f32 -1.442695, %v848_v13  ;;  %v1518_v13 = vpack.c.bf16 %v1275_v12, %v1274_v11 }
 0xc82   :  { %1572 = vpow2.f32 %v1263_v14  ;;  %v1152_v14 = vld [vmem:[%s1999_s6] sm:$0xff] }
 0xc8c   :  { %v1573_v15 = vpop.eup %1572 }
 0xc8d   :  { %v852_v17 = vadd.f32 1.0, %v1573_v15  ;;  %v1153_v15 = vld [vmem:[%s1999_s6 + $0x8] sm:$0xff] }
 0xc8f   :  { %1574 = vrcp.f32 %v852_v17  ;;  %v1521_v17 = vpack.c.bf16 %v1153_v15, %v1152_v14 }
 0xc99   :  { %v1575_v4 = vpop.eup %1574 }
 0xc9a   :  { %v858_v22 = vmul.f32 %v1575_v4, %v856_v21  ;;  %v869_v23 = vmul.f32 %v1575_v4, %v867_v20  ;;  %v861_v25 = vsub.f32 1.0, %v1575_v4 }
 0xc9c   :  { %v859_v43 = vadd.f32 %v858_v22, %v1855_v41 }
 0xc9e   :  { %1576 = vtanh.f32 %v859_v43  ;;  %v1155_v43 = vld [vmem:[%s1999_s6 + $0x18] sm:$0xff] }
 0xca8   :  { %v1577_v24 = vpop.eup %1576 }
 0xca9   :  { %863 = vrot.lane.b32.xlu0 %v1577_v24, %s1589_s10 }
 0xd1b   :  { %v864_v26 = vpop.permute.xlu0 %863 }
 0xd1c   :  { %v866_v29 = vmul.f32 %v864_v26, %v861_v25  ;;  %v1156_v25 = vld [vmem:[%s1999_s6 + $0x20] sm:$0xff]  ;;  %v1157_v26 = vld [vmem:[%s1999_s6 + $0x28] sm:$0xff] }
 0xd1e   :  { %v870_v56 = vadd.f32 %v869_v23, %v866_v29  ;;  %v1154_v23 = vld [vmem:[%s1999_s6 + $0x10] sm:$0xff]  ;;  %v1527_v29 = vpack.c.bf16 %v1157_v26, %v1156_v25 }
 0xd1f   :  { %v1524_v24 = vpack.c.bf16 %v1155_v43, %v1154_v23 }
 0xd20   :  { %v872_v31 = vrot.slane %v870_v56, 4  ;;  %v970_v45 = vrot.slane %v870_v56, 6  ;;  %v1158_v56 = vld [vmem:[%s1999_s6 + $0x30] sm:$0xff] }
 0xd22   :  { %873 = vrot.lane.b32.xlu1 %v872_v31, %s1589_s10  ;;  %v1159_v31 = vld [vmem:[%s1999_s6 + $0x38] sm:$0xff] }
 0xd94   :  { %v874_v32 = vpop.permute.xlu1 %873 }
 0xd95   :  { %1264 = vmatmul.mubr.msk.f32.vlgmr.msra.gmra.mrb[10].mxu0 %vm169_vm2, %v874_v32  ;;  %v1530_v32 = vpack.c.bf16 %v1159_v31, %v1158_v56 }
 0xd96   :  { %1342 = vmatprep.mubr.msk.f32.mxu0 %vm1591_vm3, %v1588_v3 }
 0xe68   :  { %v943_v34 = vpop.f32.mrb[10].mxu0 }
 0xe69   :  { %v944_v35 = vadd.f32 %v943_v34, %v1762_v42  ;;  %v945_v36 = vpop.f32.mrb[11].mxu0  ;;  %v1590_v42 = vmov 0.0|0.0   ;;  %v1276_v34 = vld [vmem:[%s2000_s5 + $0x1] ss:$0 sm:$0xff] }
 0xe6a   :  { %v946_v2 = vadd.f32 %v945_v36, %v1769_v52  ;;  %1496 = vmatprep.subr.bf16.mxu1 %v1590_v42  ;;  %v976_v52 = vld [vmem:[%s1998_s4 + $0x10] sm:$0xff]  ;;  %1508 = vmatprep.subr.bf16.mxu0 %v1590_v42 }
 0xe6b   :  { %v949_v37 = vrot.slane %v944_v35, 2  ;;  %v1500_v51 = vpack.c.bf16 %v977_v5, %v976_v52  ;;  %1510 = vmatpush3.bf16.msra.mxu0 %v1509_v28 }
 0xe6c   :  { %v959_v46 = vrot.slane %v946_v2, 2  ;;  %1511 = vmatprep.subr.bf16.mxu0 %v1590_v42 }
 0xe6d   :  { %v951_v38 = vadd.f32 %v949_v37, %v1848_v30  ;;  %v974_v30 = vld [vmem:[%s1998_s4] sm:$0xff] }
 0xe6f   :  { %v1265_v39 = vmul.f32 -1.442695, %v951_v38  ;;  %1513 = vmatpush3.bf16.msra.mxu0 %v1512_v6 }
 0xe70   :  { %1514 = vmatprep.subr.bf16.mxu0 %v1590_v42 }
 0xe71   :  { %1578 = vpow2.f32 %v1265_v39  ;;  %v1278_v39 = vld [vmem:[%s2001_s7] ss:$0 sm:$0xff] }
 0xe7b   :  { %v1579_v44 = vpop.eup %1578 }
 0xe7c   :  { %v955_v40 = vadd.f32 1.0, %v1579_v44 }
 0xe7e   :  { %1580 = vrcp.f32 %v955_v40 }
 0xe88   :  { %v1581_v47 = vpop.eup %1580 }
 0xe89   :  { %v961_v48 = vmul.f32 %v1581_v47, %v959_v46  ;;  %v972_v49 = vmul.f32 %v1581_v47, %v970_v45  ;;  %v964_v59 = vsub.f32 1.0, %v1581_v47 }
 0xe8b   :  { %v962_v50 = vadd.f32 %v961_v48, %v1855_v41  ;;  %v1497_v41 = vpack.c.bf16 %v975_v53, %v974_v30 }
 0xe8d   :  { %1582 = vtanh.f32 %v962_v50  ;;  %1498 = vmatpush3.bf16.msra.mxu1 %v1497_v41 }
 0xe8e   :  { %1499 = vmatprep.subr.bf16.mxu1 %v1590_v42 }
 0xe91   :  { %1501 = vmatpush3.bf16.msra.mxu1 %v1500_v51 }
 0xe92   :  { %1502 = vmatprep.subr.bf16.mxu1 %v1590_v42 }
 0xe95   :  { %1504 = vmatpush3.bf16.msra.mxu1 %v1503_v9 }
 0xe96   :  { %1505 = vmatprep.subr.bf16.mxu1 %v1590_v42 }
 0xe97   :  { %v1583_v55 = vpop.eup %1582 }
 0xe98   :  { %966 = vrot.lane.b32.xlu0 %v1583_v55, %s1589_s10 }
 0xe99   :  { %1507 = vmatpush3.bf16.msra.mxu1 %v1506_v19 }
 0xe9a   :  { %1520 = vmatprep.subr.bf16.mxu1 %v1590_v42 }
 0xf0a   :  { %v967_v33 = vpop.permute.xlu0 %966 }
 0xf0b   :  { %v969_v60 = vmul.f32 %v967_v33, %v964_v59 }
 0xf0d   :  { %v973_v61 = vadd.f32 %v972_v49, %v969_v60 }
 0xf0f   :  { %v988_v62 = vrot.slane %v973_v61, 6 }
 0xf11   :  { %989 = vrot.lane.b32.xlu1 %v988_v62, %s1589_s10 }
 0xf83   :  { %v990_v63 = vpop.permute.xlu1 %989 }
 0xf84   :  { %1324 = vmatmul.mubr.msk.f32.vlgmr.msra.gmra.mrb[8].mxu1 %vm169_vm2, %v990_v63 }
 0xf85   :  { %1361 = vmatprep.mubr.msk.f32.mxu1 %vm1591_vm3, %v1588_v3  ;;  %v1515_v3 = vpack.c.bf16 %v1273_v10, %v1272_v7  ;;  %1522 = vmatpush3.bf16.msra.mxu1 %v1521_v17 }
 0xf86   :  { %1523 = vmatprep.subr.bf16.mxu1 %v1590_v42 }
 0xf87   :  { %1516 = vmatpush3.bf16.msra.mxu0 %v1515_v3 }
 0xf88   :  { %1517 = vmatprep.subr.bf16.mxu0 %v1590_v42 }
 0xf89   :  { %1525 = vmatpush3.bf16.msra.mxu1 %v1524_v24 }
 0xf8a   :  { %1526 = vmatprep.subr.bf16.mxu1 %v1590_v42 }
 0xf8b   :  { %1519 = vmatpush3.bf16.msra.mxu0 %v1518_v13 }
 0xf8d   :  { %1528 = vmatpush3.bf16.msra.mxu1 %v1527_v29 }
 0xf8e   :  { %1529 = vmatprep.subr.bf16.mxu1 %v1590_v42 }
 0xf91   :  { %1531 = vmatpush3.bf16.msra.mxu1 %v1530_v32 }
0x1057   :  { %v1059_v20 = vpop.f32.mrb[8].mxu1 }
0x1058   :  { %v1060_v21 = vadd.f32 %v1266_v18, %v1059_v20  ;;  %v1325_v4 = vpop.f32.mrb[9].mxu1 }
0x105a   :  { %1584 = vtanh.f32 %v1060_v21 }
0x1064   :  { %v1585_v22 = vpop.eup %1584 }
0x1065   :  { %1343 = vmatmul.mubr.msk.f32.vlgmr.msra.gmra.mrb[12].mxu0 %vm169_vm2, %v1585_v22 }
0x1138   :  { %v1147_v35 = vpop.f32.mrb[12].mxu0 }
0x1139   :  { %v1148_v36 = vadd.f32 %v1276_v34, %v1147_v35  ;;  %v1344_v37 = vpop.f32.mrb[13].mxu0 }
0x113b   :  { %1586 = vtanh.f32 %v1148_v36 }
0x1145   :  { %v1587_v38 = vpop.eup %1586 }
0x1146   :  { %1362 = vmatmul.mubr.msk.f32.vlgmr.msra.gmra.mrb[10].mxu1 %vm169_vm2, %v1587_v38 }
0x1219   :  { %v1236_v44 = vpop.f32.mrb[10].mxu1 }
0x121a   :  { %v1237_v40 = vadd.f32 %v1278_v39, %v1236_v44  ;;  %v1363_v2 = vpop.f32.mrb[11].mxu1 }
0x121c   :  { %1241 = vst.msk [vmem:[%s2002_s8] sm:$0x3] %vm1240_vm4, %v1237_v40 }

// kernel: forward.5
= control target key start
LH: loop header
LB: loop body
LE: loop exit
PB: predicated region body
PF: predicated region fallthrough
CT: control target
= control target key end

     0   :  { %v1315_v3 = vmov 0.0   ;;  %v1316_v19 = vmov 683565275   ;;  %v1317_v21 = vmov 2475754826   ;;  %s1614_s1 = inlined_call_operand.vmem [shape: f32[18,256], index: 1, kind: input, shape index: {}]   ;;  %s1615_s0 = inlined_call_operand.vmem [shape: f32[5,16], index: 0, kind: input, shape index: {}]   ;;  %s1616_s5 = inlined_call_operand.vmem [shape: f32[64,4], index: 5, kind: input, shape index: {}]   ;;  %s1617_s2 = inlined_call_operand.vmem [shape: f32[64,2], index: 2, kind: input, shape index: {}]   ;;  %s1618_s3 = inlined_call_operand.vmem [shape: f32[2,64,64], index: 3, kind: input, shape index: {}]   ;;  %s1619_s4 = inlined_call_operand.vmem [shape: f32[1,64], index: 4, kind: input, shape index: {}]   ;;  %s1620_s6 = inlined_call_operand.vmem [shape: f32[1,256], index: 6, kind: output, shape index: {}]  }
   0x1   :  { %v244_v0 = vld [vmem:[%s1614_s1 + $0x8] sm:$0xff]  ;;  %v246_v1 = vld [vmem:[%s1614_s1 + $0x18] sm:$0xff]  ;;  %v243_v2 = vld [vmem:[%s1614_s1] sm:$0xff]  ;;  %319 = vmatprep.mubr.f32.mxu1 %v1315_v3  ;;  %533 = vmatprep.mubr.f32.mxu0 %v1315_v3  ;;  %v1318_v23 = vmov 2131351028  }
   0x2   :  { %v1138_v4 = vpack.c.bf16 %v246_v1, %v244_v0  ;;  %v245_v5 = vld [vmem:[%s1614_s1 + $0x10] sm:$0xff]  ;;  %v1379_v6 = vld [vmem:[%s1615_s0] sm:$0x1f]  ;;  %v1319_v25 = vmov 2102212464  }
   0x3   :  { %v1140_v7 = vpack.c.bf16 %v245_v5, %v243_v2  ;;  %v27_v8 = vand.u32 2139095040, %v1379_v6  ;;  %v24_v10 = vand.u32 2147483647, %v1379_v6  ;;  %v1320_v27 = vmov 920167782  }
   0x4   :  { %1139 = vmatprep.subr.bf16.mxu1 %v1138_v4  ;;  %v1321_v34 = vmov 1326507024   ;;  %vm26_vm7 = vcmp.lt.s32.totalorder %v1379_v6, 0  ;;  %vm116_vm15 = vweird.f32 %v1379_v6 }
   0x5   :  { %1141 = vmatpush1.bf16.msra.mxu1 %v1140_v7  ;;  %v28_v9 = vshrl.u32 %v27_v8, 23  ;;  %v31_v13 = vand.u32 8388607, %v24_v10  ;;  %vm25_vm8 = vcmp.le.f32.partialorder %v24_v10, 0.7853982 }
   0x7   :  { %v1092_v11 = vadd.s32 4294967169, %v28_v9  ;;  %v32_v16 = vor.u32 8388608, %v31_v13 }
   0x9   :  { %v34_v12 = vadd.s32 1, %v1092_v11  ;;  %v72_v36 = vshll.u32 %v32_v16, 8 }
   0xb   :  { %vm35_vm0 = vcmp.gt.s32.totalorder %v34_v12, 0 }
   0xc   :  { %v36_v14 = vsel %vm35_vm0, %v34_v12, 0  ;;  %vm237_vm0 = vcmask 1040384  }
   0xd   :  { %v38_v15 = vand.u32 31, %v36_v14  ;;  %v37_v17 = vshrl.u32 %v36_v14, 5 }
   0xf   :  { %v39_v18 = vsub.s32 32, %v38_v15  ;;  %v41_v20 = vshll.u32 %v1316_v19, %v38_v15  ;;  %v44_v22 = vshll.u32 %v1317_v21, %v38_v15  ;;  %v47_v24 = vshll.u32 %v1318_v23, %v38_v15 }
  0x10   :  { %v50_v26 = vshll.u32 %v1319_v25, %v38_v15  ;;  %v53_v28 = vshll.u32 %v1320_v27, %v38_v15  ;;  %vm56_vm1 = vcmp.lt.s32.totalorder %v37_v17, 1  ;;  %vm59_vm2 = vcmp.lt.s32.totalorder %v37_v17, 4 }
  0x11   :  { %v40_v29 = vshrl.u32 %v1316_v19, %v39_v18  ;;  %v42_v30 = vshrl.u32 %v1317_v21, %v39_v18  ;;  %v45_v31 = vshrl.u32 %v1318_v23, %v39_v18  ;;  %v48_v32 = vshrl.u32 %v1319_v25, %v39_v18 }
  0x12   :  { %v51_v33 = vshrl.u32 %v1320_v27, %v39_v18  ;;  %v54_v35 = vshrl.u32 %v1321_v34, %v39_v18  ;;  %vm57_vm3 = vcmp.lt.s32.totalorder %v37_v17, 2  ;;  %vm58_vm4 = vcmp.lt.s32.totalorder %v37_v17, 3 }
  0x13   :  { %v43_v37 = vor.u32 %v42_v30, %v41_v20  ;;  %v46_v38 = vor.u32 %v45_v31, %v44_v22  ;;  %v49_v39 = vor.u32 %v48_v32, %v47_v24 }
  0x14   :  { %v52_v40 = vor.u32 %v51_v33, %v50_v26  ;;  %v55_v41 = vor.u32 %v54_v35, %v53_v28 }
  0x15   :  { %v60_v42 = vsel %vm56_vm1, %v40_v29, %v43_v37  ;;  %v61_v43 = vsel %vm59_vm2, %v49_v39, 2102212464  ;;  %v64_v44 = vsel %vm56_vm1, %v43_v37, %v46_v38  ;;  %v68_v45 = vsel %vm56_vm1, %v46_v38, %v49_v39 }
  0x16   :  { %v62_v46 = vsel %vm58_vm4, %v46_v38, %v61_v43  ;;  %v65_v47 = vsel %vm59_vm2, %v52_v40, 920167782  ;;  %v69_v48 = vsel %vm59_vm2, %v55_v41, 1326507024  ;;  %vm239_vm1 = vcmask 1041408  }
  0x17   :  { %v66_v49 = vsel %vm58_vm4, %v49_v39, %v65_v47  ;;  %v70_v50 = vsel %vm58_vm4, %v52_v40, %v69_v48  ;;  %v63_v51 = vsel %vm57_vm3, %v60_v42, %v62_v46  ;;  %v235_v42 = vrot.slane %v1379_v6, 7  ;;  %v1407_v48 = vld [vmem:[%s1616_s5] sm:$0xff] }
  0x18   :  { %v67_v52 = vsel %vm57_vm3, %v64_v44, %v66_v49  ;;  %v71_v53 = vsel %vm57_vm3, %v68_v45, %v70_v50  ;;  %v79_v58 = vmul.u32 %v72_v36, %v63_v51  ;;  %vm241_vm2 = vcmask 1042432   ;;  %v1419_v49 = vld [vmem:[%s1616_s5 + $0x8] sm:$0xff]  ;;  %v1424_v50 = vld [vmem:[%s1616_s5 + $0x18] sm:$0xff]  ;;  %v1431_v51 = vld [vmem:[%s1616_s5 + $0x20] sm:$0xff] }
  0x19   :  { %v1385_v54 = vmul.u32.u64.low %v72_v36, %v71_v53  ;;  %v1386_v55 = vmul.u32.u64.high %v72_v36, %v71_v53, %v1385_v54  ;;  %v1388_v56 = vmul.u32.u64.low %v72_v36, %v67_v52  ;;  %v1389_v57 = vmul.u32.u64.high %v72_v36, %v67_v52, %v1388_v56  ;;  %v1436_v52 = vld [vmem:[%s1616_s5 + $0x28] sm:$0xff]  ;;  %v1443_v53 = vld [vmem:[%s1616_s5 + $0x30] sm:$0xff] }
  0x1a   :  { %vm251_vm3 = vcmask 130048   ;;  %v1322_v47 = vmov 0   ;;  %v1448_v54 = vld [vmem:[%s1616_s5 + $0x38] sm:$0xff]  ;;  %vm438_vm4 = vcmask 15360  }
  0x1b   :  { %vm81_vm5 = vc.u32 %v1386_v55, %v1388_v56  ;;  %v82_v59 = vadd.s32 1, %v1389_v57  ;;  %v80_v8 = vadd.s32 %v1388_v56, %v1386_v55  ;;  %1208 = vset.pattern.permute.xlu0 %v1322_v47  ;;  %1209 = vset.pattern.permute.xlu1 %v1322_v47  ;;  %v327_v55 = vlaneseq }
  0x1c   :  { %400 = vperm.xlu0 %1208, %v1407_v48  }
  0x1d   :  { %v83_v60 = vsel %vm81_vm5, %v82_v59, %v1389_v57  ;;  %v1453_v56 = vshrl.u32 %v327_v55, 7  ;;  %v1100_v57 = vld [vmem:[%s1614_s1 + $0x20] ss:$8 sm:$0x3]  ;;  %vm638_vm5 = vcmask 523264  }
  0x1e   :  { %v84_v61 = vadd.s32 %v83_v60, %v79_v58  ;;  %v1101_v59 = vld [vmem:[%s1614_s1 + $0x21] ss:$8 sm:$0x3] }
  0x1f   :  { %v329_v58 = vsub.s32 0, %v1453_v56  ;;  %v333_v60 = vsub.s32 1, %v1453_v56 }
  0x20   :  { %v85_v62 = vadd.s32 536870912, %v84_v61  ;;  %405 = vperm.xlu0 %1208, %v1419_v49  }
  0x22   :  { %v86_v63 = vshrl.u32 %v85_v62, 30  ;;  %v343_v62 = vrot.slane %v1101_v59, %v329_v58 }
  0x24   :  { %v87_v0 = vshll.u32 %v86_v63, 30  ;;  %v110_v21 = vsub.s32 4, %v86_v63  ;;  %420 = vperm.xlu0 %1208, %v1431_v51  }
  0x26   :  { %v88_v1 = vsub.s32 %v84_v61, %v87_v0  ;;  %v111_v24 = vsel %vm26_vm7, %v110_v21, %v86_v63  ;;  %v330_v61 = vrot.slane %v1100_v57, %v329_v58  ;;  %v334_v63 = vrot.slane %v1100_v57, %v333_v60 }
  0x27   :  { %v113_v27 = vsel %vm25_vm8, 0, %v111_v24  ;;  %v347_v0 = vrot.slane %v1101_v59, %v333_v60 }
  0x28   :  { %v90_v2 = vsub.s32 0, %v88_v1  ;;  %v220_v28 = vadd.s32 3, %v113_v27  ;;  %v117_v29 = vand.u32 3, %v113_v27  ;;  %430 = vperm.xlu0 %1208, %v1443_v53  }
  0x2a   :  { %v1093_v4 = vmin.u32 %v90_v2, %v88_v1  ;;  %v221_v30 = vand.u32 3, %v220_v28  ;;  %vm122_vm9 = vcmp.eq.s32.totalorder %v117_v29, 2  ;;  %vm119_vm11 = vcmp.eq.s32.totalorder %v117_v29, 0 }
  0x2b   :  { %vm118_vm13 = vcmp.lt.s32.totalorder %v117_v29, 2 }
  0x2c   :  { %v92_v5 = vclz %v1093_v4  ;;  %vm226_vm10 = vcmp.eq.s32.totalorder %v221_v30, 2  ;;  %vm223_vm12 = vcmp.eq.s32.totalorder %v221_v30, 0  ;;  %vm222_vm14 = vcmp.lt.s32.totalorder %v221_v30, 2  ;;  %v390_v30 = vld [vmem:[%s1617_s2] sm:$0xff] }
  0x2e   :  { %v1094_v7 = vadd.s32 4294967294, %v92_v5 }
  0x30   :  { %vm1095_vm6 = vcmp.lt.s32.totalorder %v1094_v7, 0 }
  0x31   :  { %v95_v9 = vsel %vm1095_vm6, 0, %v1094_v7  ;;  %vm1085_vm6 = vcmp.lt.s32.totalorder %v327_v55, 256 }
  0x32   :  { %v96_v11 = vsub.s32 32, %v95_v9  ;;  %v97_v12 = vshll.u32 %v88_v1, %v95_v9  ;;  %v100_v13 = vsub.s32 4294967266, %v95_v9 }
  0x34   :  { %v98_v14 = vshrl.u32 %v80_v8, %v96_v11  ;;  %v101_v15 = vadd.s32 127, %v100_v13 }
  0x36   :  { %v99_v16 = vor.u32 %v98_v14, %v97_v12  ;;  %v102_v17 = vshll.u32 %v101_v15, 23 }
  0x38   :  { %v103_v18 = vor.u32 4788187, %v102_v17  ;;  %v106_v19 = vcvt.s32.f32 %v99_v16 }
  0x3a   :  { %v104_v20 = vand.u32 2147483647, %v103_v18 }
  0x3c   :  { %v107_v22 = vmul.f32 %v106_v19, %v104_v20 }
  0x3e   :  { %v108_v23 = vxor.u32 2147483648, %v107_v22 }
  0x40   :  { %v109_v25 = vsel %vm26_vm7, %v108_v23, %v107_v22 }
  0x41   :  { %v112_v26 = vsel %vm25_vm8, %v1379_v6, %v109_v25  ;;  %v1412_v6 = vld [vmem:[%s1616_s5 + $0x10] sm:$0xff] }
  0x42   :  { %1215 = vcosq.f32 %v112_v26  ;;  %410 = vperm.xlu1 %1209, %v1412_v6  }
  0x43   :  { %1217 = vsinq.f32 %v112_v26 }
  0x46   :  { %415 = vperm.xlu1 %1209, %v1424_v50  }
  0x4a   :  { %425 = vperm.xlu1 %1209, %v1436_v52  }
  0x4c   :  { %v1216_v31 = vpop.eup %1215 }
  0x4d   :  { %v1218_v32 = vpop.eup %1217  ;;  %v123_v33 = vxor.u32 2147483648, %v1216_v31 }
  0x4e   :  { %v120_v10 = vxor.u32 2147483648, %v1218_v32  ;;  %435 = vperm.xlu1 %1209, %v1448_v54  }
  0x4f   :  { %v124_v34 = vsel %vm122_vm9, %v123_v33, %v1218_v32  ;;  %v228_v35 = vsel %vm226_vm10, %v123_v33, %v1218_v32  ;;  %v391_v32 = vld [vmem:[%s1617_s2 + $0x8] sm:$0xff] }
  0x50   :  { %v121_v36 = vsel %vm119_vm11, %v1216_v31, %v120_v10  ;;  %v225_v37 = vsel %vm223_vm12, %v1216_v31, %v120_v10  ;;  %v394_v31 = vld [vmem:[%s1617_s2 + $0x20] sm:$0xff]  ;;  %v395_v33 = vld [vmem:[%s1617_s2 + $0x28] sm:$0xff]  ;;  %v392_v10 = vld [vmem:[%s1617_s2 + $0x10] sm:$0xff] }
  0x51   :  { %v125_v38 = vsel %vm118_vm13, %v121_v36, %v124_v34  ;;  %v229_v39 = vsel %vm222_vm14, %v225_v37, %v228_v35  ;;  %v396_v34 = vld [vmem:[%s1617_s2 + $0x30] sm:$0xff]  ;;  %v393_v35 = vld [vmem:[%s1617_s2 + $0x18] sm:$0xff]  ;;  %v1323_v37 = vmov 1  }
  0x52   :  { %v126_v40 = vsel %vm116_vm15, nan, %v125_v38  ;;  %v230_v41 = vsel %vm116_vm15, nan, %v229_v39  ;;  %v397_v36 = vld [vmem:[%s1617_s2 + $0x38] sm:$0xff]  ;;  %1210 = vset.pattern.permute.xlu0 %v1323_v37  ;;  %1211 = vset.pattern.permute.xlu1 %v1323_v37 }
  0x53   :  { %v232_v43 = vrot.slane %v230_v41, 7  ;;  %607 = vperm.xlu0 %1210, %v1407_v48   ;;  %611 = vperm.xlu1 %1211, %v1419_v49  }
  0x55   :  { %v238_v44 = vsel %vm237_vm0, %v126_v40, %v232_v43 }
  0x56   :  { %v240_v45 = vsel %vm239_vm1, %v238_v44, %v235_v42 }
  0x57   :  { %v242_v46 = vsel %vm241_vm2, %v240_v45, %v235_v42  ;;  %615 = vperm.xlu1 %1211, %v1412_v6   ;;  %619 = vperm.xlu0 %1210, %v1424_v50  }
  0x58   :  { %1102 = vmatmul.mubr.msk.f32.vlgmr.msra.gmra.mrb[0].mxu1 %vm251_vm3, %v242_v46 }
  0x59   :  { %557 = vmatprep.mubr.f32.mxu1 %v1315_v3 }
  0x5b   :  { %623 = vperm.xlu1 %1211, %v1431_v51   ;;  %627 = vperm.xlu0 %1210, %v1436_v52  }
  0x5f   :  { %631 = vperm.xlu1 %1211, %v1443_v53   ;;  %635 = vperm.xlu0 %1210, %v1448_v54  }
  0x9b   :  { %v401_v38 = vpop.permute.xlu0 %400 }
  0x9f   :  { %v406_v40 = vpop.permute.xlu0 %405 }
  0xa3   :  { %v421_v42 = vpop.permute.xlu0 %420 }
  0xc1   :  { %v411_v39 = vpop.permute.xlu1 %410 }
  0xc5   :  { %v416_v41 = vpop.permute.xlu1 %415 }
  0xc9   :  { %v426_v60 = vpop.permute.xlu1 %425 }
 0x12b   :  { %v321_v1 = vpop.f32.mrb[0].mxu1 }
 0x12c   :  { %v337_v2 = vmul.f32 %v330_v61, %v321_v1  ;;  %v350_v4 = vmul.f32 %v343_v62, %v321_v1  ;;  %v368_v5 = vsub.f32 0.0, %v321_v1  ;;  %v323_v7 = vpop.f32.mrb[1].mxu1  ;;  %v362_v19 = vrot.slane %v321_v1, 2 }
 0x12d   :  { %v338_v8 = vmul.f32 %v334_v63, %v323_v7  ;;  %v351_v9 = vmul.f32 %v347_v0, %v323_v7  ;;  %v369_v11 = vsub.f32 0.0, %v323_v7  ;;  %v363_v21 = vrot.slane %v323_v7, 2  ;;  %v431_v7 = vpop.permute.xlu0 %430 }
 0x12e   :  { %v354_v12 = vrot.slane %v350_v4, 1  ;;  %v370_v13 = vmul.f32 %v368_v5, %v330_v61  ;;  %v372_v14 = vrot.slane %v350_v4, 7 }
 0x12f   :  { %v355_v15 = vrot.slane %v351_v9, 1  ;;  %v371_v16 = vmul.f32 %v369_v11, %v334_v63  ;;  %v373_v17 = vrot.slane %v351_v9, 7 }
 0x130   :  { %v358_v18 = vadd.f32 %v354_v12, %v337_v2  ;;  %v376_v20 = vadd.f32 %v372_v14, %v370_v13 }
 0x131   :  { %v359_v22 = vadd.f32 %v355_v15, %v338_v8  ;;  %v377_v23 = vadd.f32 %v373_v17, %v371_v16  ;;  %v436_v17 = vpop.permute.xlu1 %435 }
 0x132   :  { %v366_v24 = vadd.f32 %v362_v19, %v358_v18  ;;  %v378_v25 = vadd.f32 %v376_v20, %v362_v19 }
 0x133   :  { %v367_v26 = vadd.f32 %v363_v21, %v359_v22  ;;  %v379_v27 = vadd.f32 %v377_v23, %v363_v21 }
 0x134   :  { %v380_v28 = vsel %vm237_vm0, %v366_v24, %v378_v25 }
 0x135   :  { %v381_v29 = vsel %vm237_vm0, %v367_v26, %v379_v27 }
 0x136   :  { %1103 = vmatprep.subr.msk.mxu0 %vm239_vm1, %v381_v29  ;;  %1190 = vmatprep.subr.msk.mxu1 %vm239_vm1, %v381_v29 }
 0x137   :  { %1104 = vmatpush1.msk.msra.mxu0 %vm239_vm1, %v380_v28  ;;  %1191 = vmatpush1.msk.msra.mxu1 %vm239_vm1, %v380_v28 }
 0x138   :  { %1105 = vmatmul.mubr.msk.f32.vlgmr.msra.gmra.mrb[0].mxu0 %vm438_vm4, %v390_v30  ;;  %1109 = vmatmul.mubr.msk.f32.vlgmr.msra.gmra.mrb[2].mxu1 %vm438_vm4, %v394_v31 }
 0x139   :  { %539 = vmatprep.mubr.f32.mxu0 %v1315_v3  ;;  %563 = vmatprep.mubr.f32.mxu1 %v1315_v3 }
 0x13c   :  { %1106 = vmatmul.mubr.msk.f32.gmra.mrb[2].mxu0 %vm438_vm4, %v391_v32  ;;  %1110 = vmatmul.mubr.msk.f32.gmra.mrb[4].mxu1 %vm438_vm4, %v395_v33 }
 0x13d   :  { %545 = vmatprep.mubr.f32.mxu0 %v1315_v3  ;;  %569 = vmatprep.mubr.f32.mxu1 %v1315_v3 }
 0x140   :  { %1107 = vmatmul.mubr.msk.f32.gmra.mrb[4].mxu0 %vm438_vm4, %v392_v10  ;;  %1111 = vmatmul.mubr.msk.f32.gmra.mrb[6].mxu1 %vm438_vm4, %v396_v34 }
 0x141   :  { %551 = vmatprep.mubr.f32.mxu0 %v1315_v3  ;;  %575 = vmatprep.mubr.f32.mxu1 %v1315_v3 }
 0x144   :  { %1108 = vmatmul.mubr.msk.f32.gmra.mrb[6].mxu0 %vm438_vm4, %v393_v35  ;;  %1112 = vmatmul.mubr.msk.f32.gmra.mrb[8].mxu1 %vm438_vm4, %v397_v36 }
 0x145   :  { %727 = vmatprep.mubr.f32.mxu0 %v1315_v3  ;;  %921 = vmatprep.mubr.f32.mxu1 %v1315_v3 }
 0x20b   :  { %v535_v43 = vpop.f32.mrb[0].mxu0  ;;  %v559_v44 = vpop.f32.mrb[2].mxu1 }
 0x20c   :  { %v536_v45 = vadd.f32 %v535_v43, %v401_v38  ;;  %v537_v46 = vpop.f32.mrb[1].mxu0  ;;  %v560_v47 = vadd.f32 %v559_v44, %v421_v42  ;;  %v561_v57 = vpop.f32.mrb[3].mxu1 }
 0x20d   :  { %v538_v58 = vadd.f32 %v537_v46, %v401_v38  ;;  %v562_v59 = vadd.f32 %v561_v57, %v421_v42 }
 0x20e   :  { %1219 = vtanh.f32 %v536_v45 }
 0x20f   :  { %1221 = vtanh.f32 %v538_v58  ;;  %v541_v61 = vpop.f32.mrb[2].mxu0  ;;  %v565_v62 = vpop.f32.mrb[4].mxu1  ;;  %v598_v58 = vld [vmem:[%s1618_s3] sm:$0xff] }
 0x210   :  { %1223 = vtanh.f32 %v560_v47  ;;  %v542_v63 = vadd.f32 %v541_v61, %v406_v40  ;;  %v566_v0 = vadd.f32 %v565_v62, %v426_v60  ;;  %v543_v1 = vpop.f32.mrb[3].mxu0  ;;  %v567_v2 = vpop.f32.mrb[5].mxu1  ;;  %v601_v61 = vld [vmem:[%s1618_s3 + $0x18] sm:$0xff]  ;;  %v602_v62 = vld [vmem:[%s1618_s3 + $0x20] sm:$0xff] }
 0x211   :  { %1225 = vtanh.f32 %v562_v59  ;;  %v544_v4 = vadd.f32 %v543_v1, %v406_v40  ;;  %v568_v5 = vadd.f32 %v567_v2, %v426_v60  ;;  %v599_v59 = vld [vmem:[%s1618_s3 + $0x8] sm:$0xff]  ;;  %v600_v60 = vld [vmem:[%s1618_s3 + $0x10] sm:$0xff]  ;;  %v605_v1 = vld [vmem:[%s1618_s3 + $0x38] sm:$0xff]  ;;  %v1324_v2 = vmov 2  }
 0x212   :  { %1227 = vtanh.f32 %v542_v63  ;;  %v603_v63 = vld [vmem:[%s1618_s3 + $0x28] sm:$0xff]  ;;  %1212 = vset.pattern.permute.xlu1 %v1324_v2  ;;  %1213 = vset.pattern.permute.xlu0 %v1324_v2 }
 0x213   :  { %1229 = vtanh.f32 %v566_v0  ;;  %v547_v8 = vpop.f32.mrb[4].mxu0  ;;  %v571_v9 = vpop.f32.mrb[6].mxu1  ;;  %v604_v0 = vld [vmem:[%s1618_s3 + $0x30] sm:$0xff]  ;;  %802 = vperm.xlu1 %1212, %v1407_v48   ;;  %806 = vperm.xlu0 %1213, %v1419_v49  }
 0x214   :  { %1231 = vtanh.f32 %v544_v4  ;;  %v548_v11 = vadd.f32 %v547_v8, %v411_v39  ;;  %v572_v12 = vadd.f32 %v571_v9, %v431_v7  ;;  %v549_v13 = vpop.f32.mrb[5].mxu0  ;;  %v573_v14 = vpop.f32.mrb[7].mxu1 }
 0x215   :  { %1233 = vtanh.f32 %v568_v5  ;;  %v550_v15 = vadd.f32 %v549_v13, %v411_v39  ;;  %v574_v16 = vadd.f32 %v573_v14, %v431_v7  ;;  %v608_v4 = vpop.permute.xlu0 %607  ;;  %v612_v7 = vpop.permute.xlu1 %611 }
 0x216   :  { %1235 = vtanh.f32 %v548_v11 }
 0x217   :  { %1237 = vtanh.f32 %v572_v12  ;;  %v553_v18 = vpop.f32.mrb[6].mxu0  ;;  %v577_v19 = vpop.f32.mrb[8].mxu1  ;;  %810 = vperm.xlu1 %1212, %v1412_v6   ;;  %818 = vperm.xlu0 %1213, %v1431_v51  }
 0x218   :  { %v1220_v20 = vpop.eup %1219  ;;  %1239 = vtanh.f32 %v550_v15  ;;  %v554_v21 = vadd.f32 %v553_v18, %v416_v41  ;;  %v578_v22 = vadd.f32 %v577_v19, %v436_v17  ;;  %v555_v23 = vpop.f32.mrb[7].mxu0 }
 0x219   :  { %v579_v24 = vpop.f32.mrb[9].mxu1  ;;  %v1222_v25 = vpop.eup %1221  ;;  %1241 = vtanh.f32 %v574_v16  ;;  %v556_v26 = vadd.f32 %v555_v23, %v416_v41 }
 0x21a   :  { %v580_v27 = vadd.f32 %v579_v24, %v436_v17  ;;  %v1224_v28 = vpop.eup %1223  ;;  %1243 = vtanh.f32 %v554_v21  ;;  %v616_v13 = vpop.permute.xlu1 %615 }
 0x21b   :  { %v1226_v29 = vpop.eup %1225  ;;  %1245 = vtanh.f32 %v578_v22  ;;  %814 = vperm.xlu1 %1212, %v1424_v50   ;;  %826 = vperm.xlu0 %1213, %v1443_v53  }
 0x21c   :  { %v1228_v30 = vpop.eup %1227  ;;  %1247 = vtanh.f32 %v556_v26 }
 0x21d   :  { %v1230_v31 = vpop.eup %1229  ;;  %1249 = vtanh.f32 %v580_v27  ;;  %v1144_v32 = vpack.c.bf16 %v1228_v30, %v1220_v20 }
 0x21e   :  { %v1232_v33 = vpop.eup %1231  ;;  %v1152_v10 = vpack.c.bf16 %v1230_v31, %v1224_v28  ;;  %v624_v21 = vpop.permute.xlu1 %623 }
 0x21f   :  { %v1234_v34 = vpop.eup %1233  ;;  %v1142_v35 = vpack.c.bf16 %v1232_v33, %v1222_v25  ;;  %822 = vperm.xlu1 %1212, %v1436_v52  }
 0x220   :  { %v1236_v36 = vpop.eup %1235  ;;  %v1150_v37 = vpack.c.bf16 %v1234_v34, %v1226_v29 }
 0x221   :  { %v1238_v38 = vpop.eup %1237  ;;  %1143 = vmatprep.subr.bf16.mxu0 %v1142_v35 }
 0x222   :  { %v1240_v39 = vpop.eup %1239  ;;  %1145 = vmatpush1.bf16.msra.mxu0 %v1144_v32 }
 0x223   :  { %v1242_v40 = vpop.eup %1241  ;;  %830 = vperm.xlu1 %1212, %v1448_v54   ;;  %v620_v54 = vpop.permute.xlu0 %619 }
 0x224   :  { %v1244_v41 = vpop.eup %1243 }
 0x225   :  { %v1246_v42 = vpop.eup %1245  ;;  %v1148_v43 = vpack.c.bf16 %v1244_v41, %v1236_v36  ;;  %v632_v36 = vpop.permute.xlu1 %631 }
 0x226   :  { %v1248_v44 = vpop.eup %1247  ;;  %v1156_v45 = vpack.c.bf16 %v1246_v42, %v1238_v38 }
 0x227   :  { %v1250_v46 = vpop.eup %1249  ;;  %v1146_v47 = vpack.c.bf16 %v1248_v44, %v1240_v39  ;;  %v628_v30 = vpop.permute.xlu0 %627 }
 0x228   :  { %v1154_v57 = vpack.c.bf16 %v1250_v46, %v1242_v40 }
 0x229   :  { %1147 = vmatprep.subr.bf16.mxu0 %v1146_v47 }
 0x22a   :  { %1149 = vmatpush1.bf16.msra.mxu0 %v1148_v43 }
 0x22b   :  { %1151 = vmatprep.subr.bf16.mxu0 %v1150_v37 }
 0x22e   :  { %1153 = vmatpush1.bf16.msra.mxu0 %v1152_v10 }
 0x22f   :  { %1155 = vmatprep.subr.bf16.mxu0 %v1154_v57 }
 0x232   :  { %1157 = vmatpush1.bf16.msra.mxu0 %v1156_v45  ;;  %v636_v45 = vpop.permute.xlu0 %635 }
 0x235   :  { %1113 = vmatmul.mubr.msk.f32.vlgmr.msra.gmra.mrb[8].mxu0 %vm638_vm5, %v598_v58 }
 0x236   :  { %733 = vmatprep.mubr.f32.mxu0 %v1315_v3 }
 0x239   :  { %1114 = vmatmul.mubr.msk.f32.gmra.mrb[10].mxu0 %vm638_vm5, %v599_v59 }
 0x23a   :  { %739 = vmatprep.mubr.f32.mxu0 %v1315_v3 }
 0x23d   :  { %1115 = vmatmul.mubr.msk.f32.gmra.mrb[12].mxu0 %vm638_vm5, %v600_v60 }
 0x23e   :  { %745 = vmatprep.mubr.f32.mxu0 %v1315_v3 }
 0x241   :  { %1116 = vmatmul.mubr.msk.f32.gmra.mrb[14].mxu0 %vm638_vm5, %v601_v61 }
 0x242   :  { %751 = vmatprep.mubr.f32.mxu0 %v1315_v3 }
 0x245   :  { %1117 = vmatmul.mubr.msk.f32.gmra.mrb[16].mxu0 %vm638_vm5, %v602_v62 }
 0x246   :  { %757 = vmatprep.mubr.f32.mxu0 %v1315_v3 }
 0x249   :  { %1118 = vmatmul.mubr.msk.f32.gmra.mrb[18].mxu0 %vm638_vm5, %v603_v63 }
 0x24a   :  { %763 = vmatprep.mubr.f32.mxu0 %v1315_v3 }
 0x24d   :  { %1119 = vmatmul.mubr.msk.f32.gmra.mrb[20].mxu0 %vm638_vm5, %v604_v0 }
 0x24e   :  { %769 = vmatprep.mubr.f32.mxu0 %v1315_v3 }
 0x251   :  { %1120 = vmatmul.mubr.msk.f32.gmra.mrb[22].mxu0 %vm638_vm5, %v605_v1 }
 0x252   :  { %1058 = vmatprep.mubr.f32.mxu0 %v1315_v3 }
 0x308   :  { %v729_v5 = vpop.f32.mrb[8].mxu0 }
 0x309   :  { %v730_v8 = vadd.f32 %v729_v5, %v608_v4  ;;  %v731_v9 = vpop.f32.mrb[9].mxu0 }
 0x30a   :  { %v732_v11 = vadd.f32 %v731_v9, %v608_v4  ;;  %v1121_v9 = vld [vmem:[%s1618_s3 + $0x40] sm:$0xff] }
 0x30b   :  { %1251 = vtanh.f32 %v730_v8 }
 0x30c   :  { %v735_v12 = vpop.f32.mrb[10].mxu0  ;;  %1253 = vtanh.f32 %v732_v11  ;;  %v1122_v11 = vld [vmem:[%s1618_s3 + $0x48] sm:$0xff] }
 0x30d   :  { %v736_v49 = vadd.f32 %v735_v12, %v612_v7  ;;  %v737_v6 = vpop.f32.mrb[11].mxu0  ;;  %v1123_v12 = vld [vmem:[%s1618_s3 + $0x50] sm:$0xff] }
 0x30e   :  { %v738_v51 = vadd.f32 %v737_v6, %v612_v7  ;;  %v1125_v6 = vld [vmem:[%s1618_s3 + $0x60] sm:$0xff] }
 0x30f   :  { %1255 = vtanh.f32 %v736_v49  ;;  %v1124_v49 = vld [vmem:[%s1618_s3 + $0x58] sm:$0xff] }
 0x310   :  { %1257 = vtanh.f32 %v738_v51  ;;  %v741_v50 = vpop.f32.mrb[12].mxu0  ;;  %v1126_v51 = vld [vmem:[%s1618_s3 + $0x68] sm:$0xff] }
 0x311   :  { %v742_v53 = vadd.f32 %v741_v50, %v616_v13  ;;  %v743_v52 = vpop.f32.mrb[13].mxu0  ;;  %v1128_v50 = vld [vmem:[%s1618_s3 + $0x78] sm:$0xff] }
 0x312   :  { %v744_v14 = vadd.f32 %v743_v52, %v616_v13  ;;  %v1127_v13 = vld [vmem:[%s1618_s3 + $0x70] sm:$0xff]  ;;  %v803_v52 = vpop.permute.xlu1 %802 }
 0x313   :  { %1259 = vtanh.f32 %v742_v53  ;;  %v1325_v53 = vmov 3  }
 0x314   :  { %v747_v15 = vpop.f32.mrb[14].mxu0  ;;  %1261 = vtanh.f32 %v744_v14  ;;  %1214 = vset.pattern.permute.xlu0 %v1325_v53 }
 0x315   :  { %v748_v16 = vadd.f32 %v747_v15, %v620_v54  ;;  %v749_v17 = vpop.f32.mrb[15].mxu0  ;;  %v1252_v19 = vpop.eup %1251  ;;  %988 = vperm.xlu0 %1214, %v1407_v48  }
 0x316   :  { %v750_v18 = vadd.f32 %v749_v17, %v620_v54  ;;  %v1254_v20 = vpop.eup %1253 }
 0x317   :  { %1263 = vtanh.f32 %v748_v16  ;;  %v807_v16 = vpop.permute.xlu0 %806 }
 0x318   :  { %1265 = vtanh.f32 %v750_v18  ;;  %v753_v22 = vpop.f32.mrb[16].mxu0 }
 0x319   :  { %v1256_v23 = vpop.eup %1255  ;;  %v754_v24 = vadd.f32 %v753_v22, %v624_v21  ;;  %v755_v25 = vpop.f32.mrb[17].mxu0 }
 0x31a   :  { %v1258_v26 = vpop.eup %1257  ;;  %v756_v27 = vadd.f32 %v755_v25, %v624_v21  ;;  %v1160_v28 = vpack.c.bf16 %v1256_v23, %v1252_v19 }
 0x31b   :  { %v1158_v29 = vpack.c.bf16 %v1258_v26, %v1254_v20  ;;  %1267 = vtanh.f32 %v754_v24  ;;  %v811_v20 = vpop.permute.xlu1 %810 }
 0x31c   :  { %v759_v31 = vpop.f32.mrb[18].mxu0  ;;  %1269 = vtanh.f32 %v756_v27 }
 0x31d   :  { %v760_v32 = vadd.f32 %v759_v31, %v628_v30  ;;  %v761_v33 = vpop.f32.mrb[19].mxu0  ;;  %1159 = vmatprep.subr.bf16.mxu1 %v1158_v29  ;;  %v1260_v34 = vpop.eup %1259 }
 0x31e   :  { %v762_v10 = vadd.f32 %v761_v33, %v628_v30  ;;  %1161 = vmatpush1.bf16.msra.mxu1 %v1160_v28  ;;  %v1262_v35 = vpop.eup %1261 }
 0x31f   :  { %1271 = vtanh.f32 %v760_v32  ;;  %v815_v48 = vpop.permute.xlu1 %814  ;;  %v819_v32 = vpop.permute.xlu0 %818 }
 0x320   :  { %1273 = vtanh.f32 %v762_v10  ;;  %v765_v37 = vpop.f32.mrb[20].mxu0 }
 0x321   :  { %v1264_v38 = vpop.eup %1263  ;;  %v766_v39 = vadd.f32 %v765_v37, %v632_v36  ;;  %v767_v40 = vpop.f32.mrb[21].mxu0 }
 0x322   :  { %v1266_v41 = vpop.eup %1265  ;;  %v768_v42 = vadd.f32 %v767_v40, %v632_v36  ;;  %v1164_v43 = vpack.c.bf16 %v1264_v38, %v1260_v34 }
 0x323   :  { %v1162_v44 = vpack.c.bf16 %v1266_v41, %v1262_v35  ;;  %1275 = vtanh.f32 %v766_v39  ;;  %v823_v40 = vpop.permute.xlu1 %822 }
 0x324   :  { %v771_v46 = vpop.f32.mrb[22].mxu0  ;;  %1277 = vtanh.f32 %v768_v42 }
 0x325   :  { %v772_v47 = vadd.f32 %v771_v46, %v636_v45  ;;  %v773_v57 = vpop.f32.mrb[23].mxu0  ;;  %1163 = vmatprep.subr.bf16.mxu1 %v1162_v44  ;;  %v1268_v59 = vpop.eup %1267 }
 0x326   :  { %v774_v58 = vadd.f32 %v773_v57, %v636_v45  ;;  %1165 = vmatpush1.bf16.msra.mxu1 %v1164_v43  ;;  %v1270_v60 = vpop.eup %1269 }
 0x327   :  { %1279 = vtanh.f32 %v772_v47  ;;  %v827_v47 = vpop.permute.xlu0 %826 }
 0x328   :  { %1281 = vtanh.f32 %v774_v58 }
 0x329   :  { %v1272_v61 = vpop.eup %1271 }
 0x32a   :  { %v1274_v62 = vpop.eup %1273  ;;  %v1168_v63 = vpack.c.bf16 %v1272_v61, %v1268_v59 }
 0x32b   :  { %v1166_v0 = vpack.c.bf16 %v1274_v62, %v1270_v60 }
 0x32d   :  { %1167 = vmatprep.subr.bf16.mxu1 %v1166_v0  ;;  %v1276_v1 = vpop.eup %1275 }
 0x32e   :  { %1169 = vmatpush1.bf16.msra.mxu1 %v1168_v63  ;;  %v1278_v2 = vpop.eup %1277 }
 0x331   :  { %v1280_v4 = vpop.eup %1279 }
 0x332   :  { %v1282_v5 = vpop.eup %1281  ;;  %v1172_v7 = vpack.c.bf16 %v1280_v4, %v1276_v1  ;;  %v831_v1 = vpop.permute.xlu1 %830 }
 0x333   :  { %v1170_v8 = vpack.c.bf16 %v1282_v5, %v1278_v2 }
 0x335   :  { %1171 = vmatprep.subr.bf16.mxu1 %v1170_v8 }
 0x336   :  { %1173 = vmatpush1.bf16.msra.mxu1 %v1172_v7 }
 0x339   :  { %1129 = vmatmul.mubr.msk.f32.vlgmr.msra.gmra.mrb[10].mxu1 %vm638_vm5, %v1121_v9 }
 0x33a   :  { %927 = vmatprep.mubr.f32.mxu1 %v1315_v3 }
 0x33d   :  { %1130 = vmatmul.mubr.msk.f32.gmra.mrb[12].mxu1 %vm638_vm5, %v1122_v11 }
 0x33e   :  { %933 = vmatprep.mubr.f32.mxu1 %v1315_v3 }
 0x341   :  { %1131 = vmatmul.mubr.msk.f32.gmra.mrb[14].mxu1 %vm638_vm5, %v1123_v12 }
 0x342   :  { %939 = vmatprep.mubr.f32.mxu1 %v1315_v3 }
 0x345   :  { %1132 = vmatmul.mubr.msk.f32.gmra.mrb[16].mxu1 %vm638_vm5, %v1124_v49 }
 0x346   :  { %945 = vmatprep.mubr.f32.mxu1 %v1315_v3 }
 0x349   :  { %1133 = vmatmul.mubr.msk.f32.gmra.mrb[18].mxu1 %vm638_vm5, %v1125_v6 }
 0x34a   :  { %951 = vmatprep.mubr.f32.mxu1 %v1315_v3 }
 0x34d   :  { %1134 = vmatmul.mubr.msk.f32.gmra.mrb[20].mxu1 %vm638_vm5, %v1126_v51 }
 0x34e   :  { %957 = vmatprep.mubr.f32.mxu1 %v1315_v3 }
 0x351   :  { %1135 = vmatmul.mubr.msk.f32.gmra.mrb[22].mxu1 %vm638_vm5, %v1127_v13 }
 0x352   :  { %963 = vmatprep.mubr.f32.mxu1 %v1315_v3 }
 0x355   :  { %1136 = vmatmul.mubr.msk.f32.gmra.mrb[24].mxu1 %vm638_vm5, %v1128_v50 }
 0x40c   :  { %v923_v14 = vpop.f32.mrb[10].mxu1 }
 0x40d   :  { %v924_v54 = vadd.f32 %v923_v14, %v803_v52  ;;  %v925_v15 = vpop.f32.mrb[11].mxu1 }
 0x40e   :  { %v926_v17 = vadd.f32 %v925_v15, %v803_v52  ;;  %v1326_v15 = vmov 1966171168  }
 0x40f   :  { %1283 = vtanh.f32 %v924_v54  ;;  %v986_v54 = vld [vmem:[%s1619_s4] sm:$0x1] }
 0x410   :  { %v929_v18 = vpop.f32.mrb[12].mxu1  ;;  %1285 = vtanh.f32 %v926_v17  ;;  %v989_v17 = vpop.permute.xlu0 %988 }
 0x411   :  { %v930_v19 = vadd.f32 %v929_v18, %v807_v16  ;;  %v931_v3 = vpop.f32.mrb[13].mxu1 }
 0x412   :  { %v932_v21 = vadd.f32 %v931_v3, %v807_v16  ;;  %v1069_v16 = vunpack.c.l.s4 %v1326_v15 }
 0x413   :  { %1287 = vtanh.f32 %v930_v19 }
 0x414   :  { %1289 = vtanh.f32 %v932_v21  ;;  %v935_v22 = vpop.f32.mrb[14].mxu1  ;;  %v1070_v18 = vunpack.c.0.s8 %v1069_v16 }
 0x415   :  { %v936_v23 = vadd.f32 %v935_v22, %v811_v20  ;;  %v937_v24 = vpop.f32.mrb[15].mxu1 }
 0x416   :  { %v938_v25 = vadd.f32 %v937_v24, %v811_v20  ;;  %v1073_v22 = vsub.s32 %v1070_v18, %v1453_v56 }
 0x417   :  { %1291 = vtanh.f32 %v936_v23 }
 0x418   :  { %v941_v26 = vpop.f32.mrb[16].mxu1  ;;  %1293 = vtanh.f32 %v938_v25 }
 0x419   :  { %v942_v27 = vadd.f32 %v941_v26, %v815_v48  ;;  %v943_v28 = vpop.f32.mrb[17].mxu1  ;;  %v1284_v30 = vpop.eup %1283 }
 0x41a   :  { %v944_v29 = vadd.f32 %v943_v28, %v815_v48  ;;  %v1286_v31 = vpop.eup %1285 }
 0x41b   :  { %1295 = vtanh.f32 %v942_v27 }
 0x41c   :  { %1297 = vtanh.f32 %v944_v29  ;;  %v947_v33 = vpop.f32.mrb[18].mxu1 }
 0x41d   :  { %v1288_v10 = vpop.eup %1287  ;;  %v948_v34 = vadd.f32 %v947_v33, %v819_v32  ;;  %v949_v35 = vpop.f32.mrb[19].mxu1 }
 0x41e   :  { %v1290_v36 = vpop.eup %1289  ;;  %v950_v37 = vadd.f32 %v949_v35, %v819_v32  ;;  %v1176_v38 = vpack.c.bf16 %v1288_v10, %v1284_v30 }
 0x41f   :  { %v1174_v39 = vpack.c.bf16 %v1290_v36, %v1286_v31  ;;  %1299 = vtanh.f32 %v948_v34 }
 0x420   :  { %v953_v41 = vpop.f32.mrb[20].mxu1  ;;  %1301 = vtanh.f32 %v950_v37 }
 0x421   :  { %v954_v42 = vadd.f32 %v953_v41, %v823_v40  ;;  %v955_v43 = vpop.f32.mrb[21].mxu1  ;;  %1175 = vmatprep.subr.bf16.mxu0 %v1174_v39  ;;  %v1292_v45 = vpop.eup %1291 }
 0x422   :  { %v956_v44 = vadd.f32 %v955_v43, %v823_v40  ;;  %1177 = vmatpush1.bf16.msra.mxu0 %v1176_v38  ;;  %v1294_v46 = vpop.eup %1293 }
 0x423   :  { %1303 = vtanh.f32 %v954_v42 }
 0x424   :  { %1305 = vtanh.f32 %v956_v44  ;;  %v959_v57 = vpop.f32.mrb[22].mxu1 }
 0x425   :  { %v1296_v58 = vpop.eup %1295  ;;  %v960_v59 = vadd.f32 %v959_v57, %v827_v47  ;;  %v961_v60 = vpop.f32.mrb[23].mxu1 }
 0x426   :  { %v1298_v61 = vpop.eup %1297  ;;  %v962_v62 = vadd.f32 %v961_v60, %v827_v47  ;;  %v1180_v63 = vpack.c.bf16 %v1296_v58, %v1292_v45 }
 0x427   :  { %v1178_v0 = vpack.c.bf16 %v1298_v61, %v1294_v46  ;;  %1307 = vtanh.f32 %v960_v59 }
 0x428   :  { %v965_v2 = vpop.f32.mrb[24].mxu1  ;;  %1309 = vtanh.f32 %v962_v62 }
 0x429   :  { %v966_v4 = vadd.f32 %v965_v2, %v831_v1  ;;  %v967_v5 = vpop.f32.mrb[25].mxu1  ;;  %1179 = vmatprep.subr.bf16.mxu0 %v1178_v0  ;;  %v1300_v8 = vpop.eup %1299 }
 0x42a   :  { %v968_v7 = vadd.f32 %v967_v5, %v831_v1  ;;  %1181 = vmatpush1.bf16.msra.mxu0 %v1180_v63  ;;  %v1302_v9 = vpop.eup %1301 }
 0x42b   :  { %1311 = vtanh.f32 %v966_v4 }
 0x42c   :  { %1313 = vtanh.f32 %v968_v7 }
 0x42d   :  { %v1304_v11 = vpop.eup %1303 }
 0x42e   :  { %v1306_v12 = vpop.eup %1305  ;;  %v1184_v49 = vpack.c.bf16 %v1304_v11, %v1300_v8 }
 0x42f   :  { %v1182_v6 = vpack.c.bf16 %v1306_v12, %v1302_v9 }
 0x431   :  { %1183 = vmatprep.subr.bf16.mxu0 %v1182_v6  ;;  %v1308_v51 = vpop.eup %1307 }
 0x432   :  { %1185 = vmatpush1.bf16.msra.mxu0 %v1184_v49  ;;  %v1310_v13 = vpop.eup %1309 }
 0x435   :  { %v1312_v50 = vpop.eup %1311 }
 0x436   :  { %v1314_v53 = vpop.eup %1313  ;;  %v1188_v52 = vpack.c.bf16 %v1312_v50, %v1308_v51 }
 0x437   :  { %v1186_v14 = vpack.c.bf16 %v1314_v53, %v1310_v13 }
 0x439   :  { %1187 = vmatprep.subr.bf16.mxu0 %v1186_v14 }
 0x43a   :  { %1189 = vmatpush1.bf16.msra.mxu0 %v1188_v52 }
 0x43d   :  { %1137 = vmatmul.mubr.msk.f32.vlgmr.msra.gmra.mrb[24].mxu0 %vm638_vm5, %v986_v54 }
 0x510   :  { %v1060_v19 = vpop.f32.mrb[24].mxu0 }
 0x511   :  { %v1061_v3 = vadd.f32 %v1060_v19, %v989_v17  ;;  %v1062_v20 = vpop.f32.mrb[25].mxu0 }
 0x512   :  { %v1063_v21 = vadd.f32 %v1062_v20, %v989_v17 }
 0x514   :  { %v1067_v23 = vcombine.low %v1061_v3, %v1063_v21 }
 0x516   :  { %v1074_v24 = vrot.slane %v1067_v23, %v1073_v22 }
 0x518   :  { %v1081_v25 = vrot.slane %v1074_v24, %v1073_v22 }
 0x51a   :  { %1087 = vst.msk [vmem:[%s1620_s6] sm:$0x3] %vm1085_vm6, %v1081_v25 }

// kernel: forward.4
= control target key start
LH: loop header
LB: loop body
LE: loop exit
PB: predicated region body
PF: predicated region fallthrough
CT: control target
= control target key end

     0   :  { %vm51_vm0 = vcmask 1044480   ;;  %vm47_vm1 = vcmask 39936   ;;  %v10044_v0 = vmov 0.0   ;;  %vm10045_vm2 = vmmov 0   ;;  %s11515_s1 = inlined_call_operand.vmem [shape: f32[5,64], index: 1, kind: input, shape index: {}]   ;;  %s11516_s0 = inlined_call_operand.vmem [shape: f32[2,5], index: 0, kind: input, shape index: {}]   ;;  %s11517_s4 = inlined_call_operand.vmem [shape: f32[6,64], index: 4, kind: input, shape index: {}]   ;;  %s11518_s2 = inlined_call_operand.vmem [shape: f32[64,64], index: 2, kind: input, shape index: {}]   ;;  %s11519_s3 = inlined_call_operand.vmem [shape: f32[64,5], index: 3, kind: input, shape index: {}]   ;;  %s11520_s5 = inlined_call_operand.vmem [shape: f32[1,5], index: 5, kind: input, shape index: {}]   ;;  %s11521_s6 = inlined_call_operand.vmem [shape: f32[8,2,5], index: 6, kind: output, shape index: {}]  }
   0x1   :  { %7935 = vmatprep.subr.mxu0 %v10044_v0  ;;  %v10086_v1 = vld [vmem:[%s11515_s1] sm:$0x1f]  ;;  %7937 = vmatprep.mubr.msk.f32.mxu0 %vm10045_vm2, %v10044_v0  ;;  %v43_v3 = vlaneseq  ;;  %vm125_vm3 = vcmask 517120   ;;  %v26_v18 = vld [vmem:[%s11518_s2 + $0x8] sm:$0xff]  ;;  %v10046_v20 = vmov 0.0|0.0   ;;  %v27_v21 = vld [vmem:[%s11518_s2 + $0x10] sm:$0xff] }
   0x2   :  { %v10093_v2 = vld [vmem:[%s11516_s0] sm:$0x3]  ;;  %7936 = vmatpush3.msk.msra.mxu0 %vm51_vm0, %v10086_v1  ;;  %7956 = vmatprep.mubr.msk.f32.mxu1 %vm10045_vm2, %v10044_v0  ;;  %v28_v22 = vld [vmem:[%s11518_s2 + $0x18] sm:$0xff]  ;;  %v30_v25 = vld [vmem:[%s11518_s2 + $0x28] sm:$0xff]  ;;  %vm155_vm4 = vcmask 523264   ;;  %vm7221_vm5 = vcmask 33792  }
   0x3   :  { %7938 = vmatmul.mubr.msk.f32.vlgmr.msra.gmra.mrb[0].mxu0 %vm47_vm1, %v10093_v2  ;;  %v10103_v4 = vshrl.u32 %v43_v3, 7  ;;  %v10109_v6 = vld [vmem:[%s11517_s4] sm:$0x3f]  ;;  %9139 = vmatprep.subr.bf16.mxu1 %v10046_v20  ;;  %v10135_v23 = vpack.c.bf16 %v28_v22, %v27_v21  ;;  %v31_v27 = vld [vmem:[%s11518_s2 + $0x30] sm:$0xff]  ;;  %v32_v28 = vld [vmem:[%s11518_s2 + $0x38] sm:$0xff] }
   0x4   :  { %7975 = vmatprep.mubr.msk.f32.mxu0 %vm10045_vm2, %v10044_v0  ;;  %v25_v17 = vld [vmem:[%s11518_s2] sm:$0xff]  ;;  %9151 = vmatprep.subr.bf16.mxu0 %v10046_v20  ;;  %v10154_v29 = vpack.c.bf16 %v32_v28, %v31_v27  ;;  %v34_v54 = vld [vmem:[%s11519_s3 + $0x8] sm:$0xff]  ;;  %v35_v56 = vld [vmem:[%s11519_s3 + $0x10] sm:$0xff]  ;;  %7222 = vst.msk [vmem:[%s11521_s6] sm:$0x3] %vm7221_vm5, %v10093_v2 }
   0x5   :  { %v45_v5 = vsub.s32 0, %v10103_v4  ;;  %v10123_v19 = vpack.c.bf16 %v26_v18, %v25_v17  ;;  %v29_v24 = vld [vmem:[%s11518_s2 + $0x20] sm:$0xff]  ;;  %v142_v33 = vsub.s32 1, %v10103_v4  ;;  %v147_v34 = vsub.s32 2, %v10103_v4  ;;  %v36_v57 = vld [vmem:[%s11519_s3 + $0x18] sm:$0xff]  ;;  %v38_v60 = vld [vmem:[%s11519_s3 + $0x28] sm:$0xff] }
   0x6   :  { %v10145_v26 = vpack.c.bf16 %v30_v25, %v29_v24  ;;  %v153_v42 = vsub.s32 3, %v10103_v4  ;;  %v33_v53 = vld [vmem:[%s11519_s3] sm:$0xff]  ;;  %v10198_v58 = vpack.c.bf16 %v36_v57, %v35_v56  ;;  %v39_v62 = vld [vmem:[%s11519_s3 + $0x30] sm:$0xff]  ;;  %v40_v63 = vld [vmem:[%s11519_s3 + $0x38] sm:$0xff] }
   0x7   :  { %v10112_v7 = vrot.slane %v10109_v6, %v45_v5  ;;  %9141 = vmatpush3.bf16.msra.mxu1 %v10123_v19  ;;  %v10162_v35 = vrot.slane %v10109_v6, %v142_v33  ;;  %v10165_v37 = vrot.slane %v10109_v6, %v147_v34  ;;  %v10188_v55 = vpack.c.bf16 %v34_v54, %v33_v53  ;;  %v37_v59 = vld [vmem:[%s11519_s3 + $0x20] sm:$0xff] }
   0x8   :  { %9142 = vmatprep.subr.bf16.mxu1 %v10046_v20  ;;  %v10177_v43 = vrot.slane %v10109_v6, %v153_v42  ;;  %v10208_v61 = vpack.c.bf16 %v38_v60, %v37_v59  ;;  %v10217_v3 = vpack.c.bf16 %v40_v63, %v39_v62 }
   0x9   :  { %9153 = vmatpush3.bf16.msra.mxu0 %v10188_v55 }
   0xa   :  { %9154 = vmatprep.subr.bf16.mxu0 %v10046_v20 }
   0xb   :  { %9144 = vmatpush3.bf16.msra.mxu1 %v10135_v23 }
   0xc   :  { %9145 = vmatprep.subr.bf16.mxu1 %v10046_v20 }
   0xd   :  { %9156 = vmatpush3.bf16.msra.mxu0 %v10198_v58 }
   0xe   :  { %9157 = vmatprep.subr.bf16.mxu0 %v10046_v20 }
   0xf   :  { %9147 = vmatpush3.bf16.msra.mxu1 %v10145_v26 }
  0x10   :  { %9148 = vmatprep.subr.bf16.mxu1 %v10046_v20 }
  0x11   :  { %9159 = vmatpush3.bf16.msra.mxu0 %v10208_v61 }
  0x12   :  { %9160 = vmatprep.subr.bf16.mxu0 %v10046_v20 }
  0x13   :  { %9150 = vmatpush3.bf16.msra.mxu1 %v10154_v29 }
  0x14   :  { %7978 = vmatprep.subr.mxu1 %v10044_v0 }
  0x15   :  { %9162 = vmatpush3.bf16.msra.mxu0 %v10217_v3 }
  0x16   :  { %9163 = vmatprep.subr.bf16.mxu0 %v10046_v20 }
  0xd6   :  { %v121_v8 = vpop.f32.mrb[0].mxu0 }
  0xd7   :  { %v122_v9 = vadd.f32 %v121_v8, %v10112_v7  ;;  %v7939_v10 = vpop.f32.mrb[1].mxu0 }
  0xd8   :  { %v244_v10 = vsub.s32 4, %v10103_v4 }
  0xd9   :  { %v126_v11 = vsel %vm125_vm3, %v122_v9, 0.0 }
  0xda   :  { %127 = vadd.xlane.f32.xlu0 %v126_v11  ;;  %v249_v11 = vsub.s32 5, %v10103_v4  ;;  %v10246_v4 = vld [vmem:[%s11520_s5] ss:$0 sm:$0xff] }
 0x167   :  { %v128_v12 = vpop.xlane.xlu0 %127 }
 0x168   :  { %v130_v13 = vmul.f32 0.015625, %v128_v12  ;;  %v10225_v12 = vrot.slane %v10109_v6, %v244_v10 }
 0x16a   :  { %v131_v14 = vsub.f32 %v122_v9, %v130_v13 }
 0x16c   :  { %v132_v15 = vmul.f32 %v131_v14, %v131_v14 }
 0x16e   :  { %v133_v16 = vsel %vm125_vm3, %v132_v15, 0.0 }
 0x16f   :  { %134 = vadd.xlane.f32.xlu0 %v133_v16 }
 0x1fc   :  { %v135_v30 = vpop.xlane.xlu0 %134 }
 0x1fd   :  { %v136_v31 = vmul.f32 0.015625, %v135_v30 }
 0x1ff   :  { %v137_v32 = vadd.f32 1e-05, %v136_v31 }
 0x201   :  { %9814 = vrsqrt.f32 %v137_v32 }
 0x20b   :  { %v9815_v36 = vpop.eup %9814 }
 0x20c   :  { %v139_v38 = vmul.f32 %v9815_v36, %v131_v14  ;;  %v10228_v14 = vrot.slane %v10109_v6, %v249_v11 }
 0x20e   :  { %v144_v39 = vmul.f32 %v10162_v35, %v139_v38 }
 0x210   :  { %v149_v40 = vadd.f32 %v10165_v37, %v144_v39 }
 0x212   :  { %9816 = vtanh.f32 %v149_v40 }
 0x21c   :  { %v9817_v41 = vpop.eup %9816 }
 0x21d   :  { %7957 = vmatmul.mubr.msk.f32.vlgmr.msra.gmra.mrb[0].mxu1 %vm155_vm4, %v9817_v41 }
 0x21e   :  { %7979 = vmatpush3.msk.msra.mxu1 %vm51_vm0, %v10086_v1  ;;  %7980 = vmatprep.mubr.msk.f32.mxu1 %vm10045_vm2, %v10044_v0 }
 0x21f   :  { %9175 = vmatprep.subr.bf16.mxu1 %v10046_v20 }
 0x2f0   :  { %v225_v44 = vpop.f32.mrb[0].mxu1 }
 0x2f1   :  { %v226_v45 = vadd.f32 %v225_v44, %v10177_v43  ;;  %v7958_v46 = vpop.f32.mrb[1].mxu1 }
 0x2f3   :  { %v229_v47 = vsel %vm125_vm3, %v226_v45, 0.0 }
 0x2f4   :  { %230 = vadd.xlane.f32.xlu1 %v229_v47 }
 0x381   :  { %v231_v48 = vpop.xlane.xlu1 %230 }
 0x382   :  { %v232_v49 = vmul.f32 0.015625, %v231_v48 }
 0x384   :  { %v233_v50 = vsub.f32 %v226_v45, %v232_v49 }
 0x386   :  { %v234_v51 = vmul.f32 %v233_v50, %v233_v50 }
 0x388   :  { %v235_v52 = vsel %vm125_vm3, %v234_v51, 0.0 }
 0x389   :  { %236 = vadd.xlane.f32.xlu1 %v235_v52 }
 0x416   :  { %v237_v5 = vpop.xlane.xlu1 %236 }
 0x417   :  { %v238_v8 = vmul.f32 0.015625, %v237_v5 }
 0x419   :  { %v239_v9 = vadd.f32 1e-05, %v238_v8 }
 0x41b   :  { %9818 = vrsqrt.f32 %v239_v9 }
 0x425   :  { %v9819_v13 = vpop.eup %9818 }
 0x426   :  { %v241_v15 = vmul.f32 %v9819_v13, %v233_v50 }
 0x428   :  { %v246_v16 = vmul.f32 %v10225_v12, %v241_v15 }
 0x42a   :  { %v251_v17 = vadd.f32 %v10228_v14, %v246_v16 }
 0x42c   :  { %9820 = vtanh.f32 %v251_v17 }
 0x436   :  { %v9821_v18 = vpop.eup %9820 }
 0x437   :  { %7976 = vmatmul.mubr.msk.f32.vlgmr.msra.gmra.mrb[2].mxu0 %vm155_vm4, %v9821_v18 }
 0x438   :  { %9165 = vmatpush3.bf16.msra.mxu0 %v10123_v19  ;;  %7999 = vmatprep.mubr.msk.f32.mxu0 %vm10045_vm2, %v10044_v0 }
 0x439   :  { %9166 = vmatprep.subr.bf16.mxu0 %v10046_v20 }
 0x43c   :  { %9168 = vmatpush3.bf16.msra.mxu0 %v10135_v23 }
 0x43d   :  { %9169 = vmatprep.subr.bf16.mxu0 %v10046_v20 }
 0x440   :  { %9171 = vmatpush3.bf16.msra.mxu0 %v10145_v26 }
 0x441   :  { %9172 = vmatprep.subr.bf16.mxu0 %v10046_v20 }
 0x444   :  { %9174 = vmatpush3.bf16.msra.mxu0 %v10154_v29 }
 0x445   :  { %8021 = vmatprep.subr.mxu0 %v10044_v0 }
 0x50a   :  { %v328_v6 = vpop.f32.mrb[2].mxu0 }
 0x50b   :  { %v10249_v21 = vadd.f32 %v10246_v4, %v328_v6  ;;  %v7977_v22 = vpop.f32.mrb[3].mxu0 }
 0x50d   :  { %v332_v24 = vmul.f32 0.033333335, %v10249_v21  ;;  %v585_v15 = vmul.f32 0.33333334, %v10249_v21 }
 0x50f   :  { %v333_v25 = vadd.f32 %v332_v24, %v10093_v2 }
 0x511   :  { %7981 = vmatmul.mubr.msk.f32.vlgmr.msra.gmra.mrb[2].mxu1 %vm47_vm1, %v333_v25 }
 0x512   :  { %9177 = vmatpush3.bf16.msra.mxu1 %v10188_v55  ;;  %8018 = vmatprep.mubr.msk.f32.mxu1 %vm10045_vm2, %v10044_v0 }
 0x513   :  { %9178 = vmatprep.subr.bf16.mxu1 %v10046_v20 }
 0x516   :  { %9180 = vmatpush3.bf16.msra.mxu1 %v10198_v58 }
 0x517   :  { %9181 = vmatprep.subr.bf16.mxu1 %v10046_v20 }
 0x51a   :  { %9183 = vmatpush3.bf16.msra.mxu1 %v10208_v61 }
 0x51b   :  { %9184 = vmatprep.subr.bf16.mxu1 %v10046_v20 }
 0x51e   :  { %9186 = vmatpush3.bf16.msra.mxu1 %v10217_v3 }
 0x51f   :  { %9187 = vmatprep.subr.bf16.mxu1 %v10046_v20 }
 0x5e4   :  { %v403_v27 = vpop.f32.mrb[2].mxu1 }
 0x5e5   :  { %v404_v28 = vadd.f32 %v403_v27, %v10112_v7  ;;  %v7982_v30 = vpop.f32.mrb[3].mxu1 }
 0x5e7   :  { %v407_v31 = vsel %vm125_vm3, %v404_v28, 0.0 }
 0x5e8   :  { %408 = vadd.xlane.f32.xlu0 %v407_v31 }
 0x675   :  { %v409_v32 = vpop.xlane.xlu0 %408 }
 0x676   :  { %v410_v33 = vmul.f32 0.015625, %v409_v32 }
 0x678   :  { %v411_v34 = vsub.f32 %v404_v28, %v410_v33 }
 0x67a   :  { %v412_v36 = vmul.f32 %v411_v34, %v411_v34 }
 0x67c   :  { %v413_v38 = vsel %vm125_vm3, %v412_v36, 0.0 }
 0x67d   :  { %414 = vadd.xlane.f32.xlu1 %v413_v38 }
 0x70a   :  { %v415_v39 = vpop.xlane.xlu1 %414 }
 0x70b   :  { %v416_v40 = vmul.f32 0.015625, %v415_v39 }
 0x70d   :  { %v417_v41 = vadd.f32 1e-05, %v416_v40 }
 0x70f   :  { %9822 = vrsqrt.f32 %v417_v41 }
 0x719   :  { %v9823_v42 = vpop.eup %9822 }
 0x71a   :  { %v419_v44 = vmul.f32 %v9823_v42, %v411_v34 }
 0x71c   :  { %v420_v45 = vmul.f32 %v419_v44, %v10162_v35 }
 0x71e   :  { %v421_v46 = vadd.f32 %v420_v45, %v10165_v37 }
 0x720   :  { %9824 = vtanh.f32 %v421_v46 }
 0x72a   :  { %v9825_v47 = vpop.eup %9824 }
 0x72b   :  { %8000 = vmatmul.mubr.msk.f32.vlgmr.msra.gmra.mrb[4].mxu0 %vm155_vm4, %v9825_v47 }
 0x72c   :  { %8022 = vmatpush3.msk.msra.mxu0 %vm51_vm0, %v10086_v1  ;;  %8023 = vmatprep.mubr.msk.f32.mxu0 %vm10045_vm2, %v10044_v0 }
 0x72d   :  { %9199 = vmatprep.subr.bf16.mxu0 %v10046_v20 }
 0x7fe   :  { %v492_v48 = vpop.f32.mrb[4].mxu0 }
 0x7ff   :  { %v493_v49 = vadd.f32 %v492_v48, %v10177_v43  ;;  %v8001_v50 = vpop.f32.mrb[5].mxu0 }
 0x801   :  { %v496_v51 = vsel %vm125_vm3, %v493_v49, 0.0 }
 0x802   :  { %497 = vadd.xlane.f32.xlu0 %v496_v51 }
 0x88f   :  { %v498_v52 = vpop.xlane.xlu0 %497 }
 0x890   :  { %v499_v53 = vmul.f32 0.015625, %v498_v52 }
 0x892   :  { %v500_v54 = vsub.f32 %v493_v49, %v499_v53 }
 0x894   :  { %v501_v56 = vmul.f32 %v500_v54, %v500_v54 }
 0x896   :  { %v502_v57 = vsel %vm125_vm3, %v501_v56, 0.0 }
 0x897   :  { %503 = vadd.xlane.f32.xlu1 %v502_v57 }
 0x924   :  { %v504_v59 = vpop.xlane.xlu1 %503 }
 0x925   :  { %v505_v60 = vmul.f32 0.015625, %v504_v59 }
 0x927   :  { %v506_v62 = vadd.f32 1e-05, %v505_v60 }
 0x929   :  { %9826 = vrsqrt.f32 %v506_v62 }
 0x933   :  { %v9827_v63 = vpop.eup %9826 }
 0x934   :  { %v508_v5 = vmul.f32 %v9827_v63, %v500_v54 }
 0x936   :  { %v509_v8 = vmul.f32 %v508_v5, %v10225_v12 }
 0x938   :  { %v510_v9 = vadd.f32 %v509_v8, %v10228_v14 }
 0x93a   :  { %9828 = vtanh.f32 %v510_v9 }
 0x944   :  { %v9829_v10 = vpop.eup %9828 }
 0x945   :  { %8019 = vmatmul.mubr.msk.f32.vlgmr.msra.gmra.mrb[4].mxu1 %vm155_vm4, %v9829_v10 }
 0x946   :  { %9189 = vmatpush3.bf16.msra.mxu1 %v10123_v19  ;;  %8042 = vmatprep.mubr.msk.f32.mxu1 %vm10045_vm2, %v10044_v0 }
 0x947   :  { %9190 = vmatprep.subr.bf16.mxu1 %v10046_v20 }
 0x94a   :  { %9192 = vmatpush3.bf16.msra.mxu1 %v10135_v23 }
 0x94b   :  { %9193 = vmatprep.subr.bf16.mxu1 %v10046_v20 }
 0x94e   :  { %9195 = vmatpush3.bf16.msra.mxu1 %v10145_v26 }
 0x94f   :  { %9196 = vmatprep.subr.bf16.mxu1 %v10046_v20 }
 0x952   :  { %9198 = vmatpush3.bf16.msra.mxu1 %v10154_v29 }
 0x953   :  { %8064 = vmatprep.subr.mxu1 %v10044_v0 }
 0xa18   :  { %v581_v11 = vpop.f32.mrb[4].mxu1 }
 0xa19   :  { %v10292_v13 = vadd.f32 %v10246_v4, %v581_v11  ;;  %v8020_v16 = vpop.f32.mrb[5].mxu1 }
 0xa1b   :  { %v586_v17 = vsub.f32 %v10292_v13, %v585_v15  ;;  %v840_v10 = vsub.f32 %v10249_v21, %v10292_v13 }
 0xa1d   :  { %v587_v18 = vmul.f32 0.1, %v586_v17 }
 0xa1f   :  { %v588_v6 = vadd.f32 %v587_v18, %v10093_v2 }
 0xa21   :  { %8024 = vmatmul.mubr.msk.f32.vlgmr.msra.gmra.mrb[6].mxu0 %vm47_vm1, %v588_v6 }
 0xa22   :  { %9201 = vmatpush3.bf16.msra.mxu0 %v10188_v55  ;;  %8061 = vmatprep.mubr.msk.f32.mxu0 %vm10045_vm2, %v10044_v0 }
 0xa23   :  { %9202 = vmatprep.subr.bf16.mxu0 %v10046_v20 }
 0xa26   :  { %9204 = vmatpush3.bf16.msra.mxu0 %v10198_v58 }
 0xa27   :  { %9205 = vmatprep.subr.bf16.mxu0 %v10046_v20 }
 0xa2a   :  { %9207 = vmatpush3.bf16.msra.mxu0 %v10208_v61 }
 0xa2b   :  { %9208 = vmatprep.subr.bf16.mxu0 %v10046_v20 }
 0xa2e   :  { %9210 = vmatpush3.bf16.msra.mxu0 %v10217_v3 }
 0xa2f   :  { %9211 = vmatprep.subr.bf16.mxu0 %v10046_v20 }
 0xaf4   :  { %v658_v22 = vpop.f32.mrb[6].mxu0 }
 0xaf5   :  { %v659_v24 = vadd.f32 %v658_v22, %v10112_v7  ;;  %v8025_v25 = vpop.f32.mrb[7].mxu0 }
 0xaf7   :  { %v662_v27 = vsel %vm125_vm3, %v659_v24, 0.0 }
 0xaf8   :  { %663 = vadd.xlane.f32.xlu0 %v662_v27 }
 0xb85   :  { %v664_v28 = vpop.xlane.xlu0 %663 }
 0xb86   :  { %v665_v30 = vmul.f32 0.015625, %v664_v28 }
 0xb88   :  { %v666_v31 = vsub.f32 %v659_v24, %v665_v30 }
 0xb8a   :  { %v667_v32 = vmul.f32 %v666_v31, %v666_v31 }
 0xb8c   :  { %v668_v33 = vsel %vm125_vm3, %v667_v32, 0.0 }
 0xb8d   :  { %669 = vadd.xlane.f32.xlu1 %v668_v33 }
 0xc1a   :  { %v670_v34 = vpop.xlane.xlu1 %669 }
 0xc1b   :  { %v671_v36 = vmul.f32 0.015625, %v670_v34 }
 0xc1d   :  { %v672_v38 = vadd.f32 1e-05, %v671_v36 }
 0xc1f   :  { %9830 = vrsqrt.f32 %v672_v38 }
 0xc29   :  { %v9831_v39 = vpop.eup %9830 }
 0xc2a   :  { %v674_v40 = vmul.f32 %v9831_v39, %v666_v31 }
 0xc2c   :  { %v675_v41 = vmul.f32 %v674_v40, %v10162_v35 }
 0xc2e   :  { %v676_v42 = vadd.f32 %v675_v41, %v10165_v37 }
 0xc30   :  { %9832 = vtanh.f32 %v676_v42 }
 0xc3a   :  { %v9833_v44 = vpop.eup %9832 }
 0xc3b   :  { %8043 = vmatmul.mubr.msk.f32.vlgmr.msra.gmra.mrb[6].mxu1 %vm155_vm4, %v9833_v44 }
 0xc3c   :  { %8065 = vmatpush3.msk.msra.mxu1 %vm51_vm0, %v10086_v1  ;;  %8066 = vmatprep.mubr.msk.f32.mxu1 %vm10045_vm2, %v10044_v0 }
 0xc3d   :  { %9223 = vmatprep.subr.bf16.mxu1 %v10046_v20 }
 0xd0e   :  { %v747_v45 = vpop.f32.mrb[6].mxu1 }
 0xd0f   :  { %v748_v46 = vadd.f32 %v747_v45, %v10177_v43  ;;  %v8044_v47 = vpop.f32.mrb[7].mxu1 }
 0xd11   :  { %v751_v48 = vsel %vm125_vm3, %v748_v46, 0.0 }
 0xd12   :  { %752 = vadd.xlane.f32.xlu0 %v751_v48 }
 0xd9f   :  { %v753_v49 = vpop.xlane.xlu0 %752 }
 0xda0   :  { %v754_v50 = vmul.f32 0.015625, %v753_v49 }
 0xda2   :  { %v755_v51 = vsub.f32 %v748_v46, %v754_v50 }
 0xda4   :  { %v756_v52 = vmul.f32 %v755_v51, %v755_v51 }
 0xda6   :  { %v757_v53 = vsel %vm125_vm3, %v756_v52, 0.0 }
 0xda7   :  { %758 = vadd.xlane.f32.xlu1 %v757_v53 }
 0xe34   :  { %v759_v54 = vpop.xlane.xlu1 %758 }
 0xe35   :  { %v760_v56 = vmul.f32 0.015625, %v759_v54 }
 0xe37   :  { %v761_v57 = vadd.f32 1e-05, %v760_v56 }
 0xe39   :  { %9834 = vrsqrt.f32 %v761_v57 }
 0xe43   :  { %v9835_v59 = vpop.eup %9834 }
 0xe44   :  { %v763_v60 = vmul.f32 %v9835_v59, %v755_v51 }
 0xe46   :  { %v764_v62 = vmul.f32 %v763_v60, %v10225_v12 }
 0xe48   :  { %v765_v63 = vadd.f32 %v764_v62, %v10228_v14 }
 0xe4a   :  { %9836 = vtanh.f32 %v765_v63 }
 0xe54   :  { %v9837_v5 = vpop.eup %9836 }
 0xe55   :  { %8062 = vmatmul.mubr.msk.f32.vlgmr.msra.gmra.mrb[8].mxu0 %vm155_vm4, %v9837_v5 }
 0xe56   :  { %9213 = vmatpush3.bf16.msra.mxu0 %v10123_v19  ;;  %8085 = vmatprep.mubr.msk.f32.mxu0 %vm10045_vm2, %v10044_v0 }
 0xe57   :  { %9214 = vmatprep.subr.bf16.mxu0 %v10046_v20 }
 0xe5a   :  { %9216 = vmatpush3.bf16.msra.mxu0 %v10135_v23 }
 0xe5b   :  { %9217 = vmatprep.subr.bf16.mxu0 %v10046_v20 }
 0xe5e   :  { %9219 = vmatpush3.bf16.msra.mxu0 %v10145_v26 }
 0xe5f   :  { %9220 = vmatprep.subr.bf16.mxu0 %v10046_v20 }
 0xe62   :  { %9222 = vmatpush3.bf16.msra.mxu0 %v10154_v29 }
 0xe63   :  { %8107 = vmatprep.subr.mxu0 %v10044_v0 }
 0xf28   :  { %v836_v8 = vpop.f32.mrb[8].mxu0 }
 0xf29   :  { %v10336_v9 = vadd.f32 %v10246_v4, %v836_v8  ;;  %v8063_v11 = vpop.f32.mrb[9].mxu0 }
 0xf2b   :  { %v841_v15 = vadd.f32 %v840_v10, %v10336_v9  ;;  %v1095_v63 = vadd.f32 %v10336_v9, %v10292_v13 }
 0xf2d   :  { %v842_v16 = vmul.f32 0.1, %v841_v15  ;;  %v1096_v5 = vmul.f32 3.0, %v1095_v63 }
 0xf2f   :  { %v843_v17 = vadd.f32 %v842_v16, %v10093_v2  ;;  %v1097_v11 = vadd.f32 %v1096_v5, %v10249_v21 }
 0xf31   :  { %8067 = vmatmul.mubr.msk.f32.vlgmr.msra.gmra.mrb[8].mxu1 %vm47_vm1, %v843_v17 }
 0xf32   :  { %9225 = vmatpush3.bf16.msra.mxu1 %v10188_v55  ;;  %8104 = vmatprep.mubr.msk.f32.mxu1 %vm10045_vm2, %v10044_v0 }
 0xf33   :  { %9226 = vmatprep.subr.bf16.mxu1 %v10046_v20 }
 0xf36   :  { %9228 = vmatpush3.bf16.msra.mxu1 %v10198_v58 }
 0xf37   :  { %9229 = vmatprep.subr.bf16.mxu1 %v10046_v20 }
 0xf3a   :  { %9231 = vmatpush3.bf16.msra.mxu1 %v10208_v61 }
 0xf3b   :  { %9232 = vmatprep.subr.bf16.mxu1 %v10046_v20 }
 0xf3e   :  { %9234 = vmatpush3.bf16.msra.mxu1 %v10217_v3 }
 0xf3f   :  { %9235 = vmatprep.subr.bf16.mxu1 %v10046_v20 }
0x1004   :  { %v913_v18 = vpop.f32.mrb[8].mxu1 }
0x1005   :  { %v914_v6 = vadd.f32 %v913_v18, %v10112_v7  ;;  %v8068_v22 = vpop.f32.mrb[9].mxu1 }
0x1007   :  { %v917_v24 = vsel %vm125_vm3, %v914_v6, 0.0 }
0x1008   :  { %918 = vadd.xlane.f32.xlu0 %v917_v24 }
0x1095   :  { %v919_v25 = vpop.xlane.xlu0 %918 }
0x1096   :  { %v920_v27 = vmul.f32 0.015625, %v919_v25 }
0x1098   :  { %v921_v28 = vsub.f32 %v914_v6, %v920_v27 }
0x109a   :  { %v922_v30 = vmul.f32 %v921_v28, %v921_v28 }
0x109c   :  { %v923_v31 = vsel %vm125_vm3, %v922_v30, 0.0 }
0x109d   :  { %924 = vadd.xlane.f32.xlu1 %v923_v31 }
0x112a   :  { %v925_v32 = vpop.xlane.xlu1 %924 }
0x112b   :  { %v926_v33 = vmul.f32 0.015625, %v925_v32 }
0x112d   :  { %v927_v34 = vadd.f32 1e-05, %v926_v33 }
0x112f   :  { %9838 = vrsqrt.f32 %v927_v34 }
0x1139   :  { %v9839_v36 = vpop.eup %9838 }
0x113a   :  { %v929_v38 = vmul.f32 %v9839_v36, %v921_v28 }
0x113c   :  { %v930_v39 = vmul.f32 %v929_v38, %v10162_v35 }
0x113e   :  { %v931_v40 = vadd.f32 %v930_v39, %v10165_v37 }
0x1140   :  { %9840 = vtanh.f32 %v931_v40 }
0x114a   :  { %v9841_v41 = vpop.eup %9840 }
0x114b   :  { %8086 = vmatmul.mubr.msk.f32.vlgmr.msra.gmra.mrb[10].mxu0 %vm155_vm4, %v9841_v41 }
0x114c   :  { %8108 = vmatpush3.msk.msra.mxu0 %vm51_vm0, %v10086_v1  ;;  %8109 = vmatprep.mubr.msk.f32.mxu0 %vm10045_vm2, %v10044_v0 }
0x114d   :  { %9247 = vmatprep.subr.bf16.mxu0 %v10046_v20 }
0x121e   :  { %v1002_v42 = vpop.f32.mrb[10].mxu0 }
0x121f   :  { %v1003_v44 = vadd.f32 %v1002_v42, %v10177_v43  ;;  %v8087_v45 = vpop.f32.mrb[11].mxu0 }
0x1221   :  { %v1006_v46 = vsel %vm125_vm3, %v1003_v44, 0.0 }
0x1222   :  { %1007 = vadd.xlane.f32.xlu0 %v1006_v46 }
0x12af   :  { %v1008_v47 = vpop.xlane.xlu0 %1007 }
0x12b0   :  { %v1009_v48 = vmul.f32 0.015625, %v1008_v47 }
0x12b2   :  { %v1010_v49 = vsub.f32 %v1003_v44, %v1009_v48 }
0x12b4   :  { %v1011_v50 = vmul.f32 %v1010_v49, %v1010_v49 }
0x12b6   :  { %v1012_v51 = vsel %vm125_vm3, %v1011_v50, 0.0 }
0x12b7   :  { %1013 = vadd.xlane.f32.xlu1 %v1012_v51 }
0x1344   :  { %v1014_v52 = vpop.xlane.xlu1 %1013 }
0x1345   :  { %v1015_v53 = vmul.f32 0.015625, %v1014_v52 }
0x1347   :  { %v1016_v54 = vadd.f32 1e-05, %v1015_v53 }
0x1349   :  { %9842 = vrsqrt.f32 %v1016_v54 }
0x1353   :  { %v9843_v56 = vpop.eup %9842 }
0x1354   :  { %v1018_v57 = vmul.f32 %v9843_v56, %v1010_v49 }
0x1356   :  { %v1019_v59 = vmul.f32 %v1018_v57, %v10225_v12 }
0x1358   :  { %v1020_v60 = vadd.f32 %v1019_v59, %v10228_v14 }
0x135a   :  { %9844 = vtanh.f32 %v1020_v60 }
0x1364   :  { %v9845_v62 = vpop.eup %9844 }
0x1365   :  { %8105 = vmatmul.mubr.msk.f32.vlgmr.msra.gmra.mrb[10].mxu1 %vm155_vm4, %v9845_v62 }
0x1366   :  { %9237 = vmatpush3.bf16.msra.mxu1 %v10123_v19  ;;  %8128 = vmatprep.mubr.msk.f32.mxu1 %vm10045_vm2, %v10044_v0 }
0x1367   :  { %9238 = vmatprep.subr.bf16.mxu1 %v10046_v20 }
0x136a   :  { %9240 = vmatpush3.bf16.msra.mxu1 %v10135_v23 }
0x136b   :  { %9241 = vmatprep.subr.bf16.mxu1 %v10046_v20 }
0x136e   :  { %9243 = vmatpush3.bf16.msra.mxu1 %v10145_v26 }
0x136f   :  { %9244 = vmatprep.subr.bf16.mxu1 %v10046_v20 }
0x1372   :  { %9246 = vmatpush3.bf16.msra.mxu1 %v10154_v29 }
0x1373   :  { %8150 = vmatprep.subr.mxu1 %v10044_v0 }
0x1438   :  { %v1091_v8 = vpop.f32.mrb[10].mxu1 }
0x1439   :  { %v1092_v10 = vadd.f32 %v10246_v4, %v1091_v8  ;;  %v8106_v15 = vpop.f32.mrb[11].mxu1 }
0x143b   :  { %v1098_v16 = vadd.f32 %v1097_v11, %v1092_v10 }
0x143d   :  { %v1099_v17 = vmul.f32 0.0125, %v1098_v16 }
0x143f   :  { %v10390_v18 = vadd.f32 %v1099_v17, %v10093_v2 }
0x1441   :  { %v7223_v6 = vsub.f32 %v10390_v18, %v10093_v2  ;;  %8110 = vmatmul.mubr.msk.f32.vlgmr.msra.gmra.mrb[12].mxu0 %vm47_vm1, %v10390_v18 }
0x1442   :  { %9249 = vmatpush3.bf16.msra.mxu0 %v10188_v55  ;;  %8147 = vmatprep.mubr.msk.f32.mxu0 %vm10045_vm2, %v10044_v0 }
0x1443   :  { %v7224_v13 = vadd.f32 %v7223_v6, %v10093_v2  ;;  %9250 = vmatprep.subr.bf16.mxu0 %v10046_v20 }
0x1445   :  { %7368 = vst.msk [vmem:[%s11521_s6 + $0x2] sm:$0x3] %vm7221_vm5, %v7224_v13 }
0x1446   :  { %9252 = vmatpush3.bf16.msra.mxu0 %v10198_v58 }
0x1447   :  { %9253 = vmatprep.subr.bf16.mxu0 %v10046_v20 }
0x144a   :  { %9255 = vmatpush3.bf16.msra.mxu0 %v10208_v61 }
0x144b   :  { %9256 = vmatprep.subr.bf16.mxu0 %v10046_v20 }
0x144e   :  { %9258 = vmatpush3.bf16.msra.mxu0 %v10217_v3 }
0x144f   :  { %9259 = vmatprep.subr.bf16.mxu0 %v10046_v20 }
0x1514   :  { %v1170_v2 = vpop.f32.mrb[12].mxu0 }
0x1515   :  { %v1171_v21 = vadd.f32 %v1170_v2, %v10112_v7  ;;  %v8111_v9 = vpop.f32.mrb[13].mxu0 }
0x1517   :  { %v1174_v22 = vsel %vm125_vm3, %v1171_v21, 0.0 }
0x1518   :  { %1175 = vadd.xlane.f32.xlu0 %v1174_v22 }
0x15a5   :  { %v1176_v24 = vpop.xlane.xlu0 %1175 }
0x15a6   :  { %v1177_v25 = vmul.f32 0.015625, %v1176_v24 }
0x15a8   :  { %v1178_v27 = vsub.f32 %v1171_v21, %v1177_v25 }
0x15aa   :  { %v1179_v28 = vmul.f32 %v1178_v27, %v1178_v27 }
0x15ac   :  { %v1180_v30 = vsel %vm125_vm3, %v1179_v28, 0.0 }
0x15ad   :  { %1181 = vadd.xlane.f32.xlu1 %v1180_v30 }
0x163a   :  { %v1182_v31 = vpop.xlane.xlu1 %1181 }
0x163b   :  { %v1183_v32 = vmul.f32 0.015625, %v1182_v31 }
0x163d   :  { %v1184_v33 = vadd.f32 1e-05, %v1183_v32 }
0x163f   :  { %9846 = vrsqrt.f32 %v1184_v33 }
0x1649   :  { %v9847_v34 = vpop.eup %9846 }
0x164a   :  { %v1186_v36 = vmul.f32 %v9847_v34, %v1178_v27 }
0x164c   :  { %v1187_v38 = vmul.f32 %v1186_v36, %v10162_v35 }
0x164e   :  { %v1188_v39 = vadd.f32 %v1187_v38, %v10165_v37 }
0x1650   :  { %9848 = vtanh.f32 %v1188_v39 }
0x165a   :  { %v9849_v40 = vpop.eup %9848 }
0x165b   :  { %8129 = vmatmul.mubr.msk.f32.vlgmr.msra.gmra.mrb[12].mxu1 %vm155_vm4, %v9849_v40 }
0x165c   :  { %8151 = vmatpush3.msk.msra.mxu1 %vm51_vm0, %v10086_v1  ;;  %8152 = vmatprep.mubr.msk.f32.mxu1 %vm10045_vm2, %v10044_v0 }
0x165d   :  { %9271 = vmatprep.subr.bf16.mxu1 %v10046_v20 }
0x172e   :  { %v1259_v41 = vpop.f32.mrb[12].mxu1 }
0x172f   :  { %v1260_v42 = vadd.f32 %v1259_v41, %v10177_v43  ;;  %v8130_v44 = vpop.f32.mrb[13].mxu1 }
0x1731   :  { %v1263_v45 = vsel %vm125_vm3, %v1260_v42, 0.0 }
0x1732   :  { %1264 = vadd.xlane.f32.xlu0 %v1263_v45 }
0x17bf   :  { %v1265_v46 = vpop.xlane.xlu0 %1264 }
0x17c0   :  { %v1266_v47 = vmul.f32 0.015625, %v1265_v46 }
0x17c2   :  { %v1267_v48 = vsub.f32 %v1260_v42, %v1266_v47 }
0x17c4   :  { %v1268_v49 = vmul.f32 %v1267_v48, %v1267_v48 }
0x17c6   :  { %v1269_v50 = vsel %vm125_vm3, %v1268_v49, 0.0 }
0x17c7   :  { %1270 = vadd.xlane.f32.xlu1 %v1269_v50 }
0x1854   :  { %v1271_v51 = vpop.xlane.xlu1 %1270 }
0x1855   :  { %v1272_v52 = vmul.f32 0.015625, %v1271_v51 }
0x1857   :  { %v1273_v53 = vadd.f32 1e-05, %v1272_v52 }
0x1859   :  { %9850 = vrsqrt.f32 %v1273_v53 }
0x1863   :  { %v9851_v54 = vpop.eup %9850 }
0x1864   :  { %v1275_v56 = vmul.f32 %v9851_v54, %v1267_v48 }
0x1866   :  { %v1276_v57 = vmul.f32 %v1275_v56, %v10225_v12 }
0x1868   :  { %v1277_v59 = vadd.f32 %v1276_v57, %v10228_v14 }
0x186a   :  { %9852 = vtanh.f32 %v1277_v59 }
0x1874   :  { %v9853_v60 = vpop.eup %9852 }
0x1875   :  { %8148 = vmatmul.mubr.msk.f32.vlgmr.msra.gmra.mrb[14].mxu0 %vm155_vm4, %v9853_v60 }
0x1876   :  { %9261 = vmatpush3.bf16.msra.mxu0 %v10123_v19  ;;  %8171 = vmatprep.mubr.msk.f32.mxu0 %vm10045_vm2, %v10044_v0 }
0x1877   :  { %9262 = vmatprep.subr.bf16.mxu0 %v10046_v20 }
0x187a   :  { %9264 = vmatpush3.bf16.msra.mxu0 %v10135_v23 }
0x187b   :  { %9265 = vmatprep.subr.bf16.mxu0 %v10046_v20 }
0x187e   :  { %9267 = vmatpush3.bf16.msra.mxu0 %v10145_v26 }
0x187f   :  { %9268 = vmatprep.subr.bf16.mxu0 %v10046_v20 }
0x1882   :  { %9270 = vmatpush3.bf16.msra.mxu0 %v10154_v29 }
0x1883   :  { %8193 = vmatprep.subr.mxu0 %v10044_v0 }
0x1948   :  { %v1348_v62 = vpop.f32.mrb[14].mxu0 }
0x1949   :  { %v10439_v63 = vadd.f32 %v10246_v4, %v1348_v62  ;;  %v8149_v5 = vpop.f32.mrb[15].mxu0 }
0x194b   :  { %v1352_v8 = vmul.f32 0.033333335, %v10439_v63  ;;  %v1605_v54 = vmul.f32 0.33333334, %v10439_v63 }
0x194d   :  { %v1353_v10 = vadd.f32 %v1352_v8, %v10390_v18 }
0x194f   :  { %8153 = vmatmul.mubr.msk.f32.vlgmr.msra.gmra.mrb[14].mxu1 %vm47_vm1, %v1353_v10 }
0x1950   :  { %9273 = vmatpush3.bf16.msra.mxu1 %v10188_v55  ;;  %8190 = vmatprep.mubr.msk.f32.mxu1 %vm10045_vm2, %v10044_v0 }
0x1951   :  { %9274 = vmatprep.subr.bf16.mxu1 %v10046_v20 }
0x1954   :  { %9276 = vmatpush3.bf16.msra.mxu1 %v10198_v58 }
0x1955   :  { %9277 = vmatprep.subr.bf16.mxu1 %v10046_v20 }
0x1958   :  { %9279 = vmatpush3.bf16.msra.mxu1 %v10208_v61 }
0x1959   :  { %9280 = vmatprep.subr.bf16.mxu1 %v10046_v20 }
0x195c   :  { %9282 = vmatpush3.bf16.msra.mxu1 %v10217_v3 }
0x195d   :  { %9283 = vmatprep.subr.bf16.mxu1 %v10046_v20 }
0x1a22   :  { %v1423_v11 = vpop.f32.mrb[14].mxu1 }
0x1a23   :  { %v1424_v15 = vadd.f32 %v1423_v11, %v10112_v7  ;;  %v8154_v16 = vpop.f32.mrb[15].mxu1 }
0x1a25   :  { %v1427_v17 = vsel %vm125_vm3, %v1424_v15, 0.0 }
0x1a26   :  { %1428 = vadd.xlane.f32.xlu0 %v1427_v17 }
0x1ab3   :  { %v1429_v6 = vpop.xlane.xlu0 %1428 }
0x1ab4   :  { %v1430_v13 = vmul.f32 0.015625, %v1429_v6 }
0x1ab6   :  { %v1431_v2 = vsub.f32 %v1424_v15, %v1430_v13 }
0x1ab8   :  { %v1432_v21 = vmul.f32 %v1431_v2, %v1431_v2 }
0x1aba   :  { %v1433_v9 = vsel %vm125_vm3, %v1432_v21, 0.0 }
0x1abb   :  { %1434 = vadd.xlane.f32.xlu1 %v1433_v9 }
0x1b48   :  { %v1435_v22 = vpop.xlane.xlu1 %1434 }
0x1b49   :  { %v1436_v24 = vmul.f32 0.015625, %v1435_v22 }
0x1b4b   :  { %v1437_v25 = vadd.f32 1e-05, %v1436_v24 }
0x1b4d   :  { %9854 = vrsqrt.f32 %v1437_v25 }
0x1b57   :  { %v9855_v27 = vpop.eup %9854 }
0x1b58   :  { %v1439_v28 = vmul.f32 %v9855_v27, %v1431_v2 }
0x1b5a   :  { %v1440_v30 = vmul.f32 %v1439_v28, %v10162_v35  ;;  %v10507_v28 = vld [vmem:[%s11515_s1] sm:$0x1f] }
0x1b5c   :  { %v1441_v31 = vadd.f32 %v1440_v30, %v10165_v37 }
0x1b5e   :  { %9856 = vtanh.f32 %v1441_v31 }
0x1b68   :  { %v9857_v32 = vpop.eup %9856 }
0x1b69   :  { %8172 = vmatmul.mubr.msk.f32.vlgmr.msra.gmra.mrb[16].mxu0 %vm155_vm4, %v9857_v32 }
0x1b6a   :  { %8194 = vmatpush3.msk.msra.mxu0 %vm51_vm0, %v10086_v1  ;;  %8195 = vmatprep.mubr.msk.f32.mxu0 %vm10045_vm2, %v10044_v0 }
0x1b6b   :  { %9295 = vmatprep.subr.bf16.mxu0 %v10046_v20 }
0x1c3c   :  { %v1512_v33 = vpop.f32.mrb[16].mxu0 }
0x1c3d   :  { %v1513_v34 = vadd.f32 %v1512_v33, %v10177_v43  ;;  %v8173_v36 = vpop.f32.mrb[17].mxu0 }
0x1c3f   :  { %v1516_v38 = vsel %vm125_vm3, %v1513_v34, 0.0 }
0x1c40   :  { %1517 = vadd.xlane.f32.xlu0 %v1516_v38 }
0x1ccd   :  { %v1518_v39 = vpop.xlane.xlu0 %1517 }
0x1cce   :  { %v1519_v40 = vmul.f32 0.015625, %v1518_v39 }
0x1cd0   :  { %v1520_v41 = vsub.f32 %v1513_v34, %v1519_v40 }
0x1cd2   :  { %v1521_v42 = vmul.f32 %v1520_v41, %v1520_v41 }
0x1cd4   :  { %v1522_v44 = vsel %vm125_vm3, %v1521_v42, 0.0 }
0x1cd5   :  { %1523 = vadd.xlane.f32.xlu1 %v1522_v44 }
0x1d62   :  { %v1524_v1 = vpop.xlane.xlu1 %1523 }
0x1d63   :  { %v1525_v45 = vmul.f32 0.015625, %v1524_v1 }
0x1d65   :  { %v1526_v46 = vadd.f32 1e-05, %v1525_v45 }
0x1d67   :  { %9858 = vrsqrt.f32 %v1526_v46 }
0x1d71   :  { %v9859_v47 = vpop.eup %9858 }
0x1d72   :  { %v1528_v48 = vmul.f32 %v9859_v47, %v1520_v41 }
0x1d74   :  { %v1529_v49 = vmul.f32 %v1528_v48, %v10225_v12 }
0x1d76   :  { %v1530_v50 = vadd.f32 %v1529_v49, %v10228_v14 }
0x1d78   :  { %9860 = vtanh.f32 %v1530_v50 }
0x1d82   :  { %v9861_v51 = vpop.eup %9860 }
0x1d83   :  { %8191 = vmatmul.mubr.msk.f32.vlgmr.msra.gmra.mrb[16].mxu1 %vm155_vm4, %v9861_v51 }
0x1d84   :  { %9285 = vmatpush3.bf16.msra.mxu1 %v10123_v19  ;;  %8214 = vmatprep.mubr.msk.f32.mxu1 %vm10045_vm2, %v10044_v0 }
0x1d85   :  { %9286 = vmatprep.subr.bf16.mxu1 %v10046_v20 }
0x1d88   :  { %9288 = vmatpush3.bf16.msra.mxu1 %v10135_v23 }
0x1d89   :  { %9289 = vmatprep.subr.bf16.mxu1 %v10046_v20 }
0x1d8c   :  { %9291 = vmatpush3.bf16.msra.mxu1 %v10145_v26 }
0x1d8d   :  { %9292 = vmatprep.subr.bf16.mxu1 %v10046_v20 }
0x1d90   :  { %9294 = vmatpush3.bf16.msra.mxu1 %v10154_v29 }
0x1d91   :  { %8236 = vmatprep.subr.mxu1 %v10044_v0 }
0x1e56   :  { %v1601_v52 = vpop.f32.mrb[16].mxu1 }
0x1e57   :  { %v10482_v53 = vadd.f32 %v10246_v4, %v1601_v52  ;;  %v8192_v56 = vpop.f32.mrb[17].mxu1 }
0x1e59   :  { %v1606_v57 = vsub.f32 %v10482_v53, %v1605_v54  ;;  %v1860_v51 = vsub.f32 %v10439_v63, %v10482_v53 }
0x1e5b   :  { %v1607_v59 = vmul.f32 0.1, %v1606_v57 }
0x1e5d   :  { %v1608_v60 = vadd.f32 %v1607_v59, %v10390_v18 }
0x1e5f   :  { %8196 = vmatmul.mubr.msk.f32.vlgmr.msra.gmra.mrb[18].mxu0 %vm47_vm1, %v1608_v60 }
0x1e60   :  { %9297 = vmatpush3.bf16.msra.mxu0 %v10188_v55  ;;  %8233 = vmatprep.mubr.msk.f32.mxu0 %vm10045_vm2, %v10044_v0 }
0x1e61   :  { %9298 = vmatprep.subr.bf16.mxu0 %v10046_v20 }
0x1e64   :  { %9300 = vmatpush3.bf16.msra.mxu0 %v10198_v58 }
0x1e65   :  { %9301 = vmatprep.subr.bf16.mxu0 %v10046_v20 }
0x1e68   :  { %9303 = vmatpush3.bf16.msra.mxu0 %v10208_v61 }
0x1e69   :  { %9304 = vmatprep.subr.bf16.mxu0 %v10046_v20 }
0x1e6c   :  { %9306 = vmatpush3.bf16.msra.mxu0 %v10217_v3 }
0x1e6d   :  { %9307 = vmatprep.subr.bf16.mxu0 %v10046_v20 }
0x1f32   :  { %v1678_v62 = vpop.f32.mrb[18].mxu0 }
0x1f33   :  { %v1679_v5 = vadd.f32 %v1678_v62, %v10112_v7  ;;  %v8197_v8 = vpop.f32.mrb[19].mxu0 }
0x1f35   :  { %v1682_v10 = vsel %vm125_vm3, %v1679_v5, 0.0 }
0x1f36   :  { %1683 = vadd.xlane.f32.xlu0 %v1682_v10 }
0x1fc3   :  { %v1684_v11 = vpop.xlane.xlu0 %1683 }
0x1fc4   :  { %v1685_v15 = vmul.f32 0.015625, %v1684_v11 }
0x1fc6   :  { %v1686_v16 = vsub.f32 %v1679_v5, %v1685_v15 }
0x1fc8   :  { %v1687_v17 = vmul.f32 %v1686_v16, %v1686_v16 }
0x1fca   :  { %v1688_v6 = vsel %vm125_vm3, %v1687_v17, 0.0 }
0x1fcb   :  { %1689 = vadd.xlane.f32.xlu1 %v1688_v6 }
0x2058   :  { %v1690_v13 = vpop.xlane.xlu1 %1689 }
0x2059   :  { %v1691_v2 = vmul.f32 0.015625, %v1690_v13 }
0x205b   :  { %v1692_v21 = vadd.f32 1e-05, %v1691_v2 }
0x205d   :  { %9862 = vrsqrt.f32 %v1692_v21 }
0x2067   :  { %v9863_v9 = vpop.eup %9862 }
0x2068   :  { %v1694_v22 = vmul.f32 %v9863_v9, %v1686_v16 }
0x206a   :  { %v1695_v24 = vmul.f32 %v1694_v22, %v10162_v35 }
0x206c   :  { %v1696_v25 = vadd.f32 %v1695_v24, %v10165_v37 }
0x206e   :  { %9864 = vtanh.f32 %v1696_v25 }
0x2078   :  { %v9865_v27 = vpop.eup %9864 }
0x2079   :  { %8215 = vmatmul.mubr.msk.f32.vlgmr.msra.gmra.mrb[18].mxu1 %vm155_vm4, %v9865_v27 }
0x207a   :  { %8237 = vmatpush3.msk.msra.mxu1 %vm51_vm0, %v10507_v28  ;;  %8238 = vmatprep.mubr.msk.f32.mxu1 %vm10045_vm2, %v10044_v0 }
0x207b   :  { %9319 = vmatprep.subr.bf16.mxu1 %v10046_v20 }
0x214c   :  { %v1767_v30 = vpop.f32.mrb[18].mxu1 }
0x214d   :  { %v1768_v31 = vadd.f32 %v1767_v30, %v10177_v43  ;;  %v8216_v32 = vpop.f32.mrb[19].mxu1 }
0x214f   :  { %v1771_v33 = vsel %vm125_vm3, %v1768_v31, 0.0 }
0x2150   :  { %1772 = vadd.xlane.f32.xlu0 %v1771_v33 }
0x21dd   :  { %v1773_v34 = vpop.xlane.xlu0 %1772 }
0x21de   :  { %v1774_v36 = vmul.f32 0.015625, %v1773_v34 }
0x21e0   :  { %v1775_v38 = vsub.f32 %v1768_v31, %v1774_v36 }
0x21e2   :  { %v1776_v39 = vmul.f32 %v1775_v38, %v1775_v38 }
0x21e4   :  { %v1777_v40 = vsel %vm125_vm3, %v1776_v39, 0.0 }
0x21e5   :  { %1778 = vadd.xlane.f32.xlu1 %v1777_v40 }
0x2272   :  { %v1779_v41 = vpop.xlane.xlu1 %1778 }
0x2273   :  { %v1780_v42 = vmul.f32 0.015625, %v1779_v41 }
0x2275   :  { %v1781_v44 = vadd.f32 1e-05, %v1780_v42 }
0x2277   :  { %9866 = vrsqrt.f32 %v1781_v44 }
0x2281   :  { %v9867_v1 = vpop.eup %9866 }
0x2282   :  { %v1783_v45 = vmul.f32 %v9867_v1, %v1775_v38 }
0x2284   :  { %v1784_v46 = vmul.f32 %v1783_v45, %v10225_v12 }
0x2286   :  { %v1785_v47 = vadd.f32 %v1784_v46, %v10228_v14 }
0x2288   :  { %9868 = vtanh.f32 %v1785_v47 }
0x2292   :  { %v9869_v48 = vpop.eup %9868 }
0x2293   :  { %8234 = vmatmul.mubr.msk.f32.vlgmr.msra.gmra.mrb[20].mxu0 %vm155_vm4, %v9869_v48 }
0x2294   :  { %9309 = vmatpush3.bf16.msra.mxu0 %v10123_v19  ;;  %8257 = vmatprep.mubr.msk.f32.mxu0 %vm10045_vm2, %v10044_v0 }
0x2295   :  { %9310 = vmatprep.subr.bf16.mxu0 %v10046_v20 }
0x2298   :  { %9312 = vmatpush3.bf16.msra.mxu0 %v10135_v23 }
0x2299   :  { %9313 = vmatprep.subr.bf16.mxu0 %v10046_v20 }
0x229c   :  { %9315 = vmatpush3.bf16.msra.mxu0 %v10145_v26 }
0x229d   :  { %9316 = vmatprep.subr.bf16.mxu0 %v10046_v20 }
0x22a0   :  { %9318 = vmatpush3.bf16.msra.mxu0 %v10154_v29 }
0x22a1   :  { %8279 = vmatprep.subr.mxu0 %v10044_v0 }
0x2366   :  { %v1856_v49 = vpop.f32.mrb[20].mxu0 }
0x2367   :  { %v10531_v50 = vadd.f32 %v10246_v4, %v1856_v49  ;;  %v8235_v52 = vpop.f32.mrb[21].mxu0  ;;  %v10580_v49 = vld [vmem:[%s11520_s5] ss:$0 sm:$0xff] }
0x2369   :  { %v1861_v54 = vadd.f32 %v1860_v51, %v10531_v50  ;;  %v2115_v46 = vadd.f32 %v10531_v50, %v10482_v53 }
0x236b   :  { %v1862_v56 = vmul.f32 0.1, %v1861_v54  ;;  %v2116_v47 = vmul.f32 3.0, %v2115_v46 }
0x236d   :  { %v1863_v57 = vadd.f32 %v1862_v56, %v10390_v18  ;;  %v2117_v52 = vadd.f32 %v2116_v47, %v10439_v63 }
0x236f   :  { %8239 = vmatmul.mubr.msk.f32.vlgmr.msra.gmra.mrb[20].mxu1 %vm47_vm1, %v1863_v57 }
0x2370   :  { %9321 = vmatpush3.bf16.msra.mxu1 %v10188_v55  ;;  %8276 = vmatprep.mubr.msk.f32.mxu1 %vm10045_vm2, %v10044_v0 }
0x2371   :  { %9322 = vmatprep.subr.bf16.mxu1 %v10046_v20 }
0x2374   :  { %9324 = vmatpush3.bf16.msra.mxu1 %v10198_v58 }
0x2375   :  { %9325 = vmatprep.subr.bf16.mxu1 %v10046_v20 }
0x2378   :  { %9327 = vmatpush3.bf16.msra.mxu1 %v10208_v61 }
0x2379   :  { %9328 = vmatprep.subr.bf16.mxu1 %v10046_v20 }
0x237c   :  { %9330 = vmatpush3.bf16.msra.mxu1 %v10217_v3 }
0x237d   :  { %9331 = vmatprep.subr.bf16.mxu1 %v10046_v20 }
0x2442   :  { %v1933_v4 = vpop.f32.mrb[20].mxu1 }
0x2443   :  { %v1934_v59 = vadd.f32 %v1933_v4, %v10112_v7  ;;  %v8240_v60 = vpop.f32.mrb[21].mxu1 }
0x2445   :  { %v1937_v62 = vsel %vm125_vm3, %v1934_v59, 0.0 }
0x2446   :  { %1938 = vadd.xlane.f32.xlu0 %v1937_v62 }
0x24d3   :  { %v1939_v5 = vpop.xlane.xlu0 %1938 }
0x24d4   :  { %v1940_v8 = vmul.f32 0.015625, %v1939_v5 }
0x24d6   :  { %v1941_v10 = vsub.f32 %v1934_v59, %v1940_v8 }
0x24d8   :  { %v1942_v11 = vmul.f32 %v1941_v10, %v1941_v10 }
0x24da   :  { %v1943_v15 = vsel %vm125_vm3, %v1942_v11, 0.0 }
0x24db   :  { %1944 = vadd.xlane.f32.xlu1 %v1943_v15 }
0x2568   :  { %v1945_v16 = vpop.xlane.xlu1 %1944 }
0x2569   :  { %v1946_v17 = vmul.f32 0.015625, %v1945_v16 }
0x256b   :  { %v1947_v6 = vadd.f32 1e-05, %v1946_v17 }
0x256d   :  { %9870 = vrsqrt.f32 %v1947_v6 }
0x2577   :  { %v9871_v13 = vpop.eup %9870 }
0x2578   :  { %v1949_v2 = vmul.f32 %v9871_v13, %v1941_v10 }
0x257a   :  { %v1950_v21 = vmul.f32 %v1949_v2, %v10162_v35 }
0x257c   :  { %v1951_v9 = vadd.f32 %v1950_v21, %v10165_v37 }
0x257e   :  { %9872 = vtanh.f32 %v1951_v9 }
0x2588   :  { %v9873_v22 = vpop.eup %9872 }
0x2589   :  { %8258 = vmatmul.mubr.msk.f32.vlgmr.msra.gmra.mrb[22].mxu0 %vm155_vm4, %v9873_v22 }
0x258a   :  { %8280 = vmatpush3.msk.msra.mxu0 %vm51_vm0, %v10507_v28  ;;  %8281 = vmatprep.mubr.msk.f32.mxu0 %vm10045_vm2, %v10044_v0 }
0x258b   :  { %9343 = vmatprep.subr.bf16.mxu0 %v10046_v20 }
0x265c   :  { %v2022_v24 = vpop.f32.mrb[22].mxu0 }
0x265d   :  { %v2023_v25 = vadd.f32 %v2022_v24, %v10177_v43  ;;  %v8259_v27 = vpop.f32.mrb[23].mxu0 }
0x265f   :  { %v2026_v30 = vsel %vm125_vm3, %v2023_v25, 0.0 }
0x2660   :  { %2027 = vadd.xlane.f32.xlu0 %v2026_v30 }
0x26ed   :  { %v2028_v31 = vpop.xlane.xlu0 %2027 }
0x26ee   :  { %v2029_v32 = vmul.f32 0.015625, %v2028_v31 }
0x26f0   :  { %v2030_v33 = vsub.f32 %v2023_v25, %v2029_v32 }
0x26f2   :  { %v2031_v34 = vmul.f32 %v2030_v33, %v2030_v33 }
0x26f4   :  { %v2032_v36 = vsel %vm125_vm3, %v2031_v34, 0.0 }
0x26f5   :  { %2033 = vadd.xlane.f32.xlu1 %v2032_v36 }
0x2782   :  { %v2034_v38 = vpop.xlane.xlu1 %2033 }
0x2783   :  { %v2035_v39 = vmul.f32 0.015625, %v2034_v38 }
0x2785   :  { %v2036_v40 = vadd.f32 1e-05, %v2035_v39 }
0x2787   :  { %9874 = vrsqrt.f32 %v2036_v40 }
0x2791   :  { %v9875_v41 = vpop.eup %9874 }
0x2792   :  { %v2038_v42 = vmul.f32 %v9875_v41, %v2030_v33 }
0x2794   :  { %v2039_v44 = vmul.f32 %v2038_v42, %v10225_v12 }
0x2796   :  { %v2040_v1 = vadd.f32 %v2039_v44, %v10228_v14 }
0x2798   :  { %9876 = vtanh.f32 %v2040_v1 }
0x27a2   :  { %v9877_v45 = vpop.eup %9876 }
0x27a3   :  { %8277 = vmatmul.mubr.msk.f32.vlgmr.msra.gmra.mrb[22].mxu1 %vm155_vm4, %v9877_v45 }
0x27a4   :  { %9333 = vmatpush3.bf16.msra.mxu1 %v10123_v19  ;;  %8300 = vmatprep.mubr.msk.f32.mxu1 %vm10045_vm2, %v10044_v0 }
0x27a5   :  { %9334 = vmatprep.subr.bf16.mxu1 %v10046_v20 }
0x27a8   :  { %9336 = vmatpush3.bf16.msra.mxu1 %v10135_v23 }
0x27a9   :  { %9337 = vmatprep.subr.bf16.mxu1 %v10046_v20 }
0x27ac   :  { %9339 = vmatpush3.bf16.msra.mxu1 %v10145_v26 }
0x27ad   :  { %9340 = vmatprep.subr.bf16.mxu1 %v10046_v20 }
0x27b0   :  { %9342 = vmatpush3.bf16.msra.mxu1 %v10154_v29 }
0x27b1   :  { %8322 = vmatprep.subr.mxu1 %v10044_v0 }
0x2876   :  { %v2111_v48 = vpop.f32.mrb[22].mxu1 }
0x2877   :  { %v2112_v51 = vadd.f32 %v10580_v49, %v2111_v48  ;;  %v8278_v54 = vpop.f32.mrb[23].mxu1 }
0x2879   :  { %v2118_v56 = vadd.f32 %v2117_v52, %v2112_v51 }
0x287b   :  { %v2119_v57 = vmul.f32 0.0125, %v2118_v56 }
0x287d   :  { %v10585_v4 = vadd.f32 %v2119_v57, %v10390_v18 }
0x287f   :  { %v7227_v53 = vsub.f32 %v10585_v4, %v10390_v18  ;;  %8282 = vmatmul.mubr.msk.f32.vlgmr.msra.gmra.mrb[24].mxu0 %vm47_vm1, %v10585_v4 }
0x2880   :  { %9345 = vmatpush3.bf16.msra.mxu0 %v10188_v55  ;;  %8319 = vmatprep.mubr.msk.f32.mxu0 %vm10045_vm2, %v10044_v0 }
0x2881   :  { %v7228_v50 = vadd.f32 %v7227_v53, %v10390_v18  ;;  %9346 = vmatprep.subr.bf16.mxu0 %v10046_v20 }
0x2883   :  { %7369 = vst.msk [vmem:[%s11521_s6 + $0x4] sm:$0x3] %vm7221_vm5, %v7228_v50 }
0x2884   :  { %9348 = vmatpush3.bf16.msra.mxu0 %v10198_v58 }
0x2885   :  { %9349 = vmatprep.subr.bf16.mxu0 %v10046_v20 }
0x2888   :  { %9351 = vmatpush3.bf16.msra.mxu0 %v10208_v61 }
0x2889   :  { %9352 = vmatprep.subr.bf16.mxu0 %v10046_v20 }
0x288c   :  { %9354 = vmatpush3.bf16.msra.mxu0 %v10217_v3 }
0x288d   :  { %9355 = vmatprep.subr.bf16.mxu0 %v10046_v20 }
0x2952   :  { %v2190_v18 = vpop.f32.mrb[24].mxu0 }
0x2953   :  { %v2191_v63 = vadd.f32 %v2190_v18, %v10112_v7  ;;  %v8283_v59 = vpop.f32.mrb[25].mxu0 }
0x2955   :  { %v2194_v60 = vsel %vm125_vm3, %v2191_v63, 0.0 }
0x2956   :  { %2195 = vadd.xlane.f32.xlu0 %v2194_v60 }
0x29e3   :  { %v2196_v62 = vpop.xlane.xlu0 %2195 }
0x29e4   :  { %v2197_v5 = vmul.f32 0.015625, %v2196_v62 }
0x29e6   :  { %v2198_v8 = vsub.f32 %v2191_v63, %v2197_v5 }
0x29e8   :  { %v2199_v10 = vmul.f32 %v2198_v8, %v2198_v8 }
0x29ea   :  { %v2200_v11 = vsel %vm125_vm3, %v2199_v10, 0.0 }
0x29eb   :  { %2201 = vadd.xlane.f32.xlu1 %v2200_v11 }
0x2a78   :  { %v2202_v15 = vpop.xlane.xlu1 %2201 }
0x2a79   :  { %v2203_v16 = vmul.f32 0.015625, %v2202_v15 }
0x2a7b   :  { %v2204_v17 = vadd.f32 1e-05, %v2203_v16 }
0x2a7d   :  { %9878 = vrsqrt.f32 %v2204_v17 }
0x2a87   :  { %v9879_v6 = vpop.eup %9878 }
0x2a88   :  { %v2206_v13 = vmul.f32 %v9879_v6, %v2198_v8 }
0x2a8a   :  { %v2207_v2 = vmul.f32 %v2206_v13, %v10162_v35 }
0x2a8c   :  { %v2208_v21 = vadd.f32 %v2207_v2, %v10165_v37 }
0x2a8e   :  { %9880 = vtanh.f32 %v2208_v21 }
0x2a98   :  { %v9881_v9 = vpop.eup %9880 }
0x2a99   :  { %8301 = vmatmul.mubr.msk.f32.vlgmr.msra.gmra.mrb[24].mxu1 %vm155_vm4, %v9881_v9 }
0x2a9a   :  { %8323 = vmatpush3.msk.msra.mxu1 %vm51_vm0, %v10507_v28  ;;  %8324 = vmatprep.mubr.msk.f32.mxu1 %vm10045_vm2, %v10044_v0 }
0x2a9b   :  { %9367 = vmatprep.subr.bf16.mxu1 %v10046_v20 }
0x2b6c   :  { %v2279_v22 = vpop.f32.mrb[24].mxu1 }
0x2b6d   :  { %v2280_v24 = vadd.f32 %v2279_v22, %v10177_v43  ;;  %v8302_v25 = vpop.f32.mrb[25].mxu1 }
0x2b6f   :  { %v2283_v27 = vsel %vm125_vm3, %v2280_v24, 0.0 }
0x2b70   :  { %2284 = vadd.xlane.f32.xlu0 %v2283_v27 }
0x2bfd   :  { %v2285_v30 = vpop.xlane.xlu0 %2284 }
0x2bfe   :  { %v2286_v31 = vmul.f32 0.015625, %v2285_v30 }
0x2c00   :  { %v2287_v32 = vsub.f32 %v2280_v24, %v2286_v31 }
0x2c02   :  { %v2288_v33 = vmul.f32 %v2287_v32, %v2287_v32 }
0x2c04   :  { %v2289_v34 = vsel %vm125_vm3, %v2288_v33, 0.0 }
0x2c05   :  { %2290 = vadd.xlane.f32.xlu1 %v2289_v34 }
0x2c92   :  { %v2291_v36 = vpop.xlane.xlu1 %2290 }
0x2c93   :  { %v2292_v38 = vmul.f32 0.015625, %v2291_v36 }
0x2c95   :  { %v2293_v39 = vadd.f32 1e-05, %v2292_v38 }
0x2c97   :  { %9882 = vrsqrt.f32 %v2293_v39 }
0x2ca1   :  { %v9883_v40 = vpop.eup %9882 }
0x2ca2   :  { %v2295_v41 = vmul.f32 %v9883_v40, %v2287_v32 }
0x2ca4   :  { %v2296_v42 = vmul.f32 %v2295_v41, %v10225_v12 }
0x2ca6   :  { %v2297_v44 = vadd.f32 %v2296_v42, %v10228_v14 }
0x2ca8   :  { %9884 = vtanh.f32 %v2297_v44 }
0x2cb2   :  { %v9885_v1 = vpop.eup %9884 }
0x2cb3   :  { %8320 = vmatmul.mubr.msk.f32.vlgmr.msra.gmra.mrb[26].mxu0 %vm155_vm4, %v9885_v1 }
0x2cb4   :  { %9357 = vmatpush3.bf16.msra.mxu0 %v10123_v19  ;;  %8343 = vmatprep.mubr.msk.f32.mxu0 %vm10045_vm2, %v10044_v0 }
0x2cb5   :  { %9358 = vmatprep.subr.bf16.mxu0 %v10046_v20 }
0x2cb8   :  { %9360 = vmatpush3.bf16.msra.mxu0 %v10135_v23 }
0x2cb9   :  { %9361 = vmatprep.subr.bf16.mxu0 %v10046_v20 }
0x2cbc   :  { %9363 = vmatpush3.bf16.msra.mxu0 %v10145_v26 }
0x2cbd   :  { %9364 = vmatprep.subr.bf16.mxu0 %v10046_v20 }
0x2cc0   :  { %9366 = vmatpush3.bf16.msra.mxu0 %v10154_v29 }
0x2cc1   :  { %8365 = vmatprep.subr.mxu0 %v10044_v0 }
0x2d86   :  { %v2368_v45 = vpop.f32.mrb[26].mxu0 }
0x2d87   :  { %v10634_v46 = vadd.f32 %v10580_v49, %v2368_v45  ;;  %v8321_v47 = vpop.f32.mrb[27].mxu0 }
0x2d89   :  { %v2372_v48 = vmul.f32 0.033333335, %v10634_v46  ;;  %v2625_v41 = vmul.f32 0.33333334, %v10634_v46 }
0x2d8b   :  { %v2373_v51 = vadd.f32 %v2372_v48, %v10585_v4 }
0x2d8d   :  { %8325 = vmatmul.mubr.msk.f32.vlgmr.msra.gmra.mrb[26].mxu1 %vm47_vm1, %v2373_v51 }
0x2d8e   :  { %9369 = vmatpush3.bf16.msra.mxu1 %v10188_v55  ;;  %8362 = vmatprep.mubr.msk.f32.mxu1 %vm10045_vm2, %v10044_v0 }
0x2d8f   :  { %9370 = vmatprep.subr.bf16.mxu1 %v10046_v20 }
0x2d92   :  { %9372 = vmatpush3.bf16.msra.mxu1 %v10198_v58 }
0x2d93   :  { %9373 = vmatprep.subr.bf16.mxu1 %v10046_v20 }
0x2d96   :  { %9375 = vmatpush3.bf16.msra.mxu1 %v10208_v61 }
0x2d97   :  { %9376 = vmatprep.subr.bf16.mxu1 %v10046_v20 }
0x2d9a   :  { %9378 = vmatpush3.bf16.msra.mxu1 %v10217_v3 }
0x2d9b   :  { %9379 = vmatprep.subr.bf16.mxu1 %v10046_v20 }
0x2e60   :  { %v2443_v52 = vpop.f32.mrb[26].mxu1 }
0x2e61   :  { %v2444_v54 = vadd.f32 %v2443_v52, %v10112_v7  ;;  %v8326_v56 = vpop.f32.mrb[27].mxu1 }
0x2e63   :  { %v2447_v57 = vsel %vm125_vm3, %v2444_v54, 0.0 }
0x2e64   :  { %2448 = vadd.xlane.f32.xlu0 %v2447_v57 }
0x2ef1   :  { %v2449_v53 = vpop.xlane.xlu0 %2448 }
0x2ef2   :  { %v2450_v50 = vmul.f32 0.015625, %v2449_v53 }
0x2ef4   :  { %v2451_v18 = vsub.f32 %v2444_v54, %v2450_v50 }
0x2ef6   :  { %v2452_v63 = vmul.f32 %v2451_v18, %v2451_v18 }
0x2ef8   :  { %v2453_v59 = vsel %vm125_vm3, %v2452_v63, 0.0 }
0x2ef9   :  { %2454 = vadd.xlane.f32.xlu1 %v2453_v59 }
0x2f86   :  { %v2455_v60 = vpop.xlane.xlu1 %2454 }
0x2f87   :  { %v2456_v62 = vmul.f32 0.015625, %v2455_v60 }
0x2f89   :  { %v2457_v5 = vadd.f32 1e-05, %v2456_v62 }
0x2f8b   :  { %9886 = vrsqrt.f32 %v2457_v5 }
0x2f95   :  { %v9887_v8 = vpop.eup %9886 }
0x2f96   :  { %v2459_v10 = vmul.f32 %v9887_v8, %v2451_v18 }
0x2f98   :  { %v2460_v11 = vmul.f32 %v2459_v10, %v10162_v35 }
0x2f9a   :  { %v2461_v15 = vadd.f32 %v2460_v11, %v10165_v37 }
0x2f9c   :  { %9888 = vtanh.f32 %v2461_v15 }
0x2fa6   :  { %v9889_v16 = vpop.eup %9888 }
0x2fa7   :  { %8344 = vmatmul.mubr.msk.f32.vlgmr.msra.gmra.mrb[28].mxu0 %vm155_vm4, %v9889_v16 }
0x2fa8   :  { %8366 = vmatpush3.msk.msra.mxu0 %vm51_vm0, %v10507_v28  ;;  %8367 = vmatprep.mubr.msk.f32.mxu0 %vm10045_vm2, %v10044_v0 }
0x2fa9   :  { %9391 = vmatprep.subr.bf16.mxu0 %v10046_v20 }
0x307a   :  { %v2532_v17 = vpop.f32.mrb[28].mxu0 }
0x307b   :  { %v2533_v6 = vadd.f32 %v2532_v17, %v10177_v43  ;;  %v8345_v13 = vpop.f32.mrb[29].mxu0 }
0x307d   :  { %v2536_v2 = vsel %vm125_vm3, %v2533_v6, 0.0 }
0x307e   :  { %2537 = vadd.xlane.f32.xlu0 %v2536_v2 }
0x310b   :  { %v2538_v21 = vpop.xlane.xlu0 %2537 }
0x310c   :  { %v2539_v9 = vmul.f32 0.015625, %v2538_v21 }
0x310e   :  { %v2540_v22 = vsub.f32 %v2533_v6, %v2539_v9 }
0x3110   :  { %v2541_v24 = vmul.f32 %v2540_v22, %v2540_v22 }
0x3112   :  { %v2542_v25 = vsel %vm125_vm3, %v2541_v24, 0.0 }
0x3113   :  { %2543 = vadd.xlane.f32.xlu1 %v2542_v25 }
0x31a0   :  { %v2544_v27 = vpop.xlane.xlu1 %2543 }
0x31a1   :  { %v2545_v30 = vmul.f32 0.015625, %v2544_v27 }
0x31a3   :  { %v2546_v31 = vadd.f32 1e-05, %v2545_v30 }
0x31a5   :  { %9890 = vrsqrt.f32 %v2546_v31 }
0x31af   :  { %v9891_v32 = vpop.eup %9890 }
0x31b0   :  { %v2548_v33 = vmul.f32 %v9891_v32, %v2540_v22 }
0x31b2   :  { %v2549_v34 = vmul.f32 %v2548_v33, %v10225_v12 }
0x31b4   :  { %v2550_v36 = vadd.f32 %v2549_v34, %v10228_v14 }
0x31b6   :  { %9892 = vtanh.f32 %v2550_v36 }
0x31c0   :  { %v9893_v38 = vpop.eup %9892 }
0x31c1   :  { %8363 = vmatmul.mubr.msk.f32.vlgmr.msra.gmra.mrb[28].mxu1 %vm155_vm4, %v9893_v38 }
0x31c2   :  { %9381 = vmatpush3.bf16.msra.mxu1 %v10123_v19  ;;  %8386 = vmatprep.mubr.msk.f32.mxu1 %vm10045_vm2, %v10044_v0 }
0x31c3   :  { %9382 = vmatprep.subr.bf16.mxu1 %v10046_v20 }
0x31c6   :  { %9384 = vmatpush3.bf16.msra.mxu1 %v10135_v23 }
0x31c7   :  { %9385 = vmatprep.subr.bf16.mxu1 %v10046_v20 }
0x31ca   :  { %9387 = vmatpush3.bf16.msra.mxu1 %v10145_v26 }
0x31cb   :  { %9388 = vmatprep.subr.bf16.mxu1 %v10046_v20 }
0x31ce   :  { %9390 = vmatpush3.bf16.msra.mxu1 %v10154_v29 }
0x31cf   :  { %8408 = vmatprep.subr.mxu1 %v10044_v0 }
0x3294   :  { %v2621_v39 = vpop.f32.mrb[28].mxu1 }
0x3295   :  { %v10677_v40 = vadd.f32 %v10580_v49, %v2621_v39  ;;  %v8364_v42 = vpop.f32.mrb[29].mxu1 }
0x3297   :  { %v2626_v44 = vsub.f32 %v10677_v40, %v2625_v41  ;;  %v2880_v38 = vsub.f32 %v10634_v46, %v10677_v40 }
0x3299   :  { %v2627_v1 = vmul.f32 0.10000001, %v2626_v44 }
0x329b   :  { %v2628_v45 = vadd.f32 %v2627_v1, %v10585_v4 }
0x329d   :  { %8368 = vmatmul.mubr.msk.f32.vlgmr.msra.gmra.mrb[30].mxu0 %vm47_vm1, %v2628_v45 }
0x329e   :  { %9393 = vmatpush3.bf16.msra.mxu0 %v10188_v55  ;;  %8405 = vmatprep.mubr.msk.f32.mxu0 %vm10045_vm2, %v10044_v0 }
0x329f   :  { %9394 = vmatprep.subr.bf16.mxu0 %v10046_v20 }
0x32a2   :  { %9396 = vmatpush3.bf16.msra.mxu0 %v10198_v58 }
0x32a3   :  { %9397 = vmatprep.subr.bf16.mxu0 %v10046_v20 }
0x32a6   :  { %9399 = vmatpush3.bf16.msra.mxu0 %v10208_v61 }
0x32a7   :  { %9400 = vmatprep.subr.bf16.mxu0 %v10046_v20 }
0x32aa   :  { %9402 = vmatpush3.bf16.msra.mxu0 %v10217_v3 }
0x32ab   :  { %9403 = vmatprep.subr.bf16.mxu0 %v10046_v20 }
0x3370   :  { %v2698_v47 = vpop.f32.mrb[30].mxu0 }
0x3371   :  { %v2699_v48 = vadd.f32 %v2698_v47, %v10112_v7  ;;  %v8369_v51 = vpop.f32.mrb[31].mxu0 }
0x3373   :  { %v2702_v52 = vsel %vm125_vm3, %v2699_v48, 0.0 }
0x3374   :  { %2703 = vadd.xlane.f32.xlu0 %v2702_v52 }
0x3401   :  { %v2704_v54 = vpop.xlane.xlu0 %2703 }
0x3402   :  { %v2705_v56 = vmul.f32 0.015625, %v2704_v54 }
0x3404   :  { %v2706_v57 = vsub.f32 %v2699_v48, %v2705_v56 }
0x3406   :  { %v2707_v53 = vmul.f32 %v2706_v57, %v2706_v57 }
0x3408   :  { %v2708_v50 = vsel %vm125_vm3, %v2707_v53, 0.0 }
0x3409   :  { %2709 = vadd.xlane.f32.xlu1 %v2708_v50 }
0x3496   :  { %v2710_v18 = vpop.xlane.xlu1 %2709 }
0x3497   :  { %v2711_v63 = vmul.f32 0.015625, %v2710_v18 }
0x3499   :  { %v2712_v59 = vadd.f32 1e-05, %v2711_v63 }
0x349b   :  { %9894 = vrsqrt.f32 %v2712_v59 }
0x34a5   :  { %v9895_v60 = vpop.eup %9894 }
0x34a6   :  { %v2714_v62 = vmul.f32 %v9895_v60, %v2706_v57 }
0x34a8   :  { %v2715_v5 = vmul.f32 %v2714_v62, %v10162_v35 }
0x34aa   :  { %v2716_v8 = vadd.f32 %v2715_v5, %v10165_v37 }
0x34ac   :  { %9896 = vtanh.f32 %v2716_v8 }
0x34b6   :  { %v9897_v10 = vpop.eup %9896 }
0x34b7   :  { %8387 = vmatmul.mubr.msk.f32.vlgmr.msra.gmra.mrb[30].mxu1 %vm155_vm4, %v9897_v10 }
0x34b8   :  { %8409 = vmatpush3.msk.msra.mxu1 %vm51_vm0, %v10507_v28  ;;  %8410 = vmatprep.mubr.msk.f32.mxu1 %vm10045_vm2, %v10044_v0 }
0x34b9   :  { %9415 = vmatprep.subr.bf16.mxu1 %v10046_v20 }
0x358a   :  { %v2787_v11 = vpop.f32.mrb[30].mxu1 }
0x358b   :  { %v2788_v15 = vadd.f32 %v2787_v11, %v10177_v43  ;;  %v8388_v16 = vpop.f32.mrb[31].mxu1 }
0x358d   :  { %v2791_v17 = vsel %vm125_vm3, %v2788_v15, 0.0 }
0x358e   :  { %2792 = vadd.xlane.f32.xlu0 %v2791_v17 }
0x361b   :  { %v2793_v6 = vpop.xlane.xlu0 %2792 }
0x361c   :  { %v2794_v13 = vmul.f32 0.015625, %v2793_v6 }
0x361e   :  { %v2795_v2 = vsub.f32 %v2788_v15, %v2794_v13 }
0x3620   :  { %v2796_v21 = vmul.f32 %v2795_v2, %v2795_v2 }
0x3622   :  { %v2797_v9 = vsel %vm125_vm3, %v2796_v21, 0.0 }
0x3623   :  { %2798 = vadd.xlane.f32.xlu1 %v2797_v9 }
0x36b0   :  { %v2799_v22 = vpop.xlane.xlu1 %2798 }
0x36b1   :  { %v2800_v24 = vmul.f32 0.015625, %v2799_v22 }
0x36b3   :  { %v2801_v25 = vadd.f32 1e-05, %v2800_v24 }
0x36b5   :  { %9898 = vrsqrt.f32 %v2801_v25 }
0x36bf   :  { %v9899_v27 = vpop.eup %9898 }
0x36c0   :  { %v2803_v30 = vmul.f32 %v9899_v27, %v2795_v2 }
0x36c2   :  { %v2804_v31 = vmul.f32 %v2803_v30, %v10225_v12 }
0x36c4   :  { %v2805_v32 = vadd.f32 %v2804_v31, %v10228_v14 }
0x36c6   :  { %9900 = vtanh.f32 %v2805_v32 }
0x36d0   :  { %v9901_v33 = vpop.eup %9900 }
0x36d1   :  { %8406 = vmatmul.mubr.msk.f32.vlgmr.msra.gmra.mrb[32].mxu0 %vm155_vm4, %v9901_v33 }
0x36d2   :  { %9405 = vmatpush3.bf16.msra.mxu0 %v10123_v19  ;;  %8429 = vmatprep.mubr.msk.f32.mxu0 %vm10045_vm2, %v10044_v0 }
0x36d3   :  { %9406 = vmatprep.subr.bf16.mxu0 %v10046_v20 }
0x36d6   :  { %9408 = vmatpush3.bf16.msra.mxu0 %v10135_v23 }
0x36d7   :  { %9409 = vmatprep.subr.bf16.mxu0 %v10046_v20 }
0x36da   :  { %9411 = vmatpush3.bf16.msra.mxu0 %v10145_v26 }
0x36db   :  { %9412 = vmatprep.subr.bf16.mxu0 %v10046_v20 }
0x36de   :  { %9414 = vmatpush3.bf16.msra.mxu0 %v10154_v29 }
0x36df   :  { %8451 = vmatprep.subr.mxu0 %v10044_v0 }
0x37a4   :  { %v2876_v34 = vpop.f32.mrb[32].mxu0 }
0x37a5   :  { %v10721_v36 = vadd.f32 %v10580_v49, %v2876_v34  ;;  %v8407_v39 = vpop.f32.mrb[33].mxu0 }
0x37a7   :  { %v2881_v41 = vadd.f32 %v2880_v38, %v10721_v36  ;;  %v3135_v32 = vadd.f32 %v10721_v36, %v10677_v40 }
0x37a9   :  { %v2882_v42 = vmul.f32 0.10000001, %v2881_v41  ;;  %v3136_v33 = vmul.f32 3.0, %v3135_v32 }
0x37ab   :  { %v2883_v44 = vadd.f32 %v2882_v42, %v10585_v4  ;;  %v3137_v39 = vadd.f32 %v3136_v33, %v10634_v46 }
0x37ad   :  { %8411 = vmatmul.mubr.msk.f32.vlgmr.msra.gmra.mrb[32].mxu1 %vm47_vm1, %v2883_v44 }
0x37ae   :  { %9417 = vmatpush3.bf16.msra.mxu1 %v10188_v55  ;;  %8448 = vmatprep.mubr.msk.f32.mxu1 %vm10045_vm2, %v10044_v0 }
0x37af   :  { %9418 = vmatprep.subr.bf16.mxu1 %v10046_v20 }
0x37b2   :  { %9420 = vmatpush3.bf16.msra.mxu1 %v10198_v58 }
0x37b3   :  { %9421 = vmatprep.subr.bf16.mxu1 %v10046_v20 }
0x37b6   :  { %9423 = vmatpush3.bf16.msra.mxu1 %v10208_v61 }
0x37b7   :  { %9424 = vmatprep.subr.bf16.mxu1 %v10046_v20 }
0x37ba   :  { %9426 = vmatpush3.bf16.msra.mxu1 %v10217_v3 }
0x37bb   :  { %9427 = vmatprep.subr.bf16.mxu1 %v10046_v20 }
0x3880   :  { %v2953_v1 = vpop.f32.mrb[32].mxu1 }
0x3881   :  { %v2954_v45 = vadd.f32 %v2953_v1, %v10112_v7  ;;  %v8412_v47 = vpop.f32.mrb[33].mxu1 }
0x3883   :  { %v2957_v48 = vsel %vm125_vm3, %v2954_v45, 0.0 }
0x3884   :  { %2958 = vadd.xlane.f32.xlu0 %v2957_v48 }
0x3911   :  { %v2959_v51 = vpop.xlane.xlu0 %2958 }
0x3912   :  { %v2960_v52 = vmul.f32 0.015625, %v2959_v51 }
0x3914   :  { %v2961_v54 = vsub.f32 %v2954_v45, %v2960_v52 }
0x3916   :  { %v2962_v56 = vmul.f32 %v2961_v54, %v2961_v54 }
0x3918   :  { %v2963_v57 = vsel %vm125_vm3, %v2962_v56, 0.0 }
0x3919   :  { %2964 = vadd.xlane.f32.xlu1 %v2963_v57 }
0x39a6   :  { %v2965_v53 = vpop.xlane.xlu1 %2964 }
0x39a7   :  { %v2966_v50 = vmul.f32 0.015625, %v2965_v53 }
0x39a9   :  { %v2967_v18 = vadd.f32 1e-05, %v2966_v50 }
0x39ab   :  { %9902 = vrsqrt.f32 %v2967_v18 }
0x39b5   :  { %v9903_v63 = vpop.eup %9902 }
0x39b6   :  { %v2969_v59 = vmul.f32 %v9903_v63, %v2961_v54 }
0x39b8   :  { %v2970_v60 = vmul.f32 %v2969_v59, %v10162_v35 }
0x39ba   :  { %v2971_v62 = vadd.f32 %v2970_v60, %v10165_v37 }
0x39bc   :  { %9904 = vtanh.f32 %v2971_v62 }
0x39c6   :  { %v9905_v5 = vpop.eup %9904 }
0x39c7   :  { %8430 = vmatmul.mubr.msk.f32.vlgmr.msra.gmra.mrb[34].mxu0 %vm155_vm4, %v9905_v5 }
0x39c8   :  { %8452 = vmatpush3.msk.msra.mxu0 %vm51_vm0, %v10507_v28  ;;  %8453 = vmatprep.mubr.msk.f32.mxu0 %vm10045_vm2, %v10044_v0 }
0x39c9   :  { %9439 = vmatprep.subr.bf16.mxu0 %v10046_v20 }
0x3a9a   :  { %v3042_v8 = vpop.f32.mrb[34].mxu0 }
0x3a9b   :  { %v3043_v10 = vadd.f32 %v3042_v8, %v10177_v43  ;;  %v8431_v11 = vpop.f32.mrb[35].mxu0 }
0x3a9d   :  { %v3046_v15 = vsel %vm125_vm3, %v3043_v10, 0.0 }
0x3a9e   :  { %3047 = vadd.xlane.f32.xlu0 %v3046_v15 }
0x3b2b   :  { %v3048_v16 = vpop.xlane.xlu0 %3047 }
0x3b2c   :  { %v3049_v17 = vmul.f32 0.015625, %v3048_v16 }
0x3b2e   :  { %v3050_v6 = vsub.f32 %v3043_v10, %v3049_v17 }
0x3b30   :  { %v3051_v13 = vmul.f32 %v3050_v6, %v3050_v6 }
0x3b32   :  { %v3052_v2 = vsel %vm125_vm3, %v3051_v13, 0.0 }
0x3b33   :  { %3053 = vadd.xlane.f32.xlu1 %v3052_v2 }
0x3bc0   :  { %v3054_v21 = vpop.xlane.xlu1 %3053 }
0x3bc1   :  { %v3055_v9 = vmul.f32 0.015625, %v3054_v21 }
0x3bc3   :  { %v3056_v22 = vadd.f32 1e-05, %v3055_v9 }
0x3bc5   :  { %9906 = vrsqrt.f32 %v3056_v22 }
0x3bcf   :  { %v9907_v24 = vpop.eup %9906 }
0x3bd0   :  { %v3058_v25 = vmul.f32 %v9907_v24, %v3050_v6 }
0x3bd2   :  { %v3059_v27 = vmul.f32 %v3058_v25, %v10225_v12 }
0x3bd4   :  { %v3060_v30 = vadd.f32 %v3059_v27, %v10228_v14 }
0x3bd6   :  { %9908 = vtanh.f32 %v3060_v30 }
0x3be0   :  { %v9909_v31 = vpop.eup %9908 }
0x3be1   :  { %8449 = vmatmul.mubr.msk.f32.vlgmr.msra.gmra.mrb[34].mxu1 %vm155_vm4, %v9909_v31 }
0x3be2   :  { %9429 = vmatpush3.bf16.msra.mxu1 %v10123_v19  ;;  %8472 = vmatprep.mubr.msk.f32.mxu1 %vm10045_vm2, %v10044_v0 }
0x3be3   :  { %9430 = vmatprep.subr.bf16.mxu1 %v10046_v20 }
0x3be6   :  { %9432 = vmatpush3.bf16.msra.mxu1 %v10135_v23 }
0x3be7   :  { %9433 = vmatprep.subr.bf16.mxu1 %v10046_v20 }
0x3bea   :  { %9435 = vmatpush3.bf16.msra.mxu1 %v10145_v26 }
0x3beb   :  { %9436 = vmatprep.subr.bf16.mxu1 %v10046_v20 }
0x3bee   :  { %9438 = vmatpush3.bf16.msra.mxu1 %v10154_v29 }
0x3bef   :  { %8494 = vmatprep.subr.mxu1 %v10044_v0 }
0x3cb4   :  { %v3131_v34 = vpop.f32.mrb[34].mxu1 }
0x3cb5   :  { %v3132_v38 = vadd.f32 %v10580_v49, %v3131_v34  ;;  %v8450_v41 = vpop.f32.mrb[35].mxu1 }
0x3cb7   :  { %v3138_v42 = vadd.f32 %v3137_v39, %v3132_v38 }
0x3cb9   :  { %v3139_v44 = vmul.f32 0.012500001, %v3138_v42 }
0x3cbb   :  { %v10770_v1 = vadd.f32 %v3139_v44, %v10585_v4 }
0x3cbd   :  { %v7231_v45 = vsub.f32 %v10770_v1, %v10585_v4  ;;  %8454 = vmatmul.mubr.msk.f32.vlgmr.msra.gmra.mrb[36].mxu0 %vm47_vm1, %v10770_v1 }
0x3cbe   :  { %9441 = vmatpush3.bf16.msra.mxu0 %v10188_v55  ;;  %8491 = vmatprep.mubr.msk.f32.mxu0 %vm10045_vm2, %v10044_v0 }
0x3cbf   :  { %v7232_v40 = vadd.f32 %v7231_v45, %v10585_v4  ;;  %9442 = vmatprep.subr.bf16.mxu0 %v10046_v20 }
0x3cc1   :  { %7370 = vst.msk [vmem:[%s11521_s6 + $0x6] sm:$0x3] %vm7221_vm5, %v7232_v40 }
0x3cc2   :  { %9444 = vmatpush3.bf16.msra.mxu0 %v10198_v58 }
0x3cc3   :  { %9445 = vmatprep.subr.bf16.mxu0 %v10046_v20 }
0x3cc6   :  { %9447 = vmatpush3.bf16.msra.mxu0 %v10208_v61 }
0x3cc7   :  { %9448 = vmatprep.subr.bf16.mxu0 %v10046_v20 }
0x3cca   :  { %9450 = vmatpush3.bf16.msra.mxu0 %v10217_v3 }
0x3ccb   :  { %9451 = vmatprep.subr.bf16.mxu0 %v10046_v20 }
0x3d90   :  { %v3210_v4 = vpop.f32.mrb[36].mxu0 }
0x3d91   :  { %v3211_v46 = vadd.f32 %v3210_v4, %v10112_v7  ;;  %v8455_v36 = vpop.f32.mrb[37].mxu0 }
0x3d93   :  { %v3214_v47 = vsel %vm125_vm3, %v3211_v46, 0.0 }
0x3d94   :  { %3215 = vadd.xlane.f32.xlu0 %v3214_v47 }
0x3e21   :  { %v3216_v48 = vpop.xlane.xlu0 %3215 }
0x3e22   :  { %v3217_v51 = vmul.f32 0.015625, %v3216_v48 }
0x3e24   :  { %v3218_v52 = vsub.f32 %v3211_v46, %v3217_v51 }
0x3e26   :  { %v3219_v54 = vmul.f32 %v3218_v52, %v3218_v52 }
0x3e28   :  { %v3220_v56 = vsel %vm125_vm3, %v3219_v54, 0.0 }
0x3e29   :  { %3221 = vadd.xlane.f32.xlu1 %v3220_v56 }
0x3eb6   :  { %v3222_v57 = vpop.xlane.xlu1 %3221 }
0x3eb7   :  { %v3223_v53 = vmul.f32 0.015625, %v3222_v57 }
0x3eb9   :  { %v3224_v50 = vadd.f32 1e-05, %v3223_v53  ;;  %v10843_v53 = vld [vmem:[%s11515_s1] sm:$0x1f] }
0x3ebb   :  { %9910 = vrsqrt.f32 %v3224_v50 }
0x3ec5   :  { %v9911_v18 = vpop.eup %9910 }
0x3ec6   :  { %v3226_v63 = vmul.f32 %v9911_v18, %v3218_v52 }
0x3ec8   :  { %v3227_v59 = vmul.f32 %v3226_v63, %v10162_v35 }
0x3eca   :  { %v3228_v60 = vadd.f32 %v3227_v59, %v10165_v37 }
0x3ecc   :  { %9912 = vtanh.f32 %v3228_v60 }
0x3ed6   :  { %v9913_v62 = vpop.eup %9912 }
0x3ed7   :  { %8473 = vmatmul.mubr.msk.f32.vlgmr.msra.gmra.mrb[36].mxu1 %vm155_vm4, %v9913_v62 }
0x3ed8   :  { %8495 = vmatpush3.msk.msra.mxu1 %vm51_vm0, %v10507_v28  ;;  %8496 = vmatprep.mubr.msk.f32.mxu1 %vm10045_vm2, %v10044_v0 }
0x3ed9   :  { %9463 = vmatprep.subr.bf16.mxu1 %v10046_v20 }
0x3faa   :  { %v3299_v5 = vpop.f32.mrb[36].mxu1 }
0x3fab   :  { %v3300_v8 = vadd.f32 %v3299_v5, %v10177_v43  ;;  %v8474_v10 = vpop.f32.mrb[37].mxu1 }
0x3fad   :  { %v3303_v11 = vsel %vm125_vm3, %v3300_v8, 0.0 }
0x3fae   :  { %3304 = vadd.xlane.f32.xlu0 %v3303_v11 }
0x403b   :  { %v3305_v15 = vpop.xlane.xlu0 %3304 }
0x403c   :  { %v3306_v16 = vmul.f32 0.015625, %v3305_v15 }
0x403e   :  { %v3307_v17 = vsub.f32 %v3300_v8, %v3306_v16 }
0x4040   :  { %v3308_v6 = vmul.f32 %v3307_v17, %v3307_v17 }
0x4042   :  { %v3309_v13 = vsel %vm125_vm3, %v3308_v6, 0.0 }
0x4043   :  { %3310 = vadd.xlane.f32.xlu1 %v3309_v13 }
0x40d0   :  { %v3311_v28 = vpop.xlane.xlu1 %3310 }
0x40d1   :  { %v3312_v2 = vmul.f32 0.015625, %v3311_v28 }
0x40d3   :  { %v3313_v21 = vadd.f32 1e-05, %v3312_v2 }
0x40d5   :  { %9914 = vrsqrt.f32 %v3313_v21 }
0x40df   :  { %v9915_v9 = vpop.eup %9914 }
0x40e0   :  { %v3315_v22 = vmul.f32 %v9915_v9, %v3307_v17 }
0x40e2   :  { %v3316_v24 = vmul.f32 %v3315_v22, %v10225_v12 }
0x40e4   :  { %v3317_v25 = vadd.f32 %v3316_v24, %v10228_v14 }
0x40e6   :  { %9916 = vtanh.f32 %v3317_v25 }
0x40f0   :  { %v9917_v27 = vpop.eup %9916 }
0x40f1   :  { %8492 = vmatmul.mubr.msk.f32.vlgmr.msra.gmra.mrb[38].mxu0 %vm155_vm4, %v9917_v27 }
0x40f2   :  { %9453 = vmatpush3.bf16.msra.mxu0 %v10123_v19  ;;  %8515 = vmatprep.mubr.msk.f32.mxu0 %vm10045_vm2, %v10044_v0 }
0x40f3   :  { %9454 = vmatprep.subr.bf16.mxu0 %v10046_v20 }
0x40f6   :  { %9456 = vmatpush3.bf16.msra.mxu0 %v10135_v23 }
0x40f7   :  { %9457 = vmatprep.subr.bf16.mxu0 %v10046_v20 }
0x40fa   :  { %9459 = vmatpush3.bf16.msra.mxu0 %v10145_v26 }
0x40fb   :  { %9460 = vmatprep.subr.bf16.mxu0 %v10046_v20 }
0x40fe   :  { %9462 = vmatpush3.bf16.msra.mxu0 %v10154_v29 }
0x40ff   :  { %8537 = vmatprep.subr.mxu0 %v10044_v0 }
0x41c4   :  { %v3388_v30 = vpop.f32.mrb[38].mxu0 }
0x41c5   :  { %v10819_v31 = vadd.f32 %v10580_v49, %v3388_v30  ;;  %v8493_v32 = vpop.f32.mrb[39].mxu0 }
0x41c7   :  { %v3392_v33 = vmul.f32 0.03333333, %v10819_v31  ;;  %v3645_v22 = vmul.f32 0.33333334, %v10819_v31 }
0x41c9   :  { %v3393_v34 = vadd.f32 %v3392_v33, %v10770_v1 }
0x41cb   :  { %8497 = vmatmul.mubr.msk.f32.vlgmr.msra.gmra.mrb[38].mxu1 %vm47_vm1, %v3393_v34 }
0x41cc   :  { %9465 = vmatpush3.bf16.msra.mxu1 %v10188_v55  ;;  %8534 = vmatprep.mubr.msk.f32.mxu1 %vm10045_vm2, %v10044_v0 }
0x41cd   :  { %9466 = vmatprep.subr.bf16.mxu1 %v10046_v20 }
0x41d0   :  { %9468 = vmatpush3.bf16.msra.mxu1 %v10198_v58 }
0x41d1   :  { %9469 = vmatprep.subr.bf16.mxu1 %v10046_v20 }
0x41d4   :  { %9471 = vmatpush3.bf16.msra.mxu1 %v10208_v61 }
0x41d5   :  { %9472 = vmatprep.subr.bf16.mxu1 %v10046_v20 }
0x41d8   :  { %9474 = vmatpush3.bf16.msra.mxu1 %v10217_v3 }
0x41d9   :  { %9475 = vmatprep.subr.bf16.mxu1 %v10046_v20 }
0x429e   :  { %v3463_v38 = vpop.f32.mrb[38].mxu1 }
0x429f   :  { %v3464_v39 = vadd.f32 %v3463_v38, %v10112_v7  ;;  %v8498_v41 = vpop.f32.mrb[39].mxu1 }
0x42a1   :  { %v3467_v42 = vsel %vm125_vm3, %v3464_v39, 0.0 }
0x42a2   :  { %3468 = vadd.xlane.f32.xlu0 %v3467_v42 }
0x432f   :  { %v3469_v44 = vpop.xlane.xlu0 %3468 }
0x4330   :  { %v3470_v45 = vmul.f32 0.015625, %v3469_v44 }
0x4332   :  { %v3471_v40 = vsub.f32 %v3464_v39, %v3470_v45 }
0x4334   :  { %v3472_v4 = vmul.f32 %v3471_v40, %v3471_v40 }
0x4336   :  { %v3473_v46 = vsel %vm125_vm3, %v3472_v4, 0.0 }
0x4337   :  { %3474 = vadd.xlane.f32.xlu1 %v3473_v46 }
0x43c4   :  { %v3475_v36 = vpop.xlane.xlu1 %3474 }
0x43c5   :  { %v3476_v47 = vmul.f32 0.015625, %v3475_v36 }
0x43c7   :  { %v3477_v48 = vadd.f32 1e-05, %v3476_v47 }
0x43c9   :  { %9918 = vrsqrt.f32 %v3477_v48 }
0x43d3   :  { %v9919_v51 = vpop.eup %9918 }
0x43d4   :  { %v3479_v52 = vmul.f32 %v9919_v51, %v3471_v40 }
0x43d6   :  { %v3480_v54 = vmul.f32 %v3479_v52, %v10162_v35 }
0x43d8   :  { %v3481_v56 = vadd.f32 %v3480_v54, %v10165_v37 }
0x43da   :  { %9920 = vtanh.f32 %v3481_v56 }
0x43e4   :  { %v9921_v57 = vpop.eup %9920 }
0x43e5   :  { %8516 = vmatmul.mubr.msk.f32.vlgmr.msra.gmra.mrb[40].mxu0 %vm155_vm4, %v9921_v57 }
0x43e6   :  { %8538 = vmatpush3.msk.msra.mxu0 %vm51_vm0, %v10843_v53  ;;  %8539 = vmatprep.mubr.msk.f32.mxu0 %vm10045_vm2, %v10044_v0 }
0x43e7   :  { %9487 = vmatprep.subr.bf16.mxu0 %v10046_v20 }
0x44b8   :  { %v3552_v50 = vpop.f32.mrb[40].mxu0 }
0x44b9   :  { %v3553_v18 = vadd.f32 %v3552_v50, %v10177_v43  ;;  %v8517_v63 = vpop.f32.mrb[41].mxu0 }
0x44bb   :  { %v3556_v59 = vsel %vm125_vm3, %v3553_v18, 0.0 }
0x44bc   :  { %3557 = vadd.xlane.f32.xlu0 %v3556_v59 }
0x4549   :  { %v3558_v60 = vpop.xlane.xlu0 %3557 }
0x454a   :  { %v3559_v62 = vmul.f32 0.015625, %v3558_v60 }
0x454c   :  { %v3560_v5 = vsub.f32 %v3553_v18, %v3559_v62 }
0x454e   :  { %v3561_v8 = vmul.f32 %v3560_v5, %v3560_v5 }
0x4550   :  { %v3562_v10 = vsel %vm125_vm3, %v3561_v8, 0.0 }
0x4551   :  { %3563 = vadd.xlane.f32.xlu1 %v3562_v10 }
0x45de   :  { %v3564_v11 = vpop.xlane.xlu1 %3563 }
0x45df   :  { %v3565_v15 = vmul.f32 0.015625, %v3564_v11 }
0x45e1   :  { %v3566_v16 = vadd.f32 1e-05, %v3565_v15 }
0x45e3   :  { %9922 = vrsqrt.f32 %v3566_v16 }
0x45ed   :  { %v9923_v17 = vpop.eup %9922 }
0x45ee   :  { %v3568_v6 = vmul.f32 %v9923_v17, %v3560_v5 }
0x45f0   :  { %v3569_v13 = vmul.f32 %v3568_v6, %v10225_v12 }
0x45f2   :  { %v3570_v28 = vadd.f32 %v3569_v13, %v10228_v14  ;;  %v10913_v13 = vld [vmem:[%s11520_s5] ss:$0 sm:$0xff] }
0x45f4   :  { %9924 = vtanh.f32 %v3570_v28 }
0x45fe   :  { %v9925_v2 = vpop.eup %9924 }
0x45ff   :  { %8535 = vmatmul.mubr.msk.f32.vlgmr.msra.gmra.mrb[40].mxu1 %vm155_vm4, %v9925_v2 }
0x4600   :  { %9477 = vmatpush3.bf16.msra.mxu1 %v10123_v19  ;;  %8558 = vmatprep.mubr.msk.f32.mxu1 %vm10045_vm2, %v10044_v0 }
0x4601   :  { %9478 = vmatprep.subr.bf16.mxu1 %v10046_v20 }
0x4604   :  { %9480 = vmatpush3.bf16.msra.mxu1 %v10135_v23 }
0x4605   :  { %9481 = vmatprep.subr.bf16.mxu1 %v10046_v20 }
0x4608   :  { %9483 = vmatpush3.bf16.msra.mxu1 %v10145_v26 }
0x4609   :  { %9484 = vmatprep.subr.bf16.mxu1 %v10046_v20 }
0x460c   :  { %9486 = vmatpush3.bf16.msra.mxu1 %v10154_v29 }
0x460d   :  { %8580 = vmatprep.subr.mxu1 %v10044_v0 }
0x46d2   :  { %v3641_v21 = vpop.f32.mrb[40].mxu1 }
0x46d3   :  { %v10867_v9 = vadd.f32 %v10580_v49, %v3641_v21  ;;  %v8536_v24 = vpop.f32.mrb[41].mxu1 }
0x46d5   :  { %v3646_v25 = vsub.f32 %v10867_v9, %v3645_v22  ;;  %v3900_v2 = vsub.f32 %v10819_v31, %v10867_v9 }
0x46d7   :  { %v3647_v27 = vmul.f32 0.099999994, %v3646_v25 }
0x46d9   :  { %v3648_v30 = vadd.f32 %v3647_v27, %v10770_v1 }
0x46db   :  { %8540 = vmatmul.mubr.msk.f32.vlgmr.msra.gmra.mrb[42].mxu0 %vm47_vm1, %v3648_v30 }
0x46dc   :  { %9489 = vmatpush3.bf16.msra.mxu0 %v10188_v55  ;;  %8577 = vmatprep.mubr.msk.f32.mxu0 %vm10045_vm2, %v10044_v0 }
0x46dd   :  { %9490 = vmatprep.subr.bf16.mxu0 %v10046_v20 }
0x46e0   :  { %9492 = vmatpush3.bf16.msra.mxu0 %v10198_v58 }
0x46e1   :  { %9493 = vmatprep.subr.bf16.mxu0 %v10046_v20 }
0x46e4   :  { %9495 = vmatpush3.bf16.msra.mxu0 %v10208_v61 }
0x46e5   :  { %9496 = vmatprep.subr.bf16.mxu0 %v10046_v20 }
0x46e8   :  { %9498 = vmatpush3.bf16.msra.mxu0 %v10217_v3 }
0x46e9   :  { %9499 = vmatprep.subr.bf16.mxu0 %v10046_v20 }
0x47ae   :  { %v3718_v49 = vpop.f32.mrb[42].mxu0 }
0x47af   :  { %v3719_v32 = vadd.f32 %v3718_v49, %v10112_v7  ;;  %v8541_v33 = vpop.f32.mrb[43].mxu0 }
0x47b1   :  { %v3722_v34 = vsel %vm125_vm3, %v3719_v32, 0.0 }
0x47b2   :  { %3723 = vadd.xlane.f32.xlu0 %v3722_v34 }
0x483f   :  { %v3724_v38 = vpop.xlane.xlu0 %3723 }
0x4840   :  { %v3725_v39 = vmul.f32 0.015625, %v3724_v38 }
0x4842   :  { %v3726_v41 = vsub.f32 %v3719_v32, %v3725_v39 }
0x4844   :  { %v3727_v42 = vmul.f32 %v3726_v41, %v3726_v41 }
0x4846   :  { %v3728_v44 = vsel %vm125_vm3, %v3727_v42, 0.0 }
0x4847   :  { %3729 = vadd.xlane.f32.xlu1 %v3728_v44 }
0x48d4   :  { %v3730_v45 = vpop.xlane.xlu1 %3729 }
0x48d5   :  { %v3731_v40 = vmul.f32 0.015625, %v3730_v45 }
0x48d7   :  { %v3732_v4 = vadd.f32 1e-05, %v3731_v40 }
0x48d9   :  { %9926 = vrsqrt.f32 %v3732_v4 }
0x48e3   :  { %v9927_v46 = vpop.eup %9926 }
0x48e4   :  { %v3734_v36 = vmul.f32 %v9927_v46, %v3726_v41 }
0x48e6   :  { %v3735_v47 = vmul.f32 %v3734_v36, %v10162_v35 }
0x48e8   :  { %v3736_v48 = vadd.f32 %v3735_v47, %v10165_v37 }
0x48ea   :  { %9928 = vtanh.f32 %v3736_v48 }
0x48f4   :  { %v9929_v51 = vpop.eup %9928 }
0x48f5   :  { %8559 = vmatmul.mubr.msk.f32.vlgmr.msra.gmra.mrb[42].mxu1 %vm155_vm4, %v9929_v51 }
0x48f6   :  { %8581 = vmatpush3.msk.msra.mxu1 %vm51_vm0, %v10843_v53  ;;  %8582 = vmatprep.mubr.msk.f32.mxu1 %vm10045_vm2, %v10044_v0 }
0x48f7   :  { %9511 = vmatprep.subr.bf16.mxu1 %v10046_v20 }
0x49c8   :  { %v3807_v52 = vpop.f32.mrb[42].mxu1 }
0x49c9   :  { %v3808_v54 = vadd.f32 %v3807_v52, %v10177_v43  ;;  %v8560_v56 = vpop.f32.mrb[43].mxu1 }
0x49cb   :  { %v3811_v57 = vsel %vm125_vm3, %v3808_v54, 0.0 }
0x49cc   :  { %3812 = vadd.xlane.f32.xlu0 %v3811_v57 }
0x4a59   :  { %v3813_v50 = vpop.xlane.xlu0 %3812 }
0x4a5a   :  { %v3814_v18 = vmul.f32 0.015625, %v3813_v50 }
0x4a5c   :  { %v3815_v63 = vsub.f32 %v3808_v54, %v3814_v18 }
0x4a5e   :  { %v3816_v59 = vmul.f32 %v3815_v63, %v3815_v63 }
0x4a60   :  { %v3817_v60 = vsel %vm125_vm3, %v3816_v59, 0.0 }
0x4a61   :  { %3818 = vadd.xlane.f32.xlu1 %v3817_v60 }
0x4aee   :  { %v3819_v62 = vpop.xlane.xlu1 %3818 }
0x4aef   :  { %v3820_v5 = vmul.f32 0.015625, %v3819_v62 }
0x4af1   :  { %v3821_v8 = vadd.f32 1e-05, %v3820_v5 }
0x4af3   :  { %9930 = vrsqrt.f32 %v3821_v8 }
0x4afd   :  { %v9931_v10 = vpop.eup %9930 }
0x4afe   :  { %v3823_v11 = vmul.f32 %v9931_v10, %v3815_v63 }
0x4b00   :  { %v3824_v15 = vmul.f32 %v3823_v11, %v10225_v12 }
0x4b02   :  { %v3825_v16 = vadd.f32 %v3824_v15, %v10228_v14 }
0x4b04   :  { %9932 = vtanh.f32 %v3825_v16 }
0x4b0e   :  { %v9933_v17 = vpop.eup %9932 }
0x4b0f   :  { %8578 = vmatmul.mubr.msk.f32.vlgmr.msra.gmra.mrb[44].mxu0 %vm155_vm4, %v9933_v17 }
0x4b10   :  { %9501 = vmatpush3.bf16.msra.mxu0 %v10123_v19  ;;  %8601 = vmatprep.mubr.msk.f32.mxu0 %vm10045_vm2, %v10044_v0 }
0x4b11   :  { %9502 = vmatprep.subr.bf16.mxu0 %v10046_v20 }
0x4b14   :  { %9504 = vmatpush3.bf16.msra.mxu0 %v10135_v23 }
0x4b15   :  { %9505 = vmatprep.subr.bf16.mxu0 %v10046_v20 }
0x4b18   :  { %9507 = vmatpush3.bf16.msra.mxu0 %v10145_v26 }
0x4b19   :  { %9508 = vmatprep.subr.bf16.mxu0 %v10046_v20 }
0x4b1c   :  { %9510 = vmatpush3.bf16.msra.mxu0 %v10154_v29 }
0x4b1d   :  { %8623 = vmatprep.subr.mxu0 %v10044_v0 }
0x4be2   :  { %v3896_v6 = vpop.f32.mrb[44].mxu0 }
0x4be3   :  { %v10916_v28 = vadd.f32 %v10913_v13, %v3896_v6  ;;  %v8579_v21 = vpop.f32.mrb[45].mxu0 }
0x4be5   :  { %v3901_v22 = vadd.f32 %v3900_v2, %v10916_v28  ;;  %v4155_v16 = vadd.f32 %v10916_v28, %v10867_v9 }
0x4be7   :  { %v3902_v24 = vmul.f32 0.099999994, %v3901_v22  ;;  %v4156_v17 = vmul.f32 3.0, %v4155_v16 }
0x4be9   :  { %v3903_v25 = vadd.f32 %v3902_v24, %v10770_v1  ;;  %v4157_v21 = vadd.f32 %v4156_v17, %v10819_v31 }
0x4beb   :  { %8583 = vmatmul.mubr.msk.f32.vlgmr.msra.gmra.mrb[44].mxu1 %vm47_vm1, %v3903_v25 }
0x4bec   :  { %9513 = vmatpush3.bf16.msra.mxu1 %v10188_v55  ;;  %8620 = vmatprep.mubr.msk.f32.mxu1 %vm10045_vm2, %v10044_v0 }
0x4bed   :  { %9514 = vmatprep.subr.bf16.mxu1 %v10046_v20 }
0x4bf0   :  { %9516 = vmatpush3.bf16.msra.mxu1 %v10198_v58 }
0x4bf1   :  { %9517 = vmatprep.subr.bf16.mxu1 %v10046_v20 }
0x4bf4   :  { %9519 = vmatpush3.bf16.msra.mxu1 %v10208_v61 }
0x4bf5   :  { %9520 = vmatprep.subr.bf16.mxu1 %v10046_v20 }
0x4bf8   :  { %9522 = vmatpush3.bf16.msra.mxu1 %v10217_v3 }
0x4bf9   :  { %9523 = vmatprep.subr.bf16.mxu1 %v10046_v20 }
0x4cbe   :  { %v3973_v27 = vpop.f32.mrb[44].mxu1 }
0x4cbf   :  { %v3974_v30 = vadd.f32 %v3973_v27, %v10112_v7  ;;  %v8584_v49 = vpop.f32.mrb[45].mxu1 }
0x4cc1   :  { %v3977_v32 = vsel %vm125_vm3, %v3974_v30, 0.0 }
0x4cc2   :  { %3978 = vadd.xlane.f32.xlu0 %v3977_v32 }
0x4d4f   :  { %v3979_v33 = vpop.xlane.xlu0 %3978 }
0x4d50   :  { %v3980_v34 = vmul.f32 0.015625, %v3979_v33 }
0x4d52   :  { %v3981_v38 = vsub.f32 %v3974_v30, %v3980_v34 }
0x4d54   :  { %v3982_v39 = vmul.f32 %v3981_v38, %v3981_v38 }
0x4d56   :  { %v3983_v41 = vsel %vm125_vm3, %v3982_v39, 0.0 }
0x4d57   :  { %3984 = vadd.xlane.f32.xlu1 %v3983_v41 }
0x4de4   :  { %v3985_v42 = vpop.xlane.xlu1 %3984 }
0x4de5   :  { %v3986_v44 = vmul.f32 0.015625, %v3985_v42 }
0x4de7   :  { %v3987_v45 = vadd.f32 1e-05, %v3986_v44 }
0x4de9   :  { %9934 = vrsqrt.f32 %v3987_v45 }
0x4df3   :  { %v9935_v40 = vpop.eup %9934 }
0x4df4   :  { %v3989_v4 = vmul.f32 %v9935_v40, %v3981_v38 }
0x4df6   :  { %v3990_v46 = vmul.f32 %v3989_v4, %v10162_v35 }
0x4df8   :  { %v3991_v36 = vadd.f32 %v3990_v46, %v10165_v37 }
0x4dfa   :  { %9936 = vtanh.f32 %v3991_v36 }
0x4e04   :  { %v9937_v47 = vpop.eup %9936 }
0x4e05   :  { %8602 = vmatmul.mubr.msk.f32.vlgmr.msra.gmra.mrb[46].mxu0 %vm155_vm4, %v9937_v47 }
0x4e06   :  { %8624 = vmatpush3.msk.msra.mxu0 %vm51_vm0, %v10843_v53  ;;  %8625 = vmatprep.mubr.msk.f32.mxu0 %vm10045_vm2, %v10044_v0 }
0x4e07   :  { %9535 = vmatprep.subr.bf16.mxu0 %v10046_v20 }
0x4ed8   :  { %v4062_v48 = vpop.f32.mrb[46].mxu0 }
0x4ed9   :  { %v4063_v51 = vadd.f32 %v4062_v48, %v10177_v43  ;;  %v8603_v52 = vpop.f32.mrb[47].mxu0 }
0x4edb   :  { %v4066_v54 = vsel %vm125_vm3, %v4063_v51, 0.0 }
0x4edc   :  { %4067 = vadd.xlane.f32.xlu0 %v4066_v54 }
0x4f69   :  { %v4068_v56 = vpop.xlane.xlu0 %4067 }
0x4f6a   :  { %v4069_v57 = vmul.f32 0.015625, %v4068_v56 }
0x4f6c   :  { %v4070_v50 = vsub.f32 %v4063_v51, %v4069_v57 }
0x4f6e   :  { %v4071_v18 = vmul.f32 %v4070_v50, %v4070_v50 }
0x4f70   :  { %v4072_v63 = vsel %vm125_vm3, %v4071_v18, 0.0 }
0x4f71   :  { %4073 = vadd.xlane.f32.xlu1 %v4072_v63 }
0x4ffe   :  { %v4074_v59 = vpop.xlane.xlu1 %4073 }
0x4fff   :  { %v4075_v60 = vmul.f32 0.015625, %v4074_v59 }
0x5001   :  { %v4076_v62 = vadd.f32 1e-05, %v4075_v60 }
0x5003   :  { %9938 = vrsqrt.f32 %v4076_v62 }
0x500d   :  { %v9939_v5 = vpop.eup %9938 }
0x500e   :  { %v4078_v8 = vmul.f32 %v9939_v5, %v4070_v50 }
0x5010   :  { %v4079_v10 = vmul.f32 %v4078_v8, %v10225_v12 }
0x5012   :  { %v4080_v11 = vadd.f32 %v4079_v10, %v10228_v14 }
0x5014   :  { %9940 = vtanh.f32 %v4080_v11 }
0x501e   :  { %v9941_v15 = vpop.eup %9940 }
0x501f   :  { %8621 = vmatmul.mubr.msk.f32.vlgmr.msra.gmra.mrb[46].mxu1 %vm155_vm4, %v9941_v15 }
0x5020   :  { %9525 = vmatpush3.bf16.msra.mxu1 %v10123_v19  ;;  %8644 = vmatprep.mubr.msk.f32.mxu1 %vm10045_vm2, %v10044_v0 }
0x5021   :  { %9526 = vmatprep.subr.bf16.mxu1 %v10046_v20 }
0x5024   :  { %9528 = vmatpush3.bf16.msra.mxu1 %v10135_v23 }
0x5025   :  { %9529 = vmatprep.subr.bf16.mxu1 %v10046_v20 }
0x5028   :  { %9531 = vmatpush3.bf16.msra.mxu1 %v10145_v26 }
0x5029   :  { %9532 = vmatprep.subr.bf16.mxu1 %v10046_v20 }
0x502c   :  { %9534 = vmatpush3.bf16.msra.mxu1 %v10154_v29 }
0x502d   :  { %8666 = vmatprep.subr.mxu1 %v10044_v0 }
0x50f2   :  { %v4151_v6 = vpop.f32.mrb[46].mxu1 }
0x50f3   :  { %v4152_v2 = vadd.f32 %v10913_v13, %v4151_v6  ;;  %v8622_v22 = vpop.f32.mrb[47].mxu1 }
0x50f5   :  { %v4158_v24 = vadd.f32 %v4157_v21, %v4152_v2 }
0x50f7   :  { %v4159_v25 = vmul.f32 0.012499999, %v4158_v24 }
0x50f9   :  { %v10965_v27 = vadd.f32 %v4159_v25, %v10770_v1 }
0x50fb   :  { %v7235_v30 = vsub.f32 %v10965_v27, %v10770_v1  ;;  %8626 = vmatmul.mubr.msk.f32.vlgmr.msra.gmra.mrb[48].mxu0 %vm47_vm1, %v10965_v27 }
0x50fc   :  { %9537 = vmatpush3.bf16.msra.mxu0 %v10188_v55  ;;  %8663 = vmatprep.mubr.msk.f32.mxu0 %vm10045_vm2, %v10044_v0 }
0x50fd   :  { %v7236_v9 = vadd.f32 %v7235_v30, %v10770_v1  ;;  %9538 = vmatprep.subr.bf16.mxu0 %v10046_v20 }
0x50ff   :  { %7371 = vst.msk [vmem:[%s11521_s6 + $0x8] sm:$0x3] %vm7221_vm5, %v7236_v9 }
0x5100   :  { %9540 = vmatpush3.bf16.msra.mxu0 %v10198_v58 }
0x5101   :  { %9541 = vmatprep.subr.bf16.mxu0 %v10046_v20 }
0x5104   :  { %9543 = vmatpush3.bf16.msra.mxu0 %v10208_v61 }
0x5105   :  { %9544 = vmatprep.subr.bf16.mxu0 %v10046_v20 }
0x5108   :  { %9546 = vmatpush3.bf16.msra.mxu0 %v10217_v3 }
0x5109   :  { %9547 = vmatprep.subr.bf16.mxu0 %v10046_v20 }
0x51ce   :  { %v4230_v1 = vpop.f32.mrb[48].mxu0 }
0x51cf   :  { %v4231_v31 = vadd.f32 %v4230_v1, %v10112_v7  ;;  %v8627_v28 = vpop.f32.mrb[49].mxu0 }
0x51d1   :  { %v4234_v49 = vsel %vm125_vm3, %v4231_v31, 0.0 }
0x51d2   :  { %4235 = vadd.xlane.f32.xlu0 %v4234_v49 }
0x525f   :  { %v4236_v32 = vpop.xlane.xlu0 %4235 }
0x5260   :  { %v4237_v33 = vmul.f32 0.015625, %v4236_v32 }
0x5262   :  { %v4238_v34 = vsub.f32 %v4231_v31, %v4237_v33 }
0x5264   :  { %v4239_v38 = vmul.f32 %v4238_v34, %v4238_v34 }
0x5266   :  { %v4240_v39 = vsel %vm125_vm3, %v4239_v38, 0.0 }
0x5267   :  { %4241 = vadd.xlane.f32.xlu1 %v4240_v39 }
0x52f4   :  { %v4242_v41 = vpop.xlane.xlu1 %4241 }
0x52f5   :  { %v4243_v42 = vmul.f32 0.015625, %v4242_v41 }
0x52f7   :  { %v4244_v44 = vadd.f32 1e-05, %v4243_v42 }
0x52f9   :  { %9942 = vrsqrt.f32 %v4244_v44 }
0x5303   :  { %v9943_v45 = vpop.eup %9942 }
0x5304   :  { %v4246_v40 = vmul.f32 %v9943_v45, %v4238_v34 }
0x5306   :  { %v4247_v4 = vmul.f32 %v4246_v40, %v10162_v35 }
0x5308   :  { %v4248_v46 = vadd.f32 %v4247_v4, %v10165_v37 }
0x530a   :  { %9944 = vtanh.f32 %v4248_v46 }
0x5314   :  { %v9945_v36 = vpop.eup %9944 }
0x5315   :  { %8645 = vmatmul.mubr.msk.f32.vlgmr.msra.gmra.mrb[48].mxu1 %vm155_vm4, %v9945_v36 }
0x5316   :  { %8667 = vmatpush3.msk.msra.mxu1 %vm51_vm0, %v10843_v53  ;;  %8668 = vmatprep.mubr.msk.f32.mxu1 %vm10045_vm2, %v10044_v0 }
0x5317   :  { %9559 = vmatprep.subr.bf16.mxu1 %v10046_v20 }
0x53e8   :  { %v4319_v47 = vpop.f32.mrb[48].mxu1 }
0x53e9   :  { %v4320_v48 = vadd.f32 %v4319_v47, %v10177_v43  ;;  %v8646_v51 = vpop.f32.mrb[49].mxu1 }
0x53eb   :  { %v4323_v52 = vsel %vm125_vm3, %v4320_v48, 0.0 }
0x53ec   :  { %4324 = vadd.xlane.f32.xlu0 %v4323_v52 }
0x5479   :  { %v4325_v54 = vpop.xlane.xlu0 %4324 }
0x547a   :  { %v4326_v56 = vmul.f32 0.015625, %v4325_v54 }
0x547c   :  { %v4327_v57 = vsub.f32 %v4320_v48, %v4326_v56 }
0x547e   :  { %v4328_v50 = vmul.f32 %v4327_v57, %v4327_v57 }
0x5480   :  { %v4329_v18 = vsel %vm125_vm3, %v4328_v50, 0.0 }
0x5481   :  { %4330 = vadd.xlane.f32.xlu1 %v4329_v18 }
0x550e   :  { %v4331_v63 = vpop.xlane.xlu1 %4330 }
0x550f   :  { %v4332_v59 = vmul.f32 0.015625, %v4331_v63 }
0x5511   :  { %v4333_v60 = vadd.f32 1e-05, %v4332_v59 }
0x5513   :  { %9946 = vrsqrt.f32 %v4333_v60 }
0x551d   :  { %v9947_v62 = vpop.eup %9946 }
0x551e   :  { %v4335_v5 = vmul.f32 %v9947_v62, %v4327_v57 }
0x5520   :  { %v4336_v8 = vmul.f32 %v4335_v5, %v10225_v12 }
0x5522   :  { %v4337_v10 = vadd.f32 %v4336_v8, %v10228_v14 }
0x5524   :  { %9948 = vtanh.f32 %v4337_v10 }
0x552e   :  { %v9949_v11 = vpop.eup %9948 }
0x552f   :  { %8664 = vmatmul.mubr.msk.f32.vlgmr.msra.gmra.mrb[50].mxu0 %vm155_vm4, %v9949_v11 }
0x5530   :  { %9549 = vmatpush3.bf16.msra.mxu0 %v10123_v19  ;;  %8687 = vmatprep.mubr.msk.f32.mxu0 %vm10045_vm2, %v10044_v0 }
0x5531   :  { %9550 = vmatprep.subr.bf16.mxu0 %v10046_v20 }
0x5534   :  { %9552 = vmatpush3.bf16.msra.mxu0 %v10135_v23 }
0x5535   :  { %9553 = vmatprep.subr.bf16.mxu0 %v10046_v20 }
0x5538   :  { %9555 = vmatpush3.bf16.msra.mxu0 %v10145_v26 }
0x5539   :  { %9556 = vmatprep.subr.bf16.mxu0 %v10046_v20 }
0x553c   :  { %9558 = vmatpush3.bf16.msra.mxu0 %v10154_v29 }
0x553d   :  { %8709 = vmatprep.subr.mxu0 %v10044_v0 }
0x5602   :  { %v4408_v15 = vpop.f32.mrb[50].mxu0 }
0x5603   :  { %v11014_v16 = vadd.f32 %v10913_v13, %v4408_v15  ;;  %v8665_v17 = vpop.f32.mrb[51].mxu0 }
0x5605   :  { %v4412_v6 = vmul.f32 0.03333333, %v11014_v16  ;;  %v4665_v5 = vmul.f32 0.33333334, %v11014_v16 }
0x5607   :  { %v4413_v2 = vadd.f32 %v4412_v6, %v10965_v27 }
0x5609   :  { %8669 = vmatmul.mubr.msk.f32.vlgmr.msra.gmra.mrb[50].mxu1 %vm47_vm1, %v4413_v2 }
0x560a   :  { %9561 = vmatpush3.bf16.msra.mxu1 %v10188_v55  ;;  %8706 = vmatprep.mubr.msk.f32.mxu1 %vm10045_vm2, %v10044_v0 }
0x560b   :  { %9562 = vmatprep.subr.bf16.mxu1 %v10046_v20 }
0x560e   :  { %9564 = vmatpush3.bf16.msra.mxu1 %v10198_v58 }
0x560f   :  { %9565 = vmatprep.subr.bf16.mxu1 %v10046_v20 }
0x5612   :  { %9567 = vmatpush3.bf16.msra.mxu1 %v10208_v61 }
0x5613   :  { %9568 = vmatprep.subr.bf16.mxu1 %v10046_v20 }
0x5616   :  { %9570 = vmatpush3.bf16.msra.mxu1 %v10217_v3 }
0x5617   :  { %9571 = vmatprep.subr.bf16.mxu1 %v10046_v20 }
0x56dc   :  { %v4483_v21 = vpop.f32.mrb[50].mxu1 }
0x56dd   :  { %v4484_v22 = vadd.f32 %v4483_v21, %v10112_v7  ;;  %v8670_v24 = vpop.f32.mrb[51].mxu1 }
0x56df   :  { %v4487_v25 = vsel %vm125_vm3, %v4484_v22, 0.0 }
0x56e0   :  { %4488 = vadd.xlane.f32.xlu0 %v4487_v25 }
0x576d   :  { %v4489_v30 = vpop.xlane.xlu0 %4488 }
0x576e   :  { %v4490_v9 = vmul.f32 0.015625, %v4489_v30 }
0x5770   :  { %v4491_v1 = vsub.f32 %v4484_v22, %v4490_v9 }
0x5772   :  { %v4492_v31 = vmul.f32 %v4491_v1, %v4491_v1 }
0x5774   :  { %v4493_v28 = vsel %vm125_vm3, %v4492_v31, 0.0 }
0x5775   :  { %4494 = vadd.xlane.f32.xlu1 %v4493_v28 }
0x5802   :  { %v4495_v49 = vpop.xlane.xlu1 %4494 }
0x5803   :  { %v4496_v32 = vmul.f32 0.015625, %v4495_v49 }
0x5805   :  { %v4497_v33 = vadd.f32 1e-05, %v4496_v32 }
0x5807   :  { %9950 = vrsqrt.f32 %v4497_v33 }
0x5811   :  { %v9951_v34 = vpop.eup %9950 }
0x5812   :  { %v4499_v38 = vmul.f32 %v9951_v34, %v4491_v1 }
0x5814   :  { %v4500_v39 = vmul.f32 %v4499_v38, %v10162_v35 }
0x5816   :  { %v4501_v41 = vadd.f32 %v4500_v39, %v10165_v37 }
0x5818   :  { %9952 = vtanh.f32 %v4501_v41 }
0x5822   :  { %v9953_v42 = vpop.eup %9952 }
0x5823   :  { %8688 = vmatmul.mubr.msk.f32.vlgmr.msra.gmra.mrb[52].mxu0 %vm155_vm4, %v9953_v42 }
0x5824   :  { %8710 = vmatpush3.msk.msra.mxu0 %vm51_vm0, %v10843_v53  ;;  %8711 = vmatprep.mubr.msk.f32.mxu0 %vm10045_vm2, %v10044_v0 }
0x5825   :  { %9583 = vmatprep.subr.bf16.mxu0 %v10046_v20 }
0x58f6   :  { %v4572_v44 = vpop.f32.mrb[52].mxu0 }
0x58f7   :  { %v4573_v45 = vadd.f32 %v4572_v44, %v10177_v43  ;;  %v8689_v40 = vpop.f32.mrb[53].mxu0 }
0x58f9   :  { %v4576_v4 = vsel %vm125_vm3, %v4573_v45, 0.0 }
0x58fa   :  { %4577 = vadd.xlane.f32.xlu0 %v4576_v4 }
0x5987   :  { %v4578_v46 = vpop.xlane.xlu0 %4577 }
0x5988   :  { %v4579_v36 = vmul.f32 0.015625, %v4578_v46 }
0x598a   :  { %v4580_v47 = vsub.f32 %v4573_v45, %v4579_v36 }
0x598c   :  { %v4581_v48 = vmul.f32 %v4580_v47, %v4580_v47 }
0x598e   :  { %v4582_v51 = vsel %vm125_vm3, %v4581_v48, 0.0 }
0x598f   :  { %4583 = vadd.xlane.f32.xlu1 %v4582_v51 }
0x5a1c   :  { %v4584_v52 = vpop.xlane.xlu1 %4583 }
0x5a1d   :  { %v4585_v54 = vmul.f32 0.015625, %v4584_v52 }
0x5a1f   :  { %v4586_v56 = vadd.f32 1e-05, %v4585_v54 }
0x5a21   :  { %9954 = vrsqrt.f32 %v4586_v56 }
0x5a2b   :  { %v9955_v57 = vpop.eup %9954 }
0x5a2c   :  { %v4588_v50 = vmul.f32 %v9955_v57, %v4580_v47 }
0x5a2e   :  { %v4589_v18 = vmul.f32 %v4588_v50, %v10225_v12 }
0x5a30   :  { %v4590_v63 = vadd.f32 %v4589_v18, %v10228_v14 }
0x5a32   :  { %9956 = vtanh.f32 %v4590_v63 }
0x5a3c   :  { %v9957_v59 = vpop.eup %9956 }
0x5a3d   :  { %8707 = vmatmul.mubr.msk.f32.vlgmr.msra.gmra.mrb[52].mxu1 %vm155_vm4, %v9957_v59 }
0x5a3e   :  { %9573 = vmatpush3.bf16.msra.mxu1 %v10123_v19  ;;  %8730 = vmatprep.mubr.msk.f32.mxu1 %vm10045_vm2, %v10044_v0 }
0x5a3f   :  { %9574 = vmatprep.subr.bf16.mxu1 %v10046_v20 }
0x5a42   :  { %9576 = vmatpush3.bf16.msra.mxu1 %v10135_v23 }
0x5a43   :  { %9577 = vmatprep.subr.bf16.mxu1 %v10046_v20 }
0x5a46   :  { %9579 = vmatpush3.bf16.msra.mxu1 %v10145_v26 }
0x5a47   :  { %9580 = vmatprep.subr.bf16.mxu1 %v10046_v20 }
0x5a4a   :  { %9582 = vmatpush3.bf16.msra.mxu1 %v10154_v29 }
0x5a4b   :  { %8752 = vmatprep.subr.mxu1 %v10044_v0 }
0x5b10   :  { %v4661_v60 = vpop.f32.mrb[52].mxu1 }
0x5b11   :  { %v11057_v62 = vadd.f32 %v10913_v13, %v4661_v60  ;;  %v8708_v8 = vpop.f32.mrb[53].mxu1 }
0x5b13   :  { %v4666_v10 = vsub.f32 %v11057_v62, %v4665_v5  ;;  %v4920_v59 = vsub.f32 %v11014_v16, %v11057_v62 }
0x5b15   :  { %v4667_v11 = vmul.f32 0.099999994, %v4666_v10 }
0x5b17   :  { %v4668_v15 = vadd.f32 %v4667_v11, %v10965_v27 }
0x5b19   :  { %8712 = vmatmul.mubr.msk.f32.vlgmr.msra.gmra.mrb[54].mxu0 %vm47_vm1, %v4668_v15 }
0x5b1a   :  { %9585 = vmatpush3.bf16.msra.mxu0 %v10188_v55  ;;  %8749 = vmatprep.mubr.msk.f32.mxu0 %vm10045_vm2, %v10044_v0 }
0x5b1b   :  { %9586 = vmatprep.subr.bf16.mxu0 %v10046_v20 }
0x5b1e   :  { %9588 = vmatpush3.bf16.msra.mxu0 %v10198_v58 }
0x5b1f   :  { %9589 = vmatprep.subr.bf16.mxu0 %v10046_v20 }
0x5b22   :  { %9591 = vmatpush3.bf16.msra.mxu0 %v10208_v61 }
0x5b23   :  { %9592 = vmatprep.subr.bf16.mxu0 %v10046_v20 }
0x5b26   :  { %9594 = vmatpush3.bf16.msra.mxu0 %v10217_v3 }
0x5b27   :  { %9595 = vmatprep.subr.bf16.mxu0 %v10046_v20 }
0x5bec   :  { %v4738_v17 = vpop.f32.mrb[54].mxu0 }
0x5bed   :  { %v4739_v6 = vadd.f32 %v4738_v17, %v10112_v7  ;;  %v8713_v2 = vpop.f32.mrb[55].mxu0 }
0x5bef   :  { %v4742_v21 = vsel %vm125_vm3, %v4739_v6, 0.0 }
0x5bf0   :  { %4743 = vadd.xlane.f32.xlu0 %v4742_v21 }
0x5c7d   :  { %v4744_v22 = vpop.xlane.xlu0 %4743 }
0x5c7e   :  { %v4745_v24 = vmul.f32 0.015625, %v4744_v22 }
0x5c80   :  { %v4746_v25 = vsub.f32 %v4739_v6, %v4745_v24 }
0x5c82   :  { %v4747_v30 = vmul.f32 %v4746_v25, %v4746_v25 }
0x5c84   :  { %v4748_v9 = vsel %vm125_vm3, %v4747_v30, 0.0 }
0x5c85   :  { %4749 = vadd.xlane.f32.xlu1 %v4748_v9 }
0x5d12   :  { %v4750_v1 = vpop.xlane.xlu1 %4749 }
0x5d13   :  { %v4751_v31 = vmul.f32 0.015625, %v4750_v1 }
0x5d15   :  { %v4752_v28 = vadd.f32 1e-05, %v4751_v31 }
0x5d17   :  { %9958 = vrsqrt.f32 %v4752_v28 }
0x5d21   :  { %v9959_v49 = vpop.eup %9958 }
0x5d22   :  { %v4754_v32 = vmul.f32 %v9959_v49, %v4746_v25 }
0x5d24   :  { %v4755_v33 = vmul.f32 %v4754_v32, %v10162_v35 }
0x5d26   :  { %v4756_v34 = vadd.f32 %v4755_v33, %v10165_v37 }
0x5d28   :  { %9960 = vtanh.f32 %v4756_v34 }
0x5d32   :  { %v9961_v38 = vpop.eup %9960 }
0x5d33   :  { %8731 = vmatmul.mubr.msk.f32.vlgmr.msra.gmra.mrb[54].mxu1 %vm155_vm4, %v9961_v38 }
0x5d34   :  { %8753 = vmatpush3.msk.msra.mxu1 %vm51_vm0, %v10843_v53  ;;  %8754 = vmatprep.mubr.msk.f32.mxu1 %vm10045_vm2, %v10044_v0 }
0x5d35   :  { %9607 = vmatprep.subr.bf16.mxu1 %v10046_v20 }
0x5e06   :  { %v4827_v39 = vpop.f32.mrb[54].mxu1 }
0x5e07   :  { %v4828_v41 = vadd.f32 %v4827_v39, %v10177_v43  ;;  %v8732_v42 = vpop.f32.mrb[55].mxu1 }
0x5e09   :  { %v4831_v44 = vsel %vm125_vm3, %v4828_v41, 0.0 }
0x5e0a   :  { %4832 = vadd.xlane.f32.xlu0 %v4831_v44 }
0x5e97   :  { %v4833_v45 = vpop.xlane.xlu0 %4832 }
0x5e98   :  { %v4834_v40 = vmul.f32 0.015625, %v4833_v45 }
0x5e9a   :  { %v4835_v4 = vsub.f32 %v4828_v41, %v4834_v40 }
0x5e9c   :  { %v4836_v46 = vmul.f32 %v4835_v4, %v4835_v4 }
0x5e9e   :  { %v4837_v36 = vsel %vm125_vm3, %v4836_v46, 0.0 }
0x5e9f   :  { %4838 = vadd.xlane.f32.xlu1 %v4837_v36 }
0x5f2c   :  { %v4839_v47 = vpop.xlane.xlu1 %4838 }
0x5f2d   :  { %v4840_v48 = vmul.f32 0.015625, %v4839_v47 }
0x5f2f   :  { %v4841_v51 = vadd.f32 1e-05, %v4840_v48 }
0x5f31   :  { %9962 = vrsqrt.f32 %v4841_v51 }
0x5f3b   :  { %v9963_v52 = vpop.eup %9962 }
0x5f3c   :  { %v4843_v54 = vmul.f32 %v9963_v52, %v4835_v4 }
0x5f3e   :  { %v4844_v56 = vmul.f32 %v4843_v54, %v10225_v12 }
0x5f40   :  { %v4845_v57 = vadd.f32 %v4844_v56, %v10228_v14 }
0x5f42   :  { %9964 = vtanh.f32 %v4845_v57 }
0x5f4c   :  { %v9965_v50 = vpop.eup %9964 }
0x5f4d   :  { %8750 = vmatmul.mubr.msk.f32.vlgmr.msra.gmra.mrb[56].mxu0 %vm155_vm4, %v9965_v50 }
0x5f4e   :  { %9597 = vmatpush3.bf16.msra.mxu0 %v10123_v19  ;;  %8773 = vmatprep.mubr.msk.f32.mxu0 %vm10045_vm2, %v10044_v0 }
0x5f4f   :  { %9598 = vmatprep.subr.bf16.mxu0 %v10046_v20 }
0x5f52   :  { %9600 = vmatpush3.bf16.msra.mxu0 %v10135_v23 }
0x5f53   :  { %9601 = vmatprep.subr.bf16.mxu0 %v10046_v20 }
0x5f56   :  { %9603 = vmatpush3.bf16.msra.mxu0 %v10145_v26 }
0x5f57   :  { %9604 = vmatprep.subr.bf16.mxu0 %v10046_v20 }
0x5f5a   :  { %9606 = vmatpush3.bf16.msra.mxu0 %v10154_v29 }
0x5f5b   :  { %8795 = vmatprep.subr.mxu0 %v10044_v0 }
0x6020   :  { %v4916_v18 = vpop.f32.mrb[56].mxu0 }
0x6021   :  { %v11101_v63 = vadd.f32 %v10913_v13, %v4916_v18  ;;  %v8751_v60 = vpop.f32.mrb[57].mxu0 }
0x6023   :  { %v4921_v5 = vadd.f32 %v4920_v59, %v11101_v63  ;;  %v5175_v56 = vadd.f32 %v11101_v63, %v11057_v62 }
0x6025   :  { %v4922_v8 = vmul.f32 0.099999994, %v4921_v5  ;;  %v5176_v57 = vmul.f32 3.0, %v5175_v56 }
0x6027   :  { %v4923_v10 = vadd.f32 %v4922_v8, %v10965_v27  ;;  %v5177_v59 = vadd.f32 %v5176_v57, %v11014_v16 }
0x6029   :  { %8755 = vmatmul.mubr.msk.f32.vlgmr.msra.gmra.mrb[56].mxu1 %vm47_vm1, %v4923_v10 }
0x602a   :  { %9609 = vmatpush3.bf16.msra.mxu1 %v10188_v55  ;;  %8792 = vmatprep.mubr.msk.f32.mxu1 %vm10045_vm2, %v10044_v0 }
0x602b   :  { %9610 = vmatprep.subr.bf16.mxu1 %v10046_v20 }
0x602e   :  { %9612 = vmatpush3.bf16.msra.mxu1 %v10198_v58 }
0x602f   :  { %9613 = vmatprep.subr.bf16.mxu1 %v10046_v20 }
0x6032   :  { %9615 = vmatpush3.bf16.msra.mxu1 %v10208_v61 }
0x6033   :  { %9616 = vmatprep.subr.bf16.mxu1 %v10046_v20 }
0x6036   :  { %9618 = vmatpush3.bf16.msra.mxu1 %v10217_v3 }
0x6037   :  { %9619 = vmatprep.subr.bf16.mxu1 %v10046_v20 }
0x60fc   :  { %v4993_v11 = vpop.f32.mrb[56].mxu1 }
0x60fd   :  { %v4994_v15 = vadd.f32 %v4993_v11, %v10112_v7  ;;  %v8756_v17 = vpop.f32.mrb[57].mxu1 }
0x60ff   :  { %v4997_v6 = vsel %vm125_vm3, %v4994_v15, 0.0 }
0x6100   :  { %4998 = vadd.xlane.f32.xlu0 %v4997_v6 }
0x618d   :  { %v4999_v2 = vpop.xlane.xlu0 %4998 }
0x618e   :  { %v5000_v21 = vmul.f32 0.015625, %v4999_v2 }
0x6190   :  { %v5001_v22 = vsub.f32 %v4994_v15, %v5000_v21 }
0x6192   :  { %v5002_v24 = vmul.f32 %v5001_v22, %v5001_v22 }
0x6194   :  { %v5003_v25 = vsel %vm125_vm3, %v5002_v24, 0.0 }
0x6195   :  { %5004 = vadd.xlane.f32.xlu1 %v5003_v25 }
0x6222   :  { %v5005_v30 = vpop.xlane.xlu1 %5004 }
0x6223   :  { %v5006_v9 = vmul.f32 0.015625, %v5005_v30 }
0x6225   :  { %v5007_v1 = vadd.f32 1e-05, %v5006_v9 }
0x6227   :  { %9966 = vrsqrt.f32 %v5007_v1 }
0x6231   :  { %v9967_v31 = vpop.eup %9966 }
0x6232   :  { %v5009_v28 = vmul.f32 %v9967_v31, %v5001_v22 }
0x6234   :  { %v5010_v49 = vmul.f32 %v5009_v28, %v10162_v35 }
0x6236   :  { %v5011_v32 = vadd.f32 %v5010_v49, %v10165_v37 }
0x6238   :  { %9968 = vtanh.f32 %v5011_v32  ;;  %v11180_v32 = vld [vmem:[%s11515_s1] sm:$0x1f] }
0x6242   :  { %v9969_v33 = vpop.eup %9968 }
0x6243   :  { %8774 = vmatmul.mubr.msk.f32.vlgmr.msra.gmra.mrb[58].mxu0 %vm155_vm4, %v9969_v33 }
0x6244   :  { %8796 = vmatpush3.msk.msra.mxu0 %vm51_vm0, %v10843_v53  ;;  %8797 = vmatprep.mubr.msk.f32.mxu0 %vm10045_vm2, %v10044_v0 }
0x6245   :  { %9631 = vmatprep.subr.bf16.mxu0 %v10046_v20 }
0x6316   :  { %v5082_v34 = vpop.f32.mrb[58].mxu0 }
0x6317   :  { %v5083_v38 = vadd.f32 %v5082_v34, %v10177_v43  ;;  %v8775_v39 = vpop.f32.mrb[59].mxu0 }
0x6319   :  { %v5086_v41 = vsel %vm125_vm3, %v5083_v38, 0.0 }
0x631a   :  { %5087 = vadd.xlane.f32.xlu0 %v5086_v41 }
0x63a7   :  { %v5088_v42 = vpop.xlane.xlu0 %5087 }
0x63a8   :  { %v5089_v44 = vmul.f32 0.015625, %v5088_v42 }
0x63aa   :  { %v5090_v45 = vsub.f32 %v5083_v38, %v5089_v44 }
0x63ac   :  { %v5091_v40 = vmul.f32 %v5090_v45, %v5090_v45 }
0x63ae   :  { %v5092_v4 = vsel %vm125_vm3, %v5091_v40, 0.0 }
0x63af   :  { %5093 = vadd.xlane.f32.xlu1 %v5092_v4 }
0x643c   :  { %v5094_v53 = vpop.xlane.xlu1 %5093 }
0x643d   :  { %v5095_v46 = vmul.f32 0.015625, %v5094_v53 }
0x643f   :  { %v5096_v36 = vadd.f32 1e-05, %v5095_v46 }
0x6441   :  { %9970 = vrsqrt.f32 %v5096_v36 }
0x644b   :  { %v9971_v47 = vpop.eup %9970 }
0x644c   :  { %v5098_v48 = vmul.f32 %v9971_v47, %v5090_v45 }
0x644e   :  { %v5099_v51 = vmul.f32 %v5098_v48, %v10225_v12 }
0x6450   :  { %v5100_v52 = vadd.f32 %v5099_v51, %v10228_v14 }
0x6452   :  { %9972 = vtanh.f32 %v5100_v52 }
0x645c   :  { %v9973_v54 = vpop.eup %9972 }
0x645d   :  { %8793 = vmatmul.mubr.msk.f32.vlgmr.msra.gmra.mrb[58].mxu1 %vm155_vm4, %v9973_v54 }
0x645e   :  { %9621 = vmatpush3.bf16.msra.mxu1 %v10123_v19  ;;  %8816 = vmatprep.mubr.msk.f32.mxu1 %vm10045_vm2, %v10044_v0 }
0x645f   :  { %9622 = vmatprep.subr.bf16.mxu1 %v10046_v20 }
0x6462   :  { %9624 = vmatpush3.bf16.msra.mxu1 %v10135_v23 }
0x6463   :  { %9625 = vmatprep.subr.bf16.mxu1 %v10046_v20 }
0x6466   :  { %9627 = vmatpush3.bf16.msra.mxu1 %v10145_v26 }
0x6467   :  { %9628 = vmatprep.subr.bf16.mxu1 %v10046_v20 }
0x646a   :  { %9630 = vmatpush3.bf16.msra.mxu1 %v10154_v29 }
0x646b   :  { %8838 = vmatprep.subr.mxu1 %v10044_v0 }
0x6530   :  { %v5171_v50 = vpop.f32.mrb[58].mxu1 }
0x6531   :  { %v5172_v18 = vadd.f32 %v10913_v13, %v5171_v50  ;;  %v8794_v60 = vpop.f32.mrb[59].mxu1 }
0x6533   :  { %v5178_v5 = vadd.f32 %v5177_v59, %v5172_v18 }
0x6535   :  { %v5179_v8 = vmul.f32 0.012499999, %v5178_v5 }
0x6537   :  { %v11150_v10 = vadd.f32 %v5179_v8, %v10965_v27 }
0x6539   :  { %v7239_v11 = vsub.f32 %v11150_v10, %v10965_v27  ;;  %8798 = vmatmul.mubr.msk.f32.vlgmr.msra.gmra.mrb[60].mxu0 %vm47_vm1, %v11150_v10 }
0x653a   :  { %9633 = vmatpush3.bf16.msra.mxu0 %v10188_v55  ;;  %8835 = vmatprep.mubr.msk.f32.mxu0 %vm10045_vm2, %v10044_v0 }
0x653b   :  { %v7240_v62 = vadd.f32 %v7239_v11, %v10965_v27  ;;  %9634 = vmatprep.subr.bf16.mxu0 %v10046_v20 }
0x653d   :  { %7372 = vst.msk [vmem:[%s11521_s6 + $0xa] sm:$0x3] %vm7221_vm5, %v7240_v62 }
0x653e   :  { %9636 = vmatpush3.bf16.msra.mxu0 %v10198_v58 }
0x653f   :  { %9637 = vmatprep.subr.bf16.mxu0 %v10046_v20 }
0x6542   :  { %9639 = vmatpush3.bf16.msra.mxu0 %v10208_v61 }
0x6543   :  { %9640 = vmatprep.subr.bf16.mxu0 %v10046_v20 }
0x6546   :  { %9642 = vmatpush3.bf16.msra.mxu0 %v10217_v3 }
0x6547   :  { %9643 = vmatprep.subr.bf16.mxu0 %v10046_v20 }
0x660c   :  { %v5250_v27 = vpop.f32.mrb[60].mxu0 }
0x660d   :  { %v5251_v16 = vadd.f32 %v5250_v27, %v10112_v7  ;;  %v8799_v63 = vpop.f32.mrb[61].mxu0 }
0x660f   :  { %v5254_v15 = vsel %vm125_vm3, %v5251_v16, 0.0 }
0x6610   :  { %5255 = vadd.xlane.f32.xlu0 %v5254_v15 }
0x669d   :  { %v5256_v17 = vpop.xlane.xlu0 %5255 }
0x669e   :  { %v5257_v6 = vmul.f32 0.015625, %v5256_v17 }
0x66a0   :  { %v5258_v2 = vsub.f32 %v5251_v16, %v5257_v6 }
0x66a2   :  { %v5259_v21 = vmul.f32 %v5258_v2, %v5258_v2 }
0x66a4   :  { %v5260_v22 = vsel %vm125_vm3, %v5259_v21, 0.0 }
0x66a5   :  { %5261 = vadd.xlane.f32.xlu1 %v5260_v22 }
0x6732   :  { %v5262_v24 = vpop.xlane.xlu1 %5261 }
0x6733   :  { %v5263_v25 = vmul.f32 0.015625, %v5262_v24 }
0x6735   :  { %v5264_v30 = vadd.f32 1e-05, %v5263_v25 }
0x6737   :  { %9974 = vrsqrt.f32 %v5264_v30 }
0x6741   :  { %v9975_v9 = vpop.eup %9974 }
0x6742   :  { %v5266_v1 = vmul.f32 %v9975_v9, %v5258_v2 }
0x6744   :  { %v5267_v31 = vmul.f32 %v5266_v1, %v10162_v35 }
0x6746   :  { %v5268_v28 = vadd.f32 %v5267_v31, %v10165_v37 }
0x6748   :  { %9976 = vtanh.f32 %v5268_v28 }
0x6752   :  { %v9977_v49 = vpop.eup %9976 }
0x6753   :  { %8817 = vmatmul.mubr.msk.f32.vlgmr.msra.gmra.mrb[60].mxu1 %vm155_vm4, %v9977_v49 }
0x6754   :  { %8839 = vmatpush3.msk.msra.mxu1 %vm51_vm0, %v11180_v32  ;;  %8840 = vmatprep.mubr.msk.f32.mxu1 %vm10045_vm2, %v10044_v0 }
0x6755   :  { %9655 = vmatprep.subr.bf16.mxu1 %v10046_v20 }
0x6826   :  { %v5339_v33 = vpop.f32.mrb[60].mxu1 }
0x6827   :  { %v5340_v34 = vadd.f32 %v5339_v33, %v10177_v43  ;;  %v8818_v38 = vpop.f32.mrb[61].mxu1 }
0x6829   :  { %v5343_v39 = vsel %vm125_vm3, %v5340_v34, 0.0 }
0x682a   :  { %5344 = vadd.xlane.f32.xlu0 %v5343_v39 }
0x68b7   :  { %v5345_v41 = vpop.xlane.xlu0 %5344 }
0x68b8   :  { %v5346_v42 = vmul.f32 0.015625, %v5345_v41 }
0x68ba   :  { %v5347_v44 = vsub.f32 %v5340_v34, %v5346_v42 }
0x68bc   :  { %v5348_v45 = vmul.f32 %v5347_v44, %v5347_v44 }
0x68be   :  { %v5349_v40 = vsel %vm125_vm3, %v5348_v45, 0.0 }
0x68bf   :  { %5350 = vadd.xlane.f32.xlu1 %v5349_v40 }
0x694c   :  { %v5351_v4 = vpop.xlane.xlu1 %5350 }
0x694d   :  { %v5352_v53 = vmul.f32 0.015625, %v5351_v4 }
0x694f   :  { %v5353_v46 = vadd.f32 1e-05, %v5352_v53 }
0x6951   :  { %9978 = vrsqrt.f32 %v5353_v46  ;;  %v11249_v46 = vld [vmem:[%s11520_s5] ss:$0 sm:$0xff] }
0x695b   :  { %v9979_v36 = vpop.eup %9978 }
0x695c   :  { %v5355_v47 = vmul.f32 %v9979_v36, %v5347_v44 }
0x695e   :  { %v5356_v48 = vmul.f32 %v5355_v47, %v10225_v12 }
0x6960   :  { %v5357_v51 = vadd.f32 %v5356_v48, %v10228_v14 }
0x6962   :  { %9980 = vtanh.f32 %v5357_v51 }
0x696c   :  { %v9981_v52 = vpop.eup %9980 }
0x696d   :  { %8836 = vmatmul.mubr.msk.f32.vlgmr.msra.gmra.mrb[62].mxu0 %vm155_vm4, %v9981_v52 }
0x696e   :  { %9645 = vmatpush3.bf16.msra.mxu0 %v10123_v19  ;;  %8859 = vmatprep.mubr.msk.f32.mxu0 %vm10045_vm2, %v10044_v0 }
0x696f   :  { %9646 = vmatprep.subr.bf16.mxu0 %v10046_v20 }
0x6972   :  { %9648 = vmatpush3.bf16.msra.mxu0 %v10135_v23 }
0x6973   :  { %9649 = vmatprep.subr.bf16.mxu0 %v10046_v20 }
0x6976   :  { %9651 = vmatpush3.bf16.msra.mxu0 %v10145_v26 }
0x6977   :  { %9652 = vmatprep.subr.bf16.mxu0 %v10046_v20 }
0x697a   :  { %9654 = vmatpush3.bf16.msra.mxu0 %v10154_v29 }
0x697b   :  { %8881 = vmatprep.subr.mxu0 %v10044_v0 }
0x6a40   :  { %v5428_v54 = vpop.f32.mrb[62].mxu0 }
0x6a41   :  { %v11204_v56 = vadd.f32 %v10913_v13, %v5428_v54  ;;  %v8837_v57 = vpop.f32.mrb[63].mxu0 }
0x6a43   :  { %v5432_v50 = vmul.f32 0.033333343, %v11204_v56  ;;  %v5685_v47 = vmul.f32 0.33333334, %v11204_v56 }
0x6a45   :  { %v5433_v18 = vadd.f32 %v5432_v50, %v11150_v10 }
0x6a47   :  { %8841 = vmatmul.mubr.msk.f32.vlgmr.msra.gmra.mrb[62].mxu1 %vm47_vm1, %v5433_v18 }
0x6a48   :  { %9657 = vmatpush3.bf16.msra.mxu1 %v10188_v55  ;;  %8878 = vmatprep.mubr.msk.f32.mxu1 %vm10045_vm2, %v10044_v0 }
0x6a49   :  { %9658 = vmatprep.subr.bf16.mxu1 %v10046_v20 }
0x6a4c   :  { %9660 = vmatpush3.bf16.msra.mxu1 %v10198_v58 }
0x6a4d   :  { %9661 = vmatprep.subr.bf16.mxu1 %v10046_v20 }
0x6a50   :  { %9663 = vmatpush3.bf16.msra.mxu1 %v10208_v61 }
0x6a51   :  { %9664 = vmatprep.subr.bf16.mxu1 %v10046_v20 }
0x6a54   :  { %9666 = vmatpush3.bf16.msra.mxu1 %v10217_v3 }
0x6a55   :  { %9667 = vmatprep.subr.bf16.mxu1 %v10046_v20 }
0x6b1a   :  { %v5503_v13 = vpop.f32.mrb[62].mxu1 }
0x6b1b   :  { %v5504_v59 = vadd.f32 %v5503_v13, %v10112_v7  ;;  %v8842_v60 = vpop.f32.mrb[63].mxu1 }
0x6b1d   :  { %v5507_v5 = vsel %vm125_vm3, %v5504_v59, 0.0 }
0x6b1e   :  { %5508 = vadd.xlane.f32.xlu0 %v5507_v5 }
0x6bab   :  { %v5509_v8 = vpop.xlane.xlu0 %5508 }
0x6bac   :  { %v5510_v11 = vmul.f32 0.015625, %v5509_v8 }
0x6bae   :  { %v5511_v62 = vsub.f32 %v5504_v59, %v5510_v11 }
0x6bb0   :  { %v5512_v27 = vmul.f32 %v5511_v62, %v5511_v62 }
0x6bb2   :  { %v5513_v16 = vsel %vm125_vm3, %v5512_v27, 0.0 }
0x6bb3   :  { %5514 = vadd.xlane.f32.xlu1 %v5513_v16 }
0x6c40   :  { %v5515_v63 = vpop.xlane.xlu1 %5514 }
0x6c41   :  { %v5516_v15 = vmul.f32 0.015625, %v5515_v63 }
0x6c43   :  { %v5517_v17 = vadd.f32 1e-05, %v5516_v15 }
0x6c45   :  { %9982 = vrsqrt.f32 %v5517_v17 }
0x6c4f   :  { %v9983_v6 = vpop.eup %9982 }
0x6c50   :  { %v5519_v2 = vmul.f32 %v9983_v6, %v5511_v62 }
0x6c52   :  { %v5520_v21 = vmul.f32 %v5519_v2, %v10162_v35 }
0x6c54   :  { %v5521_v22 = vadd.f32 %v5520_v21, %v10165_v37 }
0x6c56   :  { %9984 = vtanh.f32 %v5521_v22 }
0x6c60   :  { %v9985_v24 = vpop.eup %9984 }
0x6c61   :  { %8860 = vmatmul.mubr.msk.f32.vlgmr.msra.gmra.mrb[64].mxu0 %vm155_vm4, %v9985_v24 }
0x6c62   :  { %8882 = vmatpush3.msk.msra.mxu0 %vm51_vm0, %v11180_v32  ;;  %8883 = vmatprep.mubr.msk.f32.mxu0 %vm10045_vm2, %v10044_v0 }
0x6c63   :  { %9679 = vmatprep.subr.bf16.mxu0 %v10046_v20 }
0x6d34   :  { %v5592_v25 = vpop.f32.mrb[64].mxu0 }
0x6d35   :  { %v5593_v30 = vadd.f32 %v5592_v25, %v10177_v43  ;;  %v8861_v9 = vpop.f32.mrb[65].mxu0 }
0x6d37   :  { %v5596_v1 = vsel %vm125_vm3, %v5593_v30, 0.0 }
0x6d38   :  { %5597 = vadd.xlane.f32.xlu0 %v5596_v1 }
0x6dc5   :  { %v5598_v31 = vpop.xlane.xlu0 %5597 }
0x6dc6   :  { %v5599_v28 = vmul.f32 0.015625, %v5598_v31 }
0x6dc8   :  { %v5600_v49 = vsub.f32 %v5593_v30, %v5599_v28 }
0x6dca   :  { %v5601_v33 = vmul.f32 %v5600_v49, %v5600_v49 }
0x6dcc   :  { %v5602_v34 = vsel %vm125_vm3, %v5601_v33, 0.0 }
0x6dcd   :  { %5603 = vadd.xlane.f32.xlu1 %v5602_v34 }
0x6e5a   :  { %v5604_v38 = vpop.xlane.xlu1 %5603 }
0x6e5b   :  { %v5605_v39 = vmul.f32 0.015625, %v5604_v38 }
0x6e5d   :  { %v5606_v41 = vadd.f32 1e-05, %v5605_v39 }
0x6e5f   :  { %9986 = vrsqrt.f32 %v5606_v41 }
0x6e69   :  { %v9987_v42 = vpop.eup %9986 }
0x6e6a   :  { %v5608_v44 = vmul.f32 %v9987_v42, %v5600_v49 }
0x6e6c   :  { %v5609_v45 = vmul.f32 %v5608_v44, %v10225_v12 }
0x6e6e   :  { %v5610_v40 = vadd.f32 %v5609_v45, %v10228_v14 }
0x6e70   :  { %9988 = vtanh.f32 %v5610_v40 }
0x6e7a   :  { %v9989_v4 = vpop.eup %9988 }
0x6e7b   :  { %8879 = vmatmul.mubr.msk.f32.vlgmr.msra.gmra.mrb[64].mxu1 %vm155_vm4, %v9989_v4 }
0x6e7c   :  { %9669 = vmatpush3.bf16.msra.mxu1 %v10123_v19  ;;  %8902 = vmatprep.mubr.msk.f32.mxu1 %vm10045_vm2, %v10044_v0 }
0x6e7d   :  { %9670 = vmatprep.subr.bf16.mxu1 %v10046_v20 }
0x6e80   :  { %9672 = vmatpush3.bf16.msra.mxu1 %v10135_v23 }
0x6e81   :  { %9673 = vmatprep.subr.bf16.mxu1 %v10046_v20 }
0x6e84   :  { %9675 = vmatpush3.bf16.msra.mxu1 %v10145_v26 }
0x6e85   :  { %9676 = vmatprep.subr.bf16.mxu1 %v10046_v20 }
0x6e88   :  { %9678 = vmatpush3.bf16.msra.mxu1 %v10154_v29 }
0x6e89   :  { %8924 = vmatprep.subr.mxu1 %v10044_v0 }
0x6f4e   :  { %v5681_v53 = vpop.f32.mrb[64].mxu1 }
0x6f4f   :  { %v11252_v36 = vadd.f32 %v11249_v46, %v5681_v53  ;;  %v8880_v48 = vpop.f32.mrb[65].mxu1 }
0x6f51   :  { %v5686_v51 = vsub.f32 %v11252_v36, %v5685_v47  ;;  %v5940_v4 = vsub.f32 %v11204_v56, %v11252_v36 }
0x6f53   :  { %v5687_v52 = vmul.f32 0.100000024, %v5686_v51 }
0x6f55   :  { %v5688_v54 = vadd.f32 %v5687_v52, %v11150_v10 }
0x6f57   :  { %8884 = vmatmul.mubr.msk.f32.vlgmr.msra.gmra.mrb[66].mxu0 %vm47_vm1, %v5688_v54 }
0x6f58   :  { %9681 = vmatpush3.bf16.msra.mxu0 %v10188_v55  ;;  %8921 = vmatprep.mubr.msk.f32.mxu0 %vm10045_vm2, %v10044_v0 }
0x6f59   :  { %9682 = vmatprep.subr.bf16.mxu0 %v10046_v20 }
0x6f5c   :  { %9684 = vmatpush3.bf16.msra.mxu0 %v10198_v58 }
0x6f5d   :  { %9685 = vmatprep.subr.bf16.mxu0 %v10046_v20 }
0x6f60   :  { %9687 = vmatpush3.bf16.msra.mxu0 %v10208_v61 }
0x6f61   :  { %9688 = vmatprep.subr.bf16.mxu0 %v10046_v20 }
0x6f64   :  { %9690 = vmatpush3.bf16.msra.mxu0 %v10217_v3 }
0x6f65   :  { %9691 = vmatprep.subr.bf16.mxu0 %v10046_v20 }
0x702a   :  { %v5758_v57 = vpop.f32.mrb[66].mxu0 }
0x702b   :  { %v5759_v50 = vadd.f32 %v5758_v57, %v10112_v7  ;;  %v8885_v18 = vpop.f32.mrb[67].mxu0 }
0x702d   :  { %v5762_v13 = vsel %vm125_vm3, %v5759_v50, 0.0 }
0x702e   :  { %5763 = vadd.xlane.f32.xlu0 %v5762_v13 }
0x70bb   :  { %v5764_v59 = vpop.xlane.xlu0 %5763 }
0x70bc   :  { %v5765_v60 = vmul.f32 0.015625, %v5764_v59 }
0x70be   :  { %v5766_v5 = vsub.f32 %v5759_v50, %v5765_v60 }
0x70c0   :  { %v5767_v8 = vmul.f32 %v5766_v5, %v5766_v5 }
0x70c2   :  { %v5768_v11 = vsel %vm125_vm3, %v5767_v8, 0.0 }
0x70c3   :  { %5769 = vadd.xlane.f32.xlu1 %v5768_v11 }
0x7150   :  { %v5770_v62 = vpop.xlane.xlu1 %5769 }
0x7151   :  { %v5771_v27 = vmul.f32 0.015625, %v5770_v62 }
0x7153   :  { %v5772_v16 = vadd.f32 1e-05, %v5771_v27 }
0x7155   :  { %9990 = vrsqrt.f32 %v5772_v16 }
0x715f   :  { %v9991_v63 = vpop.eup %9990 }
0x7160   :  { %v5774_v15 = vmul.f32 %v9991_v63, %v5766_v5 }
0x7162   :  { %v5775_v17 = vmul.f32 %v5774_v15, %v10162_v35 }
0x7164   :  { %v5776_v6 = vadd.f32 %v5775_v17, %v10165_v37 }
0x7166   :  { %9992 = vtanh.f32 %v5776_v6 }
0x7170   :  { %v9993_v2 = vpop.eup %9992 }
0x7171   :  { %8903 = vmatmul.mubr.msk.f32.vlgmr.msra.gmra.mrb[66].mxu1 %vm155_vm4, %v9993_v2 }
0x7172   :  { %8925 = vmatpush3.msk.msra.mxu1 %vm51_vm0, %v11180_v32  ;;  %8926 = vmatprep.mubr.msk.f32.mxu1 %vm10045_vm2, %v10044_v0 }
0x7173   :  { %9703 = vmatprep.subr.bf16.mxu1 %v10046_v20 }
0x7244   :  { %v5847_v21 = vpop.f32.mrb[66].mxu1 }
0x7245   :  { %v5848_v22 = vadd.f32 %v5847_v21, %v10177_v43  ;;  %v8904_v24 = vpop.f32.mrb[67].mxu1 }
0x7247   :  { %v5851_v25 = vsel %vm125_vm3, %v5848_v22, 0.0 }
0x7248   :  { %5852 = vadd.xlane.f32.xlu0 %v5851_v25 }
0x72d5   :  { %v5853_v30 = vpop.xlane.xlu0 %5852 }
0x72d6   :  { %v5854_v9 = vmul.f32 0.015625, %v5853_v30 }
0x72d8   :  { %v5855_v1 = vsub.f32 %v5848_v22, %v5854_v9 }
0x72da   :  { %v5856_v31 = vmul.f32 %v5855_v1, %v5855_v1 }
0x72dc   :  { %v5857_v28 = vsel %vm125_vm3, %v5856_v31, 0.0 }
0x72dd   :  { %5858 = vadd.xlane.f32.xlu1 %v5857_v28 }
0x736a   :  { %v5859_v49 = vpop.xlane.xlu1 %5858 }
0x736b   :  { %v5860_v33 = vmul.f32 0.015625, %v5859_v49 }
0x736d   :  { %v5861_v34 = vadd.f32 1e-05, %v5860_v33 }
0x736f   :  { %9994 = vrsqrt.f32 %v5861_v34 }
0x7379   :  { %v9995_v38 = vpop.eup %9994 }
0x737a   :  { %v5863_v39 = vmul.f32 %v9995_v38, %v5855_v1 }
0x737c   :  { %v5864_v41 = vmul.f32 %v5863_v39, %v10225_v12 }
0x737e   :  { %v5865_v42 = vadd.f32 %v5864_v41, %v10228_v14 }
0x7380   :  { %9996 = vtanh.f32 %v5865_v42 }
0x738a   :  { %v9997_v44 = vpop.eup %9996 }
0x738b   :  { %8922 = vmatmul.mubr.msk.f32.vlgmr.msra.gmra.mrb[68].mxu0 %vm155_vm4, %v9997_v44 }
0x738c   :  { %9693 = vmatpush3.bf16.msra.mxu0 %v10123_v19  ;;  %8945 = vmatprep.mubr.msk.f32.mxu0 %vm10045_vm2, %v10044_v0 }
0x738d   :  { %9694 = vmatprep.subr.bf16.mxu0 %v10046_v20 }
0x7390   :  { %9696 = vmatpush3.bf16.msra.mxu0 %v10135_v23 }
0x7391   :  { %9697 = vmatprep.subr.bf16.mxu0 %v10046_v20 }
0x7394   :  { %9699 = vmatpush3.bf16.msra.mxu0 %v10145_v26 }
0x7395   :  { %9700 = vmatprep.subr.bf16.mxu0 %v10046_v20 }
0x7398   :  { %9702 = vmatpush3.bf16.msra.mxu0 %v10154_v29 }
0x7399   :  { %8967 = vmatprep.subr.mxu0 %v10044_v0 }
0x745e   :  { %v5936_v45 = vpop.f32.mrb[68].mxu0 }
0x745f   :  { %v11296_v40 = vadd.f32 %v11249_v46, %v5936_v45  ;;  %v8923_v53 = vpop.f32.mrb[69].mxu0 }
0x7461   :  { %v5941_v47 = vadd.f32 %v5940_v4, %v11296_v40  ;;  %v6195_v42 = vadd.f32 %v11296_v40, %v11252_v36 }
0x7463   :  { %v5942_v48 = vmul.f32 0.100000024, %v5941_v47  ;;  %v6196_v44 = vmul.f32 3.0, %v6195_v42 }
0x7465   :  { %v5943_v51 = vadd.f32 %v5942_v48, %v11150_v10  ;;  %v6197_v53 = vadd.f32 %v6196_v44, %v11204_v56 }
0x7467   :  { %8927 = vmatmul.mubr.msk.f32.vlgmr.msra.gmra.mrb[68].mxu1 %vm47_vm1, %v5943_v51 }
0x7468   :  { %9705 = vmatpush3.bf16.msra.mxu1 %v10188_v55  ;;  %8964 = vmatprep.mubr.msk.f32.mxu1 %vm10045_vm2, %v10044_v0 }
0x7469   :  { %9706 = vmatprep.subr.bf16.mxu1 %v10046_v20 }
0x746c   :  { %9708 = vmatpush3.bf16.msra.mxu1 %v10198_v58 }
0x746d   :  { %9709 = vmatprep.subr.bf16.mxu1 %v10046_v20 }
0x7470   :  { %9711 = vmatpush3.bf16.msra.mxu1 %v10208_v61 }
0x7471   :  { %9712 = vmatprep.subr.bf16.mxu1 %v10046_v20 }
0x7474   :  { %9714 = vmatpush3.bf16.msra.mxu1 %v10217_v3 }
0x7475   :  { %9715 = vmatprep.subr.bf16.mxu1 %v10046_v20 }
0x753a   :  { %v6013_v52 = vpop.f32.mrb[68].mxu1 }
0x753b   :  { %v6014_v54 = vadd.f32 %v6013_v52, %v10112_v7  ;;  %v8928_v57 = vpop.f32.mrb[69].mxu1 }
0x753d   :  { %v6017_v50 = vsel %vm125_vm3, %v6014_v54, 0.0 }
0x753e   :  { %6018 = vadd.xlane.f32.xlu0 %v6017_v50 }
0x75cb   :  { %v6019_v18 = vpop.xlane.xlu0 %6018 }
0x75cc   :  { %v6020_v13 = vmul.f32 0.015625, %v6019_v18 }
0x75ce   :  { %v6021_v59 = vsub.f32 %v6014_v54, %v6020_v13 }
0x75d0   :  { %v6022_v60 = vmul.f32 %v6021_v59, %v6021_v59 }
0x75d2   :  { %v6023_v5 = vsel %vm125_vm3, %v6022_v60, 0.0 }
0x75d3   :  { %6024 = vadd.xlane.f32.xlu1 %v6023_v5 }
0x7660   :  { %v6025_v8 = vpop.xlane.xlu1 %6024 }
0x7661   :  { %v6026_v11 = vmul.f32 0.015625, %v6025_v8 }
0x7663   :  { %v6027_v62 = vadd.f32 1e-05, %v6026_v11 }
0x7665   :  { %9998 = vrsqrt.f32 %v6027_v62 }
0x766f   :  { %v9999_v27 = vpop.eup %9998 }
0x7670   :  { %v6029_v16 = vmul.f32 %v9999_v27, %v6021_v59 }
0x7672   :  { %v6030_v63 = vmul.f32 %v6029_v16, %v10162_v35 }
0x7674   :  { %v6031_v15 = vadd.f32 %v6030_v63, %v10165_v37 }
0x7676   :  { %10000 = vtanh.f32 %v6031_v15 }
0x7680   :  { %v10001_v17 = vpop.eup %10000 }
0x7681   :  { %8946 = vmatmul.mubr.msk.f32.vlgmr.msra.gmra.mrb[70].mxu0 %vm155_vm4, %v10001_v17 }
0x7682   :  { %8968 = vmatpush3.msk.msra.mxu0 %vm51_vm0, %v11180_v32  ;;  %8969 = vmatprep.mubr.msk.f32.mxu0 %vm10045_vm2, %v10044_v0 }
0x7683   :  { %9727 = vmatprep.subr.bf16.mxu0 %v10046_v20 }
0x7754   :  { %v6102_v6 = vpop.f32.mrb[70].mxu0 }
0x7755   :  { %v6103_v2 = vadd.f32 %v6102_v6, %v10177_v43  ;;  %v8947_v21 = vpop.f32.mrb[71].mxu0 }
0x7757   :  { %v6106_v22 = vsel %vm125_vm3, %v6103_v2, 0.0 }
0x7758   :  { %6107 = vadd.xlane.f32.xlu0 %v6106_v22 }
0x77e5   :  { %v6108_v24 = vpop.xlane.xlu0 %6107 }
0x77e6   :  { %v6109_v25 = vmul.f32 0.015625, %v6108_v24 }
0x77e8   :  { %v6110_v30 = vsub.f32 %v6103_v2, %v6109_v25 }
0x77ea   :  { %v6111_v9 = vmul.f32 %v6110_v30, %v6110_v30 }
0x77ec   :  { %v6112_v1 = vsel %vm125_vm3, %v6111_v9, 0.0 }
0x77ed   :  { %6113 = vadd.xlane.f32.xlu1 %v6112_v1 }
0x787a   :  { %v6114_v31 = vpop.xlane.xlu1 %6113 }
0x787b   :  { %v6115_v28 = vmul.f32 0.015625, %v6114_v31 }
0x787d   :  { %v6116_v49 = vadd.f32 1e-05, %v6115_v28 }
0x787f   :  { %10002 = vrsqrt.f32 %v6116_v49 }
0x7889   :  { %v10003_v33 = vpop.eup %10002 }
0x788a   :  { %v6118_v34 = vmul.f32 %v10003_v33, %v6110_v30 }
0x788c   :  { %v6119_v38 = vmul.f32 %v6118_v34, %v10225_v12 }
0x788e   :  { %v6120_v39 = vadd.f32 %v6119_v38, %v10228_v14 }
0x7890   :  { %10004 = vtanh.f32 %v6120_v39 }
0x789a   :  { %v10005_v41 = vpop.eup %10004 }
0x789b   :  { %8965 = vmatmul.mubr.msk.f32.vlgmr.msra.gmra.mrb[70].mxu1 %vm155_vm4, %v10005_v41 }
0x789c   :  { %9717 = vmatpush3.bf16.msra.mxu1 %v10123_v19  ;;  %8988 = vmatprep.mubr.msk.f32.mxu1 %vm10045_vm2, %v10044_v0 }
0x789d   :  { %9718 = vmatprep.subr.bf16.mxu1 %v10046_v20 }
0x78a0   :  { %9720 = vmatpush3.bf16.msra.mxu1 %v10135_v23 }
0x78a1   :  { %9721 = vmatprep.subr.bf16.mxu1 %v10046_v20 }
0x78a4   :  { %9723 = vmatpush3.bf16.msra.mxu1 %v10145_v26 }
0x78a5   :  { %9724 = vmatprep.subr.bf16.mxu1 %v10046_v20 }
0x78a8   :  { %9726 = vmatpush3.bf16.msra.mxu1 %v10154_v29 }
0x78a9   :  { %9010 = vmatprep.subr.mxu1 %v10044_v0 }
0x796e   :  { %v6191_v45 = vpop.f32.mrb[70].mxu1 }
0x796f   :  { %v6192_v4 = vadd.f32 %v11249_v46, %v6191_v45  ;;  %v8966_v47 = vpop.f32.mrb[71].mxu1 }
0x7971   :  { %v6198_v48 = vadd.f32 %v6197_v53, %v6192_v4 }
0x7973   :  { %v6199_v51 = vmul.f32 0.012500003, %v6198_v48 }
0x7975   :  { %v11345_v52 = vadd.f32 %v6199_v51, %v11150_v10 }
0x7977   :  { %v7243_v54 = vsub.f32 %v11345_v52, %v11150_v10  ;;  %8970 = vmatmul.mubr.msk.f32.vlgmr.msra.gmra.mrb[72].mxu0 %vm47_vm1, %v11345_v52 }
0x7978   :  { %9729 = vmatpush3.bf16.msra.mxu0 %v10188_v55  ;;  %9007 = vmatprep.mubr.msk.f32.mxu0 %vm10045_vm2, %v10044_v0 }
0x7979   :  { %v7244_v36 = vadd.f32 %v7243_v54, %v11150_v10  ;;  %9730 = vmatprep.subr.bf16.mxu0 %v10046_v20 }
0x797b   :  { %7373 = vst.msk [vmem:[%s11521_s6 + $0xc] sm:$0x3] %vm7221_vm5, %v7244_v36 }
0x797c   :  { %9732 = vmatpush3.bf16.msra.mxu0 %v10198_v58 }
0x797d   :  { %9733 = vmatprep.subr.bf16.mxu0 %v10046_v20 }
0x7980   :  { %9735 = vmatpush3.bf16.msra.mxu0 %v10208_v61 }
0x7981   :  { %9736 = vmatprep.subr.bf16.mxu0 %v10046_v20 }
0x7984   :  { %9738 = vmatpush3.bf16.msra.mxu0 %v10217_v3 }
0x7985   :  { %9739 = vmatprep.subr.bf16.mxu0 %v10046_v20 }
0x7a4a   :  { %v6270_v10 = vpop.f32.mrb[72].mxu0 }
0x7a4b   :  { %v6271_v56 = vadd.f32 %v6270_v10, %v10112_v7  ;;  %v8971_v40 = vpop.f32.mrb[73].mxu0 }
0x7a4d   :  { %v6274_v57 = vsel %vm125_vm3, %v6271_v56, 0.0 }
0x7a4e   :  { %6275 = vadd.xlane.f32.xlu0 %v6274_v57 }
0x7adb   :  { %v6276_v50 = vpop.xlane.xlu0 %6275 }
0x7adc   :  { %v6277_v18 = vmul.f32 0.015625, %v6276_v50 }
0x7ade   :  { %v6278_v13 = vsub.f32 %v6271_v56, %v6277_v18 }
0x7ae0   :  { %v6279_v59 = vmul.f32 %v6278_v13, %v6278_v13 }
0x7ae2   :  { %v6280_v60 = vsel %vm125_vm3, %v6279_v59, 0.0 }
0x7ae3   :  { %6281 = vadd.xlane.f32.xlu1 %v6280_v60 }
0x7b70   :  { %v6282_v5 = vpop.xlane.xlu1 %6281 }
0x7b71   :  { %v6283_v8 = vmul.f32 0.015625, %v6282_v5 }
0x7b73   :  { %v6284_v11 = vadd.f32 1e-05, %v6283_v8 }
0x7b75   :  { %10006 = vrsqrt.f32 %v6284_v11 }
0x7b7f   :  { %v10007_v62 = vpop.eup %10006 }
0x7b80   :  { %v6286_v27 = vmul.f32 %v10007_v62, %v6278_v13 }
0x7b82   :  { %v6287_v16 = vmul.f32 %v6286_v27, %v10162_v35 }
0x7b84   :  { %v6288_v63 = vadd.f32 %v6287_v16, %v10165_v37 }
0x7b86   :  { %10008 = vtanh.f32 %v6288_v63 }
0x7b90   :  { %v10009_v15 = vpop.eup %10008 }
0x7b91   :  { %8989 = vmatmul.mubr.msk.f32.vlgmr.msra.gmra.mrb[72].mxu1 %vm155_vm4, %v10009_v15 }
0x7b92   :  { %9011 = vmatpush3.msk.msra.mxu1 %vm51_vm0, %v11180_v32  ;;  %9012 = vmatprep.mubr.msk.f32.mxu1 %vm10045_vm2, %v10044_v0 }
0x7b93   :  { %9751 = vmatprep.subr.bf16.mxu1 %v10046_v20 }
0x7c64   :  { %v6359_v17 = vpop.f32.mrb[72].mxu1 }
0x7c65   :  { %v6360_v6 = vadd.f32 %v6359_v17, %v10177_v43  ;;  %v8990_v2 = vpop.f32.mrb[73].mxu1 }
0x7c67   :  { %v6363_v21 = vsel %vm125_vm3, %v6360_v6, 0.0 }
0x7c68   :  { %6364 = vadd.xlane.f32.xlu0 %v6363_v21 }
0x7cf5   :  { %v6365_v22 = vpop.xlane.xlu0 %6364 }
0x7cf6   :  { %v6366_v24 = vmul.f32 0.015625, %v6365_v22 }
0x7cf8   :  { %v6367_v25 = vsub.f32 %v6360_v6, %v6366_v24 }
0x7cfa   :  { %v6368_v30 = vmul.f32 %v6367_v25, %v6367_v25 }
0x7cfc   :  { %v6369_v9 = vsel %vm125_vm3, %v6368_v30, 0.0 }
0x7cfd   :  { %6370 = vadd.xlane.f32.xlu1 %v6369_v9 }
0x7d8a   :  { %v6371_v1 = vpop.xlane.xlu1 %6370 }
0x7d8b   :  { %v6372_v31 = vmul.f32 0.015625, %v6371_v1 }
0x7d8d   :  { %v6373_v28 = vadd.f32 1e-05, %v6372_v31 }
0x7d8f   :  { %10010 = vrsqrt.f32 %v6373_v28 }
0x7d99   :  { %v10011_v49 = vpop.eup %10010 }
0x7d9a   :  { %v6375_v33 = vmul.f32 %v10011_v49, %v6367_v25 }
0x7d9c   :  { %v6376_v34 = vmul.f32 %v6375_v33, %v10225_v12 }
0x7d9e   :  { %v6377_v38 = vadd.f32 %v6376_v34, %v10228_v14 }
0x7da0   :  { %10012 = vtanh.f32 %v6377_v38 }
0x7daa   :  { %v10013_v39 = vpop.eup %10012 }
0x7dab   :  { %9008 = vmatmul.mubr.msk.f32.vlgmr.msra.gmra.mrb[74].mxu0 %vm155_vm4, %v10013_v39 }
0x7dac   :  { %9741 = vmatpush3.bf16.msra.mxu0 %v10123_v19  ;;  %9031 = vmatprep.mubr.msk.f32.mxu0 %vm10045_vm2, %v10044_v0 }
0x7dad   :  { %9742 = vmatprep.subr.bf16.mxu0 %v10046_v20 }
0x7db0   :  { %9744 = vmatpush3.bf16.msra.mxu0 %v10135_v23 }
0x7db1   :  { %9745 = vmatprep.subr.bf16.mxu0 %v10046_v20 }
0x7db4   :  { %9747 = vmatpush3.bf16.msra.mxu0 %v10145_v26 }
0x7db5   :  { %9748 = vmatprep.subr.bf16.mxu0 %v10046_v20 }
0x7db8   :  { %9750 = vmatpush3.bf16.msra.mxu0 %v10154_v29 }
0x7db9   :  { %9053 = vmatprep.subr.mxu0 %v10044_v0 }
0x7e7e   :  { %v6448_v41 = vpop.f32.mrb[74].mxu0 }
0x7e7f   :  { %v11394_v42 = vadd.f32 %v11249_v46, %v6448_v41  ;;  %v9009_v44 = vpop.f32.mrb[75].mxu0 }
0x7e81   :  { %v6452_v45 = vmul.f32 0.03333332, %v11394_v42  ;;  %v6705_v33 = vmul.f32 0.33333334, %v11394_v42 }
0x7e83   :  { %v6453_v4 = vadd.f32 %v6452_v45, %v11345_v52 }
0x7e85   :  { %9013 = vmatmul.mubr.msk.f32.vlgmr.msra.gmra.mrb[74].mxu1 %vm47_vm1, %v6453_v4 }
0x7e86   :  { %9753 = vmatpush3.bf16.msra.mxu1 %v10188_v55  ;;  %9050 = vmatprep.mubr.msk.f32.mxu1 %vm10045_vm2, %v10044_v0 }
0x7e87   :  { %9754 = vmatprep.subr.bf16.mxu1 %v10046_v20 }
0x7e8a   :  { %9756 = vmatpush3.bf16.msra.mxu1 %v10198_v58 }
0x7e8b   :  { %9757 = vmatprep.subr.bf16.mxu1 %v10046_v20 }
0x7e8e   :  { %9759 = vmatpush3.bf16.msra.mxu1 %v10208_v61 }
0x7e8f   :  { %9760 = vmatprep.subr.bf16.mxu1 %v10046_v20 }
0x7e92   :  { %9762 = vmatpush3.bf16.msra.mxu1 %v10217_v3 }
0x7e93   :  { %9763 = vmatprep.subr.bf16.mxu1 %v10046_v20 }
0x7f58   :  { %v6523_v53 = vpop.f32.mrb[74].mxu1 }
0x7f59   :  { %v6524_v47 = vadd.f32 %v6523_v53, %v10112_v7  ;;  %v9014_v48 = vpop.f32.mrb[75].mxu1 }
0x7f5b   :  { %v6527_v51 = vsel %vm125_vm3, %v6524_v47, 0.0 }
0x7f5c   :  { %6528 = vadd.xlane.f32.xlu0 %v6527_v51 }
0x7fe9   :  { %v6529_v54 = vpop.xlane.xlu0 %6528 }
0x7fea   :  { %v6530_v36 = vmul.f32 0.015625, %v6529_v54 }
0x7fec   :  { %v6531_v10 = vsub.f32 %v6524_v47, %v6530_v36 }
0x7fee   :  { %v6532_v56 = vmul.f32 %v6531_v10, %v6531_v10 }
0x7ff0   :  { %v6533_v40 = vsel %vm125_vm3, %v6532_v56, 0.0 }
0x7ff1   :  { %6534 = vadd.xlane.f32.xlu1 %v6533_v40 }
0x807e   :  { %v6535_v57 = vpop.xlane.xlu1 %6534 }
0x807f   :  { %v6536_v50 = vmul.f32 0.015625, %v6535_v57 }
0x8081   :  { %v6537_v18 = vadd.f32 1e-05, %v6536_v50 }
0x8083   :  { %10014 = vrsqrt.f32 %v6537_v18 }
0x808d   :  { %v10015_v13 = vpop.eup %10014 }
0x808e   :  { %v6539_v59 = vmul.f32 %v10015_v13, %v6531_v10 }
0x8090   :  { %v6540_v60 = vmul.f32 %v6539_v59, %v10162_v35 }
0x8092   :  { %v6541_v5 = vadd.f32 %v6540_v60, %v10165_v37 }
0x8094   :  { %10016 = vtanh.f32 %v6541_v5 }
0x809e   :  { %v10017_v8 = vpop.eup %10016 }
0x809f   :  { %9032 = vmatmul.mubr.msk.f32.vlgmr.msra.gmra.mrb[76].mxu0 %vm155_vm4, %v10017_v8 }
0x80a0   :  { %9054 = vmatpush3.msk.msra.mxu0 %vm51_vm0, %v11180_v32  ;;  %9055 = vmatprep.mubr.msk.f32.mxu0 %vm10045_vm2, %v10044_v0 }
0x80a1   :  { %9775 = vmatprep.subr.bf16.mxu0 %v10046_v20 }
0x8172   :  { %v6612_v11 = vpop.f32.mrb[76].mxu0 }
0x8173   :  { %v6613_v62 = vadd.f32 %v6612_v11, %v10177_v43  ;;  %v9033_v27 = vpop.f32.mrb[77].mxu0 }
0x8175   :  { %v6616_v16 = vsel %vm125_vm3, %v6613_v62, 0.0 }
0x8176   :  { %6617 = vadd.xlane.f32.xlu0 %v6616_v16 }
0x8203   :  { %v6618_v63 = vpop.xlane.xlu0 %6617 }
0x8204   :  { %v6619_v15 = vmul.f32 0.015625, %v6618_v63 }
0x8206   :  { %v6620_v17 = vsub.f32 %v6613_v62, %v6619_v15 }
0x8208   :  { %v6621_v6 = vmul.f32 %v6620_v17, %v6620_v17 }
0x820a   :  { %v6622_v2 = vsel %vm125_vm3, %v6621_v6, 0.0 }
0x820b   :  { %6623 = vadd.xlane.f32.xlu1 %v6622_v2 }
0x8298   :  { %v6624_v21 = vpop.xlane.xlu1 %6623 }
0x8299   :  { %v6625_v22 = vmul.f32 0.015625, %v6624_v21 }
0x829b   :  { %v6626_v24 = vadd.f32 1e-05, %v6625_v22 }
0x829d   :  { %10018 = vrsqrt.f32 %v6626_v24 }
0x82a7   :  { %v10019_v25 = vpop.eup %10018 }
0x82a8   :  { %v6628_v30 = vmul.f32 %v10019_v25, %v6620_v17 }
0x82aa   :  { %v6629_v9 = vmul.f32 %v6628_v30, %v10225_v12 }
0x82ac   :  { %v6630_v1 = vadd.f32 %v6629_v9, %v10228_v14 }
0x82ae   :  { %10020 = vtanh.f32 %v6630_v1 }
0x82b8   :  { %v10021_v31 = vpop.eup %10020 }
0x82b9   :  { %9051 = vmatmul.mubr.msk.f32.vlgmr.msra.gmra.mrb[76].mxu1 %vm155_vm4, %v10021_v31 }
0x82ba   :  { %9765 = vmatpush3.bf16.msra.mxu1 %v10123_v19  ;;  %9074 = vmatprep.mubr.msk.f32.mxu1 %vm10045_vm2, %v10044_v0 }
0x82bb   :  { %9766 = vmatprep.subr.bf16.mxu1 %v10046_v20 }
0x82be   :  { %9768 = vmatpush3.bf16.msra.mxu1 %v10135_v23 }
0x82bf   :  { %9769 = vmatprep.subr.bf16.mxu1 %v10046_v20 }
0x82c2   :  { %9771 = vmatpush3.bf16.msra.mxu1 %v10145_v26 }
0x82c3   :  { %9772 = vmatprep.subr.bf16.mxu1 %v10046_v20 }
0x82c6   :  { %9774 = vmatpush3.bf16.msra.mxu1 %v10154_v29 }
0x82c7   :  { %9096 = vmatprep.subr.mxu1 %v10044_v0 }
0x838c   :  { %v6701_v28 = vpop.f32.mrb[76].mxu1 }
0x838d   :  { %v11437_v49 = vadd.f32 %v11249_v46, %v6701_v28  ;;  %v9052_v34 = vpop.f32.mrb[77].mxu1 }
0x838f   :  { %v6706_v38 = vsub.f32 %v11437_v49, %v6705_v33 }
0x8391   :  { %v6707_v39 = vmul.f32 0.099999964, %v6706_v38 }
0x8393   :  { %v6708_v41 = vadd.f32 %v6707_v39, %v11345_v52 }
0x8395   :  { %9056 = vmatmul.mubr.msk.f32.vlgmr.msra.gmra.mrb[78].mxu0 %vm47_vm1, %v6708_v41 }
0x8396   :  { %9777 = vmatpush3.bf16.msra.mxu0 %v10188_v55  ;;  %9093 = vmatprep.mubr.msk.f32.mxu0 %vm10045_vm2, %v10044_v0 }
0x8397   :  { %9778 = vmatprep.subr.bf16.mxu0 %v10046_v20 }
0x839a   :  { %9780 = vmatpush3.bf16.msra.mxu0 %v10198_v58 }
0x839b   :  { %9781 = vmatprep.subr.bf16.mxu0 %v10046_v20 }
0x839e   :  { %9783 = vmatpush3.bf16.msra.mxu0 %v10208_v61 }
0x839f   :  { %9784 = vmatprep.subr.bf16.mxu0 %v10046_v20 }
0x83a2   :  { %9786 = vmatpush3.bf16.msra.mxu0 %v10217_v3 }
0x83a3   :  { %9787 = vmatprep.subr.bf16.mxu0 %v10046_v20 }
0x8468   :  { %v6778_v44 = vpop.f32.mrb[78].mxu0 }
0x8469   :  { %v6779_v45 = vadd.f32 %v6778_v44, %v10112_v7  ;;  %v9057_v4 = vpop.f32.mrb[79].mxu0 }
0x846b   :  { %v6782_v53 = vsel %vm125_vm3, %v6779_v45, 0.0 }
0x846c   :  { %6783 = vadd.xlane.f32.xlu0 %v6782_v53 }
0x84f9   :  { %v6784_v47 = vpop.xlane.xlu0 %6783 }
0x84fa   :  { %v6785_v48 = vmul.f32 0.015625, %v6784_v47 }
0x84fc   :  { %v6786_v51 = vsub.f32 %v6779_v45, %v6785_v48 }
0x84fe   :  { %v6787_v54 = vmul.f32 %v6786_v51, %v6786_v51 }
0x8500   :  { %v6788_v36 = vsel %vm125_vm3, %v6787_v54, 0.0 }
0x8501   :  { %6789 = vadd.xlane.f32.xlu1 %v6788_v36 }
0x858e   :  { %v6790_v10 = vpop.xlane.xlu1 %6789 }
0x858f   :  { %v6791_v56 = vmul.f32 0.015625, %v6790_v10 }
0x8591   :  { %v6792_v40 = vadd.f32 1e-05, %v6791_v56 }
0x8593   :  { %10022 = vrsqrt.f32 %v6792_v40 }
0x859d   :  { %v10023_v57 = vpop.eup %10022 }
0x859e   :  { %v6794_v50 = vmul.f32 %v10023_v57, %v6786_v51 }
0x85a0   :  { %v6795_v18 = vmul.f32 %v6794_v50, %v10162_v35 }
0x85a2   :  { %v6796_v13 = vadd.f32 %v6795_v18, %v10165_v37 }
0x85a4   :  { %10024 = vtanh.f32 %v6796_v13 }
0x85ae   :  { %v10025_v59 = vpop.eup %10024 }
0x85af   :  { %9075 = vmatmul.mubr.msk.f32.vlgmr.msra.gmra.mrb[78].mxu1 %vm155_vm4, %v10025_v59 }
0x85b0   :  { %9097 = vmatpush3.msk.msra.mxu1 %vm51_vm0, %v11180_v32  ;;  %9098 = vmatprep.mubr.msk.f32.mxu1 %vm10045_vm2, %v10044_v0 }
0x85b1   :  { %9799 = vmatprep.subr.bf16.mxu1 %v10046_v20 }
0x8682   :  { %v6867_v60 = vpop.f32.mrb[78].mxu1 }
0x8683   :  { %v6868_v5 = vadd.f32 %v6867_v60, %v10177_v43  ;;  %v9076_v8 = vpop.f32.mrb[79].mxu1 }
0x8685   :  { %v6871_v11 = vsel %vm125_vm3, %v6868_v5, 0.0 }
0x8686   :  { %6872 = vadd.xlane.f32.xlu0 %v6871_v11 }
0x8713   :  { %v6873_v62 = vpop.xlane.xlu0 %6872 }
0x8714   :  { %v6874_v27 = vmul.f32 0.015625, %v6873_v62 }
0x8716   :  { %v6875_v16 = vsub.f32 %v6868_v5, %v6874_v27 }
0x8718   :  { %v6876_v63 = vmul.f32 %v6875_v16, %v6875_v16 }
0x871a   :  { %v6877_v15 = vsel %vm125_vm3, %v6876_v63, 0.0 }
0x871b   :  { %6878 = vadd.xlane.f32.xlu1 %v6877_v15 }
0x87a8   :  { %v6879_v32 = vpop.xlane.xlu1 %6878 }
0x87a9   :  { %v6880_v17 = vmul.f32 0.015625, %v6879_v32 }
0x87ab   :  { %v6881_v6 = vadd.f32 1e-05, %v6880_v17 }
0x87ad   :  { %10026 = vrsqrt.f32 %v6881_v6 }
0x87b7   :  { %v10027_v2 = vpop.eup %10026 }
0x87b8   :  { %v6883_v21 = vmul.f32 %v10027_v2, %v6875_v16 }
0x87ba   :  { %v6884_v22 = vmul.f32 %v6883_v21, %v10225_v12 }
0x87bc   :  { %v6885_v24 = vadd.f32 %v6884_v22, %v10228_v14 }
0x87be   :  { %10028 = vtanh.f32 %v6885_v24 }
0x87c8   :  { %v10029_v25 = vpop.eup %10028 }
0x87c9   :  { %9094 = vmatmul.mubr.msk.f32.vlgmr.msra.gmra.mrb[80].mxu0 %vm155_vm4, %v10029_v25 }
0x87ca   :  { %9789 = vmatpush3.bf16.msra.mxu0 %v10123_v19  ;;  %9117 = vmatprep.mubr.msk.f32.mxu0 %vm10045_vm2, %v10044_v0  ;;  %v6960_v19 = vsub.f32 %v11394_v42, %v11437_v49 }
0x87cb   :  { %9790 = vmatprep.subr.bf16.mxu0 %v10046_v20 }
0x87ce   :  { %9792 = vmatpush3.bf16.msra.mxu0 %v10135_v23 }
0x87cf   :  { %9793 = vmatprep.subr.bf16.mxu0 %v10046_v20 }
0x87d2   :  { %9795 = vmatpush3.bf16.msra.mxu0 %v10145_v26 }
0x87d3   :  { %9796 = vmatprep.subr.bf16.mxu0 %v10046_v20 }
0x87d6   :  { %9798 = vmatpush3.bf16.msra.mxu0 %v10154_v29 }
0x889c   :  { %v6956_v30 = vpop.f32.mrb[80].mxu0 }
0x889d   :  { %v6957_v9 = vadd.f32 %v11249_v46, %v6956_v30  ;;  %v9095_v1 = vpop.f32.mrb[81].mxu0 }
0x889f   :  { %v6961_v31 = vadd.f32 %v6960_v19, %v6957_v9  ;;  %v7215_v60 = vadd.f32 %v6957_v9, %v11437_v49 }
0x88a1   :  { %v6962_v28 = vmul.f32 0.099999964, %v6961_v31  ;;  %v7216_v5 = vmul.f32 3.0, %v7215_v60 }
0x88a3   :  { %v6963_v33 = vadd.f32 %v6962_v28, %v11345_v52  ;;  %v7217_v62 = vadd.f32 %v7216_v5, %v11394_v42 }
0x88a5   :  { %9099 = vmatmul.mubr.msk.f32.vlgmr.msra.gmra.mrb[80].mxu1 %vm47_vm1, %v6963_v33 }
0x88a6   :  { %9801 = vmatpush3.bf16.msra.mxu1 %v10188_v55  ;;  %9136 = vmatprep.mubr.msk.f32.mxu1 %vm10045_vm2, %v10044_v0 }
0x88a7   :  { %9802 = vmatprep.subr.bf16.mxu1 %v10046_v20 }
0x88aa   :  { %9804 = vmatpush3.bf16.msra.mxu1 %v10198_v58 }
0x88ab   :  { %9805 = vmatprep.subr.bf16.mxu1 %v10046_v20 }
0x88ae   :  { %9807 = vmatpush3.bf16.msra.mxu1 %v10208_v61 }
0x88af   :  { %9808 = vmatprep.subr.bf16.mxu1 %v10046_v20 }
0x88b2   :  { %9810 = vmatpush3.bf16.msra.mxu1 %v10217_v3 }
0x8978   :  { %v7033_v23 = vpop.f32.mrb[80].mxu1 }
0x8979   :  { %v7034_v26 = vadd.f32 %v7033_v23, %v10112_v7  ;;  %v9100_v29 = vpop.f32.mrb[81].mxu1 }
0x897b   :  { %v7037_v55 = vsel %vm125_vm3, %v7034_v26, 0.0 }
0x897c   :  { %7038 = vadd.xlane.f32.xlu0 %v7037_v55 }
0x8a09   :  { %v7039_v0 = vpop.xlane.xlu0 %7038 }
0x8a0a   :  { %v7040_v34 = vmul.f32 0.015625, %v7039_v0 }
0x8a0c   :  { %v7041_v38 = vsub.f32 %v7034_v26, %v7040_v34 }
0x8a0e   :  { %v7042_v39 = vmul.f32 %v7041_v38, %v7041_v38 }
0x8a10   :  { %v7043_v58 = vsel %vm125_vm3, %v7042_v39, 0.0 }
0x8a11   :  { %7044 = vadd.xlane.f32.xlu1 %v7043_v58 }
0x8a9e   :  { %v7045_v41 = vpop.xlane.xlu1 %7044 }
0x8a9f   :  { %v7046_v61 = vmul.f32 0.015625, %v7045_v41 }
0x8aa1   :  { %v7047_v44 = vadd.f32 1e-05, %v7046_v61 }
0x8aa3   :  { %10030 = vrsqrt.f32 %v7047_v44 }
0x8aad   :  { %v10031_v20 = vpop.eup %10030 }
0x8aae   :  { %v7049_v3 = vmul.f32 %v10031_v20, %v7041_v38 }
0x8ab0   :  { %v7050_v45 = vmul.f32 %v7049_v3, %v10162_v35 }
0x8ab2   :  { %v7051_v7 = vadd.f32 %v7050_v45, %v10165_v37 }
0x8ab4   :  { %10032 = vtanh.f32 %v7051_v7 }
0x8abe   :  { %v10033_v4 = vpop.eup %10032 }
0x8abf   :  { %9118 = vmatmul.mubr.msk.f32.vlgmr.msra.gmra.mrb[82].mxu0 %vm155_vm4, %v10033_v4 }
0x8b92   :  { %v7122_v53 = vpop.f32.mrb[82].mxu0 }
0x8b93   :  { %v7123_v47 = vadd.f32 %v7122_v53, %v10177_v43  ;;  %v9119_v48 = vpop.f32.mrb[83].mxu0 }
0x8b95   :  { %v7126_v51 = vsel %vm125_vm3, %v7123_v47, 0.0 }
0x8b96   :  { %7127 = vadd.xlane.f32.xlu0 %v7126_v51 }
0x8c23   :  { %v7128_v54 = vpop.xlane.xlu0 %7127 }
0x8c24   :  { %v7129_v36 = vmul.f32 0.015625, %v7128_v54 }
0x8c26   :  { %v7130_v10 = vsub.f32 %v7123_v47, %v7129_v36 }
0x8c28   :  { %v7131_v56 = vmul.f32 %v7130_v10, %v7130_v10 }
0x8c2a   :  { %v7132_v40 = vsel %vm125_vm3, %v7131_v56, 0.0 }
0x8c2b   :  { %7133 = vadd.xlane.f32.xlu1 %v7132_v40 }
0x8cb8   :  { %v7134_v35 = vpop.xlane.xlu1 %7133 }
0x8cb9   :  { %v7135_v37 = vmul.f32 0.015625, %v7134_v35 }
0x8cbb   :  { %v7136_v57 = vadd.f32 1e-05, %v7135_v37 }
0x8cbd   :  { %10034 = vrsqrt.f32 %v7136_v57 }
0x8cc7   :  { %v10035_v50 = vpop.eup %10034 }
0x8cc8   :  { %v7138_v18 = vmul.f32 %v10035_v50, %v7130_v10 }
0x8cca   :  { %v7139_v13 = vmul.f32 %v7138_v18, %v10225_v12 }
0x8ccc   :  { %v7140_v43 = vadd.f32 %v7139_v13, %v10228_v14 }
0x8cce   :  { %10036 = vtanh.f32 %v7140_v43 }
0x8cd8   :  { %v10037_v59 = vpop.eup %10036 }
0x8cd9   :  { %9137 = vmatmul.mubr.msk.f32.vlgmr.msra.gmra.mrb[82].mxu1 %vm155_vm4, %v10037_v59 }
0x8dac   :  { %v7211_v8 = vpop.f32.mrb[82].mxu1 }
0x8dad   :  { %v7212_v11 = vadd.f32 %v11249_v46, %v7211_v8  ;;  %v9138_v27 = vpop.f32.mrb[83].mxu1 }
0x8daf   :  { %v7218_v16 = vadd.f32 %v7217_v62, %v7212_v11 }
0x8db1   :  { %v7219_v63 = vmul.f32 0.0124999955, %v7218_v16 }
0x8db3   :  { %v7220_v15 = vadd.f32 %v7219_v63, %v11345_v52 }
0x8db5   :  { %v7247_v12 = vsub.f32 %v7220_v15, %v11345_v52 }
0x8db7   :  { %v7248_v14 = vadd.f32 %v7247_v12, %v11345_v52 }
0x8db9   :  { %7374 = vst.msk [vmem:[%s11521_s6 + $0xe] sm:$0x3] %vm7221_vm5, %v7248_v14 }

</bundles_post_ra>
